<compile_context>
chip_gen: v5e
topology: v5e:2x2
jax: 0.10.0
libtpu: 0.0.40
codegen_flags: <defaults>
</compile_context>

<pallas_src>
import jax
import jax.numpy as jnp
from jax.experimental import pallas as pl
from jax.experimental.pallas import tpu as pltpu

LANE = 128      # vreg lane count: per-gate padding granularity
SUBLANE = 8     # f32 sublane count: batch padding granularity


def _round_up(x, m):
    return ((x + m - 1) // m) * m


# ------------------------------ fused forward kernel ------------------------------

def _fused_kernel(
    x_ref,                       # (T*Bp, Din)
    wie_ref, whe_ref, be_ref,    # encoder:  (Din, 4*Hp1), (Hp1, 4*Hp1), (1, 4*Hp1)
    wil_ref, whl_ref, bl_ref,    # latent :  (Hp1, 4*Hp2), (Hp2, 4*Hp2), (1, 4*Hp2)
    wid_ref, whd_ref, bd_ref,    # decoder:  (Hp2, 4*Hp1), (Hp1, 4*Hp1), (1, 4*Hp1)
    wo_ref, bo_ref,              # output linear: (Hp1, Dout_p), (1, Dout_p)
    out_ref,                     # (T*Bp, Dout_p)
    proj_e, proj_l, proj_d,      # hoisted x@W_ih + b projections  (T*Bp, 4*Hp)
    seq_e, seq_l, seq_d,         # per-layer hidden sequences      (T*Bp, Hp)
    h1, c1, h2, c2,              # recurrent state scratch         (Bp, Hp)
):
    Bp = h1.shape[0]
    T = x_ref.shape[0] // Bp

    def run_layer(proj_ref, w_hh_ref, seq_ref, h_ref, c_ref):
        Hp = h_ref.shape[1]
        h_ref[...] = jnp.zeros_like(h_ref)
        c_ref[...] = jnp.zeros_like(c_ref)
        w_hh = w_hh_ref[...]     # hoisted: resident (Hp, 4*Hp) operand for the loop

        def step(t, carry):
            row = pl.multiple_of(t * Bp, Bp)
            gates = proj_ref[pl.ds(row, Bp), :] + jnp.dot(
                h_ref[...], w_hh, preferred_element_type=jnp.float32)
            # PyTorch gate order (i, f, g, o); each gate is one lane-aligned block.
            i_g = jax.nn.sigmoid(gates[:, 0 * Hp:1 * Hp])
            f_g = jax.nn.sigmoid(gates[:, 1 * Hp:2 * Hp])
            g_g = jnp.tanh(gates[:, 2 * Hp:3 * Hp])
            o_g = jax.nn.sigmoid(gates[:, 3 * Hp:4 * Hp])
            c_new = f_g * c_ref[...] + i_g * g_g
            h_new = o_g * jnp.tanh(c_new)
            c_ref[...] = c_new
            h_ref[...] = h_new
            seq_ref[pl.ds(row, Bp), :] = h_new
            return carry

        jax.lax.fori_loop(0, T, step, 0, unroll=True)

    # ---- encoder: hoisted input projection as one big MXU matmul ----
    proj_e[...] = jnp.dot(x_ref[...], wie_ref[...],
                          preferred_element_type=jnp.float32) + be_ref[...]
    run_layer(proj_e, whe_ref, seq_e, h1, c1)

    # ---- latent ----
    proj_l[...] = jnp.dot(seq_e[...], wil_ref[...],
                          preferred_element_type=jnp.float32) + bl_ref[...]
    run_layer(proj_l, whl_ref, seq_l, h2, c2)

    # ---- decoder ----
    proj_d[...] = jnp.dot(seq_l[...], wid_ref[...],
                          preferred_element_type=jnp.float32) + bd_ref[...]
    run_layer(proj_d, whd_ref, seq_d, h1, c1)

    # ---- output linear: one matmul, lane-dense padded output slab ----
    out_ref[...] = jnp.dot(seq_d[...], wo_ref[...],
                           preferred_element_type=jnp.float32) + bo_ref[...]


def _fused_forward(x_flat, kp, T, Bp):
    Hp1 = kp["w_hh_enc"].shape[0]
    Hp2 = kp["w_hh_lat"].shape[0]
    Dout_p = kp["w_out"].shape[1]
    TB = T * Bp
    f32 = jnp.float32
    scratch_shapes = [
        pltpu.VMEM((TB, 4 * Hp1), f32),   # proj_e
        pltpu.VMEM((TB, 4 * Hp2), f32),   # proj_l
        pltpu.VMEM((TB, 4 * Hp1), f32),   # proj_d
        pltpu.VMEM((TB, Hp1), f32),       # seq_e
        pltpu.VMEM((TB, Hp2), f32),       # seq_l
        pltpu.VMEM((TB, Hp1), f32),       # seq_d
        pltpu.VMEM((Bp, Hp1), f32),       # h (encoder / decoder)
        pltpu.VMEM((Bp, Hp1), f32),       # c (encoder / decoder)
        pltpu.VMEM((Bp, Hp2), f32),       # h (latent)
        pltpu.VMEM((Bp, Hp2), f32),       # c (latent)
    ]
    # Whole arrays map to VMEM (no grid): weights + scratch total ~2 MiB here.
    return pl.pallas_call(
        _fused_kernel,
        out_shape=jax.ShapeDtypeStruct((TB, Dout_p), f32),
        scratch_shapes=scratch_shapes,
    )(
        x_flat,
        kp["w_ih_enc"], kp["w_hh_enc"], kp["b_enc"],
        kp["w_ih_lat"], kp["w_hh_lat"], kp["b_lat"],
        kp["w_ih_dec"], kp["w_hh_dec"], kp["b_dec"],
        kp["w_out"], kp["b_out"],
    )


def lstm_autoencoder_forward(x, kp):
    """x: (B, T, input_dim) batch-first, like the PyTorch module."""
    B, T, Din = x.shape
    Bp = _round_up(max(B, SUBLANE), SUBLANE)
    # time-major, zero-pad batch to the sublane count, flatten to (T*Bp, Din)
    x_tm = jnp.swapaxes(x, 0, 1)
    x_tm = jnp.pad(x_tm, ((0, 0), (0, Bp - B), (0, 0)))
    x_flat = x_tm.reshape(T * Bp, Din)

    out_p = _fused_forward(x_flat, kp, T, Bp)           # (T*Bp, Dout_p)
    Dout = kp["dout"]
    out = out_p.reshape(T, Bp, -1)[:, :B, :Dout]        # drop batch + lane padding
    return jnp.swapaxes(out, 0, 1)                      # back to (B, T, input_dim)


# ----------------------------- parameter construction -----------------------------

def _init_lstm_params(key, input_dim, hidden_dim):
    """PyTorch-style init: U(-1/sqrt(H), 1/sqrt(H)), PyTorch weight layouts."""
    k = 1.0 / jnp.sqrt(hidden_dim)
    k1, k2, k3, k4 = jax.random.split(key, 4)
    return {
        "w_ih": jax.random.uniform(k1, (4 * hidden_dim, input_dim), jnp.float32, -k, k),
        "w_hh": jax.random.uniform(k2, (4 * hidden_dim, hidden_dim), jnp.float32, -k, k),
        "b_ih": jax.random.uniform(k3, (4 * hidden_dim,), jnp.float32, -k, k),
        "b_hh": jax.random.uniform(k4, (4 * hidden_dim,), jnp.float32, -k, k),
    }


def _init_linear_params(key, in_features, out_features):
    k = 1.0 / jnp.sqrt(in_features)
    k1, k2 = jax.random.split(key)
    return {
        "w": jax.random.uniform(k1, (out_features, in_features), jnp.float32, -k, k),
        "b": jax.random.uniform(k2, (out_features,), jnp.float32, -k, k),
    }


def init_params(key, input_dim, hidden_dim, latent_dim):
    ks = jax.random.split(key, 4)
    return {
        "encoder": _init_lstm_params(ks[0], input_dim, hidden_dim),
        "latent": _init_lstm_params(ks[1], hidden_dim, latent_dim),
        "decoder": _init_lstm_params(ks[2], latent_dim, hidden_dim),
        "out": _init_linear_params(ks[3], hidden_dim, input_dim),
    }


def _pad_lstm_layer(p, d_in, d_in_p, H, Hp):
    """Repack PyTorch LSTM weights into lane-aligned padded kernel layout.

    Kernel layout: W_ih (d_in_p, 4*Hp), W_hh (Hp, 4*Hp), b (1, 4*Hp).  Each gate
    (i, f, g, o) occupies one contiguous 128-multiple lane block; real values in the
    first H lanes of the block, zeros elsewhere (zero padding keeps padded state 0).
    """
    b = p["b_ih"] + p["b_hh"]
    w_ih_k = jnp.zeros((d_in_p, 4 * Hp), jnp.float32)
    w_hh_k = jnp.zeros((Hp, 4 * Hp), jnp.float32)
    b_k = jnp.zeros((1, 4 * Hp), jnp.float32)
    for g in range(4):
        w_ih_k = w_ih_k.at[:d_in, g * Hp:g * Hp + H].set(p["w_ih"][g * H:(g + 1) * H, :].T)
        w_hh_k = w_hh_k.at[:H, g * Hp:g * Hp + H].set(p["w_hh"][g * H:(g + 1) * H, :].T)
        b_k = b_k.at[0, g * Hp:g * Hp + H].set(b[g * H:(g + 1) * H])
    return w_ih_k, w_hh_k, b_k


def prepare_kernel_params(params, input_dim, hidden_dim, latent_dim):
    Hp1 = _round_up(hidden_dim, LANE)
    Hp2 = _round_up(latent_dim, LANE)
    Dout_p = _round_up(input_dim, LANE)

    wie, whe, be = _pad_lstm_layer(params["encoder"], input_dim, input_dim, hidden_dim, Hp1)
    wil, whl, bl = _pad_lstm_layer(params["latent"], hidden_dim, Hp1, latent_dim, Hp2)
    wid, whd, bd = _pad_lstm_layer(params["decoder"], latent_dim, Hp2, hidden_dim, Hp1)

    wo = jnp.zeros((Hp1, Dout_p), jnp.float32).at[:hidden_dim, :input_dim].set(
        params["out"]["w"].T)
    bo = jnp.zeros((1, Dout_p), jnp.float32).at[0, :input_dim].set(params["out"]["b"])

    return {
        "w_ih_enc": wie, "w_hh_enc": whe, "b_enc": be,
        "w_ih_lat": wil, "w_hh_lat": whl, "b_lat": bl,
        "w_ih_dec": wid, "w_hh_dec": whd, "b_dec": bd,
        "w_out": wo, "b_out": bo,
        "dout": input_dim,
    }


# ------------------------------- pure-JAX reference -------------------------------

def _lstm_ref(x, p):
    B, T, _ = x.shape
    H = p["w_hh"].shape[1]

    def step(carry, x_t):
        h, c = carry
        gates = x_t @ p["w_ih"].T + p["b_ih"] + h @ p["w_hh"].T + p["b_hh"]
        i, f, g, o = jnp.split(gates, 4, axis=-1)
        i, f, o = jax.nn.sigmoid(i), jax.nn.sigmoid(f), jax.nn.sigmoid(o)
        g = jnp.tanh(g)
        c = f * c + i * g
        h = o * jnp.tanh(c)
        return (h, c), h

    carry0 = (jnp.zeros((B, H), jnp.float32), jnp.zeros((B, H), jnp.float32))
    _, hs = jax.lax.scan(step, carry0, jnp.swapaxes(x, 0, 1))
    return jnp.swapaxes(hs, 0, 1)


def _forward_ref(x, params):
    h = x
    for name in ("encoder", "latent", "decoder"):
        h = _lstm_ref(h, params[name])
    return h @ params["out"]["w"].T + params["out"]["b"]


# -------------------------------------- main --------------------------------------

if __name__ == "__main__":
    B, T = 2, 8
    input_dim, hidden_dim, latent_dim = 8, 32, 16

    key = jax.random.PRNGKey(0)
    kx, kp_key = jax.random.split(key)
    x = jax.random.normal(kx, (B, T, input_dim), jnp.float32)

    params = init_params(kp_key, input_dim, hidden_dim, latent_dim)
    kparams = prepare_kernel_params(params, input_dim, hidden_dim, latent_dim)

    out = lstm_autoencoder_forward(x, kparams)
    out = jax.block_until_ready(out)

    ref = _forward_ref(x, params)
    assert out.shape == (B, T, input_dim), out.shape
    assert jnp.allclose(out, ref, atol=1e-4, rtol=1e-4), (
        float(jnp.max(jnp.abs(out - ref)))
    )
    print("KERNEL_OK")
</pallas_src>

<mosaic_0001>
module attributes {stable_mosaic.version = 11 : i64} {
  func.func @_fused_kernel(%arg0: memref<64x8xf32, #tpu.memory_space<vmem>>, %arg1: memref<8x512xf32, #tpu.memory_space<vmem>>, %arg2: memref<128x512xf32, #tpu.memory_space<vmem>>, %arg3: memref<1x512xf32, #tpu.memory_space<vmem>>, %arg4: memref<128x512xf32, #tpu.memory_space<vmem>>, %arg5: memref<128x512xf32, #tpu.memory_space<vmem>>, %arg6: memref<1x512xf32, #tpu.memory_space<vmem>>, %arg7: memref<128x512xf32, #tpu.memory_space<vmem>>, %arg8: memref<128x512xf32, #tpu.memory_space<vmem>>, %arg9: memref<1x512xf32, #tpu.memory_space<vmem>>, %arg10: memref<128x128xf32, #tpu.memory_space<vmem>>, %arg11: memref<1x128xf32, #tpu.memory_space<vmem>>, %arg12: memref<64x128xf32, #tpu.memory_space<vmem>>, %arg13: memref<64x512xf32, #tpu.memory_space<vmem>>, %arg14: memref<64x512xf32, #tpu.memory_space<vmem>>, %arg15: memref<64x512xf32, #tpu.memory_space<vmem>>, %arg16: memref<64x128xf32, #tpu.memory_space<vmem>>, %arg17: memref<64x128xf32, #tpu.memory_space<vmem>>, %arg18: memref<64x128xf32, #tpu.memory_space<vmem>>, %arg19: memref<8x128xf32, #tpu.memory_space<vmem>>, %arg20: memref<8x128xf32, #tpu.memory_space<vmem>>, %arg21: memref<8x128xf32, #tpu.memory_space<vmem>>, %arg22: memref<8x128xf32, #tpu.memory_space<vmem>>) attributes {dimension_semantics = [], scalar_prefetch = 0 : i64, scratch_operands = 10 : i64, tpu.core_type = #tpu.core_type<tc>} {
    %c0 = arith.constant 0 : index
    %c0_0 = arith.constant 0 : index
    %0 = vector.load %arg0[%c0, %c0_0] : memref<64x8xf32, #tpu.memory_space<vmem>>, vector<64x8xf32>
    %c0_1 = arith.constant 0 : index
    %c0_2 = arith.constant 0 : index
    %1 = vector.load %arg1[%c0_1, %c0_2] : memref<8x512xf32, #tpu.memory_space<vmem>>, vector<8x512xf32>
    %cst = arith.constant dense<0.000000e+00> : vector<64x512xf32>
    %2 = tpu.matmul %0, %1, %cst {dimension_numbers = #tpu.dot_dimension_numbers<[1], [0], [0], [1], [0, 0, 1, 1], [], []>} : vector<64x8xf32>, vector<8x512xf32>, vector<64x512xf32> -> vector<64x512xf32>
    %c0_3 = arith.constant 0 : index
    %c0_4 = arith.constant 0 : index
    %3 = vector.load %arg3[%c0_3, %c0_4] : memref<1x512xf32, #tpu.memory_space<vmem>>, vector<1x512xf32>
    %4 = vector.broadcast %3 : vector<1x512xf32> to vector<64x512xf32>
    %5 = arith.addf %2, %4 : vector<64x512xf32>
    %c0_5 = arith.constant 0 : index
    %c0_6 = arith.constant 0 : index
    %6 = vector.load %arg13[%c0_5, %c0_6] : memref<64x512xf32, #tpu.memory_space<vmem>>, vector<64x512xf32>
    tpu.vector_store %arg13[%c0_5, %c0_6], %5 {strides = array<i32>} : memref<64x512xf32, #tpu.memory_space<vmem>>, vector<64x512xf32>,
    %cst_7 = arith.constant 0.000000e+00 : f32
    %7 = vector.broadcast %cst_7 : f32 to vector<8x128xf32>
    %c0_8 = arith.constant 0 : index
    %c0_9 = arith.constant 0 : index
    %8 = vector.load %arg19[%c0_8, %c0_9] : memref<8x128xf32, #tpu.memory_space<vmem>>, vector<8x128xf32>
    tpu.vector_store %arg19[%c0_8, %c0_9], %7 {strides = array<i32>} : memref<8x128xf32, #tpu.memory_space<vmem>>, vector<8x128xf32>,
    %cst_10 = arith.constant 0.000000e+00 : f32
    %9 = vector.broadcast %cst_10 : f32 to vector<8x128xf32>
    %c0_11 = arith.constant 0 : index
    %c0_12 = arith.constant 0 : index
    %10 = vector.load %arg20[%c0_11, %c0_12] : memref<8x128xf32, #tpu.memory_space<vmem>>, vector<8x128xf32>
    tpu.vector_store %arg20[%c0_11, %c0_12], %9 {strides = array<i32>} : memref<8x128xf32, #tpu.memory_space<vmem>>, vector<8x128xf32>,
    %c0_13 = arith.constant 0 : index
    %c0_14 = arith.constant 0 : index
    %11 = vector.load %arg2[%c0_13, %c0_14] : memref<128x512xf32, #tpu.memory_space<vmem>>, vector<128x512xf32>
    %c0_i32 = arith.constant 0 : i32
    %c8_i32 = arith.constant 8 : i32
    %12 = arith.muli %c0_i32, %c8_i32 : i32
    %13 = tpu.assume_multiple %12, 8 : i32
    %14 = arith.index_cast %13 : i32 to index
    %c0_15 = arith.constant 0 : index
    %15 = vector.load %arg13[%14, %c0_15] : memref<64x512xf32, #tpu.memory_space<vmem>>, vector<8x512xf32>
    %c0_16 = arith.constant 0 : index
    %c0_17 = arith.constant 0 : index
    %16 = vector.load %arg19[%c0_16, %c0_17] : memref<8x128xf32, #tpu.memory_space<vmem>>, vector<8x128xf32>
    %cst_18 = arith.constant dense<0.000000e+00> : vector<8x512xf32>
    %17 = tpu.matmul %16, %11, %cst_18 {dimension_numbers = #tpu.dot_dimension_numbers<[1], [0], [0], [1], [0, 0, 1, 1], [], []>} : vector<8x128xf32>, vector<128x512xf32>, vector<8x512xf32> -> vector<8x512xf32>
    %18 = arith.addf %15, %17 : vector<8x512xf32>
    %19 = vector.extract_strided_slice %18 {offsets = [0, 0], sizes = [8, 128], strides = [1, 1]} : vector<8x512xf32> to vector<8x128xf32>
    %20 = arith.negf %19 : vector<8x128xf32>
    %21 = math.exp %20 : vector<8x128xf32>
    %cst_19 = arith.constant 1.000000e+00 : f32
    %22 = vector.broadcast %cst_19 : f32 to vector<8x128xf32>
    %23 = arith.addf %22, %21 : vector<8x128xf32>
    %24 = arith.divf %22, %23 : vector<8x128xf32>
    %25 = vector.extract_strided_slice %18 {offsets = [0, 128], sizes = [8, 128], strides = [1, 1]} : vector<8x512xf32> to vector<8x128xf32>
    %26 = arith.negf %25 : vector<8x128xf32>
    %27 = math.exp %26 : vector<8x128xf32>
    %cst_20 = arith.constant 1.000000e+00 : f32
    %28 = vector.broadcast %cst_20 : f32 to vector<8x128xf32>
    %29 = arith.addf %28, %27 : vector<8x128xf32>
    %30 = arith.divf %28, %29 : vector<8x128xf32>
    %31 = vector.extract_strided_slice %18 {offsets = [0, 256], sizes = [8, 128], strides = [1, 1]} : vector<8x512xf32> to vector<8x128xf32>
    %32 = math.tanh %31 : vector<8x128xf32>
    %33 = vector.extract_strided_slice %18 {offsets = [0, 384], sizes = [8, 128], strides = [1, 1]} : vector<8x512xf32> to vector<8x128xf32>
    %34 = arith.negf %33 : vector<8x128xf32>
    %35 = math.exp %34 : vector<8x128xf32>
    %cst_21 = arith.constant 1.000000e+00 : f32
    %36 = vector.broadcast %cst_21 : f32 to vector<8x128xf32>
    %37 = arith.addf %36, %35 : vector<8x128xf32>
    %38 = arith.divf %36, %37 : vector<8x128xf32>
    %c0_22 = arith.constant 0 : index
    %c0_23 = arith.constant 0 : index
    %39 = vector.load %arg20[%c0_22, %c0_23] : memref<8x128xf32, #tpu.memory_space<vmem>>, vector<8x128xf32>
    %40 = arith.mulf %30, %39 : vector<8x128xf32>
    %41 = arith.mulf %24, %32 : vector<8x128xf32>
    %42 = arith.addf %40, %41 : vector<8x128xf32>
    %43 = math.tanh %42 : vector<8x128xf32>
    %44 = arith.mulf %38, %43 : vector<8x128xf32>
    %c0_24 = arith.constant 0 : index
    %c0_25 = arith.constant 0 : index
    %45 = vector.load %arg20[%c0_24, %c0_25] : memref<8x128xf32, #tpu.memory_space<vmem>>, vector<8x128xf32>
    tpu.vector_store %arg20[%c0_24, %c0_25], %42 {strides = array<i32>} : memref<8x128xf32, #tpu.memory_space<vmem>>, vector<8x128xf32>,
    %c0_26 = arith.constant 0 : index
    %c0_27 = arith.constant 0 : index
    %46 = vector.load %arg19[%c0_26, %c0_27] : memref<8x128xf32, #tpu.memory_space<vmem>>, vector<8x128xf32>
    tpu.vector_store %arg19[%c0_26, %c0_27], %44 {strides = array<i32>} : memref<8x128xf32, #tpu.memory_space<vmem>>, vector<8x128xf32>,
    %47 = arith.index_cast %13 : i32 to index
    %c0_28 = arith.constant 0 : index
    %48 = vector.load %arg16[%47, %c0_28] : memref<64x128xf32, #tpu.memory_space<vmem>>, vector<8x128xf32>
    tpu.vector_store %arg16[%47, %c0_28], %44 {strides = array<i32>} : memref<64x128xf32, #tpu.memory_space<vmem>>, vector<8x128xf32>,
    %c1_i32 = arith.constant 1 : i32
    %c8_i32_29 = arith.constant 8 : i32
    %49 = arith.muli %c1_i32, %c8_i32_29 : i32
    %50 = tpu.assume_multiple %49, 8 : i32
    %51 = arith.index_cast %50 : i32 to index
    %c0_30 = arith.constant 0 : index
    %52 = vector.load %arg13[%51, %c0_30] : memref<64x512xf32, #tpu.memory_space<vmem>>, vector<8x512xf32>
    %c0_31 = arith.constant 0 : index
    %c0_32 = arith.constant 0 : index
    %53 = vector.load %arg19[%c0_31, %c0_32] : memref<8x128xf32, #tpu.memory_space<vmem>>, vector<8x128xf32>
    %cst_33 = arith.constant dense<0.000000e+00> : vector<8x512xf32>
    %54 = tpu.matmul %53, %11, %cst_33 {dimension_numbers = #tpu.dot_dimension_numbers<[1], [0], [0], [1], [0, 0, 1, 1], [], []>} : vector<8x128xf32>, vector<128x512xf32>, vector<8x512xf32> -> vector<8x512xf32>
    %55 = arith.addf %52, %54 : vector<8x512xf32>
    %56 = vector.extract_strided_slice %55 {offsets = [0, 0], sizes = [8, 128], strides = [1, 1]} : vector<8x512xf32> to vector<8x128xf32>
    %57 = arith.negf %56 : vector<8x128xf32>
    %58 = math.exp %57 : vector<8x128xf32>
    %cst_34 = arith.constant 1.000000e+00 : f32
    %59 = vector.broadcast %cst_34 : f32 to vector<8x128xf32>
    %60 = arith.addf %59, %58 : vector<8x128xf32>
    %61 = arith.divf %59, %60 : vector<8x128xf32>
    %62 = vector.extract_strided_slice %55 {offsets = [0, 128], sizes = [8, 128], strides = [1, 1]} : vector<8x512xf32> to vector<8x128xf32>
    %63 = arith.negf %62 : vector<8x128xf32>
    %64 = math.exp %63 : vector<8x128xf32>
    %cst_35 = arith.constant 1.000000e+00 : f32
    %65 = vector.broadcast %cst_35 : f32 to vector<8x128xf32>
    %66 = arith.addf %65, %64 : vector<8x128xf32>
    %67 = arith.divf %65, %66 : vector<8x128xf32>
    %68 = vector.extract_strided_slice %55 {offsets = [0, 256], sizes = [8, 128], strides = [1, 1]} : vector<8x512xf32> to vector<8x128xf32>
    %69 = math.tanh %68 : vector<8x128xf32>
    %70 = vector.extract_strided_slice %55 {offsets = [0, 384], sizes = [8, 128], strides = [1, 1]} : vector<8x512xf32> to vector<8x128xf32>
    %71 = arith.negf %70 : vector<8x128xf32>
    %72 = math.exp %71 : vector<8x128xf32>
    %cst_36 = arith.constant 1.000000e+00 : f32
    %73 = vector.broadcast %cst_36 : f32 to vector<8x128xf32>
    %74 = arith.addf %73, %72 : vector<8x128xf32>
    %75 = arith.divf %73, %74 : vector<8x128xf32>
    %c0_37 = arith.constant 0 : index
    %c0_38 = arith.constant 0 : index
    %76 = vector.load %arg20[%c0_37, %c0_38] : memref<8x128xf32, #tpu.memory_space<vmem>>, vector<8x128xf32>
    %77 = arith.mulf %67, %76 : vector<8x128xf32>
    %78 = arith.mulf %61, %69 : vector<8x128xf32>
    %79 = arith.addf %77, %78 : vector<8x128xf32>
    %80 = math.tanh %79 : vector<8x128xf32>
    %81 = arith.mulf %75, %80 : vector<8x128xf32>
    %c0_39 = arith.constant 0 : index
    %c0_40 = arith.constant 0 : index
    %82 = vector.load %arg20[%c0_39, %c0_40] : memref<8x128xf32, #tpu.memory_space<vmem>>, vector<8x128xf32>
    tpu.vector_store %arg20[%c0_39, %c0_40], %79 {strides = array<i32>} : memref<8x128xf32, #tpu.memory_space<vmem>>, vector<8x128xf32>,
    %c0_41 = arith.constant 0 : index
    %c0_42 = arith.constant 0 : index
    %83 = vector.load %arg19[%c0_41, %c0_42] : memref<8x128xf32, #tpu.memory_space<vmem>>, vector<8x128xf32>
    tpu.vector_store %arg19[%c0_41, %c0_42], %81 {strides = array<i32>} : memref<8x128xf32, #tpu.memory_space<vmem>>, vector<8x128xf32>,
    %84 = arith.index_cast %50 : i32 to index
    %c0_43 = arith.constant 0 : index
    %85 = vector.load %arg16[%84, %c0_43] : memref<64x128xf32, #tpu.memory_space<vmem>>, vector<8x128xf32>
    tpu.vector_store %arg16[%84, %c0_43], %81 {strides = array<i32>} : memref<64x128xf32, #tpu.memory_space<vmem>>, vector<8x128xf32>,
    %c2_i32 = arith.constant 2 : i32
    %c8_i32_44 = arith.constant 8 : i32
    %86 = arith.muli %c2_i32, %c8_i32_44 : i32
    %87 = tpu.assume_multiple %86, 8 : i32
    %88 = arith.index_cast %87 : i32 to index
    %c0_45 = arith.constant 0 : index
    %89 = vector.load %arg13[%88, %c0_45] : memref<64x512xf32, #tpu.memory_space<vmem>>, vector<8x512xf32>
    %c0_46 = arith.constant 0 : index
    %c0_47 = arith.constant 0 : index
    %90 = vector.load %arg19[%c0_46, %c0_47] : memref<8x128xf32, #tpu.memory_space<vmem>>, vector<8x128xf32>
    %cst_48 = arith.constant dense<0.000000e+00> : vector<8x512xf32>
    %91 = tpu.matmul %90, %11, %cst_48 {dimension_numbers = #tpu.dot_dimension_numbers<[1], [0], [0], [1], [0, 0, 1, 1], [], []>} : vector<8x128xf32>, vector<128x512xf32>, vector<8x512xf32> -> vector<8x512xf32>
    %92 = arith.addf %89, %91 : vector<8x512xf32>
    %93 = vector.extract_strided_slice %92 {offsets = [0, 0], sizes = [8, 128], strides = [1, 1]} : vector<8x512xf32> to vector<8x128xf32>
    %94 = arith.negf %93 : vector<8x128xf32>
    %95 = math.exp %94 : vector<8x128xf32>
    %cst_49 = arith.constant 1.000000e+00 : f32
    %96 = vector.broadcast %cst_49 : f32 to vector<8x128xf32>
    %97 = arith.addf %96, %95 : vector<8x128xf32>
    %98 = arith.divf %96, %97 : vector<8x128xf32>
    %99 = vector.extract_strided_slice %92 {offsets = [0, 128], sizes = [8, 128], strides = [1, 1]} : vector<8x512xf32> to vector<8x128xf32>
    %100 = arith.negf %99 : vector<8x128xf32>
    %101 = math.exp %100 : vector<8x128xf32>
    %cst_50 = arith.constant 1.000000e+00 : f32
    %102 = vector.broadcast %cst_50 : f32 to vector<8x128xf32>
    %103 = arith.addf %102, %101 : vector<8x128xf32>
    %104 = arith.divf %102, %103 : vector<8x128xf32>
    %105 = vector.extract_strided_slice %92 {offsets = [0, 256], sizes = [8, 128], strides = [1, 1]} : vector<8x512xf32> to vector<8x128xf32>
    %106 = math.tanh %105 : vector<8x128xf32>
    %107 = vector.extract_strided_slice %92 {offsets = [0, 384], sizes = [8, 128], strides = [1, 1]} : vector<8x512xf32> to vector<8x128xf32>
    %108 = arith.negf %107 : vector<8x128xf32>
    %109 = math.exp %108 : vector<8x128xf32>
    %cst_51 = arith.constant 1.000000e+00 : f32
    %110 = vector.broadcast %cst_51 : f32 to vector<8x128xf32>
    %111 = arith.addf %110, %109 : vector<8x128xf32>
    %112 = arith.divf %110, %111 : vector<8x128xf32>
    %c0_52 = arith.constant 0 : index
    %c0_53 = arith.constant 0 : index
    %113 = vector.load %arg20[%c0_52, %c0_53] : memref<8x128xf32, #tpu.memory_space<vmem>>, vector<8x128xf32>
    %114 = arith.mulf %104, %113 : vector<8x128xf32>
    %115 = arith.mulf %98, %106 : vector<8x128xf32>
    %116 = arith.addf %114, %115 : vector<8x128xf32>
    %117 = math.tanh %116 : vector<8x128xf32>
    %118 = arith.mulf %112, %117 : vector<8x128xf32>
    %c0_54 = arith.constant 0 : index
    %c0_55 = arith.constant 0 : index
    %119 = vector.load %arg20[%c0_54, %c0_55] : memref<8x128xf32, #tpu.memory_space<vmem>>, vector<8x128xf32>
    tpu.vector_store %arg20[%c0_54, %c0_55], %116 {strides = array<i32>} : memref<8x128xf32, #tpu.memory_space<vmem>>, vector<8x128xf32>,
    %c0_56 = arith.constant 0 : index
    %c0_57 = arith.constant 0 : index
    %120 = vector.load %arg19[%c0_56, %c0_57] : memref<8x128xf32, #tpu.memory_space<vmem>>, vector<8x128xf32>
    tpu.vector_store %arg19[%c0_56, %c0_57], %118 {strides = array<i32>} : memref<8x128xf32, #tpu.memory_space<vmem>>, vector<8x128xf32>,
    %121 = arith.index_cast %87 : i32 to index
    %c0_58 = arith.constant 0 : index
    %122 = vector.load %arg16[%121, %c0_58] : memref<64x128xf32, #tpu.memory_space<vmem>>, vector<8x128xf32>
    tpu.vector_store %arg16[%121, %c0_58], %118 {strides = array<i32>} : memref<64x128xf32, #tpu.memory_space<vmem>>, vector<8x128xf32>,
    %c3_i32 = arith.constant 3 : i32
    %c8_i32_59 = arith.constant 8 : i32
    %123 = arith.muli %c3_i32, %c8_i32_59 : i32
    %124 = tpu.assume_multiple %123, 8 : i32
    %125 = arith.index_cast %124 : i32 to index
    %c0_60 = arith.constant 0 : index
    %126 = vector.load %arg13[%125, %c0_60] : memref<64x512xf32, #tpu.memory_space<vmem>>, vector<8x512xf32>
    %c0_61 = arith.constant 0 : index
    %c0_62 = arith.constant 0 : index
    %127 = vector.load %arg19[%c0_61, %c0_62] : memref<8x128xf32, #tpu.memory_space<vmem>>, vector<8x128xf32>
    %cst_63 = arith.constant dense<0.000000e+00> : vector<8x512xf32>
    %128 = tpu.matmul %127, %11, %cst_63 {dimension_numbers = #tpu.dot_dimension_numbers<[1], [0], [0], [1], [0, 0, 1, 1], [], []>} : vector<8x128xf32>, vector<128x512xf32>, vector<8x512xf32> -> vector<8x512xf32>
    %129 = arith.addf %126, %128 : vector<8x512xf32>
    %130 = vector.extract_strided_slice %129 {offsets = [0, 0], sizes = [8, 128], strides = [1, 1]} : vector<8x512xf32> to vector<8x128xf32>
    %131 = arith.negf %130 : vector<8x128xf32>
    %132 = math.exp %131 : vector<8x128xf32>
    %cst_64 = arith.constant 1.000000e+00 : f32
    %133 = vector.broadcast %cst_64 : f32 to vector<8x128xf32>
    %134 = arith.addf %133, %132 : vector<8x128xf32>
    %135 = arith.divf %133, %134 : vector<8x128xf32>
    %136 = vector.extract_strided_slice %129 {offsets = [0, 128], sizes = [8, 128], strides = [1, 1]} : vector<8x512xf32> to vector<8x128xf32>
    %137 = arith.negf %136 : vector<8x128xf32>
    %138 = math.exp %137 : vector<8x128xf32>
    %cst_65 = arith.constant 1.000000e+00 : f32
    %139 = vector.broadcast %cst_65 : f32 to vector<8x128xf32>
    %140 = arith.addf %139, %138 : vector<8x128xf32>
    %141 = arith.divf %139, %140 : vector<8x128xf32>
    %142 = vector.extract_strided_slice %129 {offsets = [0, 256], sizes = [8, 128], strides = [1, 1]} : vector<8x512xf32> to vector<8x128xf32>
    %143 = math.tanh %142 : vector<8x128xf32>
    %144 = vector.extract_strided_slice %129 {offsets = [0, 384], sizes = [8, 128], strides = [1, 1]} : vector<8x512xf32> to vector<8x128xf32>
    %145 = arith.negf %144 : vector<8x128xf32>
    %146 = math.exp %145 : vector<8x128xf32>
    %cst_66 = arith.constant 1.000000e+00 : f32
    %147 = vector.broadcast %cst_66 : f32 to vector<8x128xf32>
    %148 = arith.addf %147, %146 : vector<8x128xf32>
    %149 = arith.divf %147, %148 : vector<8x128xf32>
    %c0_67 = arith.constant 0 : index
    %c0_68 = arith.constant 0 : index
    %150 = vector.load %arg20[%c0_67, %c0_68] : memref<8x128xf32, #tpu.memory_space<vmem>>, vector<8x128xf32>
    %151 = arith.mulf %141, %150 : vector<8x128xf32>
    %152 = arith.mulf %135, %143 : vector<8x128xf32>
    %153 = arith.addf %151, %152 : vector<8x128xf32>
    %154 = math.tanh %153 : vector<8x128xf32>
    %155 = arith.mulf %149, %154 : vector<8x128xf32>
    %c0_69 = arith.constant 0 : index
    %c0_70 = arith.constant 0 : index
    %156 = vector.load %arg20[%c0_69, %c0_70] : memref<8x128xf32, #tpu.memory_space<vmem>>, vector<8x128xf32>
    tpu.vector_store %arg20[%c0_69, %c0_70], %153 {strides = array<i32>} : memref<8x128xf32, #tpu.memory_space<vmem>>, vector<8x128xf32>,
    %c0_71 = arith.constant 0 : index
    %c0_72 = arith.constant 0 : index
    %157 = vector.load %arg19[%c0_71, %c0_72] : memref<8x128xf32, #tpu.memory_space<vmem>>, vector<8x128xf32>
    tpu.vector_store %arg19[%c0_71, %c0_72], %155 {strides = array<i32>} : memref<8x128xf32, #tpu.memory_space<vmem>>, vector<8x128xf32>,
    %158 = arith.index_cast %124 : i32 to index
    %c0_73 = arith.constant 0 : index
    %159 = vector.load %arg16[%158, %c0_73] : memref<64x128xf32, #tpu.memory_space<vmem>>, vector<8x128xf32>
    tpu.vector_store %arg16[%158, %c0_73], %155 {strides = array<i32>} : memref<64x128xf32, #tpu.memory_space<vmem>>, vector<8x128xf32>,
    %c4_i32 = arith.constant 4 : i32
    %c8_i32_74 = arith.constant 8 : i32
    %160 = arith.muli %c4_i32, %c8_i32_74 : i32
    %161 = tpu.assume_multiple %160, 8 : i32
    %162 = arith.index_cast %161 : i32 to index
    %c0_75 = arith.constant 0 : index
    %163 = vector.load %arg13[%162, %c0_75] : memref<64x512xf32, #tpu.memory_space<vmem>>, vector<8x512xf32>
    %c0_76 = arith.constant 0 : index
    %c0_77 = arith.constant 0 : index
    %164 = vector.load %arg19[%c0_76, %c0_77] : memref<8x128xf32, #tpu.memory_space<vmem>>, vector<8x128xf32>
    %cst_78 = arith.constant dense<0.000000e+00> : vector<8x512xf32>
    %165 = tpu.matmul %164, %11, %cst_78 {dimension_numbers = #tpu.dot_dimension_numbers<[1], [0], [0], [1], [0, 0, 1, 1], [], []>} : vector<8x128xf32>, vector<128x512xf32>, vector<8x512xf32> -> vector<8x512xf32>
    %166 = arith.addf %163, %165 : vector<8x512xf32>
    %167 = vector.extract_strided_slice %166 {offsets = [0, 0], sizes = [8, 128], strides = [1, 1]} : vector<8x512xf32> to vector<8x128xf32>
    %168 = arith.negf %167 : vector<8x128xf32>
    %169 = math.exp %168 : vector<8x128xf32>
    %cst_79 = arith.constant 1.000000e+00 : f32
    %170 = vector.broadcast %cst_79 : f32 to vector<8x128xf32>
    %171 = arith.addf %170, %169 : vector<8x128xf32>
    %172 = arith.divf %170, %171 : vector<8x128xf32>
    %173 = vector.extract_strided_slice %166 {offsets = [0, 128], sizes = [8, 128], strides = [1, 1]} : vector<8x512xf32> to vector<8x128xf32>
    %174 = arith.negf %173 : vector<8x128xf32>
    %175 = math.exp %174 : vector<8x128xf32>
    %cst_80 = arith.constant 1.000000e+00 : f32
    %176 = vector.broadcast %cst_80 : f32 to vector<8x128xf32>
    %177 = arith.addf %176, %175 : vector<8x128xf32>
    %178 = arith.divf %176, %177 : vector<8x128xf32>
    %179 = vector.extract_strided_slice %166 {offsets = [0, 256], sizes = [8, 128], strides = [1, 1]} : vector<8x512xf32> to vector<8x128xf32>
    %180 = math.tanh %179 : vector<8x128xf32>
    %181 = vector.extract_strided_slice %166 {offsets = [0, 384], sizes = [8, 128], strides = [1, 1]} : vector<8x512xf32> to vector<8x128xf32>
    %182 = arith.negf %181 : vector<8x128xf32>
    %183 = math.exp %182 : vector<8x128xf32>
    %cst_81 = arith.constant 1.000000e+00 : f32
    %184 = vector.broadcast %cst_81 : f32 to vector<8x128xf32>
    %185 = arith.addf %184, %183 : vector<8x128xf32>
    %186 = arith.divf %184, %185 : vector<8x128xf32>
    %c0_82 = arith.constant 0 : index
    %c0_83 = arith.constant 0 : index
    %187 = vector.load %arg20[%c0_82, %c0_83] : memref<8x128xf32, #tpu.memory_space<vmem>>, vector<8x128xf32>
    %188 = arith.mulf %178, %187 : vector<8x128xf32>
    %189 = arith.mulf %172, %180 : vector<8x128xf32>
    %190 = arith.addf %188, %189 : vector<8x128xf32>
    %191 = math.tanh %190 : vector<8x128xf32>
    %192 = arith.mulf %186, %191 : vector<8x128xf32>
    %c0_84 = arith.constant 0 : index
    %c0_85 = arith.constant 0 : index
    %193 = vector.load %arg20[%c0_84, %c0_85] : memref<8x128xf32, #tpu.memory_space<vmem>>, vector<8x128xf32>
    tpu.vector_store %arg20[%c0_84, %c0_85], %190 {strides = array<i32>} : memref<8x128xf32, #tpu.memory_space<vmem>>, vector<8x128xf32>,
    %c0_86 = arith.constant 0 : index
    %c0_87 = arith.constant 0 : index
    %194 = vector.load %arg19[%c0_86, %c0_87] : memref<8x128xf32, #tpu.memory_space<vmem>>, vector<8x128xf32>
    tpu.vector_store %arg19[%c0_86, %c0_87], %192 {strides = array<i32>} : memref<8x128xf32, #tpu.memory_space<vmem>>, vector<8x128xf32>,
    %195 = arith.index_cast %161 : i32 to index
    %c0_88 = arith.constant 0 : index
    %196 = vector.load %arg16[%195, %c0_88] : memref<64x128xf32, #tpu.memory_space<vmem>>, vector<8x128xf32>
    tpu.vector_store %arg16[%195, %c0_88], %192 {strides = array<i32>} : memref<64x128xf32, #tpu.memory_space<vmem>>, vector<8x128xf32>,
    %c5_i32 = arith.constant 5 : i32
    %c8_i32_89 = arith.constant 8 : i32
    %197 = arith.muli %c5_i32, %c8_i32_89 : i32
    %198 = tpu.assume_multiple %197, 8 : i32
    %199 = arith.index_cast %198 : i32 to index
    %c0_90 = arith.constant 0 : index
    %200 = vector.load %arg13[%199, %c0_90] : memref<64x512xf32, #tpu.memory_space<vmem>>, vector<8x512xf32>
    %c0_91 = arith.constant 0 : index
    %c0_92 = arith.constant 0 : index
    %201 = vector.load %arg19[%c0_91, %c0_92] : memref<8x128xf32, #tpu.memory_space<vmem>>, vector<8x128xf32>
    %cst_93 = arith.constant dense<0.000000e+00> : vector<8x512xf32>
    %202 = tpu.matmul %201, %11, %cst_93 {dimension_numbers = #tpu.dot_dimension_numbers<[1], [0], [0], [1], [0, 0, 1, 1], [], []>} : vector<8x128xf32>, vector<128x512xf32>, vector<8x512xf32> -> vector<8x512xf32>
    %203 = arith.addf %200, %202 : vector<8x512xf32>
    %204 = vector.extract_strided_slice %203 {offsets = [0, 0], sizes = [8, 128], strides = [1, 1]} : vector<8x512xf32> to vector<8x128xf32>
    %205 = arith.negf %204 : vector<8x128xf32>
    %206 = math.exp %205 : vector<8x128xf32>
    %cst_94 = arith.constant 1.000000e+00 : f32
    %207 = vector.broadcast %cst_94 : f32 to vector<8x128xf32>
    %208 = arith.addf %207, %206 : vector<8x128xf32>
    %209 = arith.divf %207, %208 : vector<8x128xf32>
    %210 = vector.extract_strided_slice %203 {offsets = [0, 128], sizes = [8, 128], strides = [1, 1]} : vector<8x512xf32> to vector<8x128xf32>
    %211 = arith.negf %210 : vector<8x128xf32>
    %212 = math.exp %211 : vector<8x128xf32>
    %cst_95 = arith.constant 1.000000e+00 : f32
    %213 = vector.broadcast %cst_95 : f32 to vector<8x128xf32>
    %214 = arith.addf %213, %212 : vector<8x128xf32>
    %215 = arith.divf %213, %214 : vector<8x128xf32>
    %216 = vector.extract_strided_slice %203 {offsets = [0, 256], sizes = [8, 128], strides = [1, 1]} : vector<8x512xf32> to vector<8x128xf32>
    %217 = math.tanh %216 : vector<8x128xf32>
    %218 = vector.extract_strided_slice %203 {offsets = [0, 384], sizes = [8, 128], strides = [1, 1]} : vector<8x512xf32> to vector<8x128xf32>
    %219 = arith.negf %218 : vector<8x128xf32>
    %220 = math.exp %219 : vector<8x128xf32>
    %cst_96 = arith.constant 1.000000e+00 : f32
    %221 = vector.broadcast %cst_96 : f32 to vector<8x128xf32>
    %222 = arith.addf %221, %220 : vector<8x128xf32>
    %223 = arith.divf %221, %222 : vector<8x128xf32>
    %c0_97 = arith.constant 0 : index
    %c0_98 = arith.constant 0 : index
    %224 = vector.load %arg20[%c0_97, %c0_98] : memref<8x128xf32, #tpu.memory_space<vmem>>, vector<8x128xf32>
    %225 = arith.mulf %215, %224 : vector<8x128xf32>
    %226 = arith.mulf %209, %217 : vector<8x128xf32>
    %227 = arith.addf %225, %226 : vector<8x128xf32>
    %228 = math.tanh %227 : vector<8x128xf32>
    %229 = arith.mulf %223, %228 : vector<8x128xf32>
    %c0_99 = arith.constant 0 : index
    %c0_100 = arith.constant 0 : index
    %230 = vector.load %arg20[%c0_99, %c0_100] : memref<8x128xf32, #tpu.memory_space<vmem>>, vector<8x128xf32>
    tpu.vector_store %arg20[%c0_99, %c0_100], %227 {strides = array<i32>} : memref<8x128xf32, #tpu.memory_space<vmem>>, vector<8x128xf32>,
    %c0_101 = arith.constant 0 : index
    %c0_102 = arith.constant 0 : index
    %231 = vector.load %arg19[%c0_101, %c0_102] : memref<8x128xf32, #tpu.memory_space<vmem>>, vector<8x128xf32>
    tpu.vector_store %arg19[%c0_101, %c0_102], %229 {strides = array<i32>} : memref<8x128xf32, #tpu.memory_space<vmem>>, vector<8x128xf32>,
    %232 = arith.index_cast %198 : i32 to index
    %c0_103 = arith.constant 0 : index
    %233 = vector.load %arg16[%232, %c0_103] : memref<64x128xf32, #tpu.memory_space<vmem>>, vector<8x128xf32>
    tpu.vector_store %arg16[%232, %c0_103], %229 {strides = array<i32>} : memref<64x128xf32, #tpu.memory_space<vmem>>, vector<8x128xf32>,
    %c6_i32 = arith.constant 6 : i32
    %c8_i32_104 = arith.constant 8 : i32
    %234 = arith.muli %c6_i32, %c8_i32_104 : i32
    %235 = tpu.assume_multiple %234, 8 : i32
    %236 = arith.index_cast %235 : i32 to index
    %c0_105 = arith.constant 0 : index
    %237 = vector.load %arg13[%236, %c0_105] : memref<64x512xf32, #tpu.memory_space<vmem>>, vector<8x512xf32>
    %c0_106 = arith.constant 0 : index
    %c0_107 = arith.constant 0 : index
    %238 = vector.load %arg19[%c0_106, %c0_107] : memref<8x128xf32, #tpu.memory_space<vmem>>, vector<8x128xf32>
    %cst_108 = arith.constant dense<0.000000e+00> : vector<8x512xf32>
    %239 = tpu.matmul %238, %11, %cst_108 {dimension_numbers = #tpu.dot_dimension_numbers<[1], [0], [0], [1], [0, 0, 1, 1], [], []>} : vector<8x128xf32>, vector<128x512xf32>, vector<8x512xf32> -> vector<8x512xf32>
    %240 = arith.addf %237, %239 : vector<8x512xf32>
    %241 = vector.extract_strided_slice %240 {offsets = [0, 0], sizes = [8, 128], strides = [1, 1]} : vector<8x512xf32> to vector<8x128xf32>
    %242 = arith.negf %241 : vector<8x128xf32>
    %243 = math.exp %242 : vector<8x128xf32>
    %cst_109 = arith.constant 1.000000e+00 : f32
    %244 = vector.broadcast %cst_109 : f32 to vector<8x128xf32>
    %245 = arith.addf %244, %243 : vector<8x128xf32>
    %246 = arith.divf %244, %245 : vector<8x128xf32>
    %247 = vector.extract_strided_slice %240 {offsets = [0, 128], sizes = [8, 128], strides = [1, 1]} : vector<8x512xf32> to vector<8x128xf32>
    %248 = arith.negf %247 : vector<8x128xf32>
    %249 = math.exp %248 : vector<8x128xf32>
    %cst_110 = arith.constant 1.000000e+00 : f32
    %250 = vector.broadcast %cst_110 : f32 to vector<8x128xf32>
    %251 = arith.addf %250, %249 : vector<8x128xf32>
    %252 = arith.divf %250, %251 : vector<8x128xf32>
    %253 = vector.extract_strided_slice %240 {offsets = [0, 256], sizes = [8, 128], strides = [1, 1]} : vector<8x512xf32> to vector<8x128xf32>
    %254 = math.tanh %253 : vector<8x128xf32>
    %255 = vector.extract_strided_slice %240 {offsets = [0, 384], sizes = [8, 128], strides = [1, 1]} : vector<8x512xf32> to vector<8x128xf32>
    %256 = arith.negf %255 : vector<8x128xf32>
    %257 = math.exp %256 : vector<8x128xf32>
    %cst_111 = arith.constant 1.000000e+00 : f32
    %258 = vector.broadcast %cst_111 : f32 to vector<8x128xf32>
    %259 = arith.addf %258, %257 : vector<8x128xf32>
    %260 = arith.divf %258, %259 : vector<8x128xf32>
    %c0_112 = arith.constant 0 : index
    %c0_113 = arith.constant 0 : index
    %261 = vector.load %arg20[%c0_112, %c0_113] : memref<8x128xf32, #tpu.memory_space<vmem>>, vector<8x128xf32>
    %262 = arith.mulf %252, %261 : vector<8x128xf32>
    %263 = arith.mulf %246, %254 : vector<8x128xf32>
    %264 = arith.addf %262, %263 : vector<8x128xf32>
    %265 = math.tanh %264 : vector<8x128xf32>
    %266 = arith.mulf %260, %265 : vector<8x128xf32>
    %c0_114 = arith.constant 0 : index
    %c0_115 = arith.constant 0 : index
    %267 = vector.load %arg20[%c0_114, %c0_115] : memref<8x128xf32, #tpu.memory_space<vmem>>, vector<8x128xf32>
    tpu.vector_store %arg20[%c0_114, %c0_115], %264 {strides = array<i32>} : memref<8x128xf32, #tpu.memory_space<vmem>>, vector<8x128xf32>,
    %c0_116 = arith.constant 0 : index
    %c0_117 = arith.constant 0 : index
    %268 = vector.load %arg19[%c0_116, %c0_117] : memref<8x128xf32, #tpu.memory_space<vmem>>, vector<8x128xf32>
    tpu.vector_store %arg19[%c0_116, %c0_117], %266 {strides = array<i32>} : memref<8x128xf32, #tpu.memory_space<vmem>>, vector<8x128xf32>,
    %269 = arith.index_cast %235 : i32 to index
    %c0_118 = arith.constant 0 : index
    %270 = vector.load %arg16[%269, %c0_118] : memref<64x128xf32, #tpu.memory_space<vmem>>, vector<8x128xf32>
    tpu.vector_store %arg16[%269, %c0_118], %266 {strides = array<i32>} : memref<64x128xf32, #tpu.memory_space<vmem>>, vector<8x128xf32>,
    %c7_i32 = arith.constant 7 : i32
    %c8_i32_119 = arith.constant 8 : i32
    %271 = arith.muli %c7_i32, %c8_i32_119 : i32
    %272 = tpu.assume_multiple %271, 8 : i32
    %273 = arith.index_cast %272 : i32 to index
    %c0_120 = arith.constant 0 : index
    %274 = vector.load %arg13[%273, %c0_120] : memref<64x512xf32, #tpu.memory_space<vmem>>, vector<8x512xf32>
    %c0_121 = arith.constant 0 : index
    %c0_122 = arith.constant 0 : index
    %275 = vector.load %arg19[%c0_121, %c0_122] : memref<8x128xf32, #tpu.memory_space<vmem>>, vector<8x128xf32>
    %cst_123 = arith.constant dense<0.000000e+00> : vector<8x512xf32>
    %276 = tpu.matmul %275, %11, %cst_123 {dimension_numbers = #tpu.dot_dimension_numbers<[1], [0], [0], [1], [0, 0, 1, 1], [], []>} : vector<8x128xf32>, vector<128x512xf32>, vector<8x512xf32> -> vector<8x512xf32>
    %277 = arith.addf %274, %276 : vector<8x512xf32>
    %278 = vector.extract_strided_slice %277 {offsets = [0, 0], sizes = [8, 128], strides = [1, 1]} : vector<8x512xf32> to vector<8x128xf32>
    %279 = arith.negf %278 : vector<8x128xf32>
    %280 = math.exp %279 : vector<8x128xf32>
    %cst_124 = arith.constant 1.000000e+00 : f32
    %281 = vector.broadcast %cst_124 : f32 to vector<8x128xf32>
    %282 = arith.addf %281, %280 : vector<8x128xf32>
    %283 = arith.divf %281, %282 : vector<8x128xf32>
    %284 = vector.extract_strided_slice %277 {offsets = [0, 128], sizes = [8, 128], strides = [1, 1]} : vector<8x512xf32> to vector<8x128xf32>
    %285 = arith.negf %284 : vector<8x128xf32>
    %286 = math.exp %285 : vector<8x128xf32>
    %cst_125 = arith.constant 1.000000e+00 : f32
    %287 = vector.broadcast %cst_125 : f32 to vector<8x128xf32>
    %288 = arith.addf %287, %286 : vector<8x128xf32>
    %289 = arith.divf %287, %288 : vector<8x128xf32>
    %290 = vector.extract_strided_slice %277 {offsets = [0, 256], sizes = [8, 128], strides = [1, 1]} : vector<8x512xf32> to vector<8x128xf32>
    %291 = math.tanh %290 : vector<8x128xf32>
    %292 = vector.extract_strided_slice %277 {offsets = [0, 384], sizes = [8, 128], strides = [1, 1]} : vector<8x512xf32> to vector<8x128xf32>
    %293 = arith.negf %292 : vector<8x128xf32>
    %294 = math.exp %293 : vector<8x128xf32>
    %cst_126 = arith.constant 1.000000e+00 : f32
    %295 = vector.broadcast %cst_126 : f32 to vector<8x128xf32>
    %296 = arith.addf %295, %294 : vector<8x128xf32>
    %297 = arith.divf %295, %296 : vector<8x128xf32>
    %c0_127 = arith.constant 0 : index
    %c0_128 = arith.constant 0 : index
    %298 = vector.load %arg20[%c0_127, %c0_128] : memref<8x128xf32, #tpu.memory_space<vmem>>, vector<8x128xf32>
    %299 = arith.mulf %289, %298 : vector<8x128xf32>
    %300 = arith.mulf %283, %291 : vector<8x128xf32>
    %301 = arith.addf %299, %300 : vector<8x128xf32>
    %302 = math.tanh %301 : vector<8x128xf32>
    %303 = arith.mulf %297, %302 : vector<8x128xf32>
    %c0_129 = arith.constant 0 : index
    %c0_130 = arith.constant 0 : index
    %304 = vector.load %arg20[%c0_129, %c0_130] : memref<8x128xf32, #tpu.memory_space<vmem>>, vector<8x128xf32>
    tpu.vector_store %arg20[%c0_129, %c0_130], %301 {strides = array<i32>} : memref<8x128xf32, #tpu.memory_space<vmem>>, vector<8x128xf32>,
    %c0_131 = arith.constant 0 : index
    %c0_132 = arith.constant 0 : index
    %305 = vector.load %arg19[%c0_131, %c0_132] : memref<8x128xf32, #tpu.memory_space<vmem>>, vector<8x128xf32>
    tpu.vector_store %arg19[%c0_131, %c0_132], %303 {strides = array<i32>} : memref<8x128xf32, #tpu.memory_space<vmem>>, vector<8x128xf32>,
    %306 = arith.index_cast %272 : i32 to index
    %c0_133 = arith.constant 0 : index
    %307 = vector.load %arg16[%306, %c0_133] : memref<64x128xf32, #tpu.memory_space<vmem>>, vector<8x128xf32>
    tpu.vector_store %arg16[%306, %c0_133], %303 {strides = array<i32>} : memref<64x128xf32, #tpu.memory_space<vmem>>, vector<8x128xf32>,
    %c8_i32_134 = arith.constant 8 : i32
    %c0_135 = arith.constant 0 : index
    %c0_136 = arith.constant 0 : index
    %308 = vector.load %arg16[%c0_135, %c0_136] : memref<64x128xf32, #tpu.memory_space<vmem>>, vector<64x128xf32>
    %c0_137 = arith.constant 0 : index
    %c0_138 = arith.constant 0 : index
    %309 = vector.load %arg4[%c0_137, %c0_138] : memref<128x512xf32, #tpu.memory_space<vmem>>, vector<128x512xf32>
    %cst_139 = arith.constant dense<0.000000e+00> : vector<64x512xf32>
    %310 = tpu.matmul %308, %309, %cst_139 {dimension_numbers = #tpu.dot_dimension_numbers<[1], [0], [0], [1], [0, 0, 1, 1], [], []>} : vector<64x128xf32>, vector<128x512xf32>, vector<64x512xf32> -> vector<64x512xf32>
    %c0_140 = arith.constant 0 : index
    %c0_141 = arith.constant 0 : index
    %311 = vector.load %arg6[%c0_140, %c0_141] : memref<1x512xf32, #tpu.memory_space<vmem>>, vector<1x512xf32>
    %312 = vector.broadcast %311 : vector<1x512xf32> to vector<64x512xf32>
    %313 = arith.addf %310, %312 : vector<64x512xf32>
    %c0_142 = arith.constant 0 : index
    %c0_143 = arith.constant 0 : index
    %314 = vector.load %arg14[%c0_142, %c0_143] : memref<64x512xf32, #tpu.memory_space<vmem>>, vector<64x512xf32>
    tpu.vector_store %arg14[%c0_142, %c0_143], %313 {strides = array<i32>} : memref<64x512xf32, #tpu.memory_space<vmem>>, vector<64x512xf32>,
    %cst_144 = arith.constant 0.000000e+00 : f32
    %315 = vector.broadcast %cst_144 : f32 to vector<8x128xf32>
    %c0_145 = arith.constant 0 : index
    %c0_146 = arith.constant 0 : index
    %316 = vector.load %arg21[%c0_145, %c0_146] : memref<8x128xf32, #tpu.memory_space<vmem>>, vector<8x128xf32>
    tpu.vector_store %arg21[%c0_145, %c0_146], %315 {strides = array<i32>} : memref<8x128xf32, #tpu.memory_space<vmem>>, vector<8x128xf32>,
    %cst_147 = arith.constant 0.000000e+00 : f32
    %317 = vector.broadcast %cst_147 : f32 to vector<8x128xf32>
    %c0_148 = arith.constant 0 : index
    %c0_149 = arith.constant 0 : index
    %318 = vector.load %arg22[%c0_148, %c0_149] : memref<8x128xf32, #tpu.memory_space<vmem>>, vector<8x128xf32>
    tpu.vector_store %arg22[%c0_148, %c0_149], %317 {strides = array<i32>} : memref<8x128xf32, #tpu.memory_space<vmem>>, vector<8x128xf32>,
    %c0_150 = arith.constant 0 : index
    %c0_151 = arith.constant 0 : index
    %319 = vector.load %arg5[%c0_150, %c0_151] : memref<128x512xf32, #tpu.memory_space<vmem>>, vector<128x512xf32>
    %c0_i32_152 = arith.constant 0 : i32
    %c8_i32_153 = arith.constant 8 : i32
    %320 = arith.muli %c0_i32_152, %c8_i32_153 : i32
    %321 = tpu.assume_multiple %320, 8 : i32
    %322 = arith.index_cast %321 : i32 to index
    %c0_154 = arith.constant 0 : index
    %323 = vector.load %arg14[%322, %c0_154] : memref<64x512xf32, #tpu.memory_space<vmem>>, vector<8x512xf32>
    %c0_155 = arith.constant 0 : index
    %c0_156 = arith.constant 0 : index
    %324 = vector.load %arg21[%c0_155, %c0_156] : memref<8x128xf32, #tpu.memory_space<vmem>>, vector<8x128xf32>
    %cst_157 = arith.constant dense<0.000000e+00> : vector<8x512xf32>
    %325 = tpu.matmul %324, %319, %cst_157 {dimension_numbers = #tpu.dot_dimension_numbers<[1], [0], [0], [1], [0, 0, 1, 1], [], []>} : vector<8x128xf32>, vector<128x512xf32>, vector<8x512xf32> -> vector<8x512xf32>
    %326 = arith.addf %323, %325 : vector<8x512xf32>
    %327 = vector.extract_strided_slice %326 {offsets = [0, 0], sizes = [8, 128], strides = [1, 1]} : vector<8x512xf32> to vector<8x128xf32>
    %328 = arith.negf %327 : vector<8x128xf32>
    %329 = math.exp %328 : vector<8x128xf32>
    %cst_158 = arith.constant 1.000000e+00 : f32
    %330 = vector.broadcast %cst_158 : f32 to vector<8x128xf32>
    %331 = arith.addf %330, %329 : vector<8x128xf32>
    %332 = arith.divf %330, %331 : vector<8x128xf32>
    %333 = vector.extract_strided_slice %326 {offsets = [0, 128], sizes = [8, 128], strides = [1, 1]} : vector<8x512xf32> to vector<8x128xf32>
    %334 = arith.negf %333 : vector<8x128xf32>
    %335 = math.exp %334 : vector<8x128xf32>
    %cst_159 = arith.constant 1.000000e+00 : f32
    %336 = vector.broadcast %cst_159 : f32 to vector<8x128xf32>
    %337 = arith.addf %336, %335 : vector<8x128xf32>
    %338 = arith.divf %336, %337 : vector<8x128xf32>
    %339 = vector.extract_strided_slice %326 {offsets = [0, 256], sizes = [8, 128], strides = [1, 1]} : vector<8x512xf32> to vector<8x128xf32>
    %340 = math.tanh %339 : vector<8x128xf32>
    %341 = vector.extract_strided_slice %326 {offsets = [0, 384], sizes = [8, 128], strides = [1, 1]} : vector<8x512xf32> to vector<8x128xf32>
    %342 = arith.negf %341 : vector<8x128xf32>
    %343 = math.exp %342 : vector<8x128xf32>
    %cst_160 = arith.constant 1.000000e+00 : f32
    %344 = vector.broadcast %cst_160 : f32 to vector<8x128xf32>
    %345 = arith.addf %344, %343 : vector<8x128xf32>
    %346 = arith.divf %344, %345 : vector<8x128xf32>
    %c0_161 = arith.constant 0 : index
    %c0_162 = arith.constant 0 : index
    %347 = vector.load %arg22[%c0_161, %c0_162] : memref<8x128xf32, #tpu.memory_space<vmem>>, vector<8x128xf32>
    %348 = arith.mulf %338, %347 : vector<8x128xf32>
    %349 = arith.mulf %332, %340 : vector<8x128xf32>
    %350 = arith.addf %348, %349 : vector<8x128xf32>
    %351 = math.tanh %350 : vector<8x128xf32>
    %352 = arith.mulf %346, %351 : vector<8x128xf32>
    %c0_163 = arith.constant 0 : index
    %c0_164 = arith.constant 0 : index
    %353 = vector.load %arg22[%c0_163, %c0_164] : memref<8x128xf32, #tpu.memory_space<vmem>>, vector<8x128xf32>
    tpu.vector_store %arg22[%c0_163, %c0_164], %350 {strides = array<i32>} : memref<8x128xf32, #tpu.memory_space<vmem>>, vector<8x128xf32>,
    %c0_165 = arith.constant 0 : index
    %c0_166 = arith.constant 0 : index
    %354 = vector.load %arg21[%c0_165, %c0_166] : memref<8x128xf32, #tpu.memory_space<vmem>>, vector<8x128xf32>
    tpu.vector_store %arg21[%c0_165, %c0_166], %352 {strides = array<i32>} : memref<8x128xf32, #tpu.memory_space<vmem>>, vector<8x128xf32>,
    %355 = arith.index_cast %321 : i32 to index
    %c0_167 = arith.constant 0 : index
    %356 = vector.load %arg17[%355, %c0_167] : memref<64x128xf32, #tpu.memory_space<vmem>>, vector<8x128xf32>
    tpu.vector_store %arg17[%355, %c0_167], %352 {strides = array<i32>} : memref<64x128xf32, #tpu.memory_space<vmem>>, vector<8x128xf32>,
    %c1_i32_168 = arith.constant 1 : i32
    %c8_i32_169 = arith.constant 8 : i32
    %357 = arith.muli %c1_i32_168, %c8_i32_169 : i32
    %358 = tpu.assume_multiple %357, 8 : i32
    %359 = arith.index_cast %358 : i32 to index
    %c0_170 = arith.constant 0 : index
    %360 = vector.load %arg14[%359, %c0_170] : memref<64x512xf32, #tpu.memory_space<vmem>>, vector<8x512xf32>
    %c0_171 = arith.constant 0 : index
    %c0_172 = arith.constant 0 : index
    %361 = vector.load %arg21[%c0_171, %c0_172] : memref<8x128xf32, #tpu.memory_space<vmem>>, vector<8x128xf32>
    %cst_173 = arith.constant dense<0.000000e+00> : vector<8x512xf32>
    %362 = tpu.matmul %361, %319, %cst_173 {dimension_numbers = #tpu.dot_dimension_numbers<[1], [0], [0], [1], [0, 0, 1, 1], [], []>} : vector<8x128xf32>, vector<128x512xf32>, vector<8x512xf32> -> vector<8x512xf32>
    %363 = arith.addf %360, %362 : vector<8x512xf32>
    %364 = vector.extract_strided_slice %363 {offsets = [0, 0], sizes = [8, 128], strides = [1, 1]} : vector<8x512xf32> to vector<8x128xf32>
    %365 = arith.negf %364 : vector<8x128xf32>
    %366 = math.exp %365 : vector<8x128xf32>
    %cst_174 = arith.constant 1.000000e+00 : f32
    %367 = vector.broadcast %cst_174 : f32 to vector<8x128xf32>
    %368 = arith.addf %367, %366 : vector<8x128xf32>
    %369 = arith.divf %367, %368 : vector<8x128xf32>
    %370 = vector.extract_strided_slice %363 {offsets = [0, 128], sizes = [8, 128], strides = [1, 1]} : vector<8x512xf32> to vector<8x128xf32>
    %371 = arith.negf %370 : vector<8x128xf32>
    %372 = math.exp %371 : vector<8x128xf32>
    %cst_175 = arith.constant 1.000000e+00 : f32
    %373 = vector.broadcast %cst_175 : f32 to vector<8x128xf32>
    %374 = arith.addf %373, %372 : vector<8x128xf32>
    %375 = arith.divf %373, %374 : vector<8x128xf32>
    %376 = vector.extract_strided_slice %363 {offsets = [0, 256], sizes = [8, 128], strides = [1, 1]} : vector<8x512xf32> to vector<8x128xf32>
    %377 = math.tanh %376 : vector<8x128xf32>
    %378 = vector.extract_strided_slice %363 {offsets = [0, 384], sizes = [8, 128], strides = [1, 1]} : vector<8x512xf32> to vector<8x128xf32>
    %379 = arith.negf %378 : vector<8x128xf32>
    %380 = math.exp %379 : vector<8x128xf32>
    %cst_176 = arith.constant 1.000000e+00 : f32
    %381 = vector.broadcast %cst_176 : f32 to vector<8x128xf32>
    %382 = arith.addf %381, %380 : vector<8x128xf32>
    %383 = arith.divf %381, %382 : vector<8x128xf32>
    %c0_177 = arith.constant 0 : index
    %c0_178 = arith.constant 0 : index
    %384 = vector.load %arg22[%c0_177, %c0_178] : memref<8x128xf32, #tpu.memory_space<vmem>>, vector<8x128xf32>
    %385 = arith.mulf %375, %384 : vector<8x128xf32>
    %386 = arith.mulf %369, %377 : vector<8x128xf32>
    %387 = arith.addf %385, %386 : vector<8x128xf32>
    %388 = math.tanh %387 : vector<8x128xf32>
    %389 = arith.mulf %383, %388 : vector<8x128xf32>
    %c0_179 = arith.constant 0 : index
    %c0_180 = arith.constant 0 : index
    %390 = vector.load %arg22[%c0_179, %c0_180] : memref<8x128xf32, #tpu.memory_space<vmem>>, vector<8x128xf32>
    tpu.vector_store %arg22[%c0_179, %c0_180], %387 {strides = array<i32>} : memref<8x128xf32, #tpu.memory_space<vmem>>, vector<8x128xf32>,
    %c0_181 = arith.constant 0 : index
    %c0_182 = arith.constant 0 : index
    %391 = vector.load %arg21[%c0_181, %c0_182] : memref<8x128xf32, #tpu.memory_space<vmem>>, vector<8x128xf32>
    tpu.vector_store %arg21[%c0_181, %c0_182], %389 {strides = array<i32>} : memref<8x128xf32, #tpu.memory_space<vmem>>, vector<8x128xf32>,
    %392 = arith.index_cast %358 : i32 to index
    %c0_183 = arith.constant 0 : index
    %393 = vector.load %arg17[%392, %c0_183] : memref<64x128xf32, #tpu.memory_space<vmem>>, vector<8x128xf32>
    tpu.vector_store %arg17[%392, %c0_183], %389 {strides = array<i32>} : memref<64x128xf32, #tpu.memory_space<vmem>>, vector<8x128xf32>,
    %c2_i32_184 = arith.constant 2 : i32
    %c8_i32_185 = arith.constant 8 : i32
    %394 = arith.muli %c2_i32_184, %c8_i32_185 : i32
    %395 = tpu.assume_multiple %394, 8 : i32
    %396 = arith.index_cast %395 : i32 to index
    %c0_186 = arith.constant 0 : index
    %397 = vector.load %arg14[%396, %c0_186] : memref<64x512xf32, #tpu.memory_space<vmem>>, vector<8x512xf32>
    %c0_187 = arith.constant 0 : index
    %c0_188 = arith.constant 0 : index
    %398 = vector.load %arg21[%c0_187, %c0_188] : memref<8x128xf32, #tpu.memory_space<vmem>>, vector<8x128xf32>
    %cst_189 = arith.constant dense<0.000000e+00> : vector<8x512xf32>
    %399 = tpu.matmul %398, %319, %cst_189 {dimension_numbers = #tpu.dot_dimension_numbers<[1], [0], [0], [1], [0, 0, 1, 1], [], []>} : vector<8x128xf32>, vector<128x512xf32>, vector<8x512xf32> -> vector<8x512xf32>
    %400 = arith.addf %397, %399 : vector<8x512xf32>
    %401 = vector.extract_strided_slice %400 {offsets = [0, 0], sizes = [8, 128], strides = [1, 1]} : vector<8x512xf32> to vector<8x128xf32>
    %402 = arith.negf %401 : vector<8x128xf32>
    %403 = math.exp %402 : vector<8x128xf32>
    %cst_190 = arith.constant 1.000000e+00 : f32
    %404 = vector.broadcast %cst_190 : f32 to vector<8x128xf32>
    %405 = arith.addf %404, %403 : vector<8x128xf32>
    %406 = arith.divf %404, %405 : vector<8x128xf32>
    %407 = vector.extract_strided_slice %400 {offsets = [0, 128], sizes = [8, 128], strides = [1, 1]} : vector<8x512xf32> to vector<8x128xf32>
    %408 = arith.negf %407 : vector<8x128xf32>
    %409 = math.exp %408 : vector<8x128xf32>
    %cst_191 = arith.constant 1.000000e+00 : f32
    %410 = vector.broadcast %cst_191 : f32 to vector<8x128xf32>
    %411 = arith.addf %410, %409 : vector<8x128xf32>
    %412 = arith.divf %410, %411 : vector<8x128xf32>
    %413 = vector.extract_strided_slice %400 {offsets = [0, 256], sizes = [8, 128], strides = [1, 1]} : vector<8x512xf32> to vector<8x128xf32>
    %414 = math.tanh %413 : vector<8x128xf32>
    %415 = vector.extract_strided_slice %400 {offsets = [0, 384], sizes = [8, 128], strides = [1, 1]} : vector<8x512xf32> to vector<8x128xf32>
    %416 = arith.negf %415 : vector<8x128xf32>
    %417 = math.exp %416 : vector<8x128xf32>
    %cst_192 = arith.constant 1.000000e+00 : f32
    %418 = vector.broadcast %cst_192 : f32 to vector<8x128xf32>
    %419 = arith.addf %418, %417 : vector<8x128xf32>
    %420 = arith.divf %418, %419 : vector<8x128xf32>
    %c0_193 = arith.constant 0 : index
    %c0_194 = arith.constant 0 : index
    %421 = vector.load %arg22[%c0_193, %c0_194] : memref<8x128xf32, #tpu.memory_space<vmem>>, vector<8x128xf32>
    %422 = arith.mulf %412, %421 : vector<8x128xf32>
    %423 = arith.mulf %406, %414 : vector<8x128xf32>
    %424 = arith.addf %422, %423 : vector<8x128xf32>
    %425 = math.tanh %424 : vector<8x128xf32>
    %426 = arith.mulf %420, %425 : vector<8x128xf32>
    %c0_195 = arith.constant 0 : index
    %c0_196 = arith.constant 0 : index
    %427 = vector.load %arg22[%c0_195, %c0_196] : memref<8x128xf32, #tpu.memory_space<vmem>>, vector<8x128xf32>
    tpu.vector_store %arg22[%c0_195, %c0_196], %424 {strides = array<i32>} : memref<8x128xf32, #tpu.memory_space<vmem>>, vector<8x128xf32>,
    %c0_197 = arith.constant 0 : index
    %c0_198 = arith.constant 0 : index
    %428 = vector.load %arg21[%c0_197, %c0_198] : memref<8x128xf32, #tpu.memory_space<vmem>>, vector<8x128xf32>
    tpu.vector_store %arg21[%c0_197, %c0_198], %426 {strides = array<i32>} : memref<8x128xf32, #tpu.memory_space<vmem>>, vector<8x128xf32>,
    %429 = arith.index_cast %395 : i32 to index
    %c0_199 = arith.constant 0 : index
    %430 = vector.load %arg17[%429, %c0_199] : memref<64x128xf32, #tpu.memory_space<vmem>>, vector<8x128xf32>
    tpu.vector_store %arg17[%429, %c0_199], %426 {strides = array<i32>} : memref<64x128xf32, #tpu.memory_space<vmem>>, vector<8x128xf32>,
    %c3_i32_200 = arith.constant 3 : i32
    %c8_i32_201 = arith.constant 8 : i32
    %431 = arith.muli %c3_i32_200, %c8_i32_201 : i32
    %432 = tpu.assume_multiple %431, 8 : i32
    %433 = arith.index_cast %432 : i32 to index
    %c0_202 = arith.constant 0 : index
    %434 = vector.load %arg14[%433, %c0_202] : memref<64x512xf32, #tpu.memory_space<vmem>>, vector<8x512xf32>
    %c0_203 = arith.constant 0 : index
    %c0_204 = arith.constant 0 : index
    %435 = vector.load %arg21[%c0_203, %c0_204] : memref<8x128xf32, #tpu.memory_space<vmem>>, vector<8x128xf32>
    %cst_205 = arith.constant dense<0.000000e+00> : vector<8x512xf32>
    %436 = tpu.matmul %435, %319, %cst_205 {dimension_numbers = #tpu.dot_dimension_numbers<[1], [0], [0], [1], [0, 0, 1, 1], [], []>} : vector<8x128xf32>, vector<128x512xf32>, vector<8x512xf32> -> vector<8x512xf32>
    %437 = arith.addf %434, %436 : vector<8x512xf32>
    %438 = vector.extract_strided_slice %437 {offsets = [0, 0], sizes = [8, 128], strides = [1, 1]} : vector<8x512xf32> to vector<8x128xf32>
    %439 = arith.negf %438 : vector<8x128xf32>
    %440 = math.exp %439 : vector<8x128xf32>
    %cst_206 = arith.constant 1.000000e+00 : f32
    %441 = vector.broadcast %cst_206 : f32 to vector<8x128xf32>
    %442 = arith.addf %441, %440 : vector<8x128xf32>
    %443 = arith.divf %441, %442 : vector<8x128xf32>
    %444 = vector.extract_strided_slice %437 {offsets = [0, 128], sizes = [8, 128], strides = [1, 1]} : vector<8x512xf32> to vector<8x128xf32>
    %445 = arith.negf %444 : vector<8x128xf32>
    %446 = math.exp %445 : vector<8x128xf32>
    %cst_207 = arith.constant 1.000000e+00 : f32
    %447 = vector.broadcast %cst_207 : f32 to vector<8x128xf32>
    %448 = arith.addf %447, %446 : vector<8x128xf32>
    %449 = arith.divf %447, %448 : vector<8x128xf32>
    %450 = vector.extract_strided_slice %437 {offsets = [0, 256], sizes = [8, 128], strides = [1, 1]} : vector<8x512xf32> to vector<8x128xf32>
    %451 = math.tanh %450 : vector<8x128xf32>
    %452 = vector.extract_strided_slice %437 {offsets = [0, 384], sizes = [8, 128], strides = [1, 1]} : vector<8x512xf32> to vector<8x128xf32>
    %453 = arith.negf %452 : vector<8x128xf32>
    %454 = math.exp %453 : vector<8x128xf32>
    %cst_208 = arith.constant 1.000000e+00 : f32
    %455 = vector.broadcast %cst_208 : f32 to vector<8x128xf32>
    %456 = arith.addf %455, %454 : vector<8x128xf32>
    %457 = arith.divf %455, %456 : vector<8x128xf32>
    %c0_209 = arith.constant 0 : index
    %c0_210 = arith.constant 0 : index
    %458 = vector.load %arg22[%c0_209, %c0_210] : memref<8x128xf32, #tpu.memory_space<vmem>>, vector<8x128xf32>
    %459 = arith.mulf %449, %458 : vector<8x128xf32>
    %460 = arith.mulf %443, %451 : vector<8x128xf32>
    %461 = arith.addf %459, %460 : vector<8x128xf32>
    %462 = math.tanh %461 : vector<8x128xf32>
    %463 = arith.mulf %457, %462 : vector<8x128xf32>
    %c0_211 = arith.constant 0 : index
    %c0_212 = arith.constant 0 : index
    %464 = vector.load %arg22[%c0_211, %c0_212] : memref<8x128xf32, #tpu.memory_space<vmem>>, vector<8x128xf32>
    tpu.vector_store %arg22[%c0_211, %c0_212], %461 {strides = array<i32>} : memref<8x128xf32, #tpu.memory_space<vmem>>, vector<8x128xf32>,
    %c0_213 = arith.constant 0 : index
    %c0_214 = arith.constant 0 : index
    %465 = vector.load %arg21[%c0_213, %c0_214] : memref<8x128xf32, #tpu.memory_space<vmem>>, vector<8x128xf32>
    tpu.vector_store %arg21[%c0_213, %c0_214], %463 {strides = array<i32>} : memref<8x128xf32, #tpu.memory_space<vmem>>, vector<8x128xf32>,
    %466 = arith.index_cast %432 : i32 to index
    %c0_215 = arith.constant 0 : index
    %467 = vector.load %arg17[%466, %c0_215] : memref<64x128xf32, #tpu.memory_space<vmem>>, vector<8x128xf32>
    tpu.vector_store %arg17[%466, %c0_215], %463 {strides = array<i32>} : memref<64x128xf32, #tpu.memory_space<vmem>>, vector<8x128xf32>,
    %c4_i32_216 = arith.constant 4 : i32
    %c8_i32_217 = arith.constant 8 : i32
    %468 = arith.muli %c4_i32_216, %c8_i32_217 : i32
    %469 = tpu.assume_multiple %468, 8 : i32
    %470 = arith.index_cast %469 : i32 to index
    %c0_218 = arith.constant 0 : index
    %471 = vector.load %arg14[%470, %c0_218] : memref<64x512xf32, #tpu.memory_space<vmem>>, vector<8x512xf32>
    %c0_219 = arith.constant 0 : index
    %c0_220 = arith.constant 0 : index
    %472 = vector.load %arg21[%c0_219, %c0_220] : memref<8x128xf32, #tpu.memory_space<vmem>>, vector<8x128xf32>
    %cst_221 = arith.constant dense<0.000000e+00> : vector<8x512xf32>
    %473 = tpu.matmul %472, %319, %cst_221 {dimension_numbers = #tpu.dot_dimension_numbers<[1], [0], [0], [1], [0, 0, 1, 1], [], []>} : vector<8x128xf32>, vector<128x512xf32>, vector<8x512xf32> -> vector<8x512xf32>
    %474 = arith.addf %471, %473 : vector<8x512xf32>
    %475 = vector.extract_strided_slice %474 {offsets = [0, 0], sizes = [8, 128], strides = [1, 1]} : vector<8x512xf32> to vector<8x128xf32>
    %476 = arith.negf %475 : vector<8x128xf32>
    %477 = math.exp %476 : vector<8x128xf32>
    %cst_222 = arith.constant 1.000000e+00 : f32
    %478 = vector.broadcast %cst_222 : f32 to vector<8x128xf32>
    %479 = arith.addf %478, %477 : vector<8x128xf32>
    %480 = arith.divf %478, %479 : vector<8x128xf32>
    %481 = vector.extract_strided_slice %474 {offsets = [0, 128], sizes = [8, 128], strides = [1, 1]} : vector<8x512xf32> to vector<8x128xf32>
    %482 = arith.negf %481 : vector<8x128xf32>
    %483 = math.exp %482 : vector<8x128xf32>
    %cst_223 = arith.constant 1.000000e+00 : f32
    %484 = vector.broadcast %cst_223 : f32 to vector<8x128xf32>
    %485 = arith.addf %484, %483 : vector<8x128xf32>
    %486 = arith.divf %484, %485 : vector<8x128xf32>
    %487 = vector.extract_strided_slice %474 {offsets = [0, 256], sizes = [8, 128], strides = [1, 1]} : vector<8x512xf32> to vector<8x128xf32>
    %488 = math.tanh %487 : vector<8x128xf32>
    %489 = vector.extract_strided_slice %474 {offsets = [0, 384], sizes = [8, 128], strides = [1, 1]} : vector<8x512xf32> to vector<8x128xf32>
    %490 = arith.negf %489 : vector<8x128xf32>
    %491 = math.exp %490 : vector<8x128xf32>
    %cst_224 = arith.constant 1.000000e+00 : f32
    %492 = vector.broadcast %cst_224 : f32 to vector<8x128xf32>
    %493 = arith.addf %492, %491 : vector<8x128xf32>
    %494 = arith.divf %492, %493 : vector<8x128xf32>
    %c0_225 = arith.constant 0 : index
    %c0_226 = arith.constant 0 : index
    %495 = vector.load %arg22[%c0_225, %c0_226] : memref<8x128xf32, #tpu.memory_space<vmem>>, vector<8x128xf32>
    %496 = arith.mulf %486, %495 : vector<8x128xf32>
    %497 = arith.mulf %480, %488 : vector<8x128xf32>
    %498 = arith.addf %496, %497 : vector<8x128xf32>
    %499 = math.tanh %498 : vector<8x128xf32>
    %500 = arith.mulf %494, %499 : vector<8x128xf32>
    %c0_227 = arith.constant 0 : index
    %c0_228 = arith.constant 0 : index
    %501 = vector.load %arg22[%c0_227, %c0_228] : memref<8x128xf32, #tpu.memory_space<vmem>>, vector<8x128xf32>
    tpu.vector_store %arg22[%c0_227, %c0_228], %498 {strides = array<i32>} : memref<8x128xf32, #tpu.memory_space<vmem>>, vector<8x128xf32>,
    %c0_229 = arith.constant 0 : index
    %c0_230 = arith.constant 0 : index
    %502 = vector.load %arg21[%c0_229, %c0_230] : memref<8x128xf32, #tpu.memory_space<vmem>>, vector<8x128xf32>
    tpu.vector_store %arg21[%c0_229, %c0_230], %500 {strides = array<i32>} : memref<8x128xf32, #tpu.memory_space<vmem>>, vector<8x128xf32>,
    %503 = arith.index_cast %469 : i32 to index
    %c0_231 = arith.constant 0 : index
    %504 = vector.load %arg17[%503, %c0_231] : memref<64x128xf32, #tpu.memory_space<vmem>>, vector<8x128xf32>
    tpu.vector_store %arg17[%503, %c0_231], %500 {strides = array<i32>} : memref<64x128xf32, #tpu.memory_space<vmem>>, vector<8x128xf32>,
    %c5_i32_232 = arith.constant 5 : i32
    %c8_i32_233 = arith.constant 8 : i32
    %505 = arith.muli %c5_i32_232, %c8_i32_233 : i32
    %506 = tpu.assume_multiple %505, 8 : i32
    %507 = arith.index_cast %506 : i32 to index
    %c0_234 = arith.constant 0 : index
    %508 = vector.load %arg14[%507, %c0_234] : memref<64x512xf32, #tpu.memory_space<vmem>>, vector<8x512xf32>
    %c0_235 = arith.constant 0 : index
    %c0_236 = arith.constant 0 : index
    %509 = vector.load %arg21[%c0_235, %c0_236] : memref<8x128xf32, #tpu.memory_space<vmem>>, vector<8x128xf32>
    %cst_237 = arith.constant dense<0.000000e+00> : vector<8x512xf32>
    %510 = tpu.matmul %509, %319, %cst_237 {dimension_numbers = #tpu.dot_dimension_numbers<[1], [0], [0], [1], [0, 0, 1, 1], [], []>} : vector<8x128xf32>, vector<128x512xf32>, vector<8x512xf32> -> vector<8x512xf32>
    %511 = arith.addf %508, %510 : vector<8x512xf32>
    %512 = vector.extract_strided_slice %511 {offsets = [0, 0], sizes = [8, 128], strides = [1, 1]} : vector<8x512xf32> to vector<8x128xf32>
    %513 = arith.negf %512 : vector<8x128xf32>
    %514 = math.exp %513 : vector<8x128xf32>
    %cst_238 = arith.constant 1.000000e+00 : f32
    %515 = vector.broadcast %cst_238 : f32 to vector<8x128xf32>
    %516 = arith.addf %515, %514 : vector<8x128xf32>
    %517 = arith.divf %515, %516 : vector<8x128xf32>
    %518 = vector.extract_strided_slice %511 {offsets = [0, 128], sizes = [8, 128], strides = [1, 1]} : vector<8x512xf32> to vector<8x128xf32>
    %519 = arith.negf %518 : vector<8x128xf32>
    %520 = math.exp %519 : vector<8x128xf32>
    %cst_239 = arith.constant 1.000000e+00 : f32
    %521 = vector.broadcast %cst_239 : f32 to vector<8x128xf32>
    %522 = arith.addf %521, %520 : vector<8x128xf32>
    %523 = arith.divf %521, %522 : vector<8x128xf32>
    %524 = vector.extract_strided_slice %511 {offsets = [0, 256], sizes = [8, 128], strides = [1, 1]} : vector<8x512xf32> to vector<8x128xf32>
    %525 = math.tanh %524 : vector<8x128xf32>
    %526 = vector.extract_strided_slice %511 {offsets = [0, 384], sizes = [8, 128], strides = [1, 1]} : vector<8x512xf32> to vector<8x128xf32>
    %527 = arith.negf %526 : vector<8x128xf32>
    %528 = math.exp %527 : vector<8x128xf32>
    %cst_240 = arith.constant 1.000000e+00 : f32
    %529 = vector.broadcast %cst_240 : f32 to vector<8x128xf32>
    %530 = arith.addf %529, %528 : vector<8x128xf32>
    %531 = arith.divf %529, %530 : vector<8x128xf32>
    %c0_241 = arith.constant 0 : index
    %c0_242 = arith.constant 0 : index
    %532 = vector.load %arg22[%c0_241, %c0_242] : memref<8x128xf32, #tpu.memory_space<vmem>>, vector<8x128xf32>
    %533 = arith.mulf %523, %532 : vector<8x128xf32>
    %534 = arith.mulf %517, %525 : vector<8x128xf32>
    %535 = arith.addf %533, %534 : vector<8x128xf32>
    %536 = math.tanh %535 : vector<8x128xf32>
    %537 = arith.mulf %531, %536 : vector<8x128xf32>
    %c0_243 = arith.constant 0 : index
    %c0_244 = arith.constant 0 : index
    %538 = vector.load %arg22[%c0_243, %c0_244] : memref<8x128xf32, #tpu.memory_space<vmem>>, vector<8x128xf32>
    tpu.vector_store %arg22[%c0_243, %c0_244], %535 {strides = array<i32>} : memref<8x128xf32, #tpu.memory_space<vmem>>, vector<8x128xf32>,
    %c0_245 = arith.constant 0 : index
    %c0_246 = arith.constant 0 : index
    %539 = vector.load %arg21[%c0_245, %c0_246] : memref<8x128xf32, #tpu.memory_space<vmem>>, vector<8x128xf32>
    tpu.vector_store %arg21[%c0_245, %c0_246], %537 {strides = array<i32>} : memref<8x128xf32, #tpu.memory_space<vmem>>, vector<8x128xf32>,
    %540 = arith.index_cast %506 : i32 to index
    %c0_247 = arith.constant 0 : index
    %541 = vector.load %arg17[%540, %c0_247] : memref<64x128xf32, #tpu.memory_space<vmem>>, vector<8x128xf32>
    tpu.vector_store %arg17[%540, %c0_247], %537 {strides = array<i32>} : memref<64x128xf32, #tpu.memory_space<vmem>>, vector<8x128xf32>,
    %c6_i32_248 = arith.constant 6 : i32
    %c8_i32_249 = arith.constant 8 : i32
    %542 = arith.muli %c6_i32_248, %c8_i32_249 : i32
    %543 = tpu.assume_multiple %542, 8 : i32
    %544 = arith.index_cast %543 : i32 to index
    %c0_250 = arith.constant 0 : index
    %545 = vector.load %arg14[%544, %c0_250] : memref<64x512xf32, #tpu.memory_space<vmem>>, vector<8x512xf32>
    %c0_251 = arith.constant 0 : index
    %c0_252 = arith.constant 0 : index
    %546 = vector.load %arg21[%c0_251, %c0_252] : memref<8x128xf32, #tpu.memory_space<vmem>>, vector<8x128xf32>
    %cst_253 = arith.constant dense<0.000000e+00> : vector<8x512xf32>
    %547 = tpu.matmul %546, %319, %cst_253 {dimension_numbers = #tpu.dot_dimension_numbers<[1], [0], [0], [1], [0, 0, 1, 1], [], []>} : vector<8x128xf32>, vector<128x512xf32>, vector<8x512xf32> -> vector<8x512xf32>
    %548 = arith.addf %545, %547 : vector<8x512xf32>
    %549 = vector.extract_strided_slice %548 {offsets = [0, 0], sizes = [8, 128], strides = [1, 1]} : vector<8x512xf32> to vector<8x128xf32>
    %550 = arith.negf %549 : vector<8x128xf32>
    %551 = math.exp %550 : vector<8x128xf32>
    %cst_254 = arith.constant 1.000000e+00 : f32
    %552 = vector.broadcast %cst_254 : f32 to vector<8x128xf32>
    %553 = arith.addf %552, %551 : vector<8x128xf32>
    %554 = arith.divf %552, %553 : vector<8x128xf32>
    %555 = vector.extract_strided_slice %548 {offsets = [0, 128], sizes = [8, 128], strides = [1, 1]} : vector<8x512xf32> to vector<8x128xf32>
    %556 = arith.negf %555 : vector<8x128xf32>
    %557 = math.exp %556 : vector<8x128xf32>
    %cst_255 = arith.constant 1.000000e+00 : f32
    %558 = vector.broadcast %cst_255 : f32 to vector<8x128xf32>
    %559 = arith.addf %558, %557 : vector<8x128xf32>
    %560 = arith.divf %558, %559 : vector<8x128xf32>
    %561 = vector.extract_strided_slice %548 {offsets = [0, 256], sizes = [8, 128], strides = [1, 1]} : vector<8x512xf32> to vector<8x128xf32>
    %562 = math.tanh %561 : vector<8x128xf32>
    %563 = vector.extract_strided_slice %548 {offsets = [0, 384], sizes = [8, 128], strides = [1, 1]} : vector<8x512xf32> to vector<8x128xf32>
    %564 = arith.negf %563 : vector<8x128xf32>
    %565 = math.exp %564 : vector<8x128xf32>
    %cst_256 = arith.constant 1.000000e+00 : f32
    %566 = vector.broadcast %cst_256 : f32 to vector<8x128xf32>
    %567 = arith.addf %566, %565 : vector<8x128xf32>
    %568 = arith.divf %566, %567 : vector<8x128xf32>
    %c0_257 = arith.constant 0 : index
    %c0_258 = arith.constant 0 : index
    %569 = vector.load %arg22[%c0_257, %c0_258] : memref<8x128xf32, #tpu.memory_space<vmem>>, vector<8x128xf32>
    %570 = arith.mulf %560, %569 : vector<8x128xf32>
    %571 = arith.mulf %554, %562 : vector<8x128xf32>
    %572 = arith.addf %570, %571 : vector<8x128xf32>
    %573 = math.tanh %572 : vector<8x128xf32>
    %574 = arith.mulf %568, %573 : vector<8x128xf32>
    %c0_259 = arith.constant 0 : index
    %c0_260 = arith.constant 0 : index
    %575 = vector.load %arg22[%c0_259, %c0_260] : memref<8x128xf32, #tpu.memory_space<vmem>>, vector<8x128xf32>
    tpu.vector_store %arg22[%c0_259, %c0_260], %572 {strides = array<i32>} : memref<8x128xf32, #tpu.memory_space<vmem>>, vector<8x128xf32>,
    %c0_261 = arith.constant 0 : index
    %c0_262 = arith.constant 0 : index
    %576 = vector.load %arg21[%c0_261, %c0_262] : memref<8x128xf32, #tpu.memory_space<vmem>>, vector<8x128xf32>
    tpu.vector_store %arg21[%c0_261, %c0_262], %574 {strides = array<i32>} : memref<8x128xf32, #tpu.memory_space<vmem>>, vector<8x128xf32>,
    %577 = arith.index_cast %543 : i32 to index
    %c0_263 = arith.constant 0 : index
    %578 = vector.load %arg17[%577, %c0_263] : memref<64x128xf32, #tpu.memory_space<vmem>>, vector<8x128xf32>
    tpu.vector_store %arg17[%577, %c0_263], %574 {strides = array<i32>} : memref<64x128xf32, #tpu.memory_space<vmem>>, vector<8x128xf32>,
    %c7_i32_264 = arith.constant 7 : i32
    %c8_i32_265 = arith.constant 8 : i32
    %579 = arith.muli %c7_i32_264, %c8_i32_265 : i32
    %580 = tpu.assume_multiple %579, 8 : i32
    %581 = arith.index_cast %580 : i32 to index
    %c0_266 = arith.constant 0 : index
    %582 = vector.load %arg14[%581, %c0_266] : memref<64x512xf32, #tpu.memory_space<vmem>>, vector<8x512xf32>
    %c0_267 = arith.constant 0 : index
    %c0_268 = arith.constant 0 : index
    %583 = vector.load %arg21[%c0_267, %c0_268] : memref<8x128xf32, #tpu.memory_space<vmem>>, vector<8x128xf32>
    %cst_269 = arith.constant dense<0.000000e+00> : vector<8x512xf32>
    %584 = tpu.matmul %583, %319, %cst_269 {dimension_numbers = #tpu.dot_dimension_numbers<[1], [0], [0], [1], [0, 0, 1, 1], [], []>} : vector<8x128xf32>, vector<128x512xf32>, vector<8x512xf32> -> vector<8x512xf32>
    %585 = arith.addf %582, %584 : vector<8x512xf32>
    %586 = vector.extract_strided_slice %585 {offsets = [0, 0], sizes = [8, 128], strides = [1, 1]} : vector<8x512xf32> to vector<8x128xf32>
    %587 = arith.negf %586 : vector<8x128xf32>
    %588 = math.exp %587 : vector<8x128xf32>
    %cst_270 = arith.constant 1.000000e+00 : f32
    %589 = vector.broadcast %cst_270 : f32 to vector<8x128xf32>
    %590 = arith.addf %589, %588 : vector<8x128xf32>
    %591 = arith.divf %589, %590 : vector<8x128xf32>
    %592 = vector.extract_strided_slice %585 {offsets = [0, 128], sizes = [8, 128], strides = [1, 1]} : vector<8x512xf32> to vector<8x128xf32>
    %593 = arith.negf %592 : vector<8x128xf32>
    %594 = math.exp %593 : vector<8x128xf32>
    %cst_271 = arith.constant 1.000000e+00 : f32
    %595 = vector.broadcast %cst_271 : f32 to vector<8x128xf32>
    %596 = arith.addf %595, %594 : vector<8x128xf32>
    %597 = arith.divf %595, %596 : vector<8x128xf32>
    %598 = vector.extract_strided_slice %585 {offsets = [0, 256], sizes = [8, 128], strides = [1, 1]} : vector<8x512xf32> to vector<8x128xf32>
    %599 = math.tanh %598 : vector<8x128xf32>
    %600 = vector.extract_strided_slice %585 {offsets = [0, 384], sizes = [8, 128], strides = [1, 1]} : vector<8x512xf32> to vector<8x128xf32>
    %601 = arith.negf %600 : vector<8x128xf32>
    %602 = math.exp %601 : vector<8x128xf32>
    %cst_272 = arith.constant 1.000000e+00 : f32
    %603 = vector.broadcast %cst_272 : f32 to vector<8x128xf32>
    %604 = arith.addf %603, %602 : vector<8x128xf32>
    %605 = arith.divf %603, %604 : vector<8x128xf32>
    %c0_273 = arith.constant 0 : index
    %c0_274 = arith.constant 0 : index
    %606 = vector.load %arg22[%c0_273, %c0_274] : memref<8x128xf32, #tpu.memory_space<vmem>>, vector<8x128xf32>
    %607 = arith.mulf %597, %606 : vector<8x128xf32>
    %608 = arith.mulf %591, %599 : vector<8x128xf32>
    %609 = arith.addf %607, %608 : vector<8x128xf32>
    %610 = math.tanh %609 : vector<8x128xf32>
    %611 = arith.mulf %605, %610 : vector<8x128xf32>
    %c0_275 = arith.constant 0 : index
    %c0_276 = arith.constant 0 : index
    %612 = vector.load %arg22[%c0_275, %c0_276] : memref<8x128xf32, #tpu.memory_space<vmem>>, vector<8x128xf32>
    tpu.vector_store %arg22[%c0_275, %c0_276], %609 {strides = array<i32>} : memref<8x128xf32, #tpu.memory_space<vmem>>, vector<8x128xf32>,
    %c0_277 = arith.constant 0 : index
    %c0_278 = arith.constant 0 : index
    %613 = vector.load %arg21[%c0_277, %c0_278] : memref<8x128xf32, #tpu.memory_space<vmem>>, vector<8x128xf32>
    tpu.vector_store %arg21[%c0_277, %c0_278], %611 {strides = array<i32>} : memref<8x128xf32, #tpu.memory_space<vmem>>, vector<8x128xf32>,
    %614 = arith.index_cast %580 : i32 to index
    %c0_279 = arith.constant 0 : index
    %615 = vector.load %arg17[%614, %c0_279] : memref<64x128xf32, #tpu.memory_space<vmem>>, vector<8x128xf32>
    tpu.vector_store %arg17[%614, %c0_279], %611 {strides = array<i32>} : memref<64x128xf32, #tpu.memory_space<vmem>>, vector<8x128xf32>,
    %c8_i32_280 = arith.constant 8 : i32
    %c0_281 = arith.constant 0 : index
    %c0_282 = arith.constant 0 : index
    %616 = vector.load %arg17[%c0_281, %c0_282] : memref<64x128xf32, #tpu.memory_space<vmem>>, vector<64x128xf32>
    %c0_283 = arith.constant 0 : index
    %c0_284 = arith.constant 0 : index
    %617 = vector.load %arg7[%c0_283, %c0_284] : memref<128x512xf32, #tpu.memory_space<vmem>>, vector<128x512xf32>
    %cst_285 = arith.constant dense<0.000000e+00> : vector<64x512xf32>
    %618 = tpu.matmul %616, %617, %cst_285 {dimension_numbers = #tpu.dot_dimension_numbers<[1], [0], [0], [1], [0, 0, 1, 1], [], []>} : vector<64x128xf32>, vector<128x512xf32>, vector<64x512xf32> -> vector<64x512xf32>
    %c0_286 = arith.constant 0 : index
    %c0_287 = arith.constant 0 : index
    %619 = vector.load %arg9[%c0_286, %c0_287] : memref<1x512xf32, #tpu.memory_space<vmem>>, vector<1x512xf32>
    %620 = vector.broadcast %619 : vector<1x512xf32> to vector<64x512xf32>
    %621 = arith.addf %618, %620 : vector<64x512xf32>
    %c0_288 = arith.constant 0 : index
    %c0_289 = arith.constant 0 : index
    %622 = vector.load %arg15[%c0_288, %c0_289] : memref<64x512xf32, #tpu.memory_space<vmem>>, vector<64x512xf32>
    tpu.vector_store %arg15[%c0_288, %c0_289], %621 {strides = array<i32>} : memref<64x512xf32, #tpu.memory_space<vmem>>, vector<64x512xf32>,
    %cst_290 = arith.constant 0.000000e+00 : f32
    %623 = vector.broadcast %cst_290 : f32 to vector<8x128xf32>
    %c0_291 = arith.constant 0 : index
    %c0_292 = arith.constant 0 : index
    %624 = vector.load %arg19[%c0_291, %c0_292] : memref<8x128xf32, #tpu.memory_space<vmem>>, vector<8x128xf32>
    tpu.vector_store %arg19[%c0_291, %c0_292], %623 {strides = array<i32>} : memref<8x128xf32, #tpu.memory_space<vmem>>, vector<8x128xf32>,
    %cst_293 = arith.constant 0.000000e+00 : f32
    %625 = vector.broadcast %cst_293 : f32 to vector<8x128xf32>
    %c0_294 = arith.constant 0 : index
    %c0_295 = arith.constant 0 : index
    %626 = vector.load %arg20[%c0_294, %c0_295] : memref<8x128xf32, #tpu.memory_space<vmem>>, vector<8x128xf32>
    tpu.vector_store %arg20[%c0_294, %c0_295], %625 {strides = array<i32>} : memref<8x128xf32, #tpu.memory_space<vmem>>, vector<8x128xf32>,
    %c0_296 = arith.constant 0 : index
    %c0_297 = arith.constant 0 : index
    %627 = vector.load %arg8[%c0_296, %c0_297] : memref<128x512xf32, #tpu.memory_space<vmem>>, vector<128x512xf32>
    %c0_i32_298 = arith.constant 0 : i32
    %c8_i32_299 = arith.constant 8 : i32
    %628 = arith.muli %c0_i32_298, %c8_i32_299 : i32
    %629 = tpu.assume_multiple %628, 8 : i32
    %630 = arith.index_cast %629 : i32 to index
    %c0_300 = arith.constant 0 : index
    %631 = vector.load %arg15[%630, %c0_300] : memref<64x512xf32, #tpu.memory_space<vmem>>, vector<8x512xf32>
    %c0_301 = arith.constant 0 : index
    %c0_302 = arith.constant 0 : index
    %632 = vector.load %arg19[%c0_301, %c0_302] : memref<8x128xf32, #tpu.memory_space<vmem>>, vector<8x128xf32>
    %cst_303 = arith.constant dense<0.000000e+00> : vector<8x512xf32>
    %633 = tpu.matmul %632, %627, %cst_303 {dimension_numbers = #tpu.dot_dimension_numbers<[1], [0], [0], [1], [0, 0, 1, 1], [], []>} : vector<8x128xf32>, vector<128x512xf32>, vector<8x512xf32> -> vector<8x512xf32>
    %634 = arith.addf %631, %633 : vector<8x512xf32>
    %635 = vector.extract_strided_slice %634 {offsets = [0, 0], sizes = [8, 128], strides = [1, 1]} : vector<8x512xf32> to vector<8x128xf32>
    %636 = arith.negf %635 : vector<8x128xf32>
    %637 = math.exp %636 : vector<8x128xf32>
    %cst_304 = arith.constant 1.000000e+00 : f32
    %638 = vector.broadcast %cst_304 : f32 to vector<8x128xf32>
    %639 = arith.addf %638, %637 : vector<8x128xf32>
    %640 = arith.divf %638, %639 : vector<8x128xf32>
    %641 = vector.extract_strided_slice %634 {offsets = [0, 128], sizes = [8, 128], strides = [1, 1]} : vector<8x512xf32> to vector<8x128xf32>
    %642 = arith.negf %641 : vector<8x128xf32>
    %643 = math.exp %642 : vector<8x128xf32>
    %cst_305 = arith.constant 1.000000e+00 : f32
    %644 = vector.broadcast %cst_305 : f32 to vector<8x128xf32>
    %645 = arith.addf %644, %643 : vector<8x128xf32>
    %646 = arith.divf %644, %645 : vector<8x128xf32>
    %647 = vector.extract_strided_slice %634 {offsets = [0, 256], sizes = [8, 128], strides = [1, 1]} : vector<8x512xf32> to vector<8x128xf32>
    %648 = math.tanh %647 : vector<8x128xf32>
    %649 = vector.extract_strided_slice %634 {offsets = [0, 384], sizes = [8, 128], strides = [1, 1]} : vector<8x512xf32> to vector<8x128xf32>
    %650 = arith.negf %649 : vector<8x128xf32>
    %651 = math.exp %650 : vector<8x128xf32>
    %cst_306 = arith.constant 1.000000e+00 : f32
    %652 = vector.broadcast %cst_306 : f32 to vector<8x128xf32>
    %653 = arith.addf %652, %651 : vector<8x128xf32>
    %654 = arith.divf %652, %653 : vector<8x128xf32>
    %c0_307 = arith.constant 0 : index
    %c0_308 = arith.constant 0 : index
    %655 = vector.load %arg20[%c0_307, %c0_308] : memref<8x128xf32, #tpu.memory_space<vmem>>, vector<8x128xf32>
    %656 = arith.mulf %646, %655 : vector<8x128xf32>
    %657 = arith.mulf %640, %648 : vector<8x128xf32>
    %658 = arith.addf %656, %657 : vector<8x128xf32>
    %659 = math.tanh %658 : vector<8x128xf32>
    %660 = arith.mulf %654, %659 : vector<8x128xf32>
    %c0_309 = arith.constant 0 : index
    %c0_310 = arith.constant 0 : index
    %661 = vector.load %arg20[%c0_309, %c0_310] : memref<8x128xf32, #tpu.memory_space<vmem>>, vector<8x128xf32>
    tpu.vector_store %arg20[%c0_309, %c0_310], %658 {strides = array<i32>} : memref<8x128xf32, #tpu.memory_space<vmem>>, vector<8x128xf32>,
    %c0_311 = arith.constant 0 : index
    %c0_312 = arith.constant 0 : index
    %662 = vector.load %arg19[%c0_311, %c0_312] : memref<8x128xf32, #tpu.memory_space<vmem>>, vector<8x128xf32>
    tpu.vector_store %arg19[%c0_311, %c0_312], %660 {strides = array<i32>} : memref<8x128xf32, #tpu.memory_space<vmem>>, vector<8x128xf32>,
    %663 = arith.index_cast %629 : i32 to index
    %c0_313 = arith.constant 0 : index
    %664 = vector.load %arg18[%663, %c0_313] : memref<64x128xf32, #tpu.memory_space<vmem>>, vector<8x128xf32>
    tpu.vector_store %arg18[%663, %c0_313], %660 {strides = array<i32>} : memref<64x128xf32, #tpu.memory_space<vmem>>, vector<8x128xf32>,
    %c1_i32_314 = arith.constant 1 : i32
    %c8_i32_315 = arith.constant 8 : i32
    %665 = arith.muli %c1_i32_314, %c8_i32_315 : i32
    %666 = tpu.assume_multiple %665, 8 : i32
    %667 = arith.index_cast %666 : i32 to index
    %c0_316 = arith.constant 0 : index
    %668 = vector.load %arg15[%667, %c0_316] : memref<64x512xf32, #tpu.memory_space<vmem>>, vector<8x512xf32>
    %c0_317 = arith.constant 0 : index
    %c0_318 = arith.constant 0 : index
    %669 = vector.load %arg19[%c0_317, %c0_318] : memref<8x128xf32, #tpu.memory_space<vmem>>, vector<8x128xf32>
    %cst_319 = arith.constant dense<0.000000e+00> : vector<8x512xf32>
    %670 = tpu.matmul %669, %627, %cst_319 {dimension_numbers = #tpu.dot_dimension_numbers<[1], [0], [0], [1], [0, 0, 1, 1], [], []>} : vector<8x128xf32>, vector<128x512xf32>, vector<8x512xf32> -> vector<8x512xf32>
    %671 = arith.addf %668, %670 : vector<8x512xf32>
    %672 = vector.extract_strided_slice %671 {offsets = [0, 0], sizes = [8, 128], strides = [1, 1]} : vector<8x512xf32> to vector<8x128xf32>
    %673 = arith.negf %672 : vector<8x128xf32>
    %674 = math.exp %673 : vector<8x128xf32>
    %cst_320 = arith.constant 1.000000e+00 : f32
    %675 = vector.broadcast %cst_320 : f32 to vector<8x128xf32>
    %676 = arith.addf %675, %674 : vector<8x128xf32>
    %677 = arith.divf %675, %676 : vector<8x128xf32>
    %678 = vector.extract_strided_slice %671 {offsets = [0, 128], sizes = [8, 128], strides = [1, 1]} : vector<8x512xf32> to vector<8x128xf32>
    %679 = arith.negf %678 : vector<8x128xf32>
    %680 = math.exp %679 : vector<8x128xf32>
    %cst_321 = arith.constant 1.000000e+00 : f32
    %681 = vector.broadcast %cst_321 : f32 to vector<8x128xf32>
    %682 = arith.addf %681, %680 : vector<8x128xf32>
    %683 = arith.divf %681, %682 : vector<8x128xf32>
    %684 = vector.extract_strided_slice %671 {offsets = [0, 256], sizes = [8, 128], strides = [1, 1]} : vector<8x512xf32> to vector<8x128xf32>
    %685 = math.tanh %684 : vector<8x128xf32>
    %686 = vector.extract_strided_slice %671 {offsets = [0, 384], sizes = [8, 128], strides = [1, 1]} : vector<8x512xf32> to vector<8x128xf32>
    %687 = arith.negf %686 : vector<8x128xf32>
    %688 = math.exp %687 : vector<8x128xf32>
    %cst_322 = arith.constant 1.000000e+00 : f32
    %689 = vector.broadcast %cst_322 : f32 to vector<8x128xf32>
    %690 = arith.addf %689, %688 : vector<8x128xf32>
    %691 = arith.divf %689, %690 : vector<8x128xf32>
    %c0_323 = arith.constant 0 : index
    %c0_324 = arith.constant 0 : index
    %692 = vector.load %arg20[%c0_323, %c0_324] : memref<8x128xf32, #tpu.memory_space<vmem>>, vector<8x128xf32>
    %693 = arith.mulf %683, %692 : vector<8x128xf32>
    %694 = arith.mulf %677, %685 : vector<8x128xf32>
    %695 = arith.addf %693, %694 : vector<8x128xf32>
    %696 = math.tanh %695 : vector<8x128xf32>
    %697 = arith.mulf %691, %696 : vector<8x128xf32>
    %c0_325 = arith.constant 0 : index
    %c0_326 = arith.constant 0 : index
    %698 = vector.load %arg20[%c0_325, %c0_326] : memref<8x128xf32, #tpu.memory_space<vmem>>, vector<8x128xf32>
    tpu.vector_store %arg20[%c0_325, %c0_326], %695 {strides = array<i32>} : memref<8x128xf32, #tpu.memory_space<vmem>>, vector<8x128xf32>,
    %c0_327 = arith.constant 0 : index
    %c0_328 = arith.constant 0 : index
    %699 = vector.load %arg19[%c0_327, %c0_328] : memref<8x128xf32, #tpu.memory_space<vmem>>, vector<8x128xf32>
    tpu.vector_store %arg19[%c0_327, %c0_328], %697 {strides = array<i32>} : memref<8x128xf32, #tpu.memory_space<vmem>>, vector<8x128xf32>,
    %700 = arith.index_cast %666 : i32 to index
    %c0_329 = arith.constant 0 : index
    %701 = vector.load %arg18[%700, %c0_329] : memref<64x128xf32, #tpu.memory_space<vmem>>, vector<8x128xf32>
    tpu.vector_store %arg18[%700, %c0_329], %697 {strides = array<i32>} : memref<64x128xf32, #tpu.memory_space<vmem>>, vector<8x128xf32>,
    %c2_i32_330 = arith.constant 2 : i32
    %c8_i32_331 = arith.constant 8 : i32
    %702 = arith.muli %c2_i32_330, %c8_i32_331 : i32
    %703 = tpu.assume_multiple %702, 8 : i32
    %704 = arith.index_cast %703 : i32 to index
    %c0_332 = arith.constant 0 : index
    %705 = vector.load %arg15[%704, %c0_332] : memref<64x512xf32, #tpu.memory_space<vmem>>, vector<8x512xf32>
    %c0_333 = arith.constant 0 : index
    %c0_334 = arith.constant 0 : index
    %706 = vector.load %arg19[%c0_333, %c0_334] : memref<8x128xf32, #tpu.memory_space<vmem>>, vector<8x128xf32>
    %cst_335 = arith.constant dense<0.000000e+00> : vector<8x512xf32>
    %707 = tpu.matmul %706, %627, %cst_335 {dimension_numbers = #tpu.dot_dimension_numbers<[1], [0], [0], [1], [0, 0, 1, 1], [], []>} : vector<8x128xf32>, vector<128x512xf32>, vector<8x512xf32> -> vector<8x512xf32>
    %708 = arith.addf %705, %707 : vector<8x512xf32>
    %709 = vector.extract_strided_slice %708 {offsets = [0, 0], sizes = [8, 128], strides = [1, 1]} : vector<8x512xf32> to vector<8x128xf32>
    %710 = arith.negf %709 : vector<8x128xf32>
    %711 = math.exp %710 : vector<8x128xf32>
    %cst_336 = arith.constant 1.000000e+00 : f32
    %712 = vector.broadcast %cst_336 : f32 to vector<8x128xf32>
    %713 = arith.addf %712, %711 : vector<8x128xf32>
    %714 = arith.divf %712, %713 : vector<8x128xf32>
    %715 = vector.extract_strided_slice %708 {offsets = [0, 128], sizes = [8, 128], strides = [1, 1]} : vector<8x512xf32> to vector<8x128xf32>
    %716 = arith.negf %715 : vector<8x128xf32>
    %717 = math.exp %716 : vector<8x128xf32>
    %cst_337 = arith.constant 1.000000e+00 : f32
    %718 = vector.broadcast %cst_337 : f32 to vector<8x128xf32>
    %719 = arith.addf %718, %717 : vector<8x128xf32>
    %720 = arith.divf %718, %719 : vector<8x128xf32>
    %721 = vector.extract_strided_slice %708 {offsets = [0, 256], sizes = [8, 128], strides = [1, 1]} : vector<8x512xf32> to vector<8x128xf32>
    %722 = math.tanh %721 : vector<8x128xf32>
    %723 = vector.extract_strided_slice %708 {offsets = [0, 384], sizes = [8, 128], strides = [1, 1]} : vector<8x512xf32> to vector<8x128xf32>
    %724 = arith.negf %723 : vector<8x128xf32>
    %725 = math.exp %724 : vector<8x128xf32>
    %cst_338 = arith.constant 1.000000e+00 : f32
    %726 = vector.broadcast %cst_338 : f32 to vector<8x128xf32>
    %727 = arith.addf %726, %725 : vector<8x128xf32>
    %728 = arith.divf %726, %727 : vector<8x128xf32>
    %c0_339 = arith.constant 0 : index
    %c0_340 = arith.constant 0 : index
    %729 = vector.load %arg20[%c0_339, %c0_340] : memref<8x128xf32, #tpu.memory_space<vmem>>, vector<8x128xf32>
    %730 = arith.mulf %720, %729 : vector<8x128xf32>
    %731 = arith.mulf %714, %722 : vector<8x128xf32>
    %732 = arith.addf %730, %731 : vector<8x128xf32>
    %733 = math.tanh %732 : vector<8x128xf32>
    %734 = arith.mulf %728, %733 : vector<8x128xf32>
    %c0_341 = arith.constant 0 : index
    %c0_342 = arith.constant 0 : index
    %735 = vector.load %arg20[%c0_341, %c0_342] : memref<8x128xf32, #tpu.memory_space<vmem>>, vector<8x128xf32>
    tpu.vector_store %arg20[%c0_341, %c0_342], %732 {strides = array<i32>} : memref<8x128xf32, #tpu.memory_space<vmem>>, vector<8x128xf32>,
    %c0_343 = arith.constant 0 : index
    %c0_344 = arith.constant 0 : index
    %736 = vector.load %arg19[%c0_343, %c0_344] : memref<8x128xf32, #tpu.memory_space<vmem>>, vector<8x128xf32>
    tpu.vector_store %arg19[%c0_343, %c0_344], %734 {strides = array<i32>} : memref<8x128xf32, #tpu.memory_space<vmem>>, vector<8x128xf32>,
    %737 = arith.index_cast %703 : i32 to index
    %c0_345 = arith.constant 0 : index
    %738 = vector.load %arg18[%737, %c0_345] : memref<64x128xf32, #tpu.memory_space<vmem>>, vector<8x128xf32>
    tpu.vector_store %arg18[%737, %c0_345], %734 {strides = array<i32>} : memref<64x128xf32, #tpu.memory_space<vmem>>, vector<8x128xf32>,
    %c3_i32_346 = arith.constant 3 : i32
    %c8_i32_347 = arith.constant 8 : i32
    %739 = arith.muli %c3_i32_346, %c8_i32_347 : i32
    %740 = tpu.assume_multiple %739, 8 : i32
    %741 = arith.index_cast %740 : i32 to index
    %c0_348 = arith.constant 0 : index
    %742 = vector.load %arg15[%741, %c0_348] : memref<64x512xf32, #tpu.memory_space<vmem>>, vector<8x512xf32>
    %c0_349 = arith.constant 0 : index
    %c0_350 = arith.constant 0 : index
    %743 = vector.load %arg19[%c0_349, %c0_350] : memref<8x128xf32, #tpu.memory_space<vmem>>, vector<8x128xf32>
    %cst_351 = arith.constant dense<0.000000e+00> : vector<8x512xf32>
    %744 = tpu.matmul %743, %627, %cst_351 {dimension_numbers = #tpu.dot_dimension_numbers<[1], [0], [0], [1], [0, 0, 1, 1], [], []>} : vector<8x128xf32>, vector<128x512xf32>, vector<8x512xf32> -> vector<8x512xf32>
    %745 = arith.addf %742, %744 : vector<8x512xf32>
    %746 = vector.extract_strided_slice %745 {offsets = [0, 0], sizes = [8, 128], strides = [1, 1]} : vector<8x512xf32> to vector<8x128xf32>
    %747 = arith.negf %746 : vector<8x128xf32>
    %748 = math.exp %747 : vector<8x128xf32>
    %cst_352 = arith.constant 1.000000e+00 : f32
    %749 = vector.broadcast %cst_352 : f32 to vector<8x128xf32>
    %750 = arith.addf %749, %748 : vector<8x128xf32>
    %751 = arith.divf %749, %750 : vector<8x128xf32>
    %752 = vector.extract_strided_slice %745 {offsets = [0, 128], sizes = [8, 128], strides = [1, 1]} : vector<8x512xf32> to vector<8x128xf32>
    %753 = arith.negf %752 : vector<8x128xf32>
    %754 = math.exp %753 : vector<8x128xf32>
    %cst_353 = arith.constant 1.000000e+00 : f32
    %755 = vector.broadcast %cst_353 : f32 to vector<8x128xf32>
    %756 = arith.addf %755, %754 : vector<8x128xf32>
    %757 = arith.divf %755, %756 : vector<8x128xf32>
    %758 = vector.extract_strided_slice %745 {offsets = [0, 256], sizes = [8, 128], strides = [1, 1]} : vector<8x512xf32> to vector<8x128xf32>
    %759 = math.tanh %758 : vector<8x128xf32>
    %760 = vector.extract_strided_slice %745 {offsets = [0, 384], sizes = [8, 128], strides = [1, 1]} : vector<8x512xf32> to vector<8x128xf32>
    %761 = arith.negf %760 : vector<8x128xf32>
    %762 = math.exp %761 : vector<8x128xf32>
    %cst_354 = arith.constant 1.000000e+00 : f32
    %763 = vector.broadcast %cst_354 : f32 to vector<8x128xf32>
    %764 = arith.addf %763, %762 : vector<8x128xf32>
    %765 = arith.divf %763, %764 : vector<8x128xf32>
    %c0_355 = arith.constant 0 : index
    %c0_356 = arith.constant 0 : index
    %766 = vector.load %arg20[%c0_355, %c0_356] : memref<8x128xf32, #tpu.memory_space<vmem>>, vector<8x128xf32>
    %767 = arith.mulf %757, %766 : vector<8x128xf32>
    %768 = arith.mulf %751, %759 : vector<8x128xf32>
    %769 = arith.addf %767, %768 : vector<8x128xf32>
    %770 = math.tanh %769 : vector<8x128xf32>
    %771 = arith.mulf %765, %770 : vector<8x128xf32>
    %c0_357 = arith.constant 0 : index
    %c0_358 = arith.constant 0 : index
    %772 = vector.load %arg20[%c0_357, %c0_358] : memref<8x128xf32, #tpu.memory_space<vmem>>, vector<8x128xf32>
    tpu.vector_store %arg20[%c0_357, %c0_358], %769 {strides = array<i32>} : memref<8x128xf32, #tpu.memory_space<vmem>>, vector<8x128xf32>,
    %c0_359 = arith.constant 0 : index
    %c0_360 = arith.constant 0 : index
    %773 = vector.load %arg19[%c0_359, %c0_360] : memref<8x128xf32, #tpu.memory_space<vmem>>, vector<8x128xf32>
    tpu.vector_store %arg19[%c0_359, %c0_360], %771 {strides = array<i32>} : memref<8x128xf32, #tpu.memory_space<vmem>>, vector<8x128xf32>,
    %774 = arith.index_cast %740 : i32 to index
    %c0_361 = arith.constant 0 : index
    %775 = vector.load %arg18[%774, %c0_361] : memref<64x128xf32, #tpu.memory_space<vmem>>, vector<8x128xf32>
    tpu.vector_store %arg18[%774, %c0_361], %771 {strides = array<i32>} : memref<64x128xf32, #tpu.memory_space<vmem>>, vector<8x128xf32>,
    %c4_i32_362 = arith.constant 4 : i32
    %c8_i32_363 = arith.constant 8 : i32
    %776 = arith.muli %c4_i32_362, %c8_i32_363 : i32
    %777 = tpu.assume_multiple %776, 8 : i32
    %778 = arith.index_cast %777 : i32 to index
    %c0_364 = arith.constant 0 : index
    %779 = vector.load %arg15[%778, %c0_364] : memref<64x512xf32, #tpu.memory_space<vmem>>, vector<8x512xf32>
    %c0_365 = arith.constant 0 : index
    %c0_366 = arith.constant 0 : index
    %780 = vector.load %arg19[%c0_365, %c0_366] : memref<8x128xf32, #tpu.memory_space<vmem>>, vector<8x128xf32>
    %cst_367 = arith.constant dense<0.000000e+00> : vector<8x512xf32>
    %781 = tpu.matmul %780, %627, %cst_367 {dimension_numbers = #tpu.dot_dimension_numbers<[1], [0], [0], [1], [0, 0, 1, 1], [], []>} : vector<8x128xf32>, vector<128x512xf32>, vector<8x512xf32> -> vector<8x512xf32>
    %782 = arith.addf %779, %781 : vector<8x512xf32>
    %783 = vector.extract_strided_slice %782 {offsets = [0, 0], sizes = [8, 128], strides = [1, 1]} : vector<8x512xf32> to vector<8x128xf32>
    %784 = arith.negf %783 : vector<8x128xf32>
    %785 = math.exp %784 : vector<8x128xf32>
    %cst_368 = arith.constant 1.000000e+00 : f32
    %786 = vector.broadcast %cst_368 : f32 to vector<8x128xf32>
    %787 = arith.addf %786, %785 : vector<8x128xf32>
    %788 = arith.divf %786, %787 : vector<8x128xf32>
    %789 = vector.extract_strided_slice %782 {offsets = [0, 128], sizes = [8, 128], strides = [1, 1]} : vector<8x512xf32> to vector<8x128xf32>
    %790 = arith.negf %789 : vector<8x128xf32>
    %791 = math.exp %790 : vector<8x128xf32>
    %cst_369 = arith.constant 1.000000e+00 : f32
    %792 = vector.broadcast %cst_369 : f32 to vector<8x128xf32>
    %793 = arith.addf %792, %791 : vector<8x128xf32>
    %794 = arith.divf %792, %793 : vector<8x128xf32>
    %795 = vector.extract_strided_slice %782 {offsets = [0, 256], sizes = [8, 128], strides = [1, 1]} : vector<8x512xf32> to vector<8x128xf32>
    %796 = math.tanh %795 : vector<8x128xf32>
    %797 = vector.extract_strided_slice %782 {offsets = [0, 384], sizes = [8, 128], strides = [1, 1]} : vector<8x512xf32> to vector<8x128xf32>
    %798 = arith.negf %797 : vector<8x128xf32>
    %799 = math.exp %798 : vector<8x128xf32>
    %cst_370 = arith.constant 1.000000e+00 : f32
    %800 = vector.broadcast %cst_370 : f32 to vector<8x128xf32>
    %801 = arith.addf %800, %799 : vector<8x128xf32>
    %802 = arith.divf %800, %801 : vector<8x128xf32>
    %c0_371 = arith.constant 0 : index
    %c0_372 = arith.constant 0 : index
    %803 = vector.load %arg20[%c0_371, %c0_372] : memref<8x128xf32, #tpu.memory_space<vmem>>, vector<8x128xf32>
    %804 = arith.mulf %794, %803 : vector<8x128xf32>
    %805 = arith.mulf %788, %796 : vector<8x128xf32>
    %806 = arith.addf %804, %805 : vector<8x128xf32>
    %807 = math.tanh %806 : vector<8x128xf32>
    %808 = arith.mulf %802, %807 : vector<8x128xf32>
    %c0_373 = arith.constant 0 : index
    %c0_374 = arith.constant 0 : index
    %809 = vector.load %arg20[%c0_373, %c0_374] : memref<8x128xf32, #tpu.memory_space<vmem>>, vector<8x128xf32>
    tpu.vector_store %arg20[%c0_373, %c0_374], %806 {strides = array<i32>} : memref<8x128xf32, #tpu.memory_space<vmem>>, vector<8x128xf32>,
    %c0_375 = arith.constant 0 : index
    %c0_376 = arith.constant 0 : index
    %810 = vector.load %arg19[%c0_375, %c0_376] : memref<8x128xf32, #tpu.memory_space<vmem>>, vector<8x128xf32>
    tpu.vector_store %arg19[%c0_375, %c0_376], %808 {strides = array<i32>} : memref<8x128xf32, #tpu.memory_space<vmem>>, vector<8x128xf32>,
    %811 = arith.index_cast %777 : i32 to index
    %c0_377 = arith.constant 0 : index
    %812 = vector.load %arg18[%811, %c0_377] : memref<64x128xf32, #tpu.memory_space<vmem>>, vector<8x128xf32>
    tpu.vector_store %arg18[%811, %c0_377], %808 {strides = array<i32>} : memref<64x128xf32, #tpu.memory_space<vmem>>, vector<8x128xf32>,
    %c5_i32_378 = arith.constant 5 : i32
    %c8_i32_379 = arith.constant 8 : i32
    %813 = arith.muli %c5_i32_378, %c8_i32_379 : i32
    %814 = tpu.assume_multiple %813, 8 : i32
    %815 = arith.index_cast %814 : i32 to index
    %c0_380 = arith.constant 0 : index
    %816 = vector.load %arg15[%815, %c0_380] : memref<64x512xf32, #tpu.memory_space<vmem>>, vector<8x512xf32>
    %c0_381 = arith.constant 0 : index
    %c0_382 = arith.constant 0 : index
    %817 = vector.load %arg19[%c0_381, %c0_382] : memref<8x128xf32, #tpu.memory_space<vmem>>, vector<8x128xf32>
    %cst_383 = arith.constant dense<0.000000e+00> : vector<8x512xf32>
    %818 = tpu.matmul %817, %627, %cst_383 {dimension_numbers = #tpu.dot_dimension_numbers<[1], [0], [0], [1], [0, 0, 1, 1], [], []>} : vector<8x128xf32>, vector<128x512xf32>, vector<8x512xf32> -> vector<8x512xf32>
    %819 = arith.addf %816, %818 : vector<8x512xf32>
    %820 = vector.extract_strided_slice %819 {offsets = [0, 0], sizes = [8, 128], strides = [1, 1]} : vector<8x512xf32> to vector<8x128xf32>
    %821 = arith.negf %820 : vector<8x128xf32>
    %822 = math.exp %821 : vector<8x128xf32>
    %cst_384 = arith.constant 1.000000e+00 : f32
    %823 = vector.broadcast %cst_384 : f32 to vector<8x128xf32>
    %824 = arith.addf %823, %822 : vector<8x128xf32>
    %825 = arith.divf %823, %824 : vector<8x128xf32>
    %826 = vector.extract_strided_slice %819 {offsets = [0, 128], sizes = [8, 128], strides = [1, 1]} : vector<8x512xf32> to vector<8x128xf32>
    %827 = arith.negf %826 : vector<8x128xf32>
    %828 = math.exp %827 : vector<8x128xf32>
    %cst_385 = arith.constant 1.000000e+00 : f32
    %829 = vector.broadcast %cst_385 : f32 to vector<8x128xf32>
    %830 = arith.addf %829, %828 : vector<8x128xf32>
    %831 = arith.divf %829, %830 : vector<8x128xf32>
    %832 = vector.extract_strided_slice %819 {offsets = [0, 256], sizes = [8, 128], strides = [1, 1]} : vector<8x512xf32> to vector<8x128xf32>
    %833 = math.tanh %832 : vector<8x128xf32>
    %834 = vector.extract_strided_slice %819 {offsets = [0, 384], sizes = [8, 128], strides = [1, 1]} : vector<8x512xf32> to vector<8x128xf32>
    %835 = arith.negf %834 : vector<8x128xf32>
    %836 = math.exp %835 : vector<8x128xf32>
    %cst_386 = arith.constant 1.000000e+00 : f32
    %837 = vector.broadcast %cst_386 : f32 to vector<8x128xf32>
    %838 = arith.addf %837, %836 : vector<8x128xf32>
    %839 = arith.divf %837, %838 : vector<8x128xf32>
    %c0_387 = arith.constant 0 : index
    %c0_388 = arith.constant 0 : index
    %840 = vector.load %arg20[%c0_387, %c0_388] : memref<8x128xf32, #tpu.memory_space<vmem>>, vector<8x128xf32>
    %841 = arith.mulf %831, %840 : vector<8x128xf32>
    %842 = arith.mulf %825, %833 : vector<8x128xf32>
    %843 = arith.addf %841, %842 : vector<8x128xf32>
    %844 = math.tanh %843 : vector<8x128xf32>
    %845 = arith.mulf %839, %844 : vector<8x128xf32>
    %c0_389 = arith.constant 0 : index
    %c0_390 = arith.constant 0 : index
    %846 = vector.load %arg20[%c0_389, %c0_390] : memref<8x128xf32, #tpu.memory_space<vmem>>, vector<8x128xf32>
    tpu.vector_store %arg20[%c0_389, %c0_390], %843 {strides = array<i32>} : memref<8x128xf32, #tpu.memory_space<vmem>>, vector<8x128xf32>,
    %c0_391 = arith.constant 0 : index
    %c0_392 = arith.constant 0 : index
    %847 = vector.load %arg19[%c0_391, %c0_392] : memref<8x128xf32, #tpu.memory_space<vmem>>, vector<8x128xf32>
    tpu.vector_store %arg19[%c0_391, %c0_392], %845 {strides = array<i32>} : memref<8x128xf32, #tpu.memory_space<vmem>>, vector<8x128xf32>,
    %848 = arith.index_cast %814 : i32 to index
    %c0_393 = arith.constant 0 : index
    %849 = vector.load %arg18[%848, %c0_393] : memref<64x128xf32, #tpu.memory_space<vmem>>, vector<8x128xf32>
    tpu.vector_store %arg18[%848, %c0_393], %845 {strides = array<i32>} : memref<64x128xf32, #tpu.memory_space<vmem>>, vector<8x128xf32>,
    %c6_i32_394 = arith.constant 6 : i32
    %c8_i32_395 = arith.constant 8 : i32
    %850 = arith.muli %c6_i32_394, %c8_i32_395 : i32
    %851 = tpu.assume_multiple %850, 8 : i32
    %852 = arith.index_cast %851 : i32 to index
    %c0_396 = arith.constant 0 : index
    %853 = vector.load %arg15[%852, %c0_396] : memref<64x512xf32, #tpu.memory_space<vmem>>, vector<8x512xf32>
    %c0_397 = arith.constant 0 : index
    %c0_398 = arith.constant 0 : index
    %854 = vector.load %arg19[%c0_397, %c0_398] : memref<8x128xf32, #tpu.memory_space<vmem>>, vector<8x128xf32>
    %cst_399 = arith.constant dense<0.000000e+00> : vector<8x512xf32>
    %855 = tpu.matmul %854, %627, %cst_399 {dimension_numbers = #tpu.dot_dimension_numbers<[1], [0], [0], [1], [0, 0, 1, 1], [], []>} : vector<8x128xf32>, vector<128x512xf32>, vector<8x512xf32> -> vector<8x512xf32>
    %856 = arith.addf %853, %855 : vector<8x512xf32>
    %857 = vector.extract_strided_slice %856 {offsets = [0, 0], sizes = [8, 128], strides = [1, 1]} : vector<8x512xf32> to vector<8x128xf32>
    %858 = arith.negf %857 : vector<8x128xf32>
    %859 = math.exp %858 : vector<8x128xf32>
    %cst_400 = arith.constant 1.000000e+00 : f32
    %860 = vector.broadcast %cst_400 : f32 to vector<8x128xf32>
    %861 = arith.addf %860, %859 : vector<8x128xf32>
    %862 = arith.divf %860, %861 : vector<8x128xf32>
    %863 = vector.extract_strided_slice %856 {offsets = [0, 128], sizes = [8, 128], strides = [1, 1]} : vector<8x512xf32> to vector<8x128xf32>
    %864 = arith.negf %863 : vector<8x128xf32>
    %865 = math.exp %864 : vector<8x128xf32>
    %cst_401 = arith.constant 1.000000e+00 : f32
    %866 = vector.broadcast %cst_401 : f32 to vector<8x128xf32>
    %867 = arith.addf %866, %865 : vector<8x128xf32>
    %868 = arith.divf %866, %867 : vector<8x128xf32>
    %869 = vector.extract_strided_slice %856 {offsets = [0, 256], sizes = [8, 128], strides = [1, 1]} : vector<8x512xf32> to vector<8x128xf32>
    %870 = math.tanh %869 : vector<8x128xf32>
    %871 = vector.extract_strided_slice %856 {offsets = [0, 384], sizes = [8, 128], strides = [1, 1]} : vector<8x512xf32> to vector<8x128xf32>
    %872 = arith.negf %871 : vector<8x128xf32>
    %873 = math.exp %872 : vector<8x128xf32>
    %cst_402 = arith.constant 1.000000e+00 : f32
    %874 = vector.broadcast %cst_402 : f32 to vector<8x128xf32>
    %875 = arith.addf %874, %873 : vector<8x128xf32>
    %876 = arith.divf %874, %875 : vector<8x128xf32>
    %c0_403 = arith.constant 0 : index
    %c0_404 = arith.constant 0 : index
    %877 = vector.load %arg20[%c0_403, %c0_404] : memref<8x128xf32, #tpu.memory_space<vmem>>, vector<8x128xf32>
    %878 = arith.mulf %868, %877 : vector<8x128xf32>
    %879 = arith.mulf %862, %870 : vector<8x128xf32>
    %880 = arith.addf %878, %879 : vector<8x128xf32>
    %881 = math.tanh %880 : vector<8x128xf32>
    %882 = arith.mulf %876, %881 : vector<8x128xf32>
    %c0_405 = arith.constant 0 : index
    %c0_406 = arith.constant 0 : index
    %883 = vector.load %arg20[%c0_405, %c0_406] : memref<8x128xf32, #tpu.memory_space<vmem>>, vector<8x128xf32>
    tpu.vector_store %arg20[%c0_405, %c0_406], %880 {strides = array<i32>} : memref<8x128xf32, #tpu.memory_space<vmem>>, vector<8x128xf32>,
    %c0_407 = arith.constant 0 : index
    %c0_408 = arith.constant 0 : index
    %884 = vector.load %arg19[%c0_407, %c0_408] : memref<8x128xf32, #tpu.memory_space<vmem>>, vector<8x128xf32>
    tpu.vector_store %arg19[%c0_407, %c0_408], %882 {strides = array<i32>} : memref<8x128xf32, #tpu.memory_space<vmem>>, vector<8x128xf32>,
    %885 = arith.index_cast %851 : i32 to index
    %c0_409 = arith.constant 0 : index
    %886 = vector.load %arg18[%885, %c0_409] : memref<64x128xf32, #tpu.memory_space<vmem>>, vector<8x128xf32>
    tpu.vector_store %arg18[%885, %c0_409], %882 {strides = array<i32>} : memref<64x128xf32, #tpu.memory_space<vmem>>, vector<8x128xf32>,
    %c7_i32_410 = arith.constant 7 : i32
    %c8_i32_411 = arith.constant 8 : i32
    %887 = arith.muli %c7_i32_410, %c8_i32_411 : i32
    %888 = tpu.assume_multiple %887, 8 : i32
    %889 = arith.index_cast %888 : i32 to index
    %c0_412 = arith.constant 0 : index
    %890 = vector.load %arg15[%889, %c0_412] : memref<64x512xf32, #tpu.memory_space<vmem>>, vector<8x512xf32>
    %c0_413 = arith.constant 0 : index
    %c0_414 = arith.constant 0 : index
    %891 = vector.load %arg19[%c0_413, %c0_414] : memref<8x128xf32, #tpu.memory_space<vmem>>, vector<8x128xf32>
    %cst_415 = arith.constant dense<0.000000e+00> : vector<8x512xf32>
    %892 = tpu.matmul %891, %627, %cst_415 {dimension_numbers = #tpu.dot_dimension_numbers<[1], [0], [0], [1], [0, 0, 1, 1], [], []>} : vector<8x128xf32>, vector<128x512xf32>, vector<8x512xf32> -> vector<8x512xf32>
    %893 = arith.addf %890, %892 : vector<8x512xf32>
    %894 = vector.extract_strided_slice %893 {offsets = [0, 0], sizes = [8, 128], strides = [1, 1]} : vector<8x512xf32> to vector<8x128xf32>
    %895 = arith.negf %894 : vector<8x128xf32>
    %896 = math.exp %895 : vector<8x128xf32>
    %cst_416 = arith.constant 1.000000e+00 : f32
    %897 = vector.broadcast %cst_416 : f32 to vector<8x128xf32>
    %898 = arith.addf %897, %896 : vector<8x128xf32>
    %899 = arith.divf %897, %898 : vector<8x128xf32>
    %900 = vector.extract_strided_slice %893 {offsets = [0, 128], sizes = [8, 128], strides = [1, 1]} : vector<8x512xf32> to vector<8x128xf32>
    %901 = arith.negf %900 : vector<8x128xf32>
    %902 = math.exp %901 : vector<8x128xf32>
    %cst_417 = arith.constant 1.000000e+00 : f32
    %903 = vector.broadcast %cst_417 : f32 to vector<8x128xf32>
    %904 = arith.addf %903, %902 : vector<8x128xf32>
    %905 = arith.divf %903, %904 : vector<8x128xf32>
    %906 = vector.extract_strided_slice %893 {offsets = [0, 256], sizes = [8, 128], strides = [1, 1]} : vector<8x512xf32> to vector<8x128xf32>
    %907 = math.tanh %906 : vector<8x128xf32>
    %908 = vector.extract_strided_slice %893 {offsets = [0, 384], sizes = [8, 128], strides = [1, 1]} : vector<8x512xf32> to vector<8x128xf32>
    %909 = arith.negf %908 : vector<8x128xf32>
    %910 = math.exp %909 : vector<8x128xf32>
    %cst_418 = arith.constant 1.000000e+00 : f32
    %911 = vector.broadcast %cst_418 : f32 to vector<8x128xf32>
    %912 = arith.addf %911, %910 : vector<8x128xf32>
    %913 = arith.divf %911, %912 : vector<8x128xf32>
    %c0_419 = arith.constant 0 : index
    %c0_420 = arith.constant 0 : index
    %914 = vector.load %arg20[%c0_419, %c0_420] : memref<8x128xf32, #tpu.memory_space<vmem>>, vector<8x128xf32>
    %915 = arith.mulf %905, %914 : vector<8x128xf32>
    %916 = arith.mulf %899, %907 : vector<8x128xf32>
    %917 = arith.addf %915, %916 : vector<8x128xf32>
    %918 = math.tanh %917 : vector<8x128xf32>
    %919 = arith.mulf %913, %918 : vector<8x128xf32>
    %c0_421 = arith.constant 0 : index
    %c0_422 = arith.constant 0 : index
    %920 = vector.load %arg20[%c0_421, %c0_422] : memref<8x128xf32, #tpu.memory_space<vmem>>, vector<8x128xf32>
    tpu.vector_store %arg20[%c0_421, %c0_422], %917 {strides = array<i32>} : memref<8x128xf32, #tpu.memory_space<vmem>>, vector<8x128xf32>,
    %c0_423 = arith.constant 0 : index
    %c0_424 = arith.constant 0 : index
    %921 = vector.load %arg19[%c0_423, %c0_424] : memref<8x128xf32, #tpu.memory_space<vmem>>, vector<8x128xf32>
    tpu.vector_store %arg19[%c0_423, %c0_424], %919 {strides = array<i32>} : memref<8x128xf32, #tpu.memory_space<vmem>>, vector<8x128xf32>,
    %922 = arith.index_cast %888 : i32 to index
    %c0_425 = arith.constant 0 : index
    %923 = vector.load %arg18[%922, %c0_425] : memref<64x128xf32, #tpu.memory_space<vmem>>, vector<8x128xf32>
    tpu.vector_store %arg18[%922, %c0_425], %919 {strides = array<i32>} : memref<64x128xf32, #tpu.memory_space<vmem>>, vector<8x128xf32>,
    %c8_i32_426 = arith.constant 8 : i32
    %c0_427 = arith.constant 0 : index
    %c0_428 = arith.constant 0 : index
    %924 = vector.load %arg18[%c0_427, %c0_428] : memref<64x128xf32, #tpu.memory_space<vmem>>, vector<64x128xf32>
    %c0_429 = arith.constant 0 : index
    %c0_430 = arith.constant 0 : index
    %925 = vector.load %arg10[%c0_429, %c0_430] : memref<128x128xf32, #tpu.memory_space<vmem>>, vector<128x128xf32>
    %cst_431 = arith.constant dense<0.000000e+00> : vector<64x128xf32>
    %926 = tpu.matmul %924, %925, %cst_431 {dimension_numbers = #tpu.dot_dimension_numbers<[1], [0], [0], [1], [0, 0, 1, 1], [], []>} : vector<64x128xf32>, vector<128x128xf32>, vector<64x128xf32> -> vector<64x128xf32>
    %c0_432 = arith.constant 0 : index
    %c0_433 = arith.constant 0 : index
    %927 = vector.load %arg11[%c0_432, %c0_433] : memref<1x128xf32, #tpu.memory_space<vmem>>, vector<1x128xf32>
    %928 = vector.broadcast %927 : vector<1x128xf32> to vector<64x128xf32>
    %929 = arith.addf %926, %928 : vector<64x128xf32>
    %c0_434 = arith.constant 0 : index
    %c0_435 = arith.constant 0 : index
    %930 = vector.load %arg12[%c0_434, %c0_435] : memref<64x128xf32, #tpu.memory_space<vmem>>, vector<64x128xf32>
    tpu.vector_store %arg12[%c0_434, %c0_435], %929 {strides = array<i32>} : memref<64x128xf32, #tpu.memory_space<vmem>>, vector<64x128xf32>,
    return
  }
}

</mosaic_0001>

<bundles_post_ra>
// kernel: tpu_custom_call.1
= control target key start
LH: loop header
LB: loop body
LE: loop exit
PB: predicated region body
PF: predicated region fallthrough
CT: control target
= control target key end

     0   :  { %17 = vsyncpa [#allocation13], 0  ;;  %s9229_s0 = inlined_call_operand.vmem [shape: f32[64,8], index: 0, kind: input, shape index: {}]   ;;  %s9230_s1 = inlined_call_operand.vmem [shape: f32[8,512], index: 1, kind: input, shape index: {}]   ;;  %s9231_s2 = inlined_call_operand.hbm [shape: f32[128,512], index: 2, kind: input, shape index: {}]   ;;  %s9232_s3 = inlined_call_operand.vmem [shape: f32[1,512], index: 3, kind: input, shape index: {}]   ;;  %s9233_s4 = inlined_call_operand.hbm [shape: f32[128,512], index: 4, kind: input, shape index: {}]   ;;  %s9234_s5 = inlined_call_operand.hbm [shape: f32[128,512], index: 5, kind: input, shape index: {}]   ;;  %s9235_s6 = inlined_call_operand.vmem [shape: f32[1,512], index: 6, kind: input, shape index: {}]   ;;  %s9236_s7 = inlined_call_operand.hbm [shape: f32[128,512], index: 7, kind: input, shape index: {}]   ;;  %s9237_s8 = inlined_call_operand.hbm [shape: f32[128,512], index: 8, kind: input, shape index: {}]   ;;  %s9238_s9 = inlined_call_operand.vmem [shape: f32[1,512], index: 9, kind: input, shape index: {}]   ;;  %s9239_s10 = inlined_call_operand.hbm [shape: f32[128,128], index: 10, kind: input, shape index: {}]   ;;  %s9240_s11 = inlined_call_operand.vmem [shape: f32[1,128], index: 11, kind: input, shape index: {}]   ;;  %s9241_s12 = inlined_call_operand.hbm [shape: f32[64,128], index: 12, kind: output, shape index: {}]  }
   0x1   :  { %18 = vsyncpa [#allocation16], 0 }
   0x2   :  { %19 = vsyncpa [#allocation19], 0 }
   0x3   :  { %20 = vsyncpa [#allocation22], 0 }
   0x4   :  { %21 = vsyncpa [#allocation14], 0  ;;  %s45_s23 = sshll.u32 %s9233_s4, 4  ;;  %s5947_s24 = smov [#allocation15]   ;;  %s46_s23 = int_to_ptr.hbm [resolvable:$true] %s45_s23 }
   0x5   :  { %s47_s25 = sshll.u32 %s5947_s24, 4  ;;  %s73_s28 = sshll.u32 %s9236_s7, 4  ;;  %s48_s25 = int_to_ptr.vmem [resolvable:$true] %s47_s25  ;;  %s74_s28 = int_to_ptr.hbm [resolvable:$true] %s73_s28 }
   0x6   :  { %s5948_s29 = smov 512   ;;  %s5949_s30 = smov 32  }
   0x7   :  { %53 = dma.hbm_to_vmem [thread:$0]  %s46_s23, 8192, %s48_s25, [#allocation16], %s5948_s29, %s5948_s29, %s5949_s30  }
   0x8   :  { %s5950_s13 = smov [#allocation18]   ;;  %s30_s4 = sshll.u32 %s9231_s2, 4  ;;  %s31_s4 = int_to_ptr.hbm [resolvable:$true] %s30_s4 }
   0x9   :  { %s75_s14 = sshll.u32 %s5950_s13, 4  ;;  %s58_s18 = sshll.u32 %s9234_s5, 4  ;;  %s76_s14 = int_to_ptr.vmem [resolvable:$true] %s75_s14  ;;  %s59_s18 = int_to_ptr.hbm [resolvable:$true] %s58_s18 }
   0xa   :  { %81 = dma.hbm_to_vmem [thread:$0]  %s74_s28, 8192, %s76_s14, [#allocation19], %s5948_s29, %s5948_s29, %s5949_s30  }
   0xb   :  { %s5951_s19 = smov [#allocation12]   ;;  %s5952_s21 = smov [#allocation17]  }
   0xc   :  { %s32_s20 = sshll.u32 %s5951_s19, 4  ;;  %s60_s2 = sshll.u32 %s5952_s21, 4  ;;  %s33_s20 = int_to_ptr.vmem [resolvable:$true] %s32_s20  ;;  %s61_s2 = int_to_ptr.vmem [resolvable:$true] %s60_s2 }
   0xd   :  { %38 = dma.hbm_to_vmem [thread:$0]  %s31_s4, 8192, %s33_s20, [#allocation13], %s5948_s29, %s5948_s29, %s5949_s30  }
   0xe   :  { %s86_s24 = sshll.u32 %s9237_s8, 4  ;;  %s101_s26 = sshll.u32 %s9239_s10, 4  ;;  %s87_s24 = int_to_ptr.hbm [resolvable:$true] %s86_s24  ;;  %s102_s26 = int_to_ptr.hbm [resolvable:$true] %s101_s26 }
   0xf   :  { %66 = dma.hbm_to_vmem [thread:$0]  %s59_s18, 8192, %s61_s2, [#allocation16], %s5948_s29, %s5948_s29, %s5949_s30  }
  0x10   :  { %s5953_s27 = smov [#allocation20]   ;;  %s5954_s13 = smov [#allocation21]  }
  0x11   :  { %s88_s28 = sshll.u32 %s5953_s27, 4  ;;  %s103_s8 = sshll.u32 %s5954_s13, 4  ;;  %s89_s28 = int_to_ptr.vmem [resolvable:$true] %s88_s28  ;;  %s104_s8 = int_to_ptr.vmem [resolvable:$true] %s103_s8 }
  0x12   :  { %94 = dma.hbm_to_vmem [thread:$0]  %s87_s24, 8192, %s89_s28, [#allocation19], %s5948_s29, %s5948_s29, %s5949_s30  }
  0x13   :  { %s5955_s14 = smov 128   ;;  %s5956_s15 = smov 8  }
  0x14   :  { %109 = dma.hbm_to_vmem [thread:$0]  %s102_s26, 2048, %s104_s8, [#allocation22], %s5955_s14, %s5955_s14, %s5956_s15  }
  0x15   :  { %5937 = dma.done.wait [#allocation13], 8192  }
  0x16   :  { %5938 = vsyncadd [#allocation13], 4294959104 }
  0x17   :  { %5939 = dma.done.wait [#allocation16], 16384  }
  0x18   :  { %5940 = vsyncadd [#allocation16], 4294950912 }
  0x19   :  { %5941 = dma.done.wait [#allocation19], 16384  }
  0x1a   :  { %5942 = vsyncadd [#allocation19], 4294950912 }
  0x1b   :  { %5943 = dma.done.wait [#allocation22], 2048  }
  0x1c   :  { %5944 = vsyncadd [#allocation22], 4294965248  ;;  %vm158_vm0 = vcmask 64512   ;;  %v144_v0 = vld [vmem:[%s9230_s1] sm:$0xff]  ;;  %v146_v1 = vld [vmem:[%s9230_s1 + $0x10] sm:$0xff]  ;;  %s5037_s19 = sshll.u32 %s9241_s12, 4  ;;  %s5038_s19 = int_to_ptr.hbm [resolvable:$true] %s5037_s19 }
  0x1d   :  { %v6069_v2 = vld [vmem:[%s9229_s0 + $0x20] sm:$0xff]  ;;  %5178 = vmatpush.msra.mxu1 %v144_v0  ;;  %5179 = vmatpush.msra.mxu3 %v144_v0  ;;  %v6074_v3 = vld [vmem:[%s9229_s0 + $0x28] sm:$0xff]  ;;  %v147_v5 = vld [vmem:[%s9230_s1 + $0x18] sm:$0xff] }
  0x1e   :  { %v6079_v4 = vld [vmem:[%s9229_s0] sm:$0xff]  ;;  %280 = vmatpush.msra.mxu2 %v146_v1  ;;  %5078 = vmatmul.msk.f32.vlgmr.msra.gmra.mxu1 %vm158_vm0, %v6069_v2  ;;  %v145_v6 = vld [vmem:[%s9230_s1 + $0x8] sm:$0xff]  ;;  %v6108_v12 = vld [vmem:[#allocation12 + $0x1f8] sm:$0xff] }
  0x1f   :  { %5079 = vmatmul.msk.f32.vlgmr.msra.gmra.mxu3 %vm158_vm0, %v6074_v3  ;;  %5090 = vmatmul.msk.f32.vlgmr.msra.gmra.mxu2 %vm158_vm0, %v6079_v4  ;;  %v6093_v7 = vld [vmem:[#allocation12 + $0x1e0] sm:$0xff]  ;;  %v6098_v9 = vld [vmem:[#allocation12 + $0x1e8] sm:$0xff]  ;;  %v6114_v13 = vld [vmem:[%s9229_s0 + $0x30] sm:$0xff] }
  0x20   :  { %9634 = vst [vmem:[#allocation29_spill] sm:$0xff] %v6093_v7  ;;  %321 = vmatpush.msrb.mxu3 %v147_v5  ;;  %239 = vmatpush.msrb.mxu1 %v145_v6  ;;  %v6095_v8 = vld [vmem:[#allocation12 + $0x1c0] sm:$0xff]  ;;  %v6103_v11 = vld [vmem:[#allocation12 + $0x1c8] sm:$0xff]  ;;  %v6123_v15 = vld [vmem:[#allocation12 + $0x1d8] sm:$0xff] }
  0x21   :  { %453 = vmatpush.msrb.mxu2 %v6093_v7  ;;  %198 = vmatpush.msra.mxu0 %v144_v0  ;;  %v6100_v10 = vld [vmem:[#allocation12 + $0x1a0] sm:$0xff]  ;;  %v6119_v14 = vld [vmem:[%s9229_s0 + $0x8] sm:$0xff]  ;;  %v6134_v18 = vld [vmem:[#allocation12 + $0x1b8] sm:$0xff] }
  0x22   :  { %473 = vmatpush.msra.mxu1 %v6098_v9  ;;  %5074 = vmatmul.msk.f32.vlgmr.msra.gmra.mxu0 %vm158_vm0, %v6079_v4  ;;  %v6126_v16 = vld [vmem:[#allocation12 + $0x180] sm:$0xff]  ;;  %v6128_v17 = vld [vmem:[#allocation12 + $0x1a8] sm:$0xff]  ;;  %v6146_v21 = vld [vmem:[#allocation12 + $0x198] sm:$0xff] }
  0x23   :  { %454 = vmatpush.msrb.mxu2 %v6095_v8  ;;  %612 = vmatpush.msrb.mxu0 %v6093_v7  ;;  %v6140_v19 = vld [vmem:[#allocation12 + $0x160] sm:$0xff]  ;;  %v6142_v20 = vld [vmem:[#allocation12 + $0x188] sm:$0xff]  ;;  %v6156_v24 = vld [vmem:[#allocation12 + $0x178] sm:$0xff] }
  0x24   :  { %474 = vmatpush.msra.mxu1 %v6103_v11  ;;  %513 = vmatpush.msra.mxu3 %v6108_v12  ;;  %v6148_v22 = vld [vmem:[#allocation12 + $0x140] sm:$0xff]  ;;  %v6151_v23 = vld [vmem:[#allocation12 + $0x168] sm:$0xff]  ;;  %v6165_v26 = vld [vmem:[%s9229_s0 + $0x38] sm:$0xff] }
  0x25   :  { %455 = vmatpush.msrb.mxu2 %v6100_v10  ;;  %613 = vmatpush.msrb.mxu0 %v6095_v8  ;;  %v6158_v25 = vld [vmem:[#allocation12 + $0x120] sm:$0xff]  ;;  %v6170_v27 = vld [vmem:[%s9229_s0 + $0x10] sm:$0xff]  ;;  %v6176_v29 = vld [vmem:[#allocation12 + $0x148] sm:$0xff] }
  0x26   :  { %5082 = vmatmul.msk.f32.vlgmr.msrb.gmra.mxu1 %vm158_vm0, %v6079_v4  ;;  %514 = vmatpush.msra.mxu3 %v6123_v15  ;;  %v6174_v28 = vld [vmem:[#allocation12 + $0x100] sm:$0xff]  ;;  %v6184_v30 = vld [vmem:[#allocation12 + $0x158] sm:$0xff]  ;;  %v6192_v32 = vld [vmem:[#allocation12 + $0x128] sm:$0xff] }
  0x27   :  { %5080 = vmatmul.msk.f32.gmra.mxu3 %vm158_vm0, %v6114_v13  ;;  %5091 = vmatmul.msk.f32.gmra.mxu2 %vm158_vm0, %v6119_v14  ;;  %v6190_v31 = vld [vmem:[#allocation12 + $0xe0] sm:$0xff]  ;;  %v6196_v33 = vld [vmem:[#allocation12 + $0x138] sm:$0xff]  ;;  %v6201_v35 = vld [vmem:[#allocation12 + $0x108] sm:$0xff] }
  0x28   :  { %456 = vmatpush.msrb.mxu2 %v6126_v16  ;;  %475 = vmatpush.msra.mxu1 %v6128_v17  ;;  %v6198_v34 = vld [vmem:[#allocation12 + $0xc0] sm:$0xff]  ;;  %v6206_v36 = vld [vmem:[#allocation12 + $0x118] sm:$0xff]  ;;  %v6221_v40 = vld [vmem:[#allocation12 + $0xe8] sm:$0xff] }
  0x29   :  { %515 = vmatpush.msra.mxu3 %v6134_v18  ;;  %614 = vmatpush.msrb.mxu0 %v6100_v10  ;;  %v6208_v37 = vld [vmem:[#allocation12 + $0xa0] sm:$0xff]  ;;  %v6215_v38 = vld [vmem:[%s9229_s0 + $0x18] sm:$0xff]  ;;  %v6234_v42 = vld [vmem:[#allocation12 + $0xc8] sm:$0xff] }
  0x2a   :  { %457 = vmatpush.msrb.mxu2 %v6140_v19  ;;  %476 = vmatpush.msra.mxu1 %v6142_v20  ;;  %v6219_v39 = vld [vmem:[#allocation12 + $0x80] sm:$0xff]  ;;  %v6236_v43 = vld [vmem:[#allocation12 + $0xf8] sm:$0xff]  ;;  %v6245_v46 = vld [vmem:[#allocation12 + $0xa8] sm:$0xff] }
  0x2b   :  { %516 = vmatpush.msra.mxu3 %v6146_v21  ;;  %615 = vmatpush.msrb.mxu0 %v6126_v16  ;;  %9635 = vst [vmem:[#allocation30_spill] sm:$0xff] %v6219_v39  ;;  %v6232_v41 = vld [vmem:[#allocation12 + $0x60] sm:$0xff]  ;;  %v6240_v44 = vld [vmem:[#allocation12 + $0xd8] sm:$0xff]  ;;  %v6259_v49 = vld [vmem:[#allocation12 + $0x88] sm:$0xff] }
  0x2c   :  { %458 = vmatpush.msrb.mxu2 %v6148_v22  ;;  %477 = vmatpush.msra.mxu1 %v6151_v23  ;;  %9636 = vst [vmem:[#allocation31_spill] sm:$0xff] %v6232_v41  ;;  %v6242_v45 = vld [vmem:[#allocation12 + $0x40] sm:$0xff]  ;;  %v6265_v50 = vld [vmem:[#allocation12 + $0x1f0] sm:$0xff]  ;;  %v6271_v51 = vld [vmem:[#allocation12 + $0xb8] sm:$0xff] }
  0x2d   :  { %517 = vmatpush.msra.mxu3 %v6156_v24  ;;  %5075 = vmatmul.msk.f32.gmra.mxu0 %vm158_vm0, %v6119_v14  ;;  %9637 = vst [vmem:[#allocation32_spill] sm:$0xff] %v6242_v45  ;;  %v6250_v47 = vld [vmem:[#allocation12 + $0x20] sm:$0xff]  ;;  %v6273_v52 = vld [vmem:[#allocation12 + $0x68] sm:$0xff]  ;;  %v6276_v53 = vld [vmem:[#allocation12 + $0x1d0] sm:$0xff] }
  0x2e   :  { %5083 = vmatmul.msk.f32.gmra.mxu1 %vm158_vm0, %v6119_v14  ;;  %459 = vmatpush.msrb.mxu2 %v6158_v25  ;;  %9638 = vst [vmem:[#allocation33_spill] sm:$0xff] %v6245_v46  ;;  %v6257_v48 = vld [vmem:[#allocation12] sm:$0xff]  ;;  %v6279_v54 = vld [vmem:[#allocation12 + $0x98] sm:$0xff]  ;;  %v6283_v55 = vld [vmem:[#allocation12 + $0x48] sm:$0xff] }
  0x2f   :  { %5081 = vmatmul.msk.f32.gmra.mxu3 %vm158_vm0, %v6165_v26  ;;  %5092 = vmatmul.msk.f32.gmra.mxu2 %vm158_vm0, %v6170_v27  ;;  %9639 = vst [vmem:[#allocation34_spill] sm:$0xff] %v6250_v47  ;;  %v6285_v56 = vld [vmem:[#allocation12 + $0x1b0] sm:$0xff]  ;;  %v6296_v58 = vld [vmem:[#allocation12 + $0x28] sm:$0xff]  ;;  %v6311_v61 = vld [vmem:[#allocation12 + $0x78] sm:$0xff] }
  0x30   :  { %460 = vmatpush.msrb.mxu2 %v6174_v28  ;;  %478 = vmatpush.msra.mxu1 %v6176_v29  ;;  %9640 = vst [vmem:[#allocation35_spill] sm:$0xff] %v6257_v48  ;;  %v6294_v57 = vld [vmem:[#allocation12 + $0x190] sm:$0xff]  ;;  %v6309_v60 = vld [vmem:[#allocation12 + $0x8] sm:$0xff]  ;;  %v6315_v62 = vld [vmem:[#allocation12 + $0x58] sm:$0xff] }
  0x31   :  { %518 = vmatpush.msra.mxu3 %v6184_v30  ;;  %616 = vmatpush.msrb.mxu0 %v6140_v19  ;;  %9641 = vst [vmem:[#allocation36_spill] sm:$0xff] %v6259_v49  ;;  %v6307_v59 = vld [vmem:[#allocation12 + $0x170] sm:$0xff]  ;;  %v6341_v5 = vld [vmem:[#allocation12 + $0x38] sm:$0xff] }
  0x32   :  { %461 = vmatpush.msrb.mxu2 %v6190_v31  ;;  %479 = vmatpush.msra.mxu1 %v6192_v32  ;;  %9642 = vst [vmem:[#allocation37_spill] sm:$0xff] %v6271_v51  ;;  %v6317_v63 = vld [vmem:[#allocation12 + $0x150] sm:$0xff]  ;;  %v6343_v6 = vld [vmem:[#allocation12 + $0x18] sm:$0xff] }
  0x33   :  { %519 = vmatpush.msra.mxu3 %v6196_v33  ;;  %617 = vmatpush.msrb.mxu0 %v6148_v22  ;;  %9643 = vst [vmem:[#allocation38_spill] sm:$0xff] %v6273_v52  ;;  %v6323_v0 = vld [vmem:[#allocation12 + $0x130] sm:$0xff] }
  0x34   :  { %462 = vmatpush.msrb.mxu2 %v6198_v34  ;;  %480 = vmatpush.msra.mxu1 %v6201_v35  ;;  %9644 = vst [vmem:[#allocation39_spill] sm:$0xff] %v6279_v54  ;;  %v6329_v1 = vld [vmem:[#allocation12 + $0x110] sm:$0xff] }
  0x35   :  { %520 = vmatpush.msra.mxu3 %v6206_v36  ;;  %618 = vmatpush.msrb.mxu0 %v6158_v25  ;;  %9645 = vst [vmem:[#allocation40_spill] sm:$0xff] %v6283_v55 }
  0x36   :  { %5084 = vmatmul.msk.f32.gmra.mxu1 %vm158_vm0, %v6170_v27  ;;  %463 = vmatpush.msrb.mxu2 %v6208_v37  ;;  %9646 = vst [vmem:[#allocation41_spill] sm:$0xff] %v6296_v58 }
  0x37   :  { %5093 = vmatmul.msk.f32.gmra.mxu2 %vm158_vm0, %v6215_v38  ;;  %5098 = vmatmul.msk.f32.vlgmr.msrb.gmra.mxu3 %vm158_vm0, %v6079_v4  ;;  %9647 = vst [vmem:[#allocation42_spill] sm:$0xff] %v6309_v60  ;;  %v6339_v4 = vld [vmem:[#allocation12 + $0xf0] sm:$0xff] }
  0x38   :  { %464 = vmatpush.msrb.mxu2 %v6219_v39  ;;  %481 = vmatpush.msra.mxu1 %v6221_v40  ;;  %9648 = vst [vmem:[#allocation43_spill] sm:$0xff] %v6311_v61 }
  0x39   :  { %521 = vmatpush.msra.mxu3 %v6236_v43  ;;  %619 = vmatpush.msrb.mxu0 %v6174_v28  ;;  %9649 = vst [vmem:[#allocation44_spill] sm:$0xff] %v6315_v62 }
  0x3a   :  { %465 = vmatpush.msrb.mxu2 %v6232_v41  ;;  %482 = vmatpush.msra.mxu1 %v6234_v42  ;;  %9650 = vst [vmem:[#allocation45_spill] sm:$0xff] %v6341_v5 }
  0x3b   :  { %522 = vmatpush.msra.mxu3 %v6240_v44  ;;  %5076 = vmatmul.msk.f32.gmra.mxu0 %vm158_vm0, %v6170_v27  ;;  %9651 = vst [vmem:[#allocation46_spill] sm:$0xff] %v6343_v6 }
  0x3c   :  { %466 = vmatpush.msrb.mxu2 %v6242_v45  ;;  %483 = vmatpush.msra.mxu1 %v6245_v46 }
  0x3d   :  { %620 = vmatpush.msrb.mxu0 %v6190_v31  ;;  %523 = vmatpush.msra.mxu3 %v6271_v51 }
  0x3e   :  { %5085 = vmatmul.msk.f32.gmra.mxu1 %vm158_vm0, %v6215_v38  ;;  %467 = vmatpush.msrb.mxu2 %v6250_v47 }
  0x3f   :  { %5094 = vmatmul.msk.f32.gmra.mxu2 %vm158_vm0, %v6069_v2  ;;  %5099 = vmatmul.msk.f32.gmra.mxu3 %vm158_vm0, %v6119_v14  ;;  %v6347_v14 = vld [vmem:[#allocation12 + $0xd0] sm:$0xff] }
  0x40   :  { %468 = vmatpush.msrb.mxu2 %v6257_v48  ;;  %484 = vmatpush.msra.mxu1 %v6259_v49 }
  0x41   :  { %621 = vmatpush.msrb.mxu0 %v6198_v34  ;;  %524 = vmatpush.msra.mxu3 %v6279_v54 }
  0x42   :  { %493 = vmatpush.msra.mxu2 %v6265_v50  ;;  %485 = vmatpush.msra.mxu1 %v6273_v52 }
  0x43   :  { %622 = vmatpush.msrb.mxu0 %v6208_v37  ;;  %525 = vmatpush.msra.mxu3 %v6311_v61 }
  0x44   :  { %494 = vmatpush.msra.mxu2 %v6276_v53  ;;  %486 = vmatpush.msra.mxu1 %v6283_v55 }
  0x45   :  { %5077 = vmatmul.msk.f32.gmra.mxu0 %vm158_vm0, %v6215_v38  ;;  %526 = vmatpush.msra.mxu3 %v6315_v62 }
  0x46   :  { %495 = vmatpush.msra.mxu2 %v6285_v56  ;;  %5086 = vmatmul.msk.f32.gmra.mxu1 %vm158_vm0, %v6069_v2 }
  0x47   :  { %623 = vmatpush.msrb.mxu0 %v6219_v39  ;;  %5095 = vmatmul.msk.f32.gmra.mxu2 %vm158_vm0, %v6074_v3 }
  0x48   :  { %5100 = vmatmul.msk.f32.gmra.mxu3 %vm158_vm0, %v6170_v27  ;;  %496 = vmatpush.msra.mxu2 %v6294_v57  ;;  %v6353_v27 = vld [vmem:[#allocation12 + $0xb0] sm:$0xff] }
  0x49   :  { %487 = vmatpush.msra.mxu1 %v6296_v58  ;;  %624 = vmatpush.msrb.mxu0 %v6232_v41  ;;  %9652 = vst [vmem:[#allocation47_spill] sm:$0xff] %v6353_v27 }
  0x4a   :  { %497 = vmatpush.msra.mxu2 %v6307_v59  ;;  %527 = vmatpush.msra.mxu3 %v6341_v5 }
  0x4b   :  { %488 = vmatpush.msra.mxu1 %v6309_v60  ;;  %625 = vmatpush.msrb.mxu0 %v6242_v45  ;;  %v6380_v45 = vld [vmem:[#allocation12 + $0x30] sm:$0xff] }
  0x4c   :  { %498 = vmatpush.msra.mxu2 %v6317_v63  ;;  %528 = vmatpush.msra.mxu3 %v6343_v6  ;;  %9656 = vst [vmem:[#allocation51_spill] sm:$0xff] %v6380_v45 }
  0x4d   :  { %632 = vmatpush.msrb.mxu1 %v6098_v9  ;;  %626 = vmatpush.msrb.mxu0 %v6250_v47  ;;  %v6370_v47 = vld [vmem:[#allocation12 + $0x70] sm:$0xff] }
  0x4e   :  { %5087 = vmatmul.msk.f32.gmra.mxu1 %vm158_vm0, %v6074_v3  ;;  %499 = vmatpush.msra.mxu2 %v6323_v0  ;;  %9654 = vst [vmem:[#allocation49_spill] sm:$0xff] %v6370_v47 }
  0x4f   :  { %633 = vmatpush.msrb.mxu1 %v6103_v11  ;;  %5096 = vmatmul.msk.f32.gmra.mxu2 %vm158_vm0, %v6114_v13 }
  0x50   :  { %5101 = vmatmul.msk.f32.gmra.mxu3 %vm158_vm0, %v6215_v38  ;;  %500 = vmatpush.msra.mxu2 %v6329_v1  ;;  %v6359_v38 = vld [vmem:[#allocation12 + $0x90] sm:$0xff] }
  0x51   :  { %634 = vmatpush.msrb.mxu1 %v6128_v17  ;;  %672 = vmatpush.msrb.mxu3 %v6108_v12  ;;  %9653 = vst [vmem:[#allocation48_spill] sm:$0xff] %v6359_v38 }
  0x52   :  { %501 = vmatpush.msra.mxu2 %v6339_v4  ;;  %627 = vmatpush.msrb.mxu0 %v6257_v48  ;;  %v6374_v48 = vld [vmem:[#allocation12 + $0x50] sm:$0xff] }
  0x53   :  { %635 = vmatpush.msrb.mxu1 %v6142_v20  ;;  %673 = vmatpush.msrb.mxu3 %v6123_v15  ;;  %9655 = vst [vmem:[#allocation50_spill] sm:$0xff] %v6374_v48 }
  0x54   :  { %502 = vmatpush.msra.mxu2 %v6347_v14  ;;  %772 = vmatpush.msra.mxu0 %v6093_v7  ;;  %v9249_v7 = vmov 0.0  }
  0x55   :  { %636 = vmatpush.msrb.mxu1 %v6151_v23  ;;  %674 = vmatpush.msrb.mxu3 %v6134_v18 }
  0x56   :  { %5088 = vmatmul.msk.f32.gmra.mxu1 %vm158_vm0, %v6114_v13  ;;  %503 = vmatpush.msra.mxu2 %v6353_v27 }
  0x57   :  { %5097 = vmatmul.msk.f32.gmra.mxu2 %vm158_vm0, %v6165_v26  ;;  %637 = vmatpush.msrb.mxu1 %v6176_v29 }
  0x58   :  { %5102 = vmatmul.msk.f32.gmra.mxu3 %vm158_vm0, %v6069_v2  ;;  %504 = vmatpush.msra.mxu2 %v6359_v38  ;;  %v6386_v2 = vld [vmem:[#allocation12 + $0x10] sm:$0xff] }
  0x59   :  { %675 = vmatpush.msrb.mxu3 %v6146_v21  ;;  %638 = vmatpush.msrb.mxu1 %v6192_v32  ;;  %9657 = vst [vmem:[#allocation52_spill] sm:$0xff] %v6386_v2 }
  0x5a   :  { %505 = vmatpush.msra.mxu2 %v6370_v47  ;;  %773 = vmatpush.msra.mxu0 %v6095_v8 }
  0x5b   :  { %676 = vmatpush.msrb.mxu3 %v6156_v24  ;;  %639 = vmatpush.msrb.mxu1 %v6201_v35 }
  0x5c   :  { %506 = vmatpush.msra.mxu2 %v6374_v48  ;;  %774 = vmatpush.msra.mxu0 %v6100_v10 }
  0x5d   :  { %677 = vmatpush.msrb.mxu3 %v6184_v30  ;;  %640 = vmatpush.msrb.mxu1 %v6221_v40 }
  0x5e   :  { %5089 = vmatmul.msk.f32.gmra.mxu1 %vm158_vm0, %v6165_v26  ;;  %507 = vmatpush.msra.mxu2 %v6380_v45 }
  0x5f   :  { %469 = vmatmul.f32.vlgmr.msrb.gmra.mxu2 %v9249_v7  ;;  %678 = vmatpush.msrb.mxu3 %v6196_v33 }
  0x60   :  { %5103 = vmatmul.msk.f32.gmra.mxu3 %vm158_vm0, %v6074_v3  ;;  %508 = vmatpush.msra.mxu2 %v6386_v2  ;;  %v9658_v3 = vld [vmem:[#allocation32_spill] sm:$0xff] }
  0x61   :  { %775 = vmatpush.msra.mxu0 %v6126_v16  ;;  %641 = vmatpush.msrb.mxu1 %v6234_v42 }
  0x62   :  { %652 = vmatpush.msrb.mxu2 %v6265_v50  ;;  %679 = vmatpush.msrb.mxu3 %v6206_v36 }
  0x63   :  { %776 = vmatpush.msra.mxu0 %v6140_v19  ;;  %642 = vmatpush.msrb.mxu1 %v6245_v46 }
  0x64   :  { %653 = vmatpush.msrb.mxu2 %v6276_v53  ;;  %680 = vmatpush.msrb.mxu3 %v6236_v43 }
  0x65   :  { %643 = vmatpush.msrb.mxu1 %v6259_v49  ;;  %777 = vmatpush.msra.mxu0 %v6148_v22 }
  0x66   :  { %654 = vmatpush.msrb.mxu2 %v6285_v56  ;;  %489 = vmatmul.f32.vlgmr.msra.gmra.mxu1 %v9249_v7 }
  0x67   :  { %509 = vmatmul.f32.vlgmr.msra.gmra.mxu2 %v9249_v7  ;;  %681 = vmatpush.msrb.mxu3 %v6240_v44 }
  0x68   :  { %5104 = vmatmul.msk.f32.gmra.mxu3 %vm158_vm0, %v6114_v13  ;;  %655 = vmatpush.msrb.mxu2 %v6294_v57  ;;  %v9659_v13 = vld [vmem:[#allocation34_spill] sm:$0xff] }
  0x69   :  { %682 = vmatpush.msrb.mxu3 %v6271_v51  ;;  %644 = vmatpush.msrb.mxu1 %v6273_v52 }
  0x6a   :  { %656 = vmatpush.msrb.mxu2 %v6307_v59  ;;  %778 = vmatpush.msra.mxu0 %v6158_v25 }
  0x6b   :  { %683 = vmatpush.msrb.mxu3 %v6279_v54  ;;  %645 = vmatpush.msrb.mxu1 %v6283_v55 }
  0x6c   :  { %657 = vmatpush.msrb.mxu2 %v6317_v63  ;;  %779 = vmatpush.msra.mxu0 %v6174_v28 }
  0x6d   :  { %684 = vmatpush.msrb.mxu3 %v6311_v61  ;;  %646 = vmatpush.msrb.mxu1 %v6296_v58 }
  0x6e   :  { %658 = vmatpush.msrb.mxu2 %v6323_v0  ;;  %780 = vmatpush.msra.mxu0 %v6190_v31 }
  0x6f   :  { %685 = vmatpush.msrb.mxu3 %v6315_v62  ;;  %647 = vmatpush.msrb.mxu1 %v6309_v60 }
  0x70   :  { %5105 = vmatmul.msk.f32.gmra.mxu3 %vm158_vm0, %v6165_v26  ;;  %659 = vmatpush.msrb.mxu2 %v6329_v1  ;;  %v9660_v26 = vld [vmem:[#allocation35_spill] sm:$0xff] }
  0x71   :  { %686 = vmatpush.msrb.mxu3 %v6341_v5  ;;  %792 = vmatpush.msra.mxu1 %v6098_v9 }
  0x72   :  { %660 = vmatpush.msrb.mxu2 %v6339_v4  ;;  %781 = vmatpush.msra.mxu0 %v6198_v34 }
  0x73   :  { %687 = vmatpush.msrb.mxu3 %v6343_v6  ;;  %793 = vmatpush.msra.mxu1 %v6103_v11 }
  0x74   :  { %661 = vmatpush.msrb.mxu2 %v6347_v14  ;;  %782 = vmatpush.msra.mxu0 %v6208_v37 }
  0x75   :  { %794 = vmatpush.msra.mxu1 %v6128_v17 }
  0x76   :  { %662 = vmatpush.msrb.mxu2 %v6353_v27  ;;  %783 = vmatpush.msra.mxu0 %v6219_v39 }
  0x77   :  { %795 = vmatpush.msra.mxu1 %v6142_v20 }
  0x78   :  { %529 = vmatmul.f32.vlgmr.msra.gmra.mxu3 %v9249_v7  ;;  %663 = vmatpush.msrb.mxu2 %v6359_v38 }
  0x79   :  { %832 = vmatpush.msra.mxu3 %v6108_v12  ;;  %796 = vmatpush.msra.mxu1 %v6151_v23 }
  0x7a   :  { %664 = vmatpush.msrb.mxu2 %v6370_v47  ;;  %784 = vmatpush.msra.mxu0 %v6232_v41 }
  0x7b   :  { %833 = vmatpush.msra.mxu3 %v6123_v15  ;;  %797 = vmatpush.msra.mxu1 %v6176_v29 }
  0x7c   :  { %665 = vmatpush.msrb.mxu2 %v6374_v48  ;;  %785 = vmatpush.msra.mxu0 %v9658_v3 }
  0x7d   :  { %834 = vmatpush.msra.mxu3 %v6134_v18  ;;  %798 = vmatpush.msra.mxu1 %v6192_v32 }
  0x7e   :  { %666 = vmatpush.msrb.mxu2 %v6380_v45  ;;  %786 = vmatpush.msra.mxu0 %v9659_v13 }
  0x7f   :  { %835 = vmatpush.msra.mxu3 %v6146_v21  ;;  %799 = vmatpush.msra.mxu1 %v6201_v35 }
  0x80   :  { %667 = vmatpush.msrb.mxu2 %v6386_v2  ;;  %787 = vmatpush.msra.mxu0 %v9660_v26 }
  0x81   :  { %836 = vmatpush.msra.mxu3 %v6156_v24  ;;  %800 = vmatpush.msra.mxu1 %v6221_v40 }
  0x82   :  { %812 = vmatpush.msra.mxu2 %v6265_v50 }
  0x83   :  { %837 = vmatpush.msra.mxu3 %v6184_v30  ;;  %801 = vmatpush.msra.mxu1 %v6234_v42 }
  0x84   :  { %813 = vmatpush.msra.mxu2 %v6276_v53 }
  0x85   :  { %838 = vmatpush.msra.mxu3 %v6196_v33  ;;  %802 = vmatpush.msra.mxu1 %v6245_v46 }
  0x86   :  { %814 = vmatpush.msra.mxu2 %v6285_v56 }
  0x87   :  { %839 = vmatpush.msra.mxu3 %v6206_v36  ;;  %803 = vmatpush.msra.mxu1 %v6259_v49 }
  0x88   :  { %815 = vmatpush.msra.mxu2 %v6294_v57 }
  0x89   :  { %840 = vmatpush.msra.mxu3 %v6236_v43  ;;  %804 = vmatpush.msra.mxu1 %v6273_v52 }
  0x8a   :  { %816 = vmatpush.msra.mxu2 %v6307_v59 }
  0x8b   :  { %841 = vmatpush.msra.mxu3 %v6240_v44  ;;  %805 = vmatpush.msra.mxu1 %v6283_v55 }
  0x8c   :  { %817 = vmatpush.msra.mxu2 %v6317_v63 }
  0x8d   :  { %842 = vmatpush.msra.mxu3 %v6271_v51  ;;  %806 = vmatpush.msra.mxu1 %v6296_v58 }
  0x8e   :  { %818 = vmatpush.msra.mxu2 %v6323_v0 }
  0x8f   :  { %843 = vmatpush.msra.mxu3 %v6279_v54  ;;  %807 = vmatpush.msra.mxu1 %v6309_v60 }
  0x90   :  { %819 = vmatpush.msra.mxu2 %v6329_v1 }
  0x91   :  { %844 = vmatpush.msra.mxu3 %v6311_v61 }
  0x92   :  { %820 = vmatpush.msra.mxu2 %v6339_v4 }
  0x93   :  { %845 = vmatpush.msra.mxu3 %v6315_v62 }
  0x94   :  { %821 = vmatpush.msra.mxu2 %v6347_v14 }
  0x95   :  { %846 = vmatpush.msra.mxu3 %v6341_v5 }
  0x96   :  { %822 = vmatpush.msra.mxu2 %v6353_v27 }
  0x97   :  { %847 = vmatpush.msra.mxu3 %v6343_v6 }
  0x98   :  { %823 = vmatpush.msra.mxu2 %v6359_v38 }
  0x9a   :  { %824 = vmatpush.msra.mxu2 %v6370_v47 }
  0x9b   :  { %v6497_v7 = vpop.f32.mrf.mxu1 }
  0x9c   :  { %9661 = vst [vmem:[#allocation53_spill] sm:$0xff] %v6497_v7  ;;  %825 = vmatpush.msra.mxu2 %v6374_v48 }
  0x9e   :  { %826 = vmatpush.msra.mxu2 %v6380_v45 }
  0xa0   :  { %827 = vmatpush.msra.mxu2 %v6386_v2 }
  0xa2   :  { %v6502_v60 = vpop.f32.mrf.mxu3  ;;  %v282_v26 = vpop.f32.mrf.mxu2 }
  0xa3   :  { %9662 = vst [vmem:[#allocation54_spill] sm:$0xff] %v6502_v60  ;;  %v241_v5 = vpop.f32.mrf.mxu1 }
  0xaa   :  { %v6504_v58 = vpop.f32.mrf.mxu3  ;;  %v6506_v13 = vpop.f32.mrf.mxu2 }
  0xab   :  { %9663 = vst [vmem:[#allocation55_spill] sm:$0xff] %v6504_v58  ;;  %v6508_v6 = vpop.f32.mrf.mxu1 }
  0xac   :  { %9664 = vst [vmem:[#allocation56_spill] sm:$0xff] %v6506_v13 }
  0xad   :  { %9665 = vst [vmem:[#allocation57_spill] sm:$0xff] %v6508_v6 }
  0xb2   :  { %v6510_v62 = vpop.f32.mrf.mxu3  ;;  %v6512_v55 = vpop.f32.mrf.mxu2 }
  0xb3   :  { %9666 = vst [vmem:[#allocation58_spill] sm:$0xff] %v6510_v62  ;;  %v6514_v7 = vpop.f32.mrf.mxu1 }
  0xb4   :  { %9667 = vst [vmem:[#allocation59_spill] sm:$0xff] %v6512_v55 }
  0xb5   :  { %9668 = vst [vmem:[#allocation60_spill] sm:$0xff] %v6514_v7 }
  0xba   :  { %v6516_v48 = vpop.f32.mrf.mxu2  ;;  %v323_v45 = vpop.f32.mrf.mxu3 }
  0xbb   :  { %9669 = vst [vmem:[#allocation61_spill] sm:$0xff] %v6516_v48  ;;  %v6518_v2 = vpop.f32.mrf.mxu1 }
  0xbc   :  { %9670 = vst [vmem:[#allocation62_spill] sm:$0xff] %v6518_v2 }
  0xc2   :  { %v6520_v60 = vpop.f32.mrf.mxu2  ;;  %v6522_v3 = vpop.f32.mrf.mxu3 }
  0xc3   :  { %9671 = vst [vmem:[#allocation63_spill] sm:$0xff] %v6520_v60  ;;  %v6524_v58 = vpop.f32.mrf.mxu1  ;;  %v148_v60 = vld [vmem:[%s9232_s3] sm:$0xf] }
  0xc4   :  { %9672 = vst [vmem:[#allocation64_spill] sm:$0xff] %v6522_v3 }
  0xc5   :  { %9673 = vst [vmem:[#allocation65_spill] sm:$0xff] %v6524_v58 }
  0xca   :  { %v6526_v13 = vpop.f32.mrf.mxu2 }
  0xcb   :  { %9674 = vst [vmem:[#allocation66_spill] sm:$0xff] %v6526_v13  ;;  %v6528_v6 = vpop.f32.mrf.mxu3  ;;  %v6530_v62 = vpop.f32.mrf.mxu1 }
  0xcc   :  { %9675 = vst [vmem:[#allocation67_spill] sm:$0xff] %v6528_v6  ;;  %v200_v13 = vpop.f32.mrf.mxu0  ;;  %v6547_v6 = vperm.slane %v148_v60, 0 }
  0xcd   :  { %9676 = vst [vmem:[#allocation68_spill] sm:$0xff] %v6530_v62  ;;  %v6549_v62 = vperm.slane %v148_v60, 1 }
  0xce   :  { %9683 = vst [vmem:[#allocation75_spill] sm:$0xff] %v6547_v6 }
  0xcf   :  { %9684 = vst [vmem:[#allocation76_spill] sm:$0xff] %v6549_v62 }
  0xd2   :  { %v6532_v55 = vpop.f32.mrf.mxu2 }
  0xd3   :  { %9677 = vst [vmem:[#allocation69_spill] sm:$0xff] %v6532_v55  ;;  %v6534_v7 = vpop.f32.mrf.mxu3  ;;  %v6536_v48 = vpop.f32.mrf.mxu1  ;;  %v201_v55 = vadd.f32 %v200_v13, %v6547_v6 }
  0xd4   :  { %9678 = vst [vmem:[#allocation70_spill] sm:$0xff] %v6534_v7  ;;  %v242_v7 = vadd.f32 %v241_v5, %v6549_v62  ;;  %v6559_v5 = vperm.slane %v148_v60, 3 }
  0xd5   :  { %9679 = vst [vmem:[#allocation71_spill] sm:$0xff] %v6536_v48 }
  0xd6   :  { %9688 = vst [vmem:[#allocation80_spill] sm:$0xff] %v6559_v5 }
  0xda   :  { %v6541_v2 = vpop.f32.mrf.mxu2 }
  0xdb   :  { %9680 = vst [vmem:[#allocation72_spill] sm:$0xff] %v6541_v2  ;;  %v6543_v3 = vpop.f32.mrf.mxu3  ;;  %v6545_v58 = vpop.f32.mrf.mxu1 }
  0xdc   :  { %9681 = vst [vmem:[#allocation73_spill] sm:$0xff] %v6543_v3 }
  0xdd   :  { %9682 = vst [vmem:[#allocation74_spill] sm:$0xff] %v6545_v58 }
  0xe2   :  { %v470_v61 = vpop.f32.mrf.mxu2 }
  0xe3   :  { %v6553_v48 = vpop.f32.mrf.mxu3  ;;  %v533_v47 = vadd.f32 %v470_v61, %v201_v55  ;;  %v490_v52 = vpop.f32.mrf.mxu1 }
  0xe4   :  { %9685 = vst [vmem:[#allocation77_spill] sm:$0xff] %v6553_v48  ;;  %v534_v41 = vadd.f32 %v490_v52, %v242_v7 }
  0xe5   :  { %v5106_v2 = vmul.f32 -1.442695, %v533_v47 }
  0xe6   :  { %v5107_v54 = vmul.f32 -1.442695, %v534_v41  ;;  %v324_v41 = vadd.f32 %v323_v45, %v6559_v5 }
  0xe7   :  { %5193 = vpow2.f32 %v5106_v2  ;;  %v6562_v2 = vperm.slane %v148_v60, 2 }
  0xe8   :  { %5195 = vpow2.f32 %v5107_v54 }
  0xe9   :  { %9689 = vst [vmem:[#allocation81_spill] sm:$0xff] %v6562_v2 }
  0xea   :  { %v510_v6 = vpop.f32.mrf.mxu2 }
  0xeb   :  { %v6555_v58 = vpop.f32.mrf.mxu3 }
  0xec   :  { %9686 = vst [vmem:[#allocation78_spill] sm:$0xff] %v6555_v58 }
  0xed   :  { %v5194_v3 = vpop.eup %5193 }
  0xee   :  { %v5196_v38 = vpop.eup %5195  ;;  %v540_v49 = vadd.f32 1.0, %v5194_v3 }
  0xef   :  { %v559_v39 = vadd.f32 1.0, %v5196_v38 }
  0xf0   :  { %5197 = vrcp.f32 %v540_v49  ;;  %vm546_vm1 = vweird.f32 %v540_v49  ;;  %v552_v45 = vand.u32 2147483648, %v540_v49 }
  0xf1   :  { %5199 = vrcp.f32 %v559_v39  ;;  %v571_v27 = vand.u32 2147483648, %v559_v39  ;;  %vm565_vm4 = vweird.f32 %v559_v39 }
  0xf3   :  { %v6557_v13 = vpop.f32.mrf.mxu3 }
  0xf4   :  { %9687 = vst [vmem:[#allocation79_spill] sm:$0xff] %v6557_v13  ;;  %v283_v13 = vadd.f32 %v282_v26, %v6562_v2  ;;  %v572_v26 = vor.u32 1.1754944e-38, %v571_v27 }
  0xf6   :  { %v5198_v48 = vpop.eup %5197  ;;  %v535_v46 = vadd.f32 %v510_v6, %v283_v13 }
  0xf7   :  { %v5200_v55 = vpop.eup %5199  ;;  %v542_v61 = vmul.f32 %v5198_v48, %v540_v49  ;;  %vm547_vm2 = vweird.f32 %v5198_v48 }
  0xf8   :  { %v561_v7 = vmul.f32 %v5200_v55, %v559_v39  ;;  %vm566_vm3 = vweird.f32 %v5200_v55  ;;  %vm6565_vm5 = vmor %vm546_vm1, %vm547_vm2 }
  0xf9   :  { %v543_v47 = vsub.f32 1.0, %v542_v61  ;;  %vm567_vm6 = vmor %vm565_vm4, %vm566_vm3 }
  0xfa   :  { %v562_v52 = vsub.f32 1.0, %v561_v7  ;;  %v550_v7 = vand.u32 2147483647, %v540_v49 }
  0xfb   :  { %v530_v54 = vpop.f32.mrf.mxu3  ;;  %v544_v62 = vmul.f32 %v5198_v48, %v543_v47 }
  0xfc   :  { %v536_v58 = vadd.f32 %v530_v54, %v324_v41  ;;  %v563_v3 = vmul.f32 %v5200_v55, %v562_v52  ;;  %v553_v52 = vor.u32 1.1754944e-38, %v552_v45  ;;  %vm551_vm7 = vcmp.eq.f32.partialorder %v550_v7, 8.507059e+37 }
  0xfd   :  { %v545_v61 = vadd.f32 %v5198_v48, %v544_v62 }
  0xfe   :  { %v5108_v38 = vmul.f32 -1.442695, %v536_v58  ;;  %v564_v51 = vadd.f32 %v5200_v55, %v563_v3  ;;  %v569_v58 = vand.u32 2147483647, %v559_v39 }
  0xff   :  { %v549_v54 = vsel %vm6565_vm5, %v5198_v48, %v545_v61 }
 0x100   :  { %5201 = vpow2.f32 %v5108_v38  ;;  %v568_v41 = vsel %vm567_vm6, %v5200_v55, %v564_v51  ;;  %vm570_vm8 = vcmp.eq.f32.partialorder %v569_v58, 8.507059e+37  ;;  %v554_v62 = vsel %vm551_vm7, %v553_v52, %v549_v54 }
 0x101   :  { %5203 = vtanh.f32 %v535_v46  ;;  %v573_v13 = vsel %vm570_vm8, %v572_v26, %v568_v41 }
 0x102   :  { %v596_v3 = vmul.f32 0.0, %v573_v13 }
 0x106   :  { %v5202_v47 = vpop.eup %5201 }
 0x107   :  { %v579_v6 = vadd.f32 1.0, %v5202_v47  ;;  %v5204_v38 = vpop.eup %5203 }
 0x108   :  { %v597_v2 = vmul.f32 %v5204_v38, %v554_v62 }
 0x109   :  { %5205 = vrcp.f32 %v579_v6  ;;  %v591_v46 = vand.u32 2147483648, %v579_v6  ;;  %v589_v48 = vand.u32 2147483647, %v579_v6  ;;  %vm585_vm10 = vweird.f32 %v579_v6 }
 0x10a   :  { %v6571_v39 = vadd.f32 %v597_v2, %v596_v3  ;;  %v9693_v2 = vld [vmem:[#allocation29_spill] sm:$0xff]  ;;  %v9721_v3 = vld [vmem:[#allocation64_spill] sm:$0xff] }
 0x10b   :  { %v592_v61 = vor.u32 1.1754944e-38, %v591_v46  ;;  %vm590_vm12 = vcmp.eq.f32.partialorder %v589_v48, 8.507059e+37  ;;  %v327_v38 = vadd.f32 %v9721_v3, %v6559_v5 }
 0x10c   :  { %5207 = vtanh.f32 %v6571_v39 }
 0x10f   :  { %v5206_v49 = vpop.eup %5205 }
 0x110   :  { %v581_v51 = vmul.f32 %v5206_v49, %v579_v6  ;;  %vm586_vm9 = vweird.f32 %v5206_v49 }
 0x111   :  { %vm587_vm11 = vmor %vm585_vm10, %vm586_vm9 }
 0x112   :  { %v582_v55 = vsub.f32 1.0, %v581_v51  ;;  %v5208_v7 = vpop.eup %5207 }
 0x114   :  { %v583_v27 = vmul.f32 %v5206_v49, %v582_v55 }
 0x116   :  { %v584_v45 = vadd.f32 %v5206_v49, %v583_v27 }
 0x118   :  { %v588_v60 = vsel %vm587_vm11, %v5206_v49, %v584_v45 }
 0x119   :  { %v593_v58 = vsel %vm590_vm12, %v592_v61, %v588_v60 }
 0x11a   :  { %v6574_v41 = vmul.f32 %v5208_v7, %v593_v58  ;;  %v9722_v7 = vld [vmem:[#allocation81_spill] sm:$0xff]  ;;  %v9723_v58 = vld [vmem:[#allocation56_spill] sm:$0xff] }
 0x11c   :  { %9692 = vst [vmem:[#allocation82_spill] sm:$0xff] %v6574_v41  ;;  %628 = vmatmul.f32.vlgmr.msrb.gmra.mxu0 %v6574_v41  ;;  %648 = vmatmul.f32.vlgmr.msrb.gmra.mxu1 %v6574_v41 }
 0x11d   :  { %668 = vmatmul.f32.vlgmr.msrb.gmra.mxu2 %v6574_v41  ;;  %688 = vmatmul.f32.vlgmr.msrb.gmra.mxu3 %v6574_v41 }
 0x11e   :  { %932 = vmatpush.msrb.mxu0 %v9693_v2  ;;  %952 = vmatpush.msrb.mxu1 %v6098_v9  ;;  %v9695_v9 = vld [vmem:[#allocation47_spill] sm:$0xff]  ;;  %v286_v2 = vadd.f32 %v9723_v58, %v9722_v7 }
 0x11f   :  { %972 = vmatpush.msrb.mxu2 %v6265_v50  ;;  %992 = vmatpush.msrb.mxu3 %v6108_v12  ;;  %v9698_v12 = vld [vmem:[#allocation36_spill] sm:$0xff] }
 0x120   :  { %933 = vmatpush.msrb.mxu0 %v6095_v8  ;;  %953 = vmatpush.msrb.mxu1 %v6103_v11  ;;  %v9694_v8 = vld [vmem:[#allocation33_spill] sm:$0xff]  ;;  %v9697_v11 = vld [vmem:[#allocation30_spill] sm:$0xff] }
 0x121   :  { %973 = vmatpush.msrb.mxu2 %v6276_v53  ;;  %993 = vmatpush.msrb.mxu3 %v6123_v15  ;;  %v9699_v15 = vld [vmem:[#allocation48_spill] sm:$0xff] }
 0x122   :  { %934 = vmatpush.msrb.mxu0 %v6100_v10  ;;  %954 = vmatpush.msrb.mxu1 %v6128_v17  ;;  %v9696_v10 = vld [vmem:[#allocation37_spill] sm:$0xff]  ;;  %v9701_v17 = vld [vmem:[#allocation31_spill] sm:$0xff] }
 0x123   :  { %974 = vmatpush.msrb.mxu2 %v6285_v56  ;;  %994 = vmatpush.msrb.mxu3 %v6134_v18  ;;  %v9702_v18 = vld [vmem:[#allocation38_spill] sm:$0xff] }
 0x124   :  { %935 = vmatpush.msrb.mxu0 %v6126_v16  ;;  %955 = vmatpush.msrb.mxu1 %v6142_v20  ;;  %v9700_v16 = vld [vmem:[#allocation39_spill] sm:$0xff] }
 0x125   :  { %975 = vmatpush.msrb.mxu2 %v6294_v57  ;;  %995 = vmatpush.msrb.mxu3 %v6146_v21  ;;  %v9704_v20 = vld [vmem:[#allocation43_spill] sm:$0xff]  ;;  %v9705_v21 = vld [vmem:[#allocation32_spill] sm:$0xff] }
 0x126   :  { %936 = vmatpush.msrb.mxu0 %v6140_v19  ;;  %956 = vmatpush.msrb.mxu1 %v6151_v23  ;;  %v9703_v19 = vld [vmem:[#allocation49_spill] sm:$0xff]  ;;  %v9707_v23 = vld [vmem:[#allocation50_spill] sm:$0xff] }
 0x127   :  { %976 = vmatpush.msrb.mxu2 %v6307_v59  ;;  %996 = vmatpush.msrb.mxu3 %v6156_v24  ;;  %v9708_v24 = vld [vmem:[#allocation44_spill] sm:$0xff] }
 0x128   :  { %937 = vmatpush.msrb.mxu0 %v6148_v22  ;;  %957 = vmatpush.msrb.mxu1 %v6176_v29  ;;  %v9706_v22 = vld [vmem:[#allocation40_spill] sm:$0xff]  ;;  %v9711_v29 = vld [vmem:[#allocation51_spill] sm:$0xff] }
 0x129   :  { %977 = vmatpush.msrb.mxu2 %v6317_v63  ;;  %997 = vmatpush.msrb.mxu3 %v6184_v30  ;;  %v9712_v30 = vld [vmem:[#allocation45_spill] sm:$0xff] }
 0x12a   :  { %938 = vmatpush.msrb.mxu0 %v6158_v25  ;;  %958 = vmatpush.msrb.mxu1 %v6192_v32  ;;  %v9709_v25 = vld [vmem:[#allocation34_spill] sm:$0xff] }
 0x12b   :  { %978 = vmatpush.msrb.mxu2 %v6323_v0  ;;  %998 = vmatpush.msrb.mxu3 %v6196_v33  ;;  %v9714_v32 = vld [vmem:[#allocation42_spill] sm:$0xff]  ;;  %v9715_v33 = vld [vmem:[#allocation52_spill] sm:$0xff] }
 0x12c   :  { %939 = vmatpush.msrb.mxu0 %v6174_v28  ;;  %959 = vmatpush.msrb.mxu1 %v6201_v35  ;;  %v9710_v28 = vld [vmem:[#allocation41_spill] sm:$0xff]  ;;  %v203_v35 = vpop.f32.mrf.mxu0 }
 0x12d   :  { %979 = vmatpush.msrb.mxu2 %v6329_v1  ;;  %999 = vmatpush.msrb.mxu3 %v6206_v36 }
 0x12e   :  { %940 = vmatpush.msrb.mxu0 %v6190_v31  ;;  %960 = vmatpush.msrb.mxu1 %v6221_v40  ;;  %v9713_v31 = vld [vmem:[#allocation35_spill] sm:$0xff]  ;;  %v9718_v40 = vld [vmem:[#allocation76_spill] sm:$0xff] }
 0x12f   :  { %980 = vmatpush.msrb.mxu2 %v6339_v4  ;;  %1000 = vmatpush.msrb.mxu3 %v6236_v43 }
 0x130   :  { %941 = vmatpush.msrb.mxu0 %v6198_v34  ;;  %961 = vmatpush.msrb.mxu1 %v6234_v42  ;;  %v9716_v34 = vld [vmem:[#allocation46_spill] sm:$0xff]  ;;  %v9719_v42 = vld [vmem:[#allocation57_spill] sm:$0xff] }
 0x131   :  { %981 = vmatpush.msrb.mxu2 %v6347_v14  ;;  %1001 = vmatpush.msrb.mxu3 %v6240_v44  ;;  %v245_v43 = vadd.f32 %v9719_v42, %v9718_v40  ;;  %v9720_v44 = vld [vmem:[#allocation75_spill] sm:$0xff] }
 0x132   :  { %942 = vmatpush.msrb.mxu0 %v6208_v37  ;;  %962 = vmatpush.msrb.mxu1 %v9694_v8  ;;  %v204_v47 = vadd.f32 %v203_v35, %v9720_v44 }
 0x133   :  { %982 = vmatpush.msrb.mxu2 %v9695_v9  ;;  %1002 = vmatpush.msrb.mxu3 %v9696_v10 }
 0x134   :  { %943 = vmatpush.msrb.mxu0 %v9697_v11  ;;  %963 = vmatpush.msrb.mxu1 %v9698_v12  ;;  %v6644_v36 = vpop.f32.mrf.mxu0 }
 0x135   :  { %983 = vmatpush.msrb.mxu2 %v9699_v15  ;;  %1003 = vmatpush.msrb.mxu3 %v9700_v16 }
 0x136   :  { %944 = vmatpush.msrb.mxu0 %v9701_v17  ;;  %964 = vmatpush.msrb.mxu1 %v9702_v18 }
 0x137   :  { %984 = vmatpush.msrb.mxu2 %v9703_v19  ;;  %1004 = vmatpush.msrb.mxu3 %v9704_v20 }
 0x138   :  { %945 = vmatpush.msrb.mxu0 %v9705_v21  ;;  %965 = vmatpush.msrb.mxu1 %v9706_v22 }
 0x139   :  { %985 = vmatpush.msrb.mxu2 %v9707_v23  ;;  %1005 = vmatpush.msrb.mxu3 %v9708_v24 }
 0x13a   :  { %946 = vmatpush.msrb.mxu0 %v9709_v25  ;;  %966 = vmatpush.msrb.mxu1 %v9710_v28 }
 0x13b   :  { %986 = vmatpush.msrb.mxu2 %v9711_v29  ;;  %1006 = vmatpush.msrb.mxu3 %v9712_v30 }
 0x13c   :  { %947 = vmatpush.msrb.mxu0 %v9713_v31  ;;  %967 = vmatpush.msrb.mxu1 %v9714_v32  ;;  %v6646_v37 = vpop.f32.mrf.mxu0 }
 0x13d   :  { %987 = vmatpush.msrb.mxu2 %v9715_v33  ;;  %1007 = vmatpush.msrb.mxu3 %v9716_v34  ;;  %9717 = vst [vmem:[#allocation29_spill] sm:$0xff] %v6646_v37 }
 0x199   :  { %v629_v26 = vpop.f32.mrf.mxu0  ;;  %v649_v52 = vpop.f32.mrf.mxu1 }
 0x19a   :  { %v692_v54 = vadd.f32 %v629_v26, %v204_v47  ;;  %v693_v6 = vadd.f32 %v649_v52, %v245_v43 }
 0x19c   :  { %v5109_v13 = vmul.f32 -1.442695, %v692_v54  ;;  %v5110_v62 = vmul.f32 -1.442695, %v693_v6 }
 0x19e   :  { %5209 = vpow2.f32 %v5109_v13 }
 0x19f   :  { %5211 = vpow2.f32 %v5110_v62 }
 0x1a0   :  { %v689_v49 = vpop.f32.mrf.mxu3  ;;  %v669_v61 = vpop.f32.mrf.mxu2 }
 0x1a1   :  { %v695_v51 = vadd.f32 %v689_v49, %v327_v38  ;;  %v694_v17 = vadd.f32 %v669_v61, %v286_v2 }
 0x1a3   :  { %v5111_v55 = vmul.f32 -1.442695, %v695_v51 }
 0x1a4   :  { %v5210_v46 = vpop.eup %5209 }
 0x1a5   :  { %v5212_v27 = vpop.eup %5211  ;;  %v699_v48 = vadd.f32 1.0, %v5210_v46  ;;  %5213 = vpow2.f32 %v5111_v55 }
 0x1a6   :  { %v718_v45 = vadd.f32 1.0, %v5212_v27 }
 0x1a7   :  { %5215 = vrcp.f32 %v699_v48  ;;  %v711_v43 = vand.u32 2147483648, %v699_v48  ;;  %v709_v52 = vand.u32 2147483647, %v699_v48  ;;  %vm705_vm15 = vweird.f32 %v699_v48 }
 0x1a8   :  { %5217 = vrcp.f32 %v718_v45  ;;  %v730_v47 = vand.u32 2147483648, %v718_v45  ;;  %v728_v6 = vand.u32 2147483647, %v718_v45  ;;  %vm724_vm0 = vweird.f32 %v718_v45 }
 0x1a9   :  { %v712_v3 = vor.u32 1.1754944e-38, %v711_v43  ;;  %vm710_vm3 = vcmp.eq.f32.partialorder %v709_v52, 8.507059e+37  ;;  %v6675_v52 = vld [vmem:[#allocation12 + $0x1c0] sm:$0xff] }
 0x1aa   :  { %v731_v51 = vor.u32 1.1754944e-38, %v730_v47  ;;  %vm729_vm4 = vcmp.eq.f32.partialorder %v728_v6, 8.507059e+37  ;;  %v6682_v6 = vld [vmem:[#allocation12 + $0x1d8] sm:$0xff] }
 0x1ab   :  { %v5214_v60 = vpop.eup %5213 }
 0x1ac   :  { %v738_v8 = vadd.f32 1.0, %v5214_v60 }
 0x1ad   :  { %v5216_v11 = vpop.eup %5215 }
 0x1ae   :  { %v5218_v21 = vpop.eup %5217  ;;  %v701_v25 = vmul.f32 %v5216_v11, %v699_v48  ;;  %5219 = vrcp.f32 %v738_v8  ;;  %vm706_vm13 = vweird.f32 %v5216_v11  ;;  %vm744_vm6 = vweird.f32 %v738_v8 }
 0x1af   :  { %v720_v31 = vmul.f32 %v5218_v21, %v718_v45  ;;  %5221 = vtanh.f32 %v694_v17  ;;  %vm725_vm14 = vweird.f32 %v5218_v21  ;;  %vm707_vm1 = vmor %vm705_vm15, %vm706_vm13 }
 0x1b0   :  { %v702_v35 = vsub.f32 1.0, %v701_v25  ;;  %vm726_vm2 = vmor %vm724_vm0, %vm725_vm14 }
 0x1b1   :  { %v721_v42 = vsub.f32 1.0, %v720_v31  ;;  %v750_v31 = vand.u32 2147483648, %v738_v8 }
 0x1b2   :  { %v703_v26 = vmul.f32 %v5216_v11, %v702_v35 }
 0x1b3   :  { %v722_v54 = vmul.f32 %v5218_v21, %v721_v42  ;;  %v751_v42 = vor.u32 1.1754944e-38, %v750_v31  ;;  %v6765_v31 = vld [vmem:[#allocation12 + $0xa0] sm:$0xff] }
 0x1b4   :  { %v5220_v13 = vpop.eup %5219  ;;  %v704_v62 = vadd.f32 %v5216_v11, %v703_v26  ;;  %v6672_v26 = vld [vmem:[#allocation12 + $0x1f8] sm:$0xff]  ;;  %9726 = vst [vmem:[#allocation37_spill] sm:$0xff] %v6765_v31 }
 0x1b5   :  { %v723_v38 = vadd.f32 %v5218_v21, %v722_v54  ;;  %v740_v49 = vmul.f32 %v5220_v13, %v738_v8  ;;  %v5222_v46 = vpop.eup %5221  ;;  %vm745_vm5 = vweird.f32 %v5220_v13  ;;  %v6678_v54 = vld [vmem:[#allocation12 + $0x1c8] sm:$0xff] }
 0x1b6   :  { %v708_v55 = vsel %vm707_vm1, %v5216_v11, %v704_v62  ;;  %v748_v11 = vand.u32 2147483647, %v738_v8  ;;  %vm746_vm7 = vmor %vm744_vm6, %vm745_vm5  ;;  %v6668_v8 = vld [vmem:[#allocation12 + $0x1e8] sm:$0xff]  ;;  %v6692_v62 = vld [vmem:[#allocation12 + $0x1b8] sm:$0xff] }
 0x1b7   :  { %v713_v27 = vsel %vm710_vm3, %v712_v3, %v708_v55  ;;  %v727_v61 = vsel %vm726_vm2, %v5218_v21, %v723_v38  ;;  %v741_v60 = vsub.f32 1.0, %v740_v49  ;;  %v6695_v3 = vld [vmem:[#allocation12 + $0x180] sm:$0xff]  ;;  %v6702_v38 = vld [vmem:[#allocation12 + $0x198] sm:$0xff] }
 0x1b8   :  { %v732_v58 = vsel %vm729_vm4, %v731_v51, %v727_v61  ;;  %v756_v2 = vmul.f32 %v5222_v46, %v713_v27  ;;  %vm749_vm8 = vcmp.eq.f32.partialorder %v748_v11, 8.507059e+37  ;;  %v6705_v49 = vld [vmem:[#allocation12 + $0x160] sm:$0xff]  ;;  %v6712_v51 = vld [vmem:[#allocation12 + $0x178] sm:$0xff] }
 0x1b9   :  { %v755_v17 = vmul.f32 %v732_v58, %v6571_v39  ;;  %v742_v25 = vmul.f32 %v5220_v13, %v741_v60  ;;  %v6665_v39 = vld [vmem:[#allocation12 + $0x1e0] sm:$0xff]  ;;  %v6722_v46 = vld [vmem:[#allocation12 + $0x158] sm:$0xff] }
 0x1ba   :  { %v6715_v55 = vld [vmem:[#allocation12 + $0x140] sm:$0xff]  ;;  %v6732_v61 = vld [vmem:[#allocation12 + $0x138] sm:$0xff] }
 0x1bb   :  { %v6656_v48 = vadd.f32 %v756_v2, %v755_v17  ;;  %v743_v45 = vadd.f32 %v5220_v13, %v742_v25  ;;  %v6725_v27 = vld [vmem:[#allocation12 + $0x120] sm:$0xff]  ;;  %v6742_v58 = vld [vmem:[#allocation12 + $0x118] sm:$0xff] }
 0x1bc   :  { %v6735_v60 = vld [vmem:[#allocation12 + $0x100] sm:$0xff]  ;;  %v6752_v17 = vld [vmem:[#allocation12 + $0xf8] sm:$0xff] }
 0x1bd   :  { %5223 = vtanh.f32 %v6656_v48  ;;  %v747_v35 = vsel %vm746_vm7, %v5220_v13, %v743_v45  ;;  %v6685_v13 = vld [vmem:[#allocation12 + $0x1a0] sm:$0xff]  ;;  %v6762_v45 = vld [vmem:[#allocation12 + $0xd8] sm:$0xff] }
 0x1be   :  { %v752_v43 = vsel %vm749_vm8, %v751_v42, %v747_v35  ;;  %v6745_v2 = vld [vmem:[#allocation12 + $0xe0] sm:$0xff]  ;;  %9725 = vst [vmem:[#allocation47_spill] sm:$0xff] %v6762_v45 }
 0x1bf   :  { %v6755_v25 = vld [vmem:[#allocation12 + $0xc0] sm:$0xff] }
 0x1c0   :  { %v6773_v11 = vld [vmem:[#allocation12 + $0x80] sm:$0xff] }
 0x1c1   :  { %9728 = vst [vmem:[#allocation36_spill] sm:$0xff] %v6773_v11 }
 0x1c3   :  { %v5224_v21 = vpop.eup %5223 }
 0x1c4   :  { %v6659_v47 = vmul.f32 %v5224_v21, %v752_v43 }
 0x1c6   :  { %9724 = vst [vmem:[#allocation33_spill] sm:$0xff] %v6659_v47  ;;  %788 = vmatmul.f32.vlgmr.msra.gmra.mxu0 %v6659_v47  ;;  %808 = vmatmul.f32.vlgmr.msra.gmra.mxu1 %v6659_v47 }
 0x1c7   :  { %828 = vmatmul.f32.vlgmr.msra.gmra.mxu2 %v6659_v47  ;;  %848 = vmatmul.f32.vlgmr.msra.gmra.mxu3 %v6659_v47 }
 0x1c8   :  { %1092 = vmatpush.msra.mxu0 %v6665_v39  ;;  %1112 = vmatpush.msra.mxu1 %v6668_v8 }
 0x1c9   :  { %1132 = vmatpush.msra.mxu2 %v6265_v50  ;;  %1152 = vmatpush.msra.mxu3 %v6672_v26  ;;  %v6688_v50 = vld [vmem:[#allocation12 + $0x1a8] sm:$0xff] }
 0x1ca   :  { %1093 = vmatpush.msra.mxu0 %v6675_v52  ;;  %1113 = vmatpush.msra.mxu1 %v6678_v54 }
 0x1cb   :  { %1133 = vmatpush.msra.mxu2 %v6276_v53  ;;  %1153 = vmatpush.msra.mxu3 %v6682_v6  ;;  %v6698_v53 = vld [vmem:[#allocation12 + $0x188] sm:$0xff] }
 0x1cc   :  { %1094 = vmatpush.msra.mxu0 %v6685_v13  ;;  %1114 = vmatpush.msra.mxu1 %v6688_v50 }
 0x1cd   :  { %1134 = vmatpush.msra.mxu2 %v6285_v56  ;;  %1154 = vmatpush.msra.mxu3 %v6692_v62  ;;  %v6708_v56 = vld [vmem:[#allocation12 + $0x168] sm:$0xff] }
 0x1ce   :  { %1095 = vmatpush.msra.mxu0 %v6695_v3  ;;  %1115 = vmatpush.msra.mxu1 %v6698_v53 }
 0x1cf   :  { %1135 = vmatpush.msra.mxu2 %v6294_v57  ;;  %1155 = vmatpush.msra.mxu3 %v6702_v38  ;;  %v6718_v57 = vld [vmem:[#allocation12 + $0x148] sm:$0xff] }
 0x1d0   :  { %1096 = vmatpush.msra.mxu0 %v6705_v49  ;;  %1116 = vmatpush.msra.mxu1 %v6708_v56 }
 0x1d1   :  { %1136 = vmatpush.msra.mxu2 %v6307_v59  ;;  %1156 = vmatpush.msra.mxu3 %v6712_v51  ;;  %v6728_v59 = vld [vmem:[#allocation12 + $0x128] sm:$0xff] }
 0x1d2   :  { %1097 = vmatpush.msra.mxu0 %v6715_v55  ;;  %1117 = vmatpush.msra.mxu1 %v6718_v57 }
 0x1d3   :  { %1137 = vmatpush.msra.mxu2 %v6317_v63  ;;  %1157 = vmatpush.msra.mxu3 %v6722_v46  ;;  %v6738_v63 = vld [vmem:[#allocation12 + $0x108] sm:$0xff] }
 0x1d4   :  { %1098 = vmatpush.msra.mxu0 %v6725_v27  ;;  %1118 = vmatpush.msra.mxu1 %v6728_v59 }
 0x1d5   :  { %1138 = vmatpush.msra.mxu2 %v6323_v0  ;;  %1158 = vmatpush.msra.mxu3 %v6732_v61  ;;  %v6748_v0 = vld [vmem:[#allocation12 + $0xe8] sm:$0xff] }
 0x1d6   :  { %1099 = vmatpush.msra.mxu0 %v6735_v60  ;;  %1119 = vmatpush.msra.mxu1 %v6738_v63 }
 0x1d7   :  { %1139 = vmatpush.msra.mxu2 %v6329_v1  ;;  %1159 = vmatpush.msra.mxu3 %v6742_v58  ;;  %v6758_v1 = vld [vmem:[#allocation12 + $0xc8] sm:$0xff] }
 0x1d8   :  { %1100 = vmatpush.msra.mxu0 %v6745_v2  ;;  %1120 = vmatpush.msra.mxu1 %v6748_v0 }
 0x1d9   :  { %1140 = vmatpush.msra.mxu2 %v6339_v4  ;;  %1160 = vmatpush.msra.mxu3 %v6752_v17  ;;  %v6768_v4 = vld [vmem:[#allocation12 + $0xa8] sm:$0xff] }
 0x1da   :  { %1101 = vmatpush.msra.mxu0 %v6755_v25  ;;  %1121 = vmatpush.msra.mxu1 %v6758_v1  ;;  %9727 = vst [vmem:[#allocation30_spill] sm:$0xff] %v6768_v4 }
 0x1db   :  { %1141 = vmatpush.msra.mxu2 %v6347_v14  ;;  %1161 = vmatpush.msra.mxu3 %v6762_v45  ;;  %v6779_v14 = vld [vmem:[#allocation12 + $0x60] sm:$0xff] }
 0x1dc   :  { %1102 = vmatpush.msra.mxu0 %v6765_v31  ;;  %1122 = vmatpush.msra.mxu1 %v6768_v4  ;;  %9729 = vst [vmem:[#allocation48_spill] sm:$0xff] %v6779_v14 }
 0x1dd   :  { %1142 = vmatpush.msra.mxu2 %v9695_v9  ;;  %1162 = vmatpush.msra.mxu3 %v9696_v10  ;;  %v6785_v9 = vld [vmem:[#allocation12 + $0x40] sm:$0xff] }
 0x1de   :  { %1103 = vmatpush.msra.mxu0 %v6773_v11  ;;  %1123 = vmatpush.msra.mxu1 %v9698_v12  ;;  %9730 = vst [vmem:[#allocation39_spill] sm:$0xff] %v6785_v9  ;;  %v6791_v10 = vld [vmem:[#allocation12 + $0x20] sm:$0xff] }
 0x1df   :  { %1143 = vmatpush.msra.mxu2 %v9699_v15  ;;  %1163 = vmatpush.msra.mxu3 %v9700_v16  ;;  %9731 = vst [vmem:[#allocation31_spill] sm:$0xff] %v6791_v10  ;;  %v6797_v12 = vld [vmem:[#allocation12] sm:$0xff]  ;;  %v9733_v15 = vld [vmem:[#allocation60_spill] sm:$0xff] }
 0x1e0   :  { %1104 = vmatpush.msra.mxu0 %v6779_v14  ;;  %1124 = vmatpush.msra.mxu1 %v9702_v18  ;;  %9732 = vst [vmem:[#allocation38_spill] sm:$0xff] %v6797_v12  ;;  %v248_v16 = vadd.f32 %v9733_v15, %v9718_v40  ;;  %v207_v18 = vadd.f32 %v6644_v36, %v9720_v44 }
 0x1e1   :  { %1144 = vmatpush.msra.mxu2 %v9703_v19  ;;  %1164 = vmatpush.msra.mxu3 %v9704_v20 }
 0x1e2   :  { %1105 = vmatpush.msra.mxu0 %v6785_v9  ;;  %1125 = vmatpush.msra.mxu1 %v9706_v22 }
 0x1e3   :  { %1145 = vmatpush.msra.mxu2 %v9707_v23  ;;  %1165 = vmatpush.msra.mxu3 %v9708_v24 }
 0x1e4   :  { %1106 = vmatpush.msra.mxu0 %v6791_v10  ;;  %1126 = vmatpush.msra.mxu1 %v9710_v28 }
 0x1e5   :  { %1146 = vmatpush.msra.mxu2 %v9711_v29  ;;  %1166 = vmatpush.msra.mxu3 %v9712_v30  ;;  %v9734_v29 = vld [vmem:[#allocation67_spill] sm:$0xff] }
 0x1e6   :  { %1107 = vmatpush.msra.mxu0 %v6797_v12  ;;  %1127 = vmatpush.msra.mxu1 %v9714_v32  ;;  %v330_v30 = vadd.f32 %v9734_v29, %v6559_v5 }
 0x1e7   :  { %1147 = vmatpush.msra.mxu2 %v9715_v33  ;;  %1167 = vmatpush.msra.mxu3 %v9716_v34 }
 0x243   :  { %v789_v19 = vpop.f32.mrf.mxu0  ;;  %v809_v20 = vpop.f32.mrf.mxu1 }
 0x244   :  { %v852_v22 = vadd.f32 %v789_v19, %v207_v18  ;;  %v853_v23 = vadd.f32 %v809_v20, %v248_v16  ;;  %v9735_v16 = vld [vmem:[#allocation59_spill] sm:$0xff] }
 0x245   :  { %v289_v18 = vadd.f32 %v9735_v16, %v9722_v7 }
 0x246   :  { %v5112_v24 = vmul.f32 -1.442695, %v852_v22  ;;  %v5113_v28 = vmul.f32 -1.442695, %v853_v23 }
 0x248   :  { %5225 = vpow2.f32 %v5112_v24 }
 0x249   :  { %5227 = vpow2.f32 %v5113_v28 }
 0x24a   :  { %v849_v32 = vpop.f32.mrf.mxu3  ;;  %v829_v36 = vpop.f32.mrf.mxu2 }
 0x24b   :  { %v855_v33 = vadd.f32 %v849_v32, %v330_v30  ;;  %v854_v22 = vadd.f32 %v829_v36, %v289_v18 }
 0x24d   :  { %v5114_v34 = vmul.f32 -1.442695, %v855_v33 }
 0x24e   :  { %v5226_v35 = vpop.eup %5225 }
 0x24f   :  { %v5228_v42 = vpop.eup %5227  ;;  %v859_v21 = vadd.f32 1.0, %v5226_v35  ;;  %5229 = vpow2.f32 %v5114_v34 }
 0x250   :  { %v878_v43 = vadd.f32 1.0, %v5228_v42 }
 0x251   :  { %5231 = vrcp.f32 %v859_v21  ;;  %v871_v32 = vand.u32 2147483648, %v859_v21  ;;  %v869_v35 = vand.u32 2147483647, %v859_v21  ;;  %vm865_vm11 = vweird.f32 %v859_v21 }
 0x252   :  { %5233 = vrcp.f32 %v878_v43  ;;  %v890_v33 = vand.u32 2147483648, %v878_v43  ;;  %v888_v47 = vand.u32 2147483647, %v878_v43  ;;  %vm884_vm12 = vweird.f32 %v878_v43 }
 0x253   :  { %v872_v36 = vor.u32 1.1754944e-38, %v871_v32  ;;  %vm870_vm15 = vcmp.eq.f32.partialorder %v869_v35, 8.507059e+37 }
 0x254   :  { %vm889_vm0 = vcmp.eq.f32.partialorder %v888_v47, 8.507059e+37 }
 0x255   :  { %v5230_v15 = vpop.eup %5229 }
 0x256   :  { %v898_v19 = vadd.f32 1.0, %v5230_v15 }
 0x257   :  { %v5232_v20 = vpop.eup %5231 }
 0x258   :  { %v5234_v23 = vpop.eup %5233  ;;  %v861_v24 = vmul.f32 %v5232_v20, %v859_v21  ;;  %5235 = vrcp.f32 %v898_v19  ;;  %vm866_vm9 = vweird.f32 %v5232_v20  ;;  %v910_v32 = vand.u32 2147483648, %v898_v19 }
 0x259   :  { %v880_v28 = vmul.f32 %v5234_v23, %v878_v43  ;;  %5237 = vtanh.f32 %v854_v22  ;;  %vm885_vm10 = vweird.f32 %v5234_v23  ;;  %vm867_vm13 = vmor %vm865_vm11, %vm866_vm9  ;;  %vm904_vm2 = vweird.f32 %v898_v19 }
 0x25a   :  { %v862_v29 = vsub.f32 1.0, %v861_v24  ;;  %vm886_vm14 = vmor %vm884_vm12, %vm885_vm10  ;;  %v891_v24 = vor.u32 1.1754944e-38, %v890_v33  ;;  %v911_v35 = vor.u32 1.1754944e-38, %v910_v32  ;;  %v6910_v32 = vld [vmem:[#allocation12 + $0x48] sm:$0xff] }
 0x25b   :  { %v881_v30 = vsub.f32 1.0, %v880_v28  ;;  %9746 = vst [vmem:[#allocation35_spill] sm:$0xff] %v6910_v32 }
 0x25c   :  { %v863_v34 = vmul.f32 %v5232_v20, %v862_v29 }
 0x25d   :  { %v882_v42 = vmul.f32 %v5234_v23, %v881_v30 }
 0x25e   :  { %v5236_v41 = vpop.eup %5235  ;;  %v864_v16 = vadd.f32 %v5232_v20, %v863_v34 }
 0x25f   :  { %v883_v15 = vadd.f32 %v5234_v23, %v882_v42  ;;  %v900_v18 = vmul.f32 %v5236_v41, %v898_v19  ;;  %v5238_v22 = vpop.eup %5237  ;;  %vm905_vm1 = vweird.f32 %v5236_v41 }
 0x260   :  { %v868_v28 = vsel %vm867_vm13, %v5232_v20, %v864_v16  ;;  %v908_v20 = vand.u32 2147483647, %v898_v19  ;;  %vm906_vm3 = vmor %vm904_vm2, %vm905_vm1  ;;  %v6859_v19 = vld [vmem:[#allocation12 + $0x130] sm:$0xff] }
 0x261   :  { %v873_v7 = vsel %vm870_vm15, %v872_v36, %v868_v28  ;;  %v887_v29 = vsel %vm886_vm14, %v5234_v23, %v883_v15  ;;  %v901_v5 = vsub.f32 1.0, %v900_v18  ;;  %v6865_v16 = vld [vmem:[#allocation12 + $0x110] sm:$0xff]  ;;  %v6890_v28 = vld [vmem:[#allocation12 + $0x88] sm:$0xff] }
 0x262   :  { %v892_v30 = vsel %vm889_vm0, %v891_v24, %v887_v29  ;;  %v916_v37 = vmul.f32 %v5238_v22, %v873_v7  ;;  %vm909_vm4 = vcmp.eq.f32.partialorder %v908_v20, 8.507059e+37  ;;  %v6847_v7 = vld [vmem:[#allocation12 + $0x170] sm:$0xff]  ;;  %v6886_v24 = vld [vmem:[#allocation12 + $0xb8] sm:$0xff]  ;;  %9740 = vst [vmem:[#allocation50_spill] sm:$0xff] %v6890_v28 }
 0x263   :  { %v915_v44 = vmul.f32 %v892_v30, %v6656_v48  ;;  %v902_v34 = vmul.f32 %v5236_v41, %v901_v5  ;;  %v6823_v5 = vld [vmem:[#allocation12 + $0x1f0] sm:$0xff]  ;;  %9739 = vst [vmem:[#allocation40_spill] sm:$0xff] %v6886_v24  ;;  %v6896_v29 = vld [vmem:[#allocation12 + $0x98] sm:$0xff]  ;;  %v6900_v30 = vld [vmem:[#allocation12 + $0x68] sm:$0xff] }
 0x264   :  { %v6853_v48 = vld [vmem:[#allocation12 + $0x150] sm:$0xff]  ;;  %9742 = vst [vmem:[#allocation34_spill] sm:$0xff] %v6896_v29 }
 0x265   :  { %v6812_v21 = vadd.f32 %v916_v37, %v915_v44  ;;  %v903_v43 = vadd.f32 %v5236_v41, %v902_v34  ;;  %v6835_v37 = vld [vmem:[#allocation12 + $0x1b0] sm:$0xff]  ;;  %9743 = vst [vmem:[#allocation41_spill] sm:$0xff] %v6900_v30 }
 0x266   :  { %v6841_v44 = vld [vmem:[#allocation12 + $0x190] sm:$0xff] }
 0x267   :  { %5239 = vtanh.f32 %v6812_v21  ;;  %v907_v33 = vsel %vm906_vm3, %v5236_v41, %v903_v43  ;;  %v6829_v41 = vld [vmem:[#allocation12 + $0x1d0] sm:$0xff]  ;;  %v6906_v43 = vld [vmem:[#allocation12 + $0x78] sm:$0xff] }
 0x268   :  { %v912_v23 = vsel %vm909_vm4, %v911_v35, %v907_v33  ;;  %v6871_v36 = vld [vmem:[#allocation12 + $0xf0] sm:$0xff]  ;;  %9745 = vst [vmem:[#allocation45_spill] sm:$0xff] %v6906_v43  ;;  %v6916_v33 = vld [vmem:[#allocation12 + $0x58] sm:$0xff]  ;;  %v6920_v35 = vld [vmem:[#allocation12 + $0x28] sm:$0xff] }
 0x269   :  { %v6877_v15 = vld [vmem:[#allocation12 + $0xd0] sm:$0xff]  ;;  %9748 = vst [vmem:[#allocation52_spill] sm:$0xff] %v6916_v33 }
 0x26a   :  { %9737 = vst [vmem:[#allocation43_spill] sm:$0xff] %v6877_v15  ;;  %v6883_v18 = vld [vmem:[#allocation12 + $0xb0] sm:$0xff] }
 0x26b   :  { %9738 = vst [vmem:[#allocation32_spill] sm:$0xff] %v6883_v18  ;;  %v6893_v22 = vld [vmem:[#allocation12 + $0x90] sm:$0xff] }
 0x26c   :  { %9741 = vst [vmem:[#allocation44_spill] sm:$0xff] %v6893_v22  ;;  %v6903_v34 = vld [vmem:[#allocation12 + $0x70] sm:$0xff] }
 0x26d   :  { %v5240_v47 = vpop.eup %5239  ;;  %9744 = vst [vmem:[#allocation51_spill] sm:$0xff] %v6903_v34  ;;  %v6913_v20 = vld [vmem:[#allocation12 + $0x50] sm:$0xff] }
 0x26e   :  { %v6815_v42 = vmul.f32 %v5240_v47, %v912_v23  ;;  %9747 = vst [vmem:[#allocation42_spill] sm:$0xff] %v6913_v20  ;;  %v6923_v47 = vld [vmem:[#allocation12 + $0x30] sm:$0xff]  ;;  %v6926_v23 = vld [vmem:[#allocation12 + $0x38] sm:$0xff] }
 0x26f   :  { %9749 = vst [vmem:[#allocation46_spill] sm:$0xff] %v6920_v35 }
 0x270   :  { %9736 = vst [vmem:[#allocation49_spill] sm:$0xff] %v6815_v42  ;;  %948 = vmatmul.f32.vlgmr.msrb.gmra.mxu0 %v6815_v42  ;;  %968 = vmatmul.f32.vlgmr.msrb.gmra.mxu1 %v6815_v42 }
 0x271   :  { %988 = vmatmul.f32.vlgmr.msrb.gmra.mxu2 %v6815_v42  ;;  %1008 = vmatmul.f32.vlgmr.msrb.gmra.mxu3 %v6815_v42  ;;  %9750 = vst [vmem:[#allocation57_spill] sm:$0xff] %v6923_v47  ;;  %v6930_v42 = vld [vmem:[#allocation12 + $0x8] sm:$0xff] }
 0x272   :  { %1252 = vmatpush.msrb.mxu0 %v6665_v39  ;;  %1272 = vmatpush.msrb.mxu1 %v6668_v8  ;;  %9751 = vst [vmem:[#allocation64_spill] sm:$0xff] %v6926_v23 }
 0x273   :  { %1292 = vmatpush.msrb.mxu2 %v6823_v5  ;;  %1312 = vmatpush.msrb.mxu3 %v6672_v26  ;;  %9752 = vst [vmem:[#allocation56_spill] sm:$0xff] %v6930_v42 }
 0x274   :  { %1253 = vmatpush.msrb.mxu0 %v6675_v52  ;;  %1273 = vmatpush.msrb.mxu1 %v6678_v54 }
 0x275   :  { %1293 = vmatpush.msrb.mxu2 %v6829_v41  ;;  %1313 = vmatpush.msrb.mxu3 %v6682_v6 }
 0x276   :  { %1254 = vmatpush.msrb.mxu0 %v6685_v13  ;;  %1274 = vmatpush.msrb.mxu1 %v6688_v50 }
 0x277   :  { %1294 = vmatpush.msrb.mxu2 %v6835_v37  ;;  %1314 = vmatpush.msrb.mxu3 %v6692_v62 }
 0x278   :  { %1255 = vmatpush.msrb.mxu0 %v6695_v3  ;;  %1275 = vmatpush.msrb.mxu1 %v6698_v53 }
 0x279   :  { %1295 = vmatpush.msrb.mxu2 %v6841_v44  ;;  %1315 = vmatpush.msrb.mxu3 %v6702_v38 }
 0x27a   :  { %1256 = vmatpush.msrb.mxu0 %v6705_v49  ;;  %1276 = vmatpush.msrb.mxu1 %v6708_v56 }
 0x27b   :  { %1296 = vmatpush.msrb.mxu2 %v6847_v7  ;;  %1316 = vmatpush.msrb.mxu3 %v6712_v51 }
 0x27c   :  { %1257 = vmatpush.msrb.mxu0 %v6715_v55  ;;  %1277 = vmatpush.msrb.mxu1 %v6718_v57 }
 0x27d   :  { %1297 = vmatpush.msrb.mxu2 %v6853_v48  ;;  %1317 = vmatpush.msrb.mxu3 %v6722_v46 }
 0x27e   :  { %1258 = vmatpush.msrb.mxu0 %v6725_v27  ;;  %1278 = vmatpush.msrb.mxu1 %v6728_v59 }
 0x27f   :  { %1298 = vmatpush.msrb.mxu2 %v6859_v19  ;;  %1318 = vmatpush.msrb.mxu3 %v6732_v61 }
 0x280   :  { %1259 = vmatpush.msrb.mxu0 %v6735_v60  ;;  %1279 = vmatpush.msrb.mxu1 %v6738_v63 }
 0x281   :  { %1299 = vmatpush.msrb.mxu2 %v6865_v16  ;;  %1319 = vmatpush.msrb.mxu3 %v6742_v58 }
 0x282   :  { %1260 = vmatpush.msrb.mxu0 %v6745_v2  ;;  %1280 = vmatpush.msrb.mxu1 %v6748_v0 }
 0x283   :  { %1300 = vmatpush.msrb.mxu2 %v6871_v36  ;;  %1320 = vmatpush.msrb.mxu3 %v6752_v17 }
 0x284   :  { %1261 = vmatpush.msrb.mxu0 %v6755_v25  ;;  %1281 = vmatpush.msrb.mxu1 %v6758_v1 }
 0x285   :  { %1301 = vmatpush.msrb.mxu2 %v6877_v15  ;;  %1321 = vmatpush.msrb.mxu3 %v6762_v45 }
 0x286   :  { %1262 = vmatpush.msrb.mxu0 %v6765_v31  ;;  %1282 = vmatpush.msrb.mxu1 %v6768_v4 }
 0x287   :  { %1302 = vmatpush.msrb.mxu2 %v6883_v18  ;;  %1322 = vmatpush.msrb.mxu3 %v6886_v24 }
 0x288   :  { %1263 = vmatpush.msrb.mxu0 %v6773_v11  ;;  %1283 = vmatpush.msrb.mxu1 %v6890_v28 }
 0x289   :  { %1303 = vmatpush.msrb.mxu2 %v6893_v22  ;;  %1323 = vmatpush.msrb.mxu3 %v6896_v29  ;;  %v9759_v29 = vld [vmem:[#allocation70_spill] sm:$0xff] }
 0x28a   :  { %1264 = vmatpush.msrb.mxu0 %v6779_v14  ;;  %1284 = vmatpush.msrb.mxu1 %v6900_v30  ;;  %v9758_v14 = vld [vmem:[#allocation80_spill] sm:$0xff] }
 0x28b   :  { %1304 = vmatpush.msrb.mxu2 %v6903_v34  ;;  %1324 = vmatpush.msrb.mxu3 %v6906_v43 }
 0x28c   :  { %1265 = vmatpush.msrb.mxu0 %v6785_v9  ;;  %1285 = vmatpush.msrb.mxu1 %v6910_v32  ;;  %v9757_v32 = vld [vmem:[#allocation29_spill] sm:$0xff] }
 0x28d   :  { %1305 = vmatpush.msrb.mxu2 %v6913_v20  ;;  %1325 = vmatpush.msrb.mxu3 %v6916_v33  ;;  %v6933_v33 = vld [vmem:[#allocation12 + $0x10] sm:$0xff] }
 0x28e   :  { %1266 = vmatpush.msrb.mxu0 %v6791_v10  ;;  %1286 = vmatpush.msrb.mxu1 %v6920_v35  ;;  %9753 = vst [vmem:[#allocation60_spill] sm:$0xff] %v6933_v33  ;;  %v6936_v10 = vld [vmem:[#allocation12 + $0x18] sm:$0xff]  ;;  %v9756_v20 = vld [vmem:[#allocation75_spill] sm:$0xff] }
 0x28f   :  { %1306 = vmatpush.msrb.mxu2 %v6923_v47  ;;  %1326 = vmatpush.msrb.mxu3 %v6926_v23  ;;  %9754 = vst [vmem:[#allocation67_spill] sm:$0xff] %v6936_v10  ;;  %v9755_v47 = vld [vmem:[#allocation62_spill] sm:$0xff]  ;;  %v210_v23 = vadd.f32 %v9757_v32, %v9756_v20 }
 0x290   :  { %1267 = vmatpush.msrb.mxu0 %v6797_v12  ;;  %1287 = vmatpush.msrb.mxu1 %v6930_v42  ;;  %v251_v35 = vadd.f32 %v9755_v47, %v9718_v40 }
 0x291   :  { %1307 = vmatpush.msrb.mxu2 %v6933_v33  ;;  %1327 = vmatpush.msrb.mxu3 %v6936_v10  ;;  %v333_v33 = vadd.f32 %v9759_v29, %v9758_v14 }
 0x2ed   :  { %v949_v9 = vpop.f32.mrf.mxu0  ;;  %v969_v12 = vpop.f32.mrf.mxu1 }
 0x2ee   :  { %v1012_v43 = vadd.f32 %v949_v9, %v210_v23  ;;  %v1013_v34 = vadd.f32 %v969_v12, %v251_v35  ;;  %v9760_v12 = vld [vmem:[#allocation81_spill] sm:$0xff] }
 0x2f0   :  { %v5115_v30 = vmul.f32 -1.442695, %v1012_v43  ;;  %v5116_v42 = vmul.f32 -1.442695, %v1013_v34  ;;  %v9761_v43 = vld [vmem:[#allocation61_spill] sm:$0xff] }
 0x2f1   :  { %v292_v34 = vadd.f32 %v9761_v43, %v9760_v12 }
 0x2f2   :  { %5241 = vpow2.f32 %v5115_v30 }
 0x2f3   :  { %5243 = vpow2.f32 %v5116_v42 }
 0x2f4   :  { %v1009_v22 = vpop.f32.mrf.mxu3  ;;  %v989_v32 = vpop.f32.mrf.mxu2 }
 0x2f5   :  { %v1015_v28 = vadd.f32 %v1009_v22, %v333_v33  ;;  %v1014_v23 = vadd.f32 %v989_v32, %v292_v34 }
 0x2f7   :  { %v5117_v10 = vmul.f32 -1.442695, %v1015_v28 }
 0x2f8   :  { %v5242_v11 = vpop.eup %5241 }
 0x2f9   :  { %v5244_v24 = vpop.eup %5243  ;;  %v1019_v47 = vadd.f32 1.0, %v5242_v11  ;;  %5245 = vpow2.f32 %v5117_v10 }
 0x2fa   :  { %v1038_v40 = vadd.f32 1.0, %v5244_v24 }
 0x2fb   :  { %5247 = vrcp.f32 %v1019_v47  ;;  %v1031_v14 = vand.u32 2147483648, %v1019_v47  ;;  %v1029_v24 = vand.u32 2147483647, %v1019_v47  ;;  %vm1025_vm7 = vweird.f32 %v1019_v47 }
 0x2fc   :  { %5249 = vrcp.f32 %v1038_v40  ;;  %v1050_v11 = vand.u32 2147483648, %v1038_v40  ;;  %v1048_v18 = vand.u32 2147483647, %v1038_v40  ;;  %vm1044_vm8 = vweird.f32 %v1038_v40 }
 0x2fd   :  { %v1032_v32 = vor.u32 1.1754944e-38, %v1031_v14  ;;  %vm1030_vm11 = vcmp.eq.f32.partialorder %v1029_v24, 8.507059e+37 }
 0x2fe   :  { %vm1049_vm12 = vcmp.eq.f32.partialorder %v1048_v18, 8.507059e+37 }
 0x2ff   :  { %v5246_v9 = vpop.eup %5245 }
 0x300   :  { %v1058_v30 = vadd.f32 1.0, %v5246_v9 }
 0x301   :  { %v5248_v35 = vpop.eup %5247 }
 0x302   :  { %v5250_v29 = vpop.eup %5249  ;;  %v1021_v42 = vmul.f32 %v5248_v35, %v1019_v47  ;;  %5251 = vrcp.f32 %v1058_v30  ;;  %vm1026_vm5 = vweird.f32 %v5248_v35  ;;  %v1070_v14 = vand.u32 2147483648, %v1058_v30 }
 0x303   :  { %v1040_v22 = vmul.f32 %v5250_v29, %v1038_v40  ;;  %5253 = vtanh.f32 %v1014_v23  ;;  %vm1045_vm6 = vweird.f32 %v5250_v29  ;;  %vm1027_vm9 = vmor %vm1025_vm7, %vm1026_vm5  ;;  %vm1064_vm14 = vweird.f32 %v1058_v30 }
 0x304   :  { %v1022_v28 = vsub.f32 1.0, %v1021_v42  ;;  %vm1046_vm10 = vmor %vm1044_vm8, %vm1045_vm6  ;;  %v1051_v42 = vor.u32 1.1754944e-38, %v1050_v11  ;;  %v1071_v11 = vor.u32 1.1754944e-38, %v1070_v14  ;;  %v9781_v14 = vld [vmem:[#allocation31_spill] sm:$0xff] }
 0x305   :  { %v1041_v33 = vsub.f32 1.0, %v1040_v22 }
 0x306   :  { %v1023_v10 = vmul.f32 %v5248_v35, %v1022_v28 }
 0x307   :  { %v1042_v20 = vmul.f32 %v5250_v29, %v1041_v33 }
 0x308   :  { %v5252_v4 = vpop.eup %5251  ;;  %v1024_v43 = vadd.f32 %v5248_v35, %v1023_v10 }
 0x309   :  { %v1043_v9 = vadd.f32 %v5250_v29, %v1042_v20  ;;  %v1060_v34 = vmul.f32 %v5252_v4, %v1058_v30  ;;  %v5254_v23 = vpop.eup %5253  ;;  %vm1065_vm13 = vweird.f32 %v5252_v4  ;;  %v1068_v20 = vand.u32 2147483647, %v1058_v30  ;;  %v9769_v30 = vld [vmem:[#allocation36_spill] sm:$0xff] }
 0x30a   :  { %v1028_v22 = vsel %vm1027_vm9, %v5248_v35, %v1024_v43  ;;  %vm1066_vm15 = vmor %vm1064_vm14, %vm1065_vm13  ;;  %v9770_v43 = vld [vmem:[#allocation50_spill] sm:$0xff] }
 0x30b   :  { %v1033_v12 = vsel %vm1030_vm11, %v1032_v32, %v1028_v22  ;;  %v1047_v28 = vsel %vm1046_vm10, %v5250_v29, %v1043_v9  ;;  %v1061_v31 = vsub.f32 1.0, %v1060_v34  ;;  %vm1069_vm0 = vcmp.eq.f32.partialorder %v1068_v20, 8.507059e+37  ;;  %v9771_v32 = vld [vmem:[#allocation44_spill] sm:$0xff]  ;;  %v9772_v9 = vld [vmem:[#allocation34_spill] sm:$0xff]  ;;  %v9775_v22 = vld [vmem:[#allocation51_spill] sm:$0xff] }
 0x30c   :  { %v1052_v33 = vsel %vm1049_vm12, %v1051_v42, %v1047_v28  ;;  %v1076_v45 = vmul.f32 %v5254_v23, %v1033_v12  ;;  %v9768_v12 = vld [vmem:[#allocation40_spill] sm:$0xff]  ;;  %v9774_v42 = vld [vmem:[#allocation41_spill] sm:$0xff]  ;;  %v9777_v28 = vld [vmem:[#allocation39_spill] sm:$0xff] }
 0x30d   :  { %v1075_v15 = vmul.f32 %v1052_v33, %v6812_v21  ;;  %v1062_v10 = vmul.f32 %v5252_v4, %v1061_v31  ;;  %v9764_v31 = vld [vmem:[#allocation47_spill] sm:$0xff]  ;;  %v9766_v21 = vld [vmem:[#allocation30_spill] sm:$0xff]  ;;  %v9773_v34 = vld [vmem:[#allocation48_spill] sm:$0xff] }
 0x30e   :  { %v9776_v23 = vld [vmem:[#allocation45_spill] sm:$0xff]  ;;  %v9778_v33 = vld [vmem:[#allocation35_spill] sm:$0xff]  ;;  %v9782_v20 = vld [vmem:[#allocation46_spill] sm:$0xff] }
 0x30f   :  { %v6948_v47 = vadd.f32 %v1076_v45, %v1075_v15  ;;  %v1063_v40 = vadd.f32 %v5252_v4, %v1062_v10  ;;  %v9763_v45 = vld [vmem:[#allocation43_spill] sm:$0xff]  ;;  %v9767_v15 = vld [vmem:[#allocation32_spill] sm:$0xff]  ;;  %v9779_v10 = vld [vmem:[#allocation42_spill] sm:$0xff] }
 0x311   :  { %5255 = vtanh.f32 %v6948_v47  ;;  %v1067_v35 = vsel %vm1066_vm15, %v5252_v4, %v1063_v40  ;;  %v9765_v4 = vld [vmem:[#allocation37_spill] sm:$0xff]  ;;  %v9780_v40 = vld [vmem:[#allocation52_spill] sm:$0xff] }
 0x312   :  { %v1072_v29 = vsel %vm1069_vm0, %v1071_v11, %v1067_v35  ;;  %v9783_v35 = vld [vmem:[#allocation57_spill] sm:$0xff]  ;;  %v9784_v11 = vld [vmem:[#allocation64_spill] sm:$0xff] }
 0x317   :  { %v5256_v18 = vpop.eup %5255 }
 0x318   :  { %v6951_v24 = vmul.f32 %v5256_v18, %v1072_v29  ;;  %v9785_v18 = vld [vmem:[#allocation38_spill] sm:$0xff]  ;;  %v9786_v29 = vld [vmem:[#allocation56_spill] sm:$0xff] }
 0x31a   :  { %9762 = vst [vmem:[#allocation59_spill] sm:$0xff] %v6951_v24  ;;  %1108 = vmatmul.f32.vlgmr.msra.gmra.mxu0 %v6951_v24  ;;  %1128 = vmatmul.f32.vlgmr.msra.gmra.mxu1 %v6951_v24 }
 0x31b   :  { %1148 = vmatmul.f32.vlgmr.msra.gmra.mxu2 %v6951_v24  ;;  %1168 = vmatmul.f32.vlgmr.msra.gmra.mxu3 %v6951_v24  ;;  %v9787_v24 = vld [vmem:[#allocation60_spill] sm:$0xff] }
 0x31c   :  { %1412 = vmatpush.msra.mxu0 %v6665_v39  ;;  %1432 = vmatpush.msra.mxu1 %v6668_v8 }
 0x31d   :  { %1452 = vmatpush.msra.mxu2 %v6823_v5  ;;  %1472 = vmatpush.msra.mxu3 %v6672_v26 }
 0x31e   :  { %1413 = vmatpush.msra.mxu0 %v6675_v52  ;;  %1433 = vmatpush.msra.mxu1 %v6678_v54 }
 0x31f   :  { %1453 = vmatpush.msra.mxu2 %v6829_v41  ;;  %1473 = vmatpush.msra.mxu3 %v6682_v6 }
 0x320   :  { %1414 = vmatpush.msra.mxu0 %v6685_v13  ;;  %1434 = vmatpush.msra.mxu1 %v6688_v50 }
 0x321   :  { %1454 = vmatpush.msra.mxu2 %v6835_v37  ;;  %1474 = vmatpush.msra.mxu3 %v6692_v62 }
 0x322   :  { %1415 = vmatpush.msra.mxu0 %v6695_v3  ;;  %1435 = vmatpush.msra.mxu1 %v6698_v53 }
 0x323   :  { %1455 = vmatpush.msra.mxu2 %v6841_v44  ;;  %1475 = vmatpush.msra.mxu3 %v6702_v38 }
 0x324   :  { %1416 = vmatpush.msra.mxu0 %v6705_v49  ;;  %1436 = vmatpush.msra.mxu1 %v6708_v56 }
 0x325   :  { %1456 = vmatpush.msra.mxu2 %v6847_v7  ;;  %1476 = vmatpush.msra.mxu3 %v6712_v51 }
 0x326   :  { %1417 = vmatpush.msra.mxu0 %v6715_v55  ;;  %1437 = vmatpush.msra.mxu1 %v6718_v57 }
 0x327   :  { %1457 = vmatpush.msra.mxu2 %v6853_v48  ;;  %1477 = vmatpush.msra.mxu3 %v6722_v46 }
 0x328   :  { %1418 = vmatpush.msra.mxu0 %v6725_v27  ;;  %1438 = vmatpush.msra.mxu1 %v6728_v59 }
 0x329   :  { %1458 = vmatpush.msra.mxu2 %v6859_v19  ;;  %1478 = vmatpush.msra.mxu3 %v6732_v61 }
 0x32a   :  { %1419 = vmatpush.msra.mxu0 %v6735_v60  ;;  %1439 = vmatpush.msra.mxu1 %v6738_v63 }
 0x32b   :  { %1459 = vmatpush.msra.mxu2 %v6865_v16  ;;  %1479 = vmatpush.msra.mxu3 %v6742_v58 }
 0x32c   :  { %1420 = vmatpush.msra.mxu0 %v6745_v2  ;;  %1440 = vmatpush.msra.mxu1 %v6748_v0 }
 0x32d   :  { %1460 = vmatpush.msra.mxu2 %v6871_v36  ;;  %1480 = vmatpush.msra.mxu3 %v6752_v17 }
 0x32e   :  { %1421 = vmatpush.msra.mxu0 %v6755_v25  ;;  %1441 = vmatpush.msra.mxu1 %v6758_v1 }
 0x32f   :  { %1461 = vmatpush.msra.mxu2 %v9763_v45  ;;  %1481 = vmatpush.msra.mxu3 %v9764_v31 }
 0x330   :  { %1422 = vmatpush.msra.mxu0 %v9765_v4  ;;  %1442 = vmatpush.msra.mxu1 %v9766_v21 }
 0x331   :  { %1462 = vmatpush.msra.mxu2 %v9767_v15  ;;  %1482 = vmatpush.msra.mxu3 %v9768_v12 }
 0x332   :  { %1423 = vmatpush.msra.mxu0 %v9769_v30  ;;  %1443 = vmatpush.msra.mxu1 %v9770_v43 }
 0x333   :  { %1463 = vmatpush.msra.mxu2 %v9771_v32  ;;  %1483 = vmatpush.msra.mxu3 %v9772_v9  ;;  %v9794_v32 = vld [vmem:[#allocation73_spill] sm:$0xff] }
 0x334   :  { %1424 = vmatpush.msra.mxu0 %v9773_v34  ;;  %1444 = vmatpush.msra.mxu1 %v9774_v42 }
 0x335   :  { %1464 = vmatpush.msra.mxu2 %v9775_v22  ;;  %1484 = vmatpush.msra.mxu3 %v9776_v23  ;;  %v9792_v22 = vld [vmem:[#allocation65_spill] sm:$0xff] }
 0x336   :  { %1425 = vmatpush.msra.mxu0 %v9777_v28  ;;  %1445 = vmatpush.msra.mxu1 %v9778_v33  ;;  %v9788_v28 = vld [vmem:[#allocation67_spill] sm:$0xff] }
 0x337   :  { %1465 = vmatpush.msra.mxu2 %v9779_v10  ;;  %1485 = vmatpush.msra.mxu3 %v9780_v40  ;;  %v9789_v33 = vld [vmem:[#allocation75_spill] sm:$0xff]  ;;  %v9790_v10 = vld [vmem:[#allocation53_spill] sm:$0xff]  ;;  %v9791_v40 = vld [vmem:[#allocation76_spill] sm:$0xff] }
 0x338   :  { %1426 = vmatpush.msra.mxu0 %v9781_v14  ;;  %1446 = vmatpush.msra.mxu1 %v9782_v20  ;;  %v213_v23 = vadd.f32 %v9790_v10, %v9789_v33  ;;  %v254_v14 = vadd.f32 %v9792_v22, %v9791_v40 }
 0x339   :  { %1466 = vmatpush.msra.mxu2 %v9783_v35  ;;  %1486 = vmatpush.msra.mxu3 %v9784_v11 }
 0x33a   :  { %1427 = vmatpush.msra.mxu0 %v9785_v18  ;;  %1447 = vmatpush.msra.mxu1 %v9786_v29  ;;  %v9793_v18 = vld [vmem:[#allocation80_spill] sm:$0xff] }
 0x33b   :  { %1467 = vmatpush.msra.mxu2 %v9787_v24  ;;  %1487 = vmatpush.msra.mxu3 %v9788_v28  ;;  %v336_v29 = vadd.f32 %v9794_v32, %v9793_v18 }
 0x397   :  { %v1109_v42 = vpop.f32.mrf.mxu0  ;;  %v1129_v20 = vpop.f32.mrf.mxu1 }
 0x398   :  { %v1172_v34 = vadd.f32 %v1109_v42, %v213_v23  ;;  %v1173_v35 = vadd.f32 %v1129_v20, %v254_v14  ;;  %v9795_v23 = vld [vmem:[#allocation81_spill] sm:$0xff] }
 0x39a   :  { %v5118_v9 = vmul.f32 -1.442695, %v1172_v34  ;;  %v5119_v11 = vmul.f32 -1.442695, %v1173_v35  ;;  %v9796_v34 = vld [vmem:[#allocation63_spill] sm:$0xff] }
 0x39b   :  { %v295_v14 = vadd.f32 %v9796_v34, %v9795_v23 }
 0x39c   :  { %5257 = vpow2.f32 %v5118_v9 }
 0x39d   :  { %5259 = vpow2.f32 %v5119_v11 }
 0x39e   :  { %v1169_v24 = vpop.f32.mrf.mxu3  ;;  %v1149_v22 = vpop.f32.mrf.mxu2 }
 0x39f   :  { %v1175_v43 = vadd.f32 %v1169_v24, %v336_v29  ;;  %v1174_v35 = vadd.f32 %v1149_v22, %v295_v14 }
 0x3a1   :  { %v5120_v28 = vmul.f32 -1.442695, %v1175_v43 }
 0x3a2   :  { %v5258_v30 = vpop.eup %5257 }
 0x3a3   :  { %v5260_v12 = vpop.eup %5259  ;;  %v1179_v10 = vadd.f32 1.0, %v5258_v30  ;;  %5261 = vpow2.f32 %v5120_v28 }
 0x3a4   :  { %v1198_v33 = vadd.f32 1.0, %v5260_v12 }
 0x3a5   :  { %5263 = vrcp.f32 %v1179_v10  ;;  %v1191_v18 = vand.u32 2147483648, %v1179_v10  ;;  %v1189_v28 = vand.u32 2147483647, %v1179_v10  ;;  %vm1185_vm3 = vweird.f32 %v1179_v10 }
 0x3a6   :  { %5265 = vrcp.f32 %v1198_v33  ;;  %v1210_v30 = vand.u32 2147483648, %v1198_v33  ;;  %v1208_v15 = vand.u32 2147483647, %v1198_v33  ;;  %vm1204_vm4 = vweird.f32 %v1198_v33 }
 0x3a7   :  { %v1192_v22 = vor.u32 1.1754944e-38, %v1191_v18  ;;  %vm1190_vm7 = vcmp.eq.f32.partialorder %v1189_v28, 8.507059e+37 }
 0x3a8   :  { %vm1209_vm8 = vcmp.eq.f32.partialorder %v1208_v15, 8.507059e+37 }
 0x3a9   :  { %v5262_v42 = vpop.eup %5261 }
 0x3aa   :  { %v1218_v9 = vadd.f32 1.0, %v5262_v42 }
 0x3ab   :  { %v5264_v20 = vpop.eup %5263 }
 0x3ac   :  { %v5266_v32 = vpop.eup %5265  ;;  %v1181_v11 = vmul.f32 %v5264_v20, %v1179_v10  ;;  %5267 = vrcp.f32 %v1218_v9  ;;  %vm1186_vm1 = vweird.f32 %v5264_v20  ;;  %vm1224_vm10 = vweird.f32 %v1218_v9 }
 0x3ad   :  { %v1200_v24 = vmul.f32 %v5266_v32, %v1198_v33  ;;  %5269 = vtanh.f32 %v1174_v35  ;;  %vm1205_vm2 = vweird.f32 %v5266_v32  ;;  %vm1187_vm5 = vmor %vm1185_vm3, %vm1186_vm1  ;;  %v1228_v18 = vand.u32 2147483647, %v1218_v9 }
 0x3ae   :  { %v1182_v43 = vsub.f32 1.0, %v1181_v11  ;;  %vm1206_vm6 = vmor %vm1204_vm4, %vm1205_vm2  ;;  %v1211_v11 = vor.u32 1.1754944e-38, %v1210_v30 }
 0x3af   :  { %v1201_v29 = vsub.f32 1.0, %v1200_v24  ;;  %vm1229_vm12 = vcmp.eq.f32.partialorder %v1228_v18, 8.507059e+37 }
 0x3b0   :  { %v1183_v12 = vmul.f32 %v5264_v20, %v1182_v43 }
 0x3b1   :  { %v1202_v40 = vmul.f32 %v5266_v32, %v1201_v29 }
 0x3b2   :  { %v5268_v21 = vpop.eup %5267  ;;  %v1184_v34 = vadd.f32 %v5264_v20, %v1183_v12 }
 0x3b3   :  { %v1203_v42 = vadd.f32 %v5266_v32, %v1202_v40  ;;  %v1220_v14 = vmul.f32 %v5268_v21, %v1218_v9  ;;  %v5270_v35 = vpop.eup %5269  ;;  %vm1225_vm9 = vweird.f32 %v5268_v21  ;;  %v1230_v40 = vand.u32 2147483648, %v1218_v9 }
 0x3b4   :  { %v1188_v24 = vsel %vm1187_vm5, %v5264_v20, %v1184_v34  ;;  %vm1226_vm11 = vmor %vm1224_vm10, %vm1225_vm9 }
 0x3b5   :  { %v1193_v23 = vsel %vm1190_vm7, %v1192_v22, %v1188_v24  ;;  %v1207_v43 = vsel %vm1206_vm6, %v5266_v32, %v1203_v42  ;;  %v1221_v4 = vsub.f32 1.0, %v1220_v14  ;;  %v1231_v30 = vor.u32 1.1754944e-38, %v1230_v40  ;;  %v9829_v24 = vld [vmem:[#allocation81_spill] sm:$0xff] }
 0x3b6   :  { %v1212_v29 = vsel %vm1209_vm8, %v1211_v11, %v1207_v43  ;;  %v1236_v31 = vmul.f32 %v5270_v35, %v1193_v23  ;;  %v9830_v35 = vld [vmem:[#allocation66_spill] sm:$0xff] }
 0x3b7   :  { %v1235_v45 = vmul.f32 %v1212_v29, %v6948_v47  ;;  %v1222_v12 = vmul.f32 %v5268_v21, %v1221_v4  ;;  %v9827_v47 = vld [vmem:[#allocation80_spill] sm:$0xff]  ;;  %v298_v43 = vadd.f32 %v9830_v35, %v9829_v24  ;;  %v9831_v35 = vld [vmem:[#allocation55_spill] sm:$0xff] }
 0x3b9   :  { %v7030_v10 = vadd.f32 %v1236_v31, %v1235_v45  ;;  %v1223_v33 = vadd.f32 %v5268_v21, %v1222_v12  ;;  %v9828_v45 = vld [vmem:[#allocation77_spill] sm:$0xff] }
 0x3ba   :  { %v339_v31 = vadd.f32 %v9828_v45, %v9827_v47  ;;  %v1784_v45 = vld [vmem:[#allocation15 + $0x1a0] sm:$0xff] }
 0x3bb   :  { %5271 = vtanh.f32 %v7030_v10  ;;  %v1227_v20 = vsel %vm1226_vm11, %v5268_v21, %v1223_v33 }
 0x3bc   :  { %v1232_v32 = vsel %vm1229_vm12, %v1231_v30, %v1227_v20 }
 0x3c1   :  { %v5272_v15 = vpop.eup %5271 }
 0x3c2   :  { %v7033_v28 = vmul.f32 %v5272_v15, %v1232_v32 }
 0x3c4   :  { %1268 = vmatmul.f32.vlgmr.msrb.gmra.mxu0 %v7033_v28  ;;  %1288 = vmatmul.f32.vlgmr.msrb.gmra.mxu1 %v7033_v28 }
 0x3c5   :  { %1308 = vmatmul.f32.vlgmr.msrb.gmra.mxu2 %v7033_v28  ;;  %1328 = vmatmul.f32.vlgmr.msrb.gmra.mxu3 %v7033_v28 }
 0x3c6   :  { %1572 = vmatpush.msrb.mxu0 %v6665_v39  ;;  %1592 = vmatpush.msrb.mxu1 %v6668_v8  ;;  %v9797_v39 = vld [vmem:[#allocation43_spill] sm:$0xff] }
 0x3c7   :  { %1612 = vmatpush.msrb.mxu2 %v6823_v5  ;;  %1632 = vmatpush.msrb.mxu3 %v6672_v26  ;;  %v9798_v8 = vld [vmem:[#allocation47_spill] sm:$0xff]  ;;  %v9799_v26 = vld [vmem:[#allocation37_spill] sm:$0xff]  ;;  %v9825_v5 = vld [vmem:[#allocation76_spill] sm:$0xff] }
 0x3c8   :  { %1573 = vmatpush.msrb.mxu0 %v6675_v52  ;;  %1593 = vmatpush.msrb.mxu1 %v6678_v54  ;;  %v9800_v52 = vld [vmem:[#allocation30_spill] sm:$0xff]  ;;  %v9801_v54 = vld [vmem:[#allocation32_spill] sm:$0xff] }
 0x3c9   :  { %1613 = vmatpush.msrb.mxu2 %v6829_v41  ;;  %1633 = vmatpush.msrb.mxu3 %v6682_v6  ;;  %v9802_v6 = vld [vmem:[#allocation40_spill] sm:$0xff] }
 0x3ca   :  { %1574 = vmatpush.msrb.mxu0 %v6685_v13  ;;  %1594 = vmatpush.msrb.mxu1 %v6688_v50  ;;  %v9803_v13 = vld [vmem:[#allocation36_spill] sm:$0xff]  ;;  %v9804_v50 = vld [vmem:[#allocation50_spill] sm:$0xff] }
 0x3cb   :  { %1614 = vmatpush.msrb.mxu2 %v6835_v37  ;;  %1634 = vmatpush.msrb.mxu3 %v6692_v62  ;;  %v9805_v62 = vld [vmem:[#allocation44_spill] sm:$0xff] }
 0x3cc   :  { %1575 = vmatpush.msrb.mxu0 %v6695_v3  ;;  %1595 = vmatpush.msrb.mxu1 %v6698_v53  ;;  %v9806_v3 = vld [vmem:[#allocation34_spill] sm:$0xff]  ;;  %v9807_v53 = vld [vmem:[#allocation48_spill] sm:$0xff] }
 0x3cd   :  { %1615 = vmatpush.msrb.mxu2 %v6841_v44  ;;  %1635 = vmatpush.msrb.mxu3 %v6702_v38  ;;  %v9808_v38 = vld [vmem:[#allocation41_spill] sm:$0xff]  ;;  %v9826_v41 = vld [vmem:[#allocation68_spill] sm:$0xff] }
 0x3ce   :  { %1576 = vmatpush.msrb.mxu0 %v6705_v49  ;;  %1596 = vmatpush.msrb.mxu1 %v6708_v56  ;;  %v9809_v49 = vld [vmem:[#allocation51_spill] sm:$0xff]  ;;  %v9810_v56 = vld [vmem:[#allocation45_spill] sm:$0xff]  ;;  %v257_v37 = vadd.f32 %v9826_v41, %v9825_v5 }
 0x3cf   :  { %1616 = vmatpush.msrb.mxu2 %v6847_v7  ;;  %1636 = vmatpush.msrb.mxu3 %v6712_v51  ;;  %v9811_v51 = vld [vmem:[#allocation39_spill] sm:$0xff] }
 0x3d0   :  { %1577 = vmatpush.msrb.mxu0 %v6715_v55  ;;  %1597 = vmatpush.msrb.mxu1 %v6718_v57  ;;  %v9812_v55 = vld [vmem:[#allocation35_spill] sm:$0xff]  ;;  %v9813_v57 = vld [vmem:[#allocation42_spill] sm:$0xff] }
 0x3d1   :  { %1617 = vmatpush.msrb.mxu2 %v6853_v48  ;;  %1637 = vmatpush.msrb.mxu3 %v6722_v46  ;;  %v9814_v46 = vld [vmem:[#allocation52_spill] sm:$0xff] }
 0x3d2   :  { %1578 = vmatpush.msrb.mxu0 %v6725_v27  ;;  %1598 = vmatpush.msrb.mxu1 %v6728_v59  ;;  %v9815_v27 = vld [vmem:[#allocation31_spill] sm:$0xff]  ;;  %v9816_v59 = vld [vmem:[#allocation46_spill] sm:$0xff] }
 0x3d3   :  { %1618 = vmatpush.msrb.mxu2 %v6859_v19  ;;  %1638 = vmatpush.msrb.mxu3 %v6732_v61  ;;  %v9817_v61 = vld [vmem:[#allocation57_spill] sm:$0xff] }
 0x3d4   :  { %1579 = vmatpush.msrb.mxu0 %v6735_v60  ;;  %1599 = vmatpush.msrb.mxu1 %v6738_v63  ;;  %v9818_v60 = vld [vmem:[#allocation64_spill] sm:$0xff]  ;;  %v9819_v63 = vld [vmem:[#allocation38_spill] sm:$0xff] }
 0x3d5   :  { %1619 = vmatpush.msrb.mxu2 %v6865_v16  ;;  %1639 = vmatpush.msrb.mxu3 %v6742_v58  ;;  %v9820_v58 = vld [vmem:[#allocation56_spill] sm:$0xff] }
 0x3d6   :  { %1580 = vmatpush.msrb.mxu0 %v6745_v2  ;;  %1600 = vmatpush.msrb.mxu1 %v6748_v0  ;;  %v9821_v2 = vld [vmem:[#allocation60_spill] sm:$0xff]  ;;  %v9822_v0 = vld [vmem:[#allocation67_spill] sm:$0xff] }
 0x3d7   :  { %1620 = vmatpush.msrb.mxu2 %v6871_v36  ;;  %1640 = vmatpush.msrb.mxu3 %v6752_v17  ;;  %v9823_v17 = vld [vmem:[#allocation75_spill] sm:$0xff] }
 0x3d8   :  { %1581 = vmatpush.msrb.mxu0 %v6755_v25  ;;  %1601 = vmatpush.msrb.mxu1 %v6758_v1  ;;  %v9824_v25 = vld [vmem:[#allocation54_spill] sm:$0xff] }
 0x3d9   :  { %1621 = vmatpush.msrb.mxu2 %v9797_v39  ;;  %1641 = vmatpush.msrb.mxu3 %v9798_v8  ;;  %v216_v1 = vadd.f32 %v9824_v25, %v9823_v17 }
 0x3da   :  { %1582 = vmatpush.msrb.mxu0 %v9799_v26  ;;  %1602 = vmatpush.msrb.mxu1 %v9800_v52 }
 0x3db   :  { %1622 = vmatpush.msrb.mxu2 %v9801_v54  ;;  %1642 = vmatpush.msrb.mxu3 %v9802_v6 }
 0x3dc   :  { %1583 = vmatpush.msrb.mxu0 %v9803_v13  ;;  %1603 = vmatpush.msrb.mxu1 %v9804_v50 }
 0x3dd   :  { %1623 = vmatpush.msrb.mxu2 %v9805_v62  ;;  %1643 = vmatpush.msrb.mxu3 %v9806_v3 }
 0x3de   :  { %1584 = vmatpush.msrb.mxu0 %v9807_v53  ;;  %1604 = vmatpush.msrb.mxu1 %v9808_v38 }
 0x3df   :  { %1624 = vmatpush.msrb.mxu2 %v9809_v49  ;;  %1644 = vmatpush.msrb.mxu3 %v9810_v56 }
 0x3e0   :  { %1585 = vmatpush.msrb.mxu0 %v9811_v51  ;;  %1605 = vmatpush.msrb.mxu1 %v9812_v55 }
 0x3e1   :  { %1625 = vmatpush.msrb.mxu2 %v9813_v57  ;;  %1645 = vmatpush.msrb.mxu3 %v9814_v46 }
 0x3e2   :  { %1586 = vmatpush.msrb.mxu0 %v9815_v27  ;;  %1606 = vmatpush.msrb.mxu1 %v9816_v59 }
 0x3e3   :  { %1626 = vmatpush.msrb.mxu2 %v9817_v61  ;;  %1646 = vmatpush.msrb.mxu3 %v9818_v60 }
 0x3e4   :  { %1587 = vmatpush.msrb.mxu0 %v9819_v63  ;;  %1607 = vmatpush.msrb.mxu1 %v9820_v58 }
 0x3e5   :  { %1627 = vmatpush.msrb.mxu2 %v9821_v2  ;;  %1647 = vmatpush.msrb.mxu3 %v9822_v0 }
 0x441   :  { %v1269_v44 = vpop.f32.mrf.mxu0  ;;  %v1289_v7 = vpop.f32.mrf.mxu1 }
 0x442   :  { %v1332_v48 = vadd.f32 %v1269_v44, %v216_v1  ;;  %v1333_v19 = vadd.f32 %v1289_v7, %v257_v37  ;;  %v1793_v37 = vld [vmem:[#allocation15 + $0x1e8] sm:$0xff]  ;;  %v1794_v44 = vld [vmem:[#allocation15 + $0x1f0] sm:$0xff]  ;;  %v1795_v7 = vld [vmem:[#allocation15 + $0x1f8] sm:$0xff] }
 0x444   :  { %v5121_v16 = vmul.f32 -1.442695, %v1332_v48  ;;  %v5122_v36 = vmul.f32 -1.442695, %v1333_v19  ;;  %v1788_v48 = vld [vmem:[#allocation15 + $0x1c0] sm:$0xff]  ;;  %v1789_v19 = vld [vmem:[#allocation15 + $0x1c8] sm:$0xff] }
 0x446   :  { %5273 = vpow2.f32 %v5121_v16  ;;  %v1790_v16 = vld [vmem:[#allocation15 + $0x1d0] sm:$0xff] }
 0x447   :  { %5275 = vpow2.f32 %v5122_v36  ;;  %v1791_v36 = vld [vmem:[#allocation15 + $0x1d8] sm:$0xff] }
 0x448   :  { %v1329_v4 = vpop.f32.mrf.mxu3  ;;  %v1309_v14 = vpop.f32.mrf.mxu2 }
 0x449   :  { %v1335_v21 = vadd.f32 %v1329_v4, %v339_v31  ;;  %v1334_v33 = vadd.f32 %v1309_v14, %v298_v43  ;;  %v1785_v31 = vld [vmem:[#allocation15 + $0x1a8] sm:$0xff]  ;;  %v1786_v4 = vld [vmem:[#allocation15 + $0x1b0] sm:$0xff]  ;;  %v219_v43 = vadd.f32 %v9831_v35, %v9823_v17 }
 0x44a   :  { %v1777_v14 = vld [vmem:[#allocation15 + $0x168] sm:$0xff] }
 0x44b   :  { %v5123_v23 = vmul.f32 -1.442695, %v1335_v21  ;;  %v1787_v21 = vld [vmem:[#allocation15 + $0x1b8] sm:$0xff] }
 0x44c   :  { %v5274_v9 = vpop.eup %5273 }
 0x44d   :  { %v5276_v34 = vpop.eup %5275  ;;  %v1339_v22 = vadd.f32 1.0, %v5274_v9  ;;  %5277 = vpow2.f32 %v5123_v23  ;;  %v1780_v23 = vld [vmem:[#allocation15 + $0x180] sm:$0xff]  ;;  %v1781_v9 = vld [vmem:[#allocation15 + $0x188] sm:$0xff] }
 0x44e   :  { %v1358_v42 = vadd.f32 1.0, %v5276_v34  ;;  %v1782_v34 = vld [vmem:[#allocation15 + $0x190] sm:$0xff] }
 0x44f   :  { %5279 = vrcp.f32 %v1339_v22  ;;  %v1351_v32 = vand.u32 2147483648, %v1339_v22  ;;  %v1349_v26 = vand.u32 2147483647, %v1339_v22  ;;  %vm1345_vm15 = vweird.f32 %v1339_v22 }
 0x450   :  { %5281 = vrcp.f32 %v1358_v42  ;;  %v1370_v39 = vand.u32 2147483648, %v1358_v42  ;;  %v1368_v54 = vand.u32 2147483647, %v1358_v42  ;;  %vm1364_vm0 = vweird.f32 %v1358_v42 }
 0x451   :  { %v1352_v50 = vor.u32 1.1754944e-38, %v1351_v32  ;;  %vm1350_vm3 = vcmp.eq.f32.partialorder %v1349_v26, 8.507059e+37  ;;  %v1768_v26 = vld [vmem:[#allocation15 + $0x120] sm:$0xff] }
 0x452   :  { %v1371_v53 = vor.u32 1.1754944e-38, %v1370_v39  ;;  %vm1369_vm4 = vcmp.eq.f32.partialorder %v1368_v54, 8.507059e+37  ;;  %v1770_v54 = vld [vmem:[#allocation15 + $0x130] sm:$0xff] }
 0x453   :  { %v5278_v11 = vpop.eup %5277 }
 0x454   :  { %v1378_v29 = vadd.f32 1.0, %v5278_v11  ;;  %v1778_v11 = vld [vmem:[#allocation15 + $0x170] sm:$0xff] }
 0x455   :  { %v5280_v12 = vpop.eup %5279 }
 0x456   :  { %v5282_v40 = vpop.eup %5281  ;;  %v1341_v18 = vmul.f32 %v5280_v12, %v1339_v22  ;;  %5283 = vrcp.f32 %v1378_v29  ;;  %vm1346_vm13 = vweird.f32 %v5280_v12  ;;  %v1390_v63 = vand.u32 2147483648, %v1378_v29  ;;  %v1783_v22 = vld [vmem:[#allocation15 + $0x198] sm:$0xff] }
 0x457   :  { %v1360_v20 = vmul.f32 %v5282_v40, %v1358_v42  ;;  %5285 = vtanh.f32 %v1334_v33  ;;  %vm1365_vm14 = vweird.f32 %v5282_v40  ;;  %vm1347_vm1 = vmor %vm1345_vm15, %vm1346_vm13  ;;  %vm1384_vm6 = vweird.f32 %v1378_v29  ;;  %v1776_v42 = vld [vmem:[#allocation15 + $0x160] sm:$0xff]  ;;  %v1779_v33 = vld [vmem:[#allocation15 + $0x178] sm:$0xff] }
 0x458   :  { %v1342_v30 = vsub.f32 1.0, %v1341_v18  ;;  %vm1366_vm2 = vmor %vm1364_vm0, %vm1365_vm14  ;;  %v1388_v58 = vand.u32 2147483647, %v1378_v29  ;;  %v1391_v0 = vor.u32 1.1754944e-38, %v1390_v63  ;;  %v1757_v63 = vld [vmem:[#allocation15 + $0xc8] sm:$0xff] }
 0x459   :  { %v1361_v15 = vsub.f32 1.0, %v1360_v20  ;;  %v1772_v20 = vld [vmem:[#allocation15 + $0x140] sm:$0xff] }
 0x45a   :  { %v1343_v8 = vmul.f32 %v5280_v12, %v1342_v30  ;;  %vm1389_vm8 = vcmp.eq.f32.partialorder %v1388_v58, 8.507059e+37  ;;  %v1773_v30 = vld [vmem:[#allocation15 + $0x148] sm:$0xff]  ;;  %v1758_v58 = vld [vmem:[#allocation15 + $0xd0] sm:$0xff] }
 0x45b   :  { %v1362_v52 = vmul.f32 %v5282_v40, %v1361_v15  ;;  %v1774_v15 = vld [vmem:[#allocation15 + $0x150] sm:$0xff] }
 0x45c   :  { %v5284_v6 = vpop.eup %5283  ;;  %v1344_v13 = vadd.f32 %v5280_v12, %v1343_v8  ;;  %v1775_v8 = vld [vmem:[#allocation15 + $0x158] sm:$0xff] }
 0x45d   :  { %v1363_v62 = vadd.f32 %v5282_v40, %v1362_v52  ;;  %v1380_v3 = vmul.f32 %v5284_v6, %v1378_v29  ;;  %v5286_v49 = vpop.eup %5285  ;;  %vm1385_vm5 = vweird.f32 %v5284_v6  ;;  %v9832_v29 = vld [vmem:[#allocation71_spill] sm:$0xff]  ;;  %v1769_v52 = vld [vmem:[#allocation15 + $0x128] sm:$0xff] }
 0x45e   :  { %v1348_v38 = vsel %vm1347_vm1, %v5280_v12, %v1344_v13  ;;  %vm1386_vm7 = vmor %vm1384_vm6, %vm1385_vm5  ;;  %v260_v12 = vadd.f32 %v9832_v29, %v9825_v5  ;;  %v1738_v29 = vld [vmem:[#allocation15 + $0x30] sm:$0xff] }
 0x45f   :  { %v1353_v56 = vsel %vm1350_vm3, %v1352_v50, %v1348_v38  ;;  %v1367_v51 = vsel %vm1366_vm2, %v5282_v40, %v1363_v62  ;;  %v1381_v55 = vsub.f32 1.0, %v1380_v3  ;;  %v1771_v50 = vld [vmem:[#allocation15 + $0x138] sm:$0xff]  ;;  %v1764_v62 = vld [vmem:[#allocation15 + $0x100] sm:$0xff]  ;;  %v1765_v3 = vld [vmem:[#allocation15 + $0x108] sm:$0xff] }
 0x460   :  { %v1372_v57 = vsel %vm1369_vm4, %v1371_v53, %v1367_v51  ;;  %v1396_v46 = vmul.f32 %v5286_v49, %v1353_v56  ;;  %v1766_v53 = vld [vmem:[#allocation15 + $0x110] sm:$0xff]  ;;  %v1767_v38 = vld [vmem:[#allocation15 + $0x118] sm:$0xff]  ;;  %v9833_v49 = vld [vmem:[#allocation78_spill] sm:$0xff] }
 0x461   :  { %v1395_v27 = vmul.f32 %v1372_v57, %v7030_v10  ;;  %v1382_v59 = vmul.f32 %v5284_v6, %v1381_v55  ;;  %v1792_v10 = vld [vmem:[#allocation15 + $0x1e0] sm:$0xff]  ;;  %v342_v56 = vadd.f32 %v9833_v49, %v9827_v47  ;;  %v1761_v55 = vld [vmem:[#allocation15 + $0xe8] sm:$0xff]  ;;  %v1762_v57 = vld [vmem:[#allocation15 + $0xf0] sm:$0xff] }
 0x462   :  { %v1760_v51 = vld [vmem:[#allocation15 + $0xe0] sm:$0xff] }
 0x463   :  { %v7112_v61 = vadd.f32 %v1396_v46, %v1395_v27  ;;  %v1383_v60 = vadd.f32 %v5284_v6, %v1382_v59  ;;  %v1763_v27 = vld [vmem:[#allocation15 + $0xf8] sm:$0xff] }
 0x465   :  { %5287 = vtanh.f32 %v7112_v61  ;;  %v1387_v2 = vsel %vm1386_vm7, %v5284_v6, %v1383_v60  ;;  %v1756_v60 = vld [vmem:[#allocation15 + $0xc0] sm:$0xff] }
 0x466   :  { %v1392_v1 = vsel %vm1389_vm8, %v1391_v0, %v1387_v2  ;;  %v1759_v2 = vld [vmem:[#allocation15 + $0xd8] sm:$0xff] }
 0x46b   :  { %v5288_v25 = vpop.eup %5287 }
 0x46c   :  { %v7115_v41 = vmul.f32 %v5288_v25, %v1392_v1  ;;  %v1752_v25 = vld [vmem:[#allocation15 + $0xa0] sm:$0xff]  ;;  %v1753_v1 = vld [vmem:[#allocation15 + $0xa8] sm:$0xff] }
 0x46e   :  { %1428 = vmatmul.f32.vlgmr.msra.gmra.mxu0 %v7115_v41  ;;  %1448 = vmatmul.f32.vlgmr.msra.gmra.mxu1 %v7115_v41 }
 0x46f   :  { %1468 = vmatmul.f32.vlgmr.msra.gmra.mxu2 %v7115_v41  ;;  %1488 = vmatmul.f32.vlgmr.msra.gmra.mxu3 %v7115_v41 }
 0x470   :  { %1806 = vmatpush.msra.mxu0 %v1792_v10  ;;  %1847 = vmatpush.msra.mxu1 %v1793_v37  ;;  %v1754_v10 = vld [vmem:[#allocation15 + $0xb0] sm:$0xff] }
 0x471   :  { %1888 = vmatpush.msra.mxu2 %v1794_v44  ;;  %1929 = vmatpush.msra.mxu3 %v1795_v7  ;;  %v1755_v44 = vld [vmem:[#allocation15 + $0xb8] sm:$0xff]  ;;  %v1748_v7 = vld [vmem:[#allocation15 + $0x80] sm:$0xff] }
 0x472   :  { %1807 = vmatpush.msra.mxu0 %v1788_v48  ;;  %1848 = vmatpush.msra.mxu1 %v1789_v19  ;;  %v1749_v48 = vld [vmem:[#allocation15 + $0x88] sm:$0xff] }
 0x473   :  { %1889 = vmatpush.msra.mxu2 %v1790_v16  ;;  %1930 = vmatpush.msra.mxu3 %v1791_v36  ;;  %v1750_v36 = vld [vmem:[#allocation15 + $0x90] sm:$0xff] }
 0x474   :  { %1808 = vmatpush.msra.mxu0 %v1784_v45  ;;  %1849 = vmatpush.msra.mxu1 %v1785_v31  ;;  %v1751_v45 = vld [vmem:[#allocation15 + $0x98] sm:$0xff] }
 0x475   :  { %1890 = vmatpush.msra.mxu2 %v1786_v4  ;;  %1931 = vmatpush.msra.mxu3 %v1787_v21  ;;  %v1744_v4 = vld [vmem:[#allocation15 + $0x60] sm:$0xff]  ;;  %v1745_v21 = vld [vmem:[#allocation15 + $0x68] sm:$0xff] }
 0x476   :  { %1809 = vmatpush.msra.mxu0 %v1780_v23  ;;  %1850 = vmatpush.msra.mxu1 %v1781_v9  ;;  %v1746_v23 = vld [vmem:[#allocation15 + $0x70] sm:$0xff]  ;;  %v1747_v9 = vld [vmem:[#allocation15 + $0x78] sm:$0xff] }
 0x477   :  { %1891 = vmatpush.msra.mxu2 %v1782_v34  ;;  %1932 = vmatpush.msra.mxu3 %v1783_v22  ;;  %v1740_v34 = vld [vmem:[#allocation15 + $0x40] sm:$0xff]  ;;  %v1741_v22 = vld [vmem:[#allocation15 + $0x48] sm:$0xff] }
 0x478   :  { %1810 = vmatpush.msra.mxu0 %v1776_v42  ;;  %1851 = vmatpush.msra.mxu1 %v1777_v14  ;;  %v1742_v42 = vld [vmem:[#allocation15 + $0x50] sm:$0xff]  ;;  %v1743_v14 = vld [vmem:[#allocation15 + $0x58] sm:$0xff] }
 0x479   :  { %1892 = vmatpush.msra.mxu2 %v1778_v11  ;;  %1933 = vmatpush.msra.mxu3 %v1779_v33  ;;  %v1736_v11 = vld [vmem:[#allocation15 + $0x20] sm:$0xff] }
 0x47a   :  { %1811 = vmatpush.msra.mxu0 %v1772_v20  ;;  %1852 = vmatpush.msra.mxu1 %v1773_v30  ;;  %v1732_v20 = vld [vmem:[#allocation15] sm:$0xff]  ;;  %v1733_v30 = vld [vmem:[#allocation15 + $0x8] sm:$0xff] }
 0x47b   :  { %1893 = vmatpush.msra.mxu2 %v1774_v15  ;;  %1934 = vmatpush.msra.mxu3 %v1775_v8 }
 0x47c   :  { %1812 = vmatpush.msra.mxu0 %v1768_v26  ;;  %1853 = vmatpush.msra.mxu1 %v1769_v52 }
 0x47d   :  { %1894 = vmatpush.msra.mxu2 %v1770_v54  ;;  %1935 = vmatpush.msra.mxu3 %v1771_v50 }
 0x47e   :  { %1813 = vmatpush.msra.mxu0 %v1764_v62  ;;  %1854 = vmatpush.msra.mxu1 %v1765_v3 }
 0x47f   :  { %1895 = vmatpush.msra.mxu2 %v1766_v53  ;;  %1936 = vmatpush.msra.mxu3 %v1767_v38 }
 0x480   :  { %1814 = vmatpush.msra.mxu0 %v1760_v51  ;;  %1855 = vmatpush.msra.mxu1 %v1761_v55 }
 0x481   :  { %1896 = vmatpush.msra.mxu2 %v1762_v57  ;;  %1937 = vmatpush.msra.mxu3 %v1763_v27 }
 0x482   :  { %1815 = vmatpush.msra.mxu0 %v1756_v60  ;;  %1856 = vmatpush.msra.mxu1 %v1757_v63 }
 0x483   :  { %1897 = vmatpush.msra.mxu2 %v1758_v58  ;;  %1938 = vmatpush.msra.mxu3 %v1759_v2 }
 0x484   :  { %1816 = vmatpush.msra.mxu0 %v1752_v25  ;;  %1857 = vmatpush.msra.mxu1 %v1753_v1 }
 0x485   :  { %1898 = vmatpush.msra.mxu2 %v1754_v10  ;;  %1939 = vmatpush.msra.mxu3 %v1755_v44 }
 0x486   :  { %1817 = vmatpush.msra.mxu0 %v1748_v7  ;;  %1858 = vmatpush.msra.mxu1 %v1749_v48 }
 0x487   :  { %1899 = vmatpush.msra.mxu2 %v1750_v36  ;;  %1940 = vmatpush.msra.mxu3 %v1751_v45 }
 0x488   :  { %1818 = vmatpush.msra.mxu0 %v1744_v4  ;;  %1859 = vmatpush.msra.mxu1 %v1745_v21  ;;  %v9836_v21 = vld [vmem:[#allocation33_spill] sm:$0xff] }
 0x489   :  { %1900 = vmatpush.msra.mxu2 %v1746_v23  ;;  %1941 = vmatpush.msra.mxu3 %v1747_v9  ;;  %v9837_v23 = vld [vmem:[#allocation49_spill] sm:$0xff] }
 0x48a   :  { %1819 = vmatpush.msra.mxu0 %v1740_v34  ;;  %1860 = vmatpush.msra.mxu1 %v1741_v22  ;;  %v7159_v9 = vld [vmem:[#allocation17 + $0x1e0] sm:$0xff]  ;;  %v7161_v34 = vld [vmem:[#allocation17 + $0x1e8] sm:$0xff] }
 0x48b   :  { %1901 = vmatpush.msra.mxu2 %v1742_v42  ;;  %1942 = vmatpush.msra.mxu3 %v1743_v14  ;;  %9838 = vst [vmem:[#allocation62_spill] sm:$0xff] %v7159_v9  ;;  %v7163_v22 = vld [vmem:[#allocation17 + $0x1c0] sm:$0xff]  ;;  %v7167_v42 = vld [vmem:[#allocation17 + $0x1c8] sm:$0xff]  ;;  %v7169_v14 = vld [vmem:[#allocation17 + $0x1f8] sm:$0xff] }
 0x48c   :  { %1820 = vmatpush.msra.mxu0 %v1736_v11  ;;  %9839 = vst [vmem:[#allocation29_spill] sm:$0xff] %v7167_v42  ;;  %v7172_v11 = vld [vmem:[#allocation17 + $0x1a0] sm:$0xff] }
 0x48d   :  { %1902 = vmatpush.msra.mxu2 %v1738_v29  ;;  %v9842_v29 = vld [vmem:[#allocation59_spill] sm:$0xff] }
 0x48e   :  { %1821 = vmatpush.msra.mxu0 %v1732_v20  ;;  %v7207_v20 = vld [vmem:[#allocation17 + $0x188] sm:$0xff] }
 0x4eb   :  { %v1429_v40 = vpop.f32.mrf.mxu0  ;;  %v1449_v18 = vpop.f32.mrf.mxu1 }
 0x4ec   :  { %v1492_v32 = vadd.f32 %v1429_v40, %v219_v43  ;;  %v1493_v39 = vadd.f32 %v1449_v18, %v260_v12  ;;  %v1737_v43 = vld [vmem:[#allocation15 + $0x28] sm:$0xff]  ;;  %v1739_v12 = vld [vmem:[#allocation15 + $0x38] sm:$0xff]  ;;  %v9834_v40 = vld [vmem:[#allocation69_spill] sm:$0xff] }
 0x4ed   :  { %v301_v18 = vadd.f32 %v9834_v40, %v9829_v24  ;;  %1861 = vmatpush.msra.mxu1 %v1737_v43  ;;  %1943 = vmatpush.msra.mxu3 %v1739_v12  ;;  %v7176_v43 = vld [vmem:[#allocation17 + $0x1d8] sm:$0xff]  ;;  %v7195_v12 = vld [vmem:[#allocation17 + $0x1f0] sm:$0xff] }
 0x4ee   :  { %v5124_v6 = vmul.f32 -1.442695, %v1492_v32  ;;  %v5125_v13 = vmul.f32 -1.442695, %v1493_v39  ;;  %v1734_v32 = vld [vmem:[#allocation15 + $0x10] sm:$0xff]  ;;  %v1735_v39 = vld [vmem:[#allocation15 + $0x18] sm:$0xff] }
 0x4ef   :  { %1862 = vmatpush.msra.mxu1 %v1733_v30  ;;  %1903 = vmatpush.msra.mxu2 %v1734_v32  ;;  %9841 = vst [vmem:[#allocation61_spill] sm:$0xff] %v7176_v43  ;;  %v7203_v40 = vld [vmem:[#allocation17 + $0x1b0] sm:$0xff]  ;;  %v7215_v30 = vld [vmem:[#allocation17 + $0x168] sm:$0xff] }
 0x4f0   :  { %5289 = vpow2.f32 %v5124_v6  ;;  %1944 = vmatpush.msra.mxu3 %v1735_v39  ;;  %v7219_v32 = vld [vmem:[#allocation17 + $0x190] sm:$0xff]  ;;  %v7225_v39 = vld [vmem:[#allocation17 + $0x178] sm:$0xff] }
 0x4f1   :  { %5291 = vpow2.f32 %v5125_v13 }
 0x4f2   :  { %v1489_v46 = vpop.f32.mrf.mxu3  ;;  %v1469_v35 = vpop.f32.mrf.mxu2 }
 0x4f3   :  { %v1495_v59 = vadd.f32 %v1489_v46, %v342_v56  ;;  %v1494_v26 = vadd.f32 %v1469_v35, %v301_v18  ;;  %v7174_v35 = vld [vmem:[#allocation17 + $0x1a8] sm:$0xff]  ;;  %v7205_v18 = vld [vmem:[#allocation17 + $0x180] sm:$0xff] }
 0x4f4   :  { %9840 = vst [vmem:[#allocation70_spill] sm:$0xff] %v7174_v35 }
 0x4f5   :  { %v5126_v0 = vmul.f32 -1.442695, %v1495_v59  ;;  %9844 = vst [vmem:[#allocation65_spill] sm:$0xff] %v7205_v18 }
 0x4f6   :  { %v5290_v37 = vpop.eup %5289 }
 0x4f7   :  { %v5292_v19 = vpop.eup %5291  ;;  %v7127_v16 = vadd.f32 1.0, %v5290_v37  ;;  %5293 = vpow2.f32 %v5126_v0 }
 0x4f8   :  { %v7129_v31 = vadd.f32 1.0, %v5292_v19 }
 0x4f9   :  { %5295 = vrcp.f32 %v7127_v16  ;;  %v1511_v62 = vand.u32 2147483648, %v7127_v16  ;;  %v1509_v38 = vand.u32 2147483647, %v7127_v16  ;;  %vm1505_vm11 = vweird.f32 %v7127_v16 }
 0x4fa   :  { %5297 = vrcp.f32 %v7129_v31  ;;  %v1530_v3 = vand.u32 2147483648, %v7129_v31  ;;  %v1528_v56 = vand.u32 2147483647, %v7129_v31  ;;  %vm1524_vm12 = vweird.f32 %v7129_v31 }
 0x4fb   :  { %v1512_v57 = vor.u32 1.1754944e-38, %v1511_v62  ;;  %vm1510_vm15 = vcmp.eq.f32.partialorder %v1509_v38, 8.507059e+37  ;;  %v7239_v62 = vld [vmem:[#allocation17 + $0x158] sm:$0xff]  ;;  %v7243_v38 = vld [vmem:[#allocation17 + $0x150] sm:$0xff] }
 0x4fc   :  { %v1531_v59 = vor.u32 1.1754944e-38, %v1530_v3  ;;  %vm1529_vm0 = vcmp.eq.f32.partialorder %v1528_v56, 8.507059e+37 }
 0x4fd   :  { %v5294_v33 = vpop.eup %5293 }
 0x4fe   :  { %v1538_v15 = vadd.f32 1.0, %v5294_v33  ;;  %v7198_v33 = vld [vmem:[#allocation17 + $0x1d0] sm:$0xff] }
 0x4ff   :  { %v5296_v8 = vpop.eup %5295 }
 0x500   :  { %v5298_v52 = vpop.eup %5297  ;;  %v1501_v54 = vmul.f32 %v5296_v8, %v7127_v16  ;;  %5299 = vrcp.f32 %v1538_v15  ;;  %vm1506_vm9 = vweird.f32 %v5296_v8  ;;  %v1550_v48 = vand.u32 2147483648, %v1538_v15 }
 0x501   :  { %v1520_v6 = vmul.f32 %v5298_v52, %v7129_v31  ;;  %5301 = vtanh.f32 %v1494_v26  ;;  %vm1525_vm10 = vweird.f32 %v5298_v52  ;;  %vm1507_vm13 = vmor %vm1505_vm11, %vm1506_vm9  ;;  %vm1544_vm2 = vweird.f32 %v1538_v15  ;;  %v9845_v26 = vld [vmem:[#allocation58_spill] sm:$0xff] }
 0x502   :  { %v1502_v13 = vsub.f32 1.0, %v1501_v54  ;;  %vm1526_vm14 = vmor %vm1524_vm12, %vm1525_vm10  ;;  %v1548_v19 = vand.u32 2147483647, %v1538_v15  ;;  %v1551_v36 = vor.u32 1.1754944e-38, %v1550_v48  ;;  %v9846_v54 = vld [vmem:[#allocation74_spill] sm:$0xff]  ;;  %v7285_v48 = vld [vmem:[#allocation17 + $0xa0] sm:$0xff] }
 0x503   :  { %v1521_v50 = vsub.f32 1.0, %v1520_v6  ;;  %v263_v6 = vadd.f32 %v9846_v54, %v9825_v5  ;;  %v7250_v5 = vld [vmem:[#allocation17 + $0x138] sm:$0xff]  ;;  %9849 = vst [vmem:[#allocation63_spill] sm:$0xff] %v7285_v48 }
 0x504   :  { %v1503_v53 = vmul.f32 %v5296_v8, %v1502_v13  ;;  %vm1549_vm4 = vcmp.eq.f32.partialorder %v1548_v19, 8.507059e+37  ;;  %v7235_v13 = vld [vmem:[#allocation17 + $0x140] sm:$0xff]  ;;  %v7287_v19 = vld [vmem:[#allocation17 + $0xa8] sm:$0xff] }
 0x505   :  { %v1522_v49 = vmul.f32 %v5298_v52, %v1521_v50  ;;  %v7237_v50 = vld [vmem:[#allocation17 + $0x148] sm:$0xff]  ;;  %9850 = vst [vmem:[#allocation43_spill] sm:$0xff] %v7287_v19 }
 0x506   :  { %v5300_v51 = vpop.eup %5299  ;;  %v1504_v55 = vadd.f32 %v5296_v8, %v1503_v53 }
 0x507   :  { %v1523_v46 = vadd.f32 %v5298_v52, %v1522_v49  ;;  %v1540_v27 = vmul.f32 %v5300_v51, %v1538_v15  ;;  %v5302_v63 = vpop.eup %5301  ;;  %vm1545_vm1 = vweird.f32 %v5300_v51  ;;  %v7217_v15 = vld [vmem:[#allocation17 + $0x198] sm:$0xff] }
 0x508   :  { %v1508_v60 = vsel %vm1507_vm13, %v5296_v8, %v1504_v55  ;;  %vm1546_vm3 = vmor %vm1544_vm2, %vm1545_vm1  ;;  %v7227_v8 = vld [vmem:[#allocation17 + $0x170] sm:$0xff] }
 0x509   :  { %v1513_v58 = vsel %vm1510_vm15, %v1512_v57, %v1508_v60  ;;  %v1527_v2 = vsel %vm1526_vm14, %v5298_v52, %v1523_v46  ;;  %v1541_v0 = vsub.f32 1.0, %v1540_v27  ;;  %v222_v52 = vadd.f32 %v9845_v26, %v9823_v17  ;;  %v7245_v17 = vld [vmem:[#allocation17 + $0x120] sm:$0xff]  ;;  %v7255_v55 = vld [vmem:[#allocation17 + $0x130] sm:$0xff] }
 0x50a   :  { %v1532_v25 = vsel %vm1529_vm0, %v1531_v59, %v1527_v2  ;;  %v1556_v1 = vmul.f32 %v5302_v63, %v1513_v58  ;;  %v7257_v27 = vld [vmem:[#allocation17 + $0x100] sm:$0xff]  ;;  %v7259_v59 = vld [vmem:[#allocation17 + $0x108] sm:$0xff]  ;;  %v7269_v58 = vld [vmem:[#allocation17 + $0x118] sm:$0xff] }
 0x50b   :  { %v1555_v10 = vmul.f32 %v1532_v25, %v7112_v61  ;;  %v1542_v37 = vmul.f32 %v5300_v51, %v1541_v0  ;;  %v9835_v61 = vld [vmem:[#allocation82_spill] sm:$0xff]  ;;  %v7265_v60 = vld [vmem:[#allocation17 + $0xe0] sm:$0xff]  ;;  %v7276_v25 = vld [vmem:[#allocation17 + $0xf8] sm:$0xff] }
 0x50c   :  { %v7267_v63 = vld [vmem:[#allocation17 + $0xe8] sm:$0xff]  ;;  %v7272_v2 = vld [vmem:[#allocation17 + $0xc0] sm:$0xff] }
 0x50d   :  { %v7144_v44 = vadd.f32 %v1556_v1, %v1555_v10  ;;  %v1543_v7 = vadd.f32 %v5300_v51, %v1542_v37  ;;  %v7274_v0 = vld [vmem:[#allocation17 + $0xc8] sm:$0xff]  ;;  %v9847_v1 = vld [vmem:[#allocation79_spill] sm:$0xff]  ;;  %v7282_v37 = vld [vmem:[#allocation17 + $0xd8] sm:$0xff] }
 0x50e   :  { %v345_v10 = vadd.f32 %v9847_v1, %v9827_v47  ;;  %9848 = vst [vmem:[#allocation73_spill] sm:$0xff] %v7282_v37  ;;  %v7293_v47 = vld [vmem:[#allocation17 + $0xb8] sm:$0xff]  ;;  %v7311_v26 = vld [vmem:[#allocation17 + $0x60] sm:$0xff] }
 0x50f   :  { %5303 = vtanh.f32 %v7144_v44  ;;  %v1547_v16 = vsel %vm1546_vm3, %v5300_v51, %v1543_v7  ;;  %v7247_v51 = vld [vmem:[#allocation17 + $0x128] sm:$0xff]  ;;  %9851 = vst [vmem:[#allocation47_spill] sm:$0xff] %v7293_v47  ;;  %v7339_v1 = vld [vmem:[#allocation17 + $0x20] sm:$0xff] }
 0x510   :  { %v1552_v31 = vsel %vm1549_vm4, %v1551_v36, %v1547_v16  ;;  %v7289_v16 = vld [vmem:[#allocation17 + $0x110] sm:$0xff]  ;;  %9856 = vst [vmem:[#allocation36_spill] sm:$0xff] %v7311_v26 }
 0x511   :  { %9863 = vst [vmem:[#allocation45_spill] sm:$0xff] %v7339_v1 }
 0x515   :  { %v5304_v45 = vpop.eup %5303 }
 0x516   :  { %v1559_v4 = vmul.f32 %v5304_v45, %v1552_v31  ;;  %v7295_v45 = vld [vmem:[#allocation17 + $0xf0] sm:$0xff]  ;;  %v7299_v31 = vld [vmem:[#allocation17 + $0x80] sm:$0xff] }
 0x517   :  { %9852 = vst [vmem:[#allocation37_spill] sm:$0xff] %v7299_v31 }
 0x518   :  { %1588 = vmatmul.f32.vlgmr.msrb.gmra.mxu0 %v1559_v4  ;;  %1608 = vmatmul.f32.vlgmr.msrb.gmra.mxu1 %v1559_v4 }
 0x519   :  { %1628 = vmatmul.f32.vlgmr.msrb.gmra.mxu2 %v1559_v4  ;;  %1648 = vmatmul.f32.vlgmr.msrb.gmra.mxu3 %v1559_v4 }
 0x51a   :  { %2075 = vmatpush.msrb.mxu0 %v7159_v9  ;;  %2095 = vmatpush.msrb.mxu1 %v7161_v34 }
 0x51b   :  { %2135 = vmatpush.msrb.mxu3 %v7169_v14  ;;  %2115 = vmatpush.msrb.mxu2 %v7195_v12 }
 0x51c   :  { %2076 = vmatpush.msrb.mxu0 %v7163_v22  ;;  %2096 = vmatpush.msrb.mxu1 %v7167_v42 }
 0x51d   :  { %2136 = vmatpush.msrb.mxu3 %v7176_v43  ;;  %2116 = vmatpush.msrb.mxu2 %v7198_v33 }
 0x51e   :  { %2077 = vmatpush.msrb.mxu0 %v7172_v11  ;;  %2097 = vmatpush.msrb.mxu1 %v7174_v35 }
 0x51f   :  { %2117 = vmatpush.msrb.mxu2 %v7203_v40 }
 0x520   :  { %1822 = vmatmul.f32.vlgmr.msra.gmra.mxu0 %v9835_v61  ;;  %1863 = vmatmul.f32.vlgmr.msra.gmra.mxu1 %v9835_v61 }
 0x521   :  { %1904 = vmatmul.f32.vlgmr.msra.gmra.mxu2 %v9835_v61  ;;  %1945 = vmatmul.f32.vlgmr.msra.gmra.mxu3 %v9835_v61 }
 0x522   :  { %2078 = vmatpush.msrb.mxu0 %v7205_v18  ;;  %2098 = vmatpush.msrb.mxu1 %v7207_v20 }
 0x523   :  { %2118 = vmatpush.msrb.mxu2 %v7219_v32 }
 0x524   :  { %2099 = vmatpush.msrb.mxu1 %v7215_v30 }
 0x525   :  { %2119 = vmatpush.msrb.mxu2 %v7227_v8 }
 0x526   :  { %2100 = vmatpush.msrb.mxu1 %v7237_v50 }
 0x527   :  { %2120 = vmatpush.msrb.mxu2 %v7243_v38 }
 0x528   :  { %1825 = vmatmul.f32.gmra.mxu0 %v9836_v21  ;;  %1866 = vmatmul.f32.gmra.mxu1 %v9836_v21 }
 0x529   :  { %1907 = vmatmul.f32.gmra.mxu2 %v9836_v21  ;;  %1948 = vmatmul.f32.gmra.mxu3 %v9836_v21  ;;  %v7305_v21 = vld [vmem:[#allocation17 + $0x98] sm:$0xff] }
 0x52a   :  { %2101 = vmatpush.msrb.mxu1 %v7247_v51  ;;  %2121 = vmatpush.msrb.mxu2 %v7255_v55  ;;  %9854 = vst [vmem:[#allocation32_spill] sm:$0xff] %v7305_v21 }
 0x52c   :  { %2102 = vmatpush.msrb.mxu1 %v7259_v59  ;;  %2122 = vmatpush.msrb.mxu2 %v7289_v16 }
 0x52e   :  { %2103 = vmatpush.msrb.mxu1 %v7267_v63  ;;  %2123 = vmatpush.msrb.mxu2 %v7295_v45 }
 0x530   :  { %1828 = vmatmul.f32.gmra.mxu0 %v9837_v23  ;;  %1869 = vmatmul.f32.gmra.mxu1 %v9837_v23 }
 0x531   :  { %1910 = vmatmul.f32.gmra.mxu2 %v9837_v23  ;;  %1951 = vmatmul.f32.gmra.mxu3 %v9837_v23  ;;  %v7307_v23 = vld [vmem:[#allocation17 + $0xd0] sm:$0xff] }
 0x532   :  { %2104 = vmatpush.msrb.mxu1 %v7274_v0  ;;  %9855 = vst [vmem:[#allocation40_spill] sm:$0xff] %v7307_v23  ;;  %2124 = vmatpush.msrb.mxu2 %v7307_v23 }
 0x534   :  { %2105 = vmatpush.msrb.mxu1 %v7287_v19 }
 0x538   :  { %1831 = vmatmul.f32.gmra.mxu0 %v9842_v29  ;;  %1872 = vmatmul.f32.gmra.mxu1 %v9842_v29 }
 0x539   :  { %1913 = vmatmul.f32.gmra.mxu2 %v9842_v29  ;;  %1954 = vmatmul.f32.gmra.mxu3 %v9842_v29 }
 0x540   :  { %1834 = vmatmul.f32.gmra.mxu0 %v7033_v28  ;;  %1875 = vmatmul.f32.gmra.mxu1 %v7033_v28 }
 0x541   :  { %1916 = vmatmul.f32.gmra.mxu2 %v7033_v28  ;;  %1957 = vmatmul.f32.gmra.mxu3 %v7033_v28  ;;  %v7201_v28 = vld [vmem:[#allocation17 + $0x1b8] sm:$0xff] }
 0x542   :  { %9843 = vst [vmem:[#allocation53_spill] sm:$0xff] %v7201_v28  ;;  %2137 = vmatpush.msrb.mxu3 %v7201_v28 }
 0x544   :  { %2138 = vmatpush.msrb.mxu3 %v7217_v15 }
 0x546   :  { %2139 = vmatpush.msrb.mxu3 %v7225_v39 }
 0x548   :  { %1837 = vmatmul.f32.gmra.mxu0 %v7115_v41  ;;  %1878 = vmatmul.f32.gmra.mxu1 %v7115_v41 }
 0x549   :  { %1919 = vmatmul.f32.gmra.mxu2 %v7115_v41  ;;  %1960 = vmatmul.f32.gmra.mxu3 %v7115_v41  ;;  %v7210_v41 = vld [vmem:[#allocation17 + $0x160] sm:$0xff] }
 0x54a   :  { %2079 = vmatpush.msrb.mxu0 %v7210_v41  ;;  %2140 = vmatpush.msrb.mxu3 %v7239_v62 }
 0x54c   :  { %2080 = vmatpush.msrb.mxu0 %v7235_v13  ;;  %2141 = vmatpush.msrb.mxu3 %v7250_v5 }
 0x54e   :  { %2081 = vmatpush.msrb.mxu0 %v7245_v17  ;;  %2142 = vmatpush.msrb.mxu3 %v7269_v58 }
 0x550   :  { %1840 = vmatmul.f32.gmra.mxu0 %v1559_v4  ;;  %1881 = vmatmul.f32.gmra.mxu1 %v1559_v4 }
 0x551   :  { %1922 = vmatmul.f32.gmra.mxu2 %v1559_v4  ;;  %1963 = vmatmul.f32.gmra.mxu3 %v1559_v4  ;;  %v7301_v4 = vld [vmem:[#allocation17 + $0x88] sm:$0xff] }
 0x552   :  { %2082 = vmatpush.msrb.mxu0 %v7257_v27  ;;  %2143 = vmatpush.msrb.mxu3 %v7276_v25  ;;  %9853 = vst [vmem:[#allocation30_spill] sm:$0xff] %v7301_v4 }
 0x553   :  { %2106 = vmatpush.msrb.mxu1 %v7301_v4 }
 0x554   :  { %2083 = vmatpush.msrb.mxu0 %v7265_v60  ;;  %2144 = vmatpush.msrb.mxu3 %v7282_v37 }
 0x556   :  { %2084 = vmatpush.msrb.mxu0 %v7272_v2  ;;  %2145 = vmatpush.msrb.mxu3 %v7293_v47 }
 0x558   :  { %2085 = vmatpush.msrb.mxu0 %v7285_v48  ;;  %2146 = vmatpush.msrb.mxu3 %v7305_v21  ;;  %v7363_v21 = vld [vmem:[#allocation17 + $0x18] sm:$0xff] }
 0x559   :  { %9872 = vst [vmem:[#allocation64_spill] sm:$0xff] %v7363_v21 }
 0x55a   :  { %2086 = vmatpush.msrb.mxu0 %v7299_v31 }
 0x55c   :  { %2087 = vmatpush.msrb.mxu0 %v7311_v26 }
 0x595   :  { %v1589_v3 = vpop.f32.mrf.mxu0  ;;  %v1609_v53 = vpop.f32.mrf.mxu1 }
 0x596   :  { %v1652_v49 = vadd.f32 %v1589_v3, %v222_v52  ;;  %v1653_v56 = vadd.f32 %v1609_v53, %v263_v6  ;;  %v7313_v52 = vld [vmem:[#allocation17 + $0x68] sm:$0xff]  ;;  %v7319_v3 = vld [vmem:[#allocation17 + $0xb0] sm:$0xff]  ;;  %v7321_v53 = vld [vmem:[#allocation17 + $0x78] sm:$0xff] }
 0x597   :  { %9857 = vst [vmem:[#allocation50_spill] sm:$0xff] %v7313_v52  ;;  %2107 = vmatpush.msrb.mxu1 %v7313_v52  ;;  %2125 = vmatpush.msrb.mxu2 %v7319_v3  ;;  %v9869_v52 = vld [vmem:[#allocation72_spill] sm:$0xff] }
 0x598   :  { %v5127_v57 = vmul.f32 -1.442695, %v1652_v49  ;;  %v5128_v46 = vmul.f32 -1.442695, %v1653_v56  ;;  %9858 = vst [vmem:[#allocation44_spill] sm:$0xff] %v7319_v3  ;;  %v7327_v56 = vld [vmem:[#allocation17 + $0x40] sm:$0xff]  ;;  %2147 = vmatpush.msrb.mxu3 %v7321_v53  ;;  %v304_v26 = vadd.f32 %v9869_v52, %v9829_v24 }
 0x599   :  { %9859 = vst [vmem:[#allocation34_spill] sm:$0xff] %v7321_v53  ;;  %2088 = vmatpush.msrb.mxu0 %v7327_v56  ;;  %v7371_v24 = vld [vmem:[#allocation17 + $0x30] sm:$0xff] }
 0x59a   :  { %5305 = vpow2.f32 %v5127_v57  ;;  %9860 = vst [vmem:[#allocation48_spill] sm:$0xff] %v7327_v56  ;;  %v7329_v57 = vld [vmem:[#allocation17 + $0x48] sm:$0xff]  ;;  %v7361_v56 = vld [vmem:[#allocation17 + $0x38] sm:$0xff] }
 0x59b   :  { %5307 = vpow2.f32 %v5128_v46  ;;  %9861 = vst [vmem:[#allocation41_spill] sm:$0xff] %v7329_v57  ;;  %v7334_v46 = vld [vmem:[#allocation17 + $0x90] sm:$0xff]  ;;  %2108 = vmatpush.msrb.mxu1 %v7329_v57  ;;  %2089 = vmatpush.msrb.mxu0 %v7339_v1 }
 0x59c   :  { %v1649_v7 = vpop.f32.mrf.mxu3  ;;  %9862 = vst [vmem:[#allocation51_spill] sm:$0xff] %v7334_v46  ;;  %2126 = vmatpush.msrb.mxu2 %v7334_v46  ;;  %v7359_v57 = vld [vmem:[#allocation17 + $0x50] sm:$0xff] }
 0x59d   :  { %v1655_v36 = vadd.f32 %v1649_v7, %v345_v10  ;;  %v7341_v10 = vld [vmem:[#allocation17 + $0x28] sm:$0xff]  ;;  %v7343_v7 = vld [vmem:[#allocation17 + $0x58] sm:$0xff]  ;;  %9870 = vst [vmem:[#allocation46_spill] sm:$0xff] %v7359_v57 }
 0x59e   :  { %9864 = vst [vmem:[#allocation39_spill] sm:$0xff] %v7341_v10  ;;  %2148 = vmatpush.msrb.mxu3 %v7343_v7  ;;  %2109 = vmatpush.msrb.mxu1 %v7341_v10 }
 0x59f   :  { %v5129_v61 = vmul.f32 -1.442695, %v1655_v36  ;;  %9865 = vst [vmem:[#allocation35_spill] sm:$0xff] %v7343_v7  ;;  %v7347_v36 = vld [vmem:[#allocation17 + $0x70] sm:$0xff] }
 0x5a0   :  { %v5306_v29 = vpop.eup %5305  ;;  %9866 = vst [vmem:[#allocation42_spill] sm:$0xff] %v7347_v36  ;;  %2127 = vmatpush.msrb.mxu2 %v7347_v36  ;;  %2149 = vmatpush.msrb.mxu3 %v7361_v56 }
 0x5a1   :  { %v5308_v54 = vpop.eup %5307  ;;  %v7315_v6 = vadd.f32 1.0, %v5306_v29  ;;  %5309 = vpow2.f32 %v5129_v61  ;;  %v1629_v61 = vpop.f32.mrf.mxu2  ;;  %v7351_v29 = vld [vmem:[#allocation17] sm:$0xff]  ;;  %9871 = vst [vmem:[#allocation57_spill] sm:$0xff] %v7361_v56  ;;  %v7378_v56 = vld [vmem:[#allocation17 + $0x10] sm:$0xff] }
 0x5a2   :  { %v7323_v49 = vadd.f32 1.0, %v5308_v54  ;;  %9867 = vst [vmem:[#allocation52_spill] sm:$0xff] %v7351_v29  ;;  %v7353_v54 = vld [vmem:[#allocation17 + $0x8] sm:$0xff]  ;;  %v1654_v4 = vadd.f32 %v1629_v61, %v304_v26  ;;  %2090 = vmatpush.msrb.mxu0 %v7351_v29  ;;  %2128 = vmatpush.msrb.mxu2 %v7359_v57 }
 0x5a3   :  { %5311 = vrcp.f32 %v7315_v6  ;;  %9868 = vst [vmem:[#allocation31_spill] sm:$0xff] %v7353_v54  ;;  %2110 = vmatpush.msrb.mxu1 %v7353_v54  ;;  %2150 = vmatpush.msrb.mxu3 %v7363_v21  ;;  %v1671_v54 = vand.u32 2147483648, %v7315_v6  ;;  %vm1665_vm7 = vweird.f32 %v7315_v6 }
 0x5a4   :  { %5313 = vrcp.f32 %v7323_v49  ;;  %9873 = vst [vmem:[#allocation38_spill] sm:$0xff] %v7371_v24  ;;  %2233 = vmatpush.msra.mxu0 %v7159_v9  ;;  %2129 = vmatpush.msrb.mxu2 %v7371_v24  ;;  %v1690_v21 = vand.u32 2147483648, %v7323_v49  ;;  %v1669_v9 = vand.u32 2147483647, %v7315_v6  ;;  %vm1684_vm8 = vweird.f32 %v7323_v49 }
 0x5a5   :  { %9874 = vst [vmem:[#allocation56_spill] sm:$0xff] %v7378_v56  ;;  %2253 = vmatpush.msra.mxu1 %v7161_v34  ;;  %2293 = vmatpush.msra.mxu3 %v7169_v14 }
 0x5a6   :  { %2234 = vmatpush.msra.mxu0 %v7163_v22  ;;  %2130 = vmatpush.msrb.mxu2 %v7378_v56  ;;  %vm1670_vm11 = vcmp.eq.f32.partialorder %v1669_v9, 8.507059e+37 }
 0x5a7   :  { %v5310_v53 = vpop.eup %5309  ;;  %2254 = vmatpush.msra.mxu1 %v7167_v42  ;;  %2294 = vmatpush.msra.mxu3 %v7176_v43 }
 0x5a8   :  { %v7365_v46 = vadd.f32 1.0, %v5310_v53  ;;  %2273 = vmatpush.msra.mxu2 %v7195_v12  ;;  %2235 = vmatpush.msra.mxu0 %v7172_v11 }
 0x5a9   :  { %v5312_v7 = vpop.eup %5311  ;;  %2255 = vmatpush.msra.mxu1 %v7174_v35  ;;  %2295 = vmatpush.msra.mxu3 %v7201_v28 }
 0x5aa   :  { %v5314_v52 = vpop.eup %5313  ;;  %v1661_v10 = vmul.f32 %v5312_v7, %v7315_v6  ;;  %5315 = vrcp.f32 %v7365_v46  ;;  %vm1666_vm5 = vweird.f32 %v5312_v7  ;;  %2274 = vmatpush.msra.mxu2 %v7198_v33  ;;  %2236 = vmatpush.msra.mxu0 %v7205_v18  ;;  %v1691_v6 = vor.u32 1.1754944e-38, %v1690_v21 }
 0x5ab   :  { %v1680_v53 = vmul.f32 %v5314_v52, %v7323_v49  ;;  %5317 = vtanh.f32 %v1654_v4  ;;  %vm1685_vm6 = vweird.f32 %v5314_v52  ;;  %vm1667_vm9 = vmor %vm1665_vm7, %vm1666_vm5  ;;  %2256 = vmatpush.msra.mxu1 %v7207_v20  ;;  %2296 = vmatpush.msra.mxu3 %v7217_v15  ;;  %vm1704_vm14 = vweird.f32 %v7365_v46 }
 0x5ac   :  { %v1662_v26 = vsub.f32 1.0, %v1661_v10  ;;  %vm1686_vm10 = vmor %vm1684_vm8, %vm1685_vm6  ;;  %2275 = vmatpush.msra.mxu2 %v7203_v40  ;;  %2237 = vmatpush.msra.mxu0 %v7210_v41 }
 0x5ad   :  { %v1681_v61 = vsub.f32 1.0, %v1680_v53  ;;  %v1688_v53 = vand.u32 2147483647, %v7323_v49  ;;  %2257 = vmatpush.msra.mxu1 %v7215_v30  ;;  %2297 = vmatpush.msra.mxu3 %v7225_v39 }
 0x5ae   :  { %v1663_v29 = vmul.f32 %v5312_v7, %v1662_v26  ;;  %v1672_v26 = vor.u32 1.1754944e-38, %v1671_v54  ;;  %2276 = vmatpush.msra.mxu2 %v7219_v32  ;;  %2238 = vmatpush.msra.mxu0 %v7235_v13 }
 0x5af   :  { %v1682_v10 = vmul.f32 %v5314_v52, %v1681_v61  ;;  %vm1689_vm12 = vcmp.eq.f32.partialorder %v1688_v53, 8.507059e+37  ;;  %2258 = vmatpush.msra.mxu1 %v7237_v50  ;;  %2298 = vmatpush.msra.mxu3 %v7239_v62  ;;  %v9875_v53 = vld [vmem:[#allocation30_spill] sm:$0xff] }
 0x5b0   :  { %v7394_v4 = vpop.eup %5315  ;;  %v1664_v42 = vadd.f32 %v5312_v7, %v1663_v29  ;;  %2277 = vmatpush.msra.mxu2 %v7227_v8  ;;  %2239 = vmatpush.msra.mxu0 %v7245_v17 }
 0x5b1   :  { %v1683_v61 = vadd.f32 %v5314_v52, %v1682_v10  ;;  %v1700_v43 = vmul.f32 %v7394_v4, %v7365_v46  ;;  %v5318_v49 = vpop.eup %5317  ;;  %vm1705_vm13 = vweird.f32 %v7394_v4  ;;  %2259 = vmatpush.msra.mxu1 %v7247_v51  ;;  %2299 = vmatpush.msra.mxu3 %v7250_v5 }
 0x5b2   :  { %v1668_v29 = vsel %vm1667_vm9, %v5312_v7, %v1664_v42  ;;  %2278 = vmatpush.msra.mxu2 %v7243_v38  ;;  %2240 = vmatpush.msra.mxu0 %v7257_v27  ;;  %vm1706_vm15 = vmor %vm1704_vm14, %vm1705_vm13 }
 0x5b3   :  { %v1673_v28 = vsel %vm1670_vm11, %v1672_v26, %v1668_v29  ;;  %v1687_v54 = vsel %vm1686_vm10, %v5314_v52, %v1683_v61  ;;  %v1701_v10 = vsub.f32 1.0, %v1700_v43  ;;  %2260 = vmatpush.msra.mxu1 %v7259_v59  ;;  %2300 = vmatpush.msra.mxu3 %v7269_v58  ;;  %v9877_v26 = vld [vmem:[#allocation51_spill] sm:$0xff]  ;;  %v9878_v61 = vld [vmem:[#allocation36_spill] sm:$0xff]  ;;  %v9880_v29 = vld [vmem:[#allocation34_spill] sm:$0xff] }
 0x5b4   :  { %v1692_v35 = vsel %vm1689_vm12, %v1691_v6, %v1687_v54  ;;  %v1716_v18 = vmul.f32 %v5318_v49, %v1673_v28  ;;  %2279 = vmatpush.msra.mxu2 %v7255_v55  ;;  %2241 = vmatpush.msra.mxu0 %v7265_v60  ;;  %v9879_v6 = vld [vmem:[#allocation50_spill] sm:$0xff]  ;;  %v9881_v49 = vld [vmem:[#allocation48_spill] sm:$0xff]  ;;  %v9882_v54 = vld [vmem:[#allocation41_spill] sm:$0xff] }
 0x5b5   :  { %v1715_v9 = vmul.f32 %v1692_v35, %v7144_v44  ;;  %v1702_v42 = vmul.f32 %v7394_v4, %v1701_v10  ;;  %v1710_v44 = vand.u32 2147483648, %v7365_v46  ;;  %v1708_v35 = vand.u32 2147483647, %v7365_v46  ;;  %2261 = vmatpush.msra.mxu1 %v7267_v63  ;;  %2301 = vmatpush.msra.mxu3 %v7276_v25  ;;  %v9883_v10 = vld [vmem:[#allocation35_spill] sm:$0xff] }
 0x5b6   :  { %2280 = vmatpush.msra.mxu2 %v7289_v16  ;;  %2242 = vmatpush.msra.mxu0 %v7272_v2 }
 0x5b7   :  { %v1717_v43 = vadd.f32 %v1716_v18, %v1715_v9  ;;  %v1703_v28 = vadd.f32 %v7394_v4, %v1702_v42  ;;  %v1711_v21 = vor.u32 1.1754944e-38, %v1710_v44  ;;  %vm1709_vm0 = vcmp.eq.f32.partialorder %v1708_v35, 8.507059e+37  ;;  %2262 = vmatpush.msra.mxu1 %v7274_v0  ;;  %2302 = vmatpush.msra.mxu3 %v7282_v37  ;;  %v9885_v42 = vld [vmem:[#allocation39_spill] sm:$0xff]  ;;  %v9889_v35 = vld [vmem:[#allocation64_spill] sm:$0xff] }
 0x5b8   :  { %2281 = vmatpush.msra.mxu2 %v7295_v45  ;;  %2243 = vmatpush.msra.mxu0 %v7285_v48  ;;  %v9884_v9 = vmov 0.0   ;;  %v9888_v44 = vld [vmem:[#allocation31_spill] sm:$0xff] }
 0x5b9   :  { %5319 = vtanh.f32 %v1717_v43  ;;  %v1707_v18 = vsel %vm1706_vm15, %v7394_v4, %v1703_v28  ;;  %2263 = vmatpush.msra.mxu1 %v7287_v19  ;;  %2303 = vmatpush.msra.mxu3 %v7293_v47  ;;  %v9876_v4 = vld [vmem:[#allocation32_spill] sm:$0xff]  ;;  %v9886_v43 = vld [vmem:[#allocation57_spill] sm:$0xff] }
 0x5ba   :  { %v1712_v7 = vsel %vm1709_vm0, %v1711_v21, %v1707_v18  ;;  %2282 = vmatpush.msra.mxu2 %v7307_v23  ;;  %2244 = vmatpush.msra.mxu0 %v7299_v31  ;;  %v9887_v28 = vld [vmem:[#allocation52_spill] sm:$0xff]  ;;  %v9890_v18 = vld [vmem:[#allocation62_spill] sm:$0xff]  ;;  %v9891_v21 = vld [vmem:[#allocation29_spill] sm:$0xff] }
 0x5bb   :  { %2264 = vmatpush.msra.mxu1 %v9875_v53  ;;  %2304 = vmatpush.msra.mxu3 %v9876_v4 }
 0x5bc   :  { %2283 = vmatpush.msra.mxu2 %v7319_v3  ;;  %2245 = vmatpush.msra.mxu0 %v9878_v61 }
 0x5bd   :  { %2265 = vmatpush.msra.mxu1 %v9879_v6  ;;  %2305 = vmatpush.msra.mxu3 %v9880_v29 }
 0x5be   :  { %2284 = vmatpush.msra.mxu2 %v9877_v26  ;;  %2246 = vmatpush.msra.mxu0 %v9881_v49 }
 0x5bf   :  { %v5320_v46 = vpop.eup %5319  ;;  %2266 = vmatpush.msra.mxu1 %v9882_v54  ;;  %2306 = vmatpush.msra.mxu3 %v9883_v10 }
 0x5c0   :  { %v1719_v52 = vmul.f32 %v5320_v46, %v1712_v7  ;;  %2285 = vmatpush.msra.mxu2 %v7347_v36  ;;  %2247 = vmatpush.msra.mxu0 %v7339_v1  ;;  %v9892_v46 = vld [vmem:[#allocation61_spill] sm:$0xff]  ;;  %v9893_v7 = vld [vmem:[#allocation70_spill] sm:$0xff] }
 0x5c1   :  { %2267 = vmatpush.msra.mxu1 %v9885_v42  ;;  %2307 = vmatpush.msra.mxu3 %v9886_v43 }
 0x5c2   :  { %1843 = vmatmul.f32.gmra.mxu0 %v1719_v52  ;;  %1884 = vmatmul.f32.gmra.mxu1 %v1719_v52 }
 0x5c3   :  { %1925 = vmatmul.f32.gmra.mxu2 %v1719_v52  ;;  %1966 = vmatmul.f32.gmra.mxu3 %v1719_v52  ;;  %v9894_v52 = vld [vmem:[#allocation53_spill] sm:$0xff] }
 0x5c4   :  { %2286 = vmatpush.msra.mxu2 %v7359_v57  ;;  %2248 = vmatpush.msra.mxu0 %v9887_v28 }
 0x5c5   :  { %2268 = vmatpush.msra.mxu1 %v9888_v44  ;;  %2308 = vmatpush.msra.mxu3 %v9889_v35 }
 0x5c6   :  { %2287 = vmatpush.msra.mxu2 %v7371_v24 }
 0x5c8   :  { %2288 = vmatpush.msra.mxu2 %v7378_v56 }
 0x5ca   :  { %2091 = vmatmul.f32.vlgmr.msrb.gmra.mxu0 %v9884_v9  ;;  %2111 = vmatmul.f32.vlgmr.msrb.gmra.mxu1 %v9884_v9 }
 0x5cb   :  { %2131 = vmatmul.f32.vlgmr.msrb.gmra.mxu2 %v9884_v9  ;;  %2151 = vmatmul.f32.vlgmr.msrb.gmra.mxu3 %v9884_v9  ;;  %v9895_v9 = vld [vmem:[#allocation65_spill] sm:$0xff] }
 0x5cc   :  { %2392 = vmatpush.msrb.mxu0 %v9890_v18  ;;  %2412 = vmatpush.msrb.mxu1 %v7161_v34 }
 0x5cd   :  { %2432 = vmatpush.msrb.mxu2 %v7195_v12  ;;  %2452 = vmatpush.msrb.mxu3 %v7169_v14 }
 0x5ce   :  { %2393 = vmatpush.msrb.mxu0 %v7163_v22  ;;  %2413 = vmatpush.msrb.mxu1 %v9891_v21 }
 0x5cf   :  { %2433 = vmatpush.msrb.mxu2 %v7198_v33  ;;  %2453 = vmatpush.msrb.mxu3 %v9892_v46 }
 0x5d0   :  { %2394 = vmatpush.msrb.mxu0 %v7172_v11  ;;  %2414 = vmatpush.msrb.mxu1 %v9893_v7 }
 0x5d1   :  { %2434 = vmatpush.msrb.mxu2 %v7203_v40  ;;  %2454 = vmatpush.msrb.mxu3 %v9894_v52 }
 0x5d2   :  { %2395 = vmatpush.msrb.mxu0 %v9895_v9  ;;  %2415 = vmatpush.msrb.mxu1 %v7207_v20 }
 0x5d3   :  { %2435 = vmatpush.msrb.mxu2 %v7219_v32  ;;  %2455 = vmatpush.msrb.mxu3 %v7217_v15 }
 0x5d4   :  { %2396 = vmatpush.msrb.mxu0 %v7210_v41  ;;  %2416 = vmatpush.msrb.mxu1 %v7215_v30 }
 0x5d5   :  { %2436 = vmatpush.msrb.mxu2 %v7227_v8  ;;  %2456 = vmatpush.msrb.mxu3 %v7225_v39 }
 0x5d6   :  { %2397 = vmatpush.msrb.mxu0 %v7235_v13  ;;  %2417 = vmatpush.msrb.mxu1 %v7237_v50 }
 0x5d7   :  { %2437 = vmatpush.msrb.mxu2 %v7243_v38  ;;  %2457 = vmatpush.msrb.mxu3 %v7239_v62 }
 0x5d8   :  { %2398 = vmatpush.msrb.mxu0 %v7245_v17  ;;  %2418 = vmatpush.msrb.mxu1 %v7247_v51 }
 0x5d9   :  { %2438 = vmatpush.msrb.mxu2 %v7255_v55  ;;  %2458 = vmatpush.msrb.mxu3 %v7250_v5 }
 0x5da   :  { %2399 = vmatpush.msrb.mxu0 %v7257_v27  ;;  %2419 = vmatpush.msrb.mxu1 %v7259_v59 }
 0x5db   :  { %2439 = vmatpush.msrb.mxu2 %v7289_v16  ;;  %2459 = vmatpush.msrb.mxu3 %v7269_v58 }
 0x5dc   :  { %2400 = vmatpush.msrb.mxu0 %v7265_v60  ;;  %2420 = vmatpush.msrb.mxu1 %v7267_v63 }
 0x5dd   :  { %2440 = vmatpush.msrb.mxu2 %v7295_v45  ;;  %2460 = vmatpush.msrb.mxu3 %v7276_v25 }
 0x5de   :  { %2401 = vmatpush.msrb.mxu0 %v7272_v2  ;;  %2421 = vmatpush.msrb.mxu1 %v7274_v0 }
 0x5df   :  { %2441 = vmatpush.msrb.mxu2 %v7307_v23  ;;  %2461 = vmatpush.msrb.mxu3 %v7282_v37 }
 0x5e0   :  { %2402 = vmatpush.msrb.mxu0 %v7285_v48  ;;  %2422 = vmatpush.msrb.mxu1 %v7287_v19 }
 0x5e1   :  { %2442 = vmatpush.msrb.mxu2 %v7319_v3  ;;  %2462 = vmatpush.msrb.mxu3 %v7293_v47 }
 0x5e2   :  { %2403 = vmatpush.msrb.mxu0 %v7299_v31  ;;  %2423 = vmatpush.msrb.mxu1 %v9875_v53 }
 0x5e3   :  { %2443 = vmatpush.msrb.mxu2 %v9877_v26  ;;  %2463 = vmatpush.msrb.mxu3 %v9876_v4 }
 0x5e4   :  { %2404 = vmatpush.msrb.mxu0 %v9878_v61  ;;  %2424 = vmatpush.msrb.mxu1 %v9879_v6 }
 0x5e5   :  { %2444 = vmatpush.msrb.mxu2 %v7347_v36  ;;  %2464 = vmatpush.msrb.mxu3 %v9880_v29 }
 0x5e6   :  { %2405 = vmatpush.msrb.mxu0 %v9881_v49  ;;  %2425 = vmatpush.msrb.mxu1 %v9882_v54  ;;  %v1823_v54 = vpop.f32.mrf.mxu0  ;;  %v1946_v49 = vpop.f32.mrf.mxu3 }
 0x5e7   :  { %2445 = vmatpush.msrb.mxu2 %v7359_v57  ;;  %2465 = vmatpush.msrb.mxu3 %v9883_v10  ;;  %v1864_v57 = vpop.f32.mrf.mxu1 }
 0x5e8   :  { %2406 = vmatpush.msrb.mxu0 %v7339_v1  ;;  %2426 = vmatpush.msrb.mxu1 %v9885_v42  ;;  %v1905_v42 = vpop.f32.mrf.mxu2 }
 0x5e9   :  { %2446 = vmatpush.msrb.mxu2 %v7371_v24  ;;  %2466 = vmatpush.msrb.mxu3 %v9886_v43 }
 0x5ea   :  { %2407 = vmatpush.msrb.mxu0 %v9887_v28  ;;  %2427 = vmatpush.msrb.mxu1 %v9888_v44 }
 0x5eb   :  { %2447 = vmatpush.msrb.mxu2 %v7378_v56  ;;  %2467 = vmatpush.msrb.mxu3 %v9889_v35 }
 0x5ee   :  { %v7534_v10 = vpop.f32.mrf.mxu0  ;;  %v7538_v29 = vpop.f32.mrf.mxu3 }
 0x5ef   :  { %9896 = vst [vmem:[#allocation60_spill] sm:$0xff] %v7534_v10  ;;  %v7536_v1 = vpop.f32.mrf.mxu1 }
 0x5f0   :  { %9897 = vst [vmem:[#allocation67_spill] sm:$0xff] %v7536_v1  ;;  %v7544_v28 = vpop.f32.mrf.mxu2 }
 0x5f1   :  { %9898 = vst [vmem:[#allocation75_spill] sm:$0xff] %v7538_v29 }
 0x5f2   :  { %9901 = vst [vmem:[#allocation68_spill] sm:$0xff] %v7544_v28 }
 0x5f6   :  { %v7540_v24 = vpop.f32.mrf.mxu0  ;;  %v7546_v44 = vpop.f32.mrf.mxu3 }
 0x5f7   :  { %9899 = vst [vmem:[#allocation54_spill] sm:$0xff] %v7540_v24  ;;  %v7542_v43 = vpop.f32.mrf.mxu1 }
 0x5f8   :  { %9900 = vst [vmem:[#allocation76_spill] sm:$0xff] %v7542_v43  ;;  %v7552_v36 = vpop.f32.mrf.mxu2 }
 0x5f9   :  { %9902 = vst [vmem:[#allocation80_spill] sm:$0xff] %v7546_v44 }
 0x5fa   :  { %9905 = vst [vmem:[#allocation66_spill] sm:$0xff] %v7552_v36 }
 0x5fe   :  { %v7548_v56 = vpop.f32.mrf.mxu0  ;;  %v7554_v10 = vpop.f32.mrf.mxu3 }
 0x5ff   :  { %9903 = vst [vmem:[#allocation77_spill] sm:$0xff] %v7548_v56  ;;  %v7550_v35 = vpop.f32.mrf.mxu1 }
 0x600   :  { %9904 = vst [vmem:[#allocation81_spill] sm:$0xff] %v7550_v35  ;;  %v7560_v29 = vpop.f32.mrf.mxu2 }
 0x601   :  { %9906 = vst [vmem:[#allocation55_spill] sm:$0xff] %v7554_v10 }
 0x602   :  { %9909 = vst [vmem:[#allocation69_spill] sm:$0xff] %v7560_v29 }
 0x606   :  { %v7556_v1 = vpop.f32.mrf.mxu0  ;;  %v7562_v24 = vpop.f32.mrf.mxu3 }
 0x607   :  { %9907 = vst [vmem:[#allocation71_spill] sm:$0xff] %v7556_v1  ;;  %v7558_v6 = vpop.f32.mrf.mxu1 }
 0x608   :  { %9908 = vst [vmem:[#allocation78_spill] sm:$0xff] %v7558_v6  ;;  %v7568_v44 = vpop.f32.mrf.mxu2 }
 0x609   :  { %9910 = vst [vmem:[#allocation82_spill] sm:$0xff] %v7562_v24  ;;  %v1796_v24 = vld [vmem:[%s9235_s6] sm:$0xf] }
 0x60a   :  { %9913 = vst [vmem:[#allocation59_spill] sm:$0xff] %v7568_v44  ;;  %v7589_v44 = vperm.slane %v1796_v24, 1  ;;  %v7597_v26 = vperm.slane %v1796_v24, 3 }
 0x60c   :  { %9922 = vst [vmem:[#allocation53_spill] sm:$0xff] %v7589_v44  ;;  %v1947_v53 = vadd.f32 %v1946_v49, %v7597_v26 }
 0x60d   :  { %9925 = vst [vmem:[#allocation84_spill] sm:$0xff] %v7597_v26 }
 0x60e   :  { %v7564_v43 = vpop.f32.mrf.mxu0  ;;  %v7570_v56 = vpop.f32.mrf.mxu3 }
 0x60f   :  { %9911 = vst [vmem:[#allocation33_spill] sm:$0xff] %v7564_v43  ;;  %v7566_v28 = vpop.f32.mrf.mxu1 }
 0x610   :  { %9912 = vst [vmem:[#allocation49_spill] sm:$0xff] %v7566_v28  ;;  %v7576_v10 = vpop.f32.mrf.mxu2  ;;  %v7587_v28 = vperm.slane %v1796_v24, 0 }
 0x611   :  { %9914 = vst [vmem:[#allocation58_spill] sm:$0xff] %v7570_v56 }
 0x612   :  { %9917 = vst [vmem:[#allocation72_spill] sm:$0xff] %v7576_v10 }
 0x613   :  { %9921 = vst [vmem:[#allocation70_spill] sm:$0xff] %v7587_v28 }
 0x616   :  { %v7572_v35 = vpop.f32.mrf.mxu0  ;;  %v7578_v1 = vpop.f32.mrf.mxu3 }
 0x617   :  { %9915 = vst [vmem:[#allocation74_spill] sm:$0xff] %v7572_v35  ;;  %v7574_v36 = vpop.f32.mrf.mxu1  ;;  %v1824_v35 = vadd.f32 %v1823_v54, %v7587_v28 }
 0x618   :  { %9916 = vst [vmem:[#allocation79_spill] sm:$0xff] %v7574_v36  ;;  %v1865_v36 = vadd.f32 %v1864_v57, %v7589_v44  ;;  %v7593_v56 = vpop.f32.mrf.mxu2 }
 0x619   :  { %9918 = vst [vmem:[#allocation62_spill] sm:$0xff] %v7578_v1 }
 0x61a   :  { %9923 = vst [vmem:[#allocation65_spill] sm:$0xff] %v7593_v56 }
 0x63f   :  { %v7583_v6 = vpop.f32.mrf.mxu0  ;;  %v7585_v43 = vpop.f32.mrf.mxu1 }
 0x640   :  { %9919 = vst [vmem:[#allocation29_spill] sm:$0xff] %v7583_v6 }
 0x641   :  { %9920 = vst [vmem:[#allocation61_spill] sm:$0xff] %v7585_v43 }
 0x646   :  { %v7595_v10 = vpop.f32.mrf.mxu3  ;;  %v7600_v31 = vpop.f32.mrf.mxu2 }
 0x647   :  { %9924 = vst [vmem:[#allocation83_spill] sm:$0xff] %v7595_v10  ;;  %v2092_v1 = vpop.f32.mrf.mxu0  ;;  %v2112_v29 = vpop.f32.mrf.mxu1 }
 0x648   :  { %v2155_v61 = vadd.f32 %v2092_v1, %v1824_v35  ;;  %v2156_v4 = vadd.f32 %v2112_v29, %v1865_v36  ;;  %9926 = vst [vmem:[#allocation85_spill] sm:$0xff] %v7600_v31  ;;  %v7602_v1 = vperm.slane %v1796_v24, 2 }
 0x64a   :  { %v5130_v6 = vmul.f32 -1.442695, %v2155_v61  ;;  %v5131_v43 = vmul.f32 -1.442695, %v2156_v4  ;;  %9927 = vst [vmem:[#allocation86_spill] sm:$0xff] %v7602_v1  ;;  %v1906_v61 = vadd.f32 %v1905_v42, %v7602_v1 }
 0x64c   :  { %5321 = vpow2.f32 %v5130_v6 }
 0x64d   :  { %5323 = vpow2.f32 %v5131_v43 }
 0x64e   :  { %v2152_v54 = vpop.f32.mrf.mxu3  ;;  %v2132_v36 = vpop.f32.mrf.mxu2 }
 0x64f   :  { %v2158_v57 = vadd.f32 %v2152_v54, %v1947_v53  ;;  %v2157_v49 = vadd.f32 %v2132_v36, %v1906_v61 }
 0x651   :  { %v5132_v44 = vmul.f32 -1.442695, %v2158_v57 }
 0x652   :  { %v5322_v56 = vpop.eup %5321 }
 0x653   :  { %v5324_v28 = vpop.eup %5323  ;;  %v2162_v10 = vadd.f32 1.0, %v5322_v56  ;;  %5325 = vpow2.f32 %v5132_v44 }
 0x654   :  { %v2181_v47 = vadd.f32 1.0, %v5324_v28 }
 0x655   :  { %5327 = vrcp.f32 %v2162_v10  ;;  %v2174_v56 = vand.u32 2147483648, %v2162_v10  ;;  %v2172_v44 = vand.u32 2147483647, %v2162_v10  ;;  %vm2168_vm3 = vweird.f32 %v2162_v10 }
 0x656   :  { %5329 = vrcp.f32 %v2181_v47  ;;  %v2193_v28 = vand.u32 2147483648, %v2181_v47  ;;  %v2191_v26 = vand.u32 2147483647, %v2181_v47  ;;  %vm2187_vm4 = vweird.f32 %v2181_v47 }
 0x657   :  { %v2175_v36 = vor.u32 1.1754944e-38, %v2174_v56  ;;  %vm2173_vm6 = vcmp.eq.f32.partialorder %v2172_v44, 8.507059e+37 }
 0x658   :  { %v2194_v1 = vor.u32 1.1754944e-38, %v2193_v28  ;;  %vm2192_vm8 = vcmp.eq.f32.partialorder %v2191_v26, 8.507059e+37 }
 0x659   :  { %v5326_v4 = vpop.eup %5325 }
 0x65a   :  { %v2201_v6 = vadd.f32 1.0, %v5326_v4 }
 0x65b   :  { %v5328_v29 = vpop.eup %5327 }
 0x65c   :  { %v5330_v43 = vpop.eup %5329  ;;  %v2164_v35 = vmul.f32 %v5328_v29, %v2162_v10  ;;  %5331 = vrcp.f32 %v2201_v6  ;;  %vm2169_vm1 = vweird.f32 %v5328_v29  ;;  %vm2207_vm10 = vweird.f32 %v2201_v6 }
 0x65d   :  { %v2183_v53 = vmul.f32 %v5330_v43, %v2181_v47  ;;  %5333 = vtanh.f32 %v2157_v49  ;;  %vm2188_vm2 = vweird.f32 %v5330_v43  ;;  %vm2170_vm5 = vmor %vm2168_vm3, %vm2169_vm1  ;;  %v2211_v10 = vand.u32 2147483647, %v2201_v6 }
 0x65e   :  { %v2165_v54 = vsub.f32 1.0, %v2164_v35  ;;  %vm2189_vm7 = vmor %vm2187_vm4, %vm2188_vm2 }
 0x65f   :  { %v2184_v57 = vsub.f32 1.0, %v2183_v53  ;;  %vm2212_vm12 = vcmp.eq.f32.partialorder %v2211_v10, 8.507059e+37 }
 0x660   :  { %v2166_v24 = vmul.f32 %v5328_v29, %v2165_v54 }
 0x661   :  { %v2185_v31 = vmul.f32 %v5330_v43, %v2184_v57 }
 0x662   :  { %v5332_v3 = vpop.eup %5331  ;;  %v2167_v42 = vadd.f32 %v5328_v29, %v2166_v24 }
 0x663   :  { %v2186_v4 = vadd.f32 %v5330_v43, %v2185_v31  ;;  %v2203_v61 = vmul.f32 %v5332_v3, %v2201_v6  ;;  %v5334_v49 = vpop.eup %5333  ;;  %vm2208_vm9 = vweird.f32 %v5332_v3  ;;  %v2213_v31 = vand.u32 2147483648, %v2201_v6 }
 0x664   :  { %v2171_v35 = vsel %vm2170_vm5, %v5328_v29, %v2167_v42  ;;  %vm2209_vm11 = vmor %vm2207_vm10, %vm2208_vm9 }
 0x665   :  { %v2176_v53 = vsel %vm2173_vm6, %v2175_v36, %v2171_v35  ;;  %v2190_v54 = vsel %vm2189_vm7, %v5330_v43, %v2186_v4  ;;  %v2204_v19 = vsub.f32 1.0, %v2203_v61  ;;  %v2214_v56 = vor.u32 1.1754944e-38, %v2213_v31  ;;  %v9961_v35 = vld [vmem:[#allocation86_spill] sm:$0xff] }
 0x666   :  { %v2195_v57 = vsel %vm2192_vm8, %v2194_v1, %v2190_v54  ;;  %v2219_v48 = vmul.f32 %v5334_v49, %v2176_v53  ;;  %v9962_v49 = vld [vmem:[#allocation68_spill] sm:$0xff] }
 0x667   :  { %v2218_v37 = vmul.f32 0.0, %v2195_v57  ;;  %v2205_v23 = vmul.f32 %v5332_v3, %v2204_v19  ;;  %v1909_v53 = vadd.f32 %v9962_v49, %v9961_v35  ;;  %v7750_v49 = vld [vmem:[#allocation17 + $0x170] sm:$0xff] }
 0x669   :  { %v7605_v24 = vadd.f32 %v2219_v48, %v2218_v37  ;;  %v2206_v47 = vadd.f32 %v5332_v3, %v2205_v23  ;;  %v9958_v37 = vld [vmem:[#allocation67_spill] sm:$0xff] }
 0x66b   :  { %5335 = vtanh.f32 %v7605_v24  ;;  %v2210_v29 = vsel %vm2209_vm11, %v5332_v3, %v2206_v47 }
 0x66c   :  { %v2215_v26 = vsel %vm2212_vm12, %v2214_v56, %v2210_v29 }
 0x671   :  { %v5336_v43 = vpop.eup %5335 }
 0x672   :  { %v7608_v28 = vmul.f32 %v5336_v43, %v2215_v26 }
 0x674   :  { %9928 = vst [vmem:[#allocation87_spill] sm:$0xff] %v7608_v28  ;;  %2249 = vmatmul.f32.vlgmr.msra.gmra.mxu0 %v7608_v28  ;;  %2269 = vmatmul.f32.vlgmr.msra.gmra.mxu1 %v7608_v28 }
 0x675   :  { %2289 = vmatmul.f32.vlgmr.msra.gmra.mxu2 %v7608_v28  ;;  %2309 = vmatmul.f32.vlgmr.msra.gmra.mxu3 %v7608_v28  ;;  %v7867_v28 = vld [vmem:[#allocation17 + $0x28] sm:$0xff] }
 0x676   :  { %2551 = vmatpush.msra.mxu0 %v9890_v18  ;;  %2571 = vmatpush.msra.mxu1 %v7161_v34  ;;  %v9929_v34 = vld [vmem:[#allocation40_spill] sm:$0xff] }
 0x677   :  { %2591 = vmatpush.msra.mxu2 %v7195_v12  ;;  %2611 = vmatpush.msra.mxu3 %v7169_v14  ;;  %v9931_v14 = vld [vmem:[#allocation63_spill] sm:$0xff]  ;;  %v9933_v12 = vld [vmem:[#allocation44_spill] sm:$0xff] }
 0x678   :  { %2552 = vmatpush.msra.mxu0 %v7163_v22  ;;  %2572 = vmatpush.msra.mxu1 %v9891_v21  ;;  %v9930_v22 = vld [vmem:[#allocation73_spill] sm:$0xff]  ;;  %v9959_v18 = vld [vmem:[#allocation84_spill] sm:$0xff]  ;;  %v9960_v21 = vld [vmem:[#allocation75_spill] sm:$0xff] }
 0x679   :  { %2592 = vmatpush.msra.mxu2 %v7198_v33  ;;  %2612 = vmatpush.msra.mxu3 %v9892_v46  ;;  %v9934_v33 = vld [vmem:[#allocation47_spill] sm:$0xff]  ;;  %v1950_v46 = vadd.f32 %v9960_v21, %v9959_v18  ;;  %v7717_v21 = vld [vmem:[#allocation17 + $0x1d8] sm:$0xff] }
 0x67a   :  { %2553 = vmatpush.msra.mxu0 %v7172_v11  ;;  %2573 = vmatpush.msra.mxu1 %v9893_v7  ;;  %v9932_v11 = vld [vmem:[#allocation43_spill] sm:$0xff] }
 0x67b   :  { %2593 = vmatpush.msra.mxu2 %v7203_v40  ;;  %2613 = vmatpush.msra.mxu3 %v9894_v52  ;;  %v9935_v40 = vld [vmem:[#allocation37_spill] sm:$0xff] }
 0x67c   :  { %2554 = vmatpush.msra.mxu0 %v9895_v9  ;;  %2574 = vmatpush.msra.mxu1 %v7207_v20  ;;  %v9936_v20 = vld [vmem:[#allocation30_spill] sm:$0xff] }
 0x67d   :  { %2594 = vmatpush.msra.mxu2 %v7219_v32  ;;  %2614 = vmatpush.msra.mxu3 %v7217_v15  ;;  %v9939_v15 = vld [vmem:[#allocation36_spill] sm:$0xff]  ;;  %v9940_v32 = vld [vmem:[#allocation50_spill] sm:$0xff] }
 0x67e   :  { %2555 = vmatpush.msra.mxu0 %v7210_v41  ;;  %2575 = vmatpush.msra.mxu1 %v7215_v30  ;;  %v9937_v41 = vld [vmem:[#allocation51_spill] sm:$0xff]  ;;  %v9938_v30 = vld [vmem:[#allocation32_spill] sm:$0xff] }
 0x67f   :  { %2595 = vmatpush.msra.mxu2 %v7227_v8  ;;  %2615 = vmatpush.msra.mxu3 %v7225_v39  ;;  %v9941_v39 = vld [vmem:[#allocation42_spill] sm:$0xff] }
 0x680   :  { %2556 = vmatpush.msra.mxu0 %v7235_v13  ;;  %2576 = vmatpush.msra.mxu1 %v7237_v50  ;;  %v9942_v8 = vld [vmem:[#allocation34_spill] sm:$0xff]  ;;  %v9943_v13 = vld [vmem:[#allocation48_spill] sm:$0xff]  ;;  %v9944_v50 = vld [vmem:[#allocation41_spill] sm:$0xff] }
 0x681   :  { %2596 = vmatpush.msra.mxu2 %v7243_v38  ;;  %2616 = vmatpush.msra.mxu3 %v7239_v62  ;;  %v9945_v62 = vld [vmem:[#allocation46_spill] sm:$0xff]  ;;  %v9946_v38 = vld [vmem:[#allocation35_spill] sm:$0xff] }
 0x682   :  { %2557 = vmatpush.msra.mxu0 %v7245_v17  ;;  %2577 = vmatpush.msra.mxu1 %v7247_v51  ;;  %v9947_v17 = vld [vmem:[#allocation45_spill] sm:$0xff]  ;;  %v9948_v51 = vld [vmem:[#allocation39_spill] sm:$0xff] }
 0x683   :  { %2597 = vmatpush.msra.mxu2 %v7255_v55  ;;  %2617 = vmatpush.msra.mxu3 %v7250_v5  ;;  %v9949_v5 = vld [vmem:[#allocation38_spill] sm:$0xff]  ;;  %v9950_v55 = vld [vmem:[#allocation57_spill] sm:$0xff] }
 0x684   :  { %2558 = vmatpush.msra.mxu0 %v7257_v27  ;;  %2578 = vmatpush.msra.mxu1 %v7259_v59  ;;  %v9951_v27 = vld [vmem:[#allocation52_spill] sm:$0xff]  ;;  %v9952_v59 = vld [vmem:[#allocation31_spill] sm:$0xff]  ;;  %9983 = vst [vmem:[#allocation38_spill] sm:$0xff] %v7867_v28 }
 0x685   :  { %2598 = vmatpush.msra.mxu2 %v7289_v16  ;;  %2618 = vmatpush.msra.mxu3 %v7269_v58  ;;  %v9955_v58 = vld [vmem:[#allocation70_spill] sm:$0xff] }
 0x686   :  { %2559 = vmatpush.msra.mxu0 %v7265_v60  ;;  %2579 = vmatpush.msra.mxu1 %v7267_v63  ;;  %v9953_v60 = vld [vmem:[#allocation56_spill] sm:$0xff] }
 0x687   :  { %2599 = vmatpush.msra.mxu2 %v7295_v45  ;;  %2619 = vmatpush.msra.mxu3 %v7276_v25  ;;  %v9954_v63 = vld [vmem:[#allocation64_spill] sm:$0xff]  ;;  %v9957_v25 = vld [vmem:[#allocation53_spill] sm:$0xff] }
 0x688   :  { %2560 = vmatpush.msra.mxu0 %v7272_v2  ;;  %2580 = vmatpush.msra.mxu1 %v7274_v0  ;;  %v9956_v2 = vld [vmem:[#allocation60_spill] sm:$0xff]  ;;  %v1868_v48 = vadd.f32 %v9958_v37, %v9957_v25 }
 0x689   :  { %2600 = vmatpush.msra.mxu2 %v9929_v34  ;;  %2620 = vmatpush.msra.mxu3 %v9930_v22  ;;  %v1827_v0 = vadd.f32 %v9956_v2, %v9955_v58 }
 0x68a   :  { %2561 = vmatpush.msra.mxu0 %v9931_v14  ;;  %2581 = vmatpush.msra.mxu1 %v9932_v11 }
 0x68b   :  { %2601 = vmatpush.msra.mxu2 %v9933_v12  ;;  %2621 = vmatpush.msra.mxu3 %v9934_v33 }
 0x68c   :  { %2562 = vmatpush.msra.mxu0 %v9935_v40  ;;  %2582 = vmatpush.msra.mxu1 %v9936_v20 }
 0x68d   :  { %2602 = vmatpush.msra.mxu2 %v9937_v41  ;;  %2622 = vmatpush.msra.mxu3 %v9938_v30 }
 0x68e   :  { %2563 = vmatpush.msra.mxu0 %v9939_v15  ;;  %2583 = vmatpush.msra.mxu1 %v9940_v32 }
 0x68f   :  { %2603 = vmatpush.msra.mxu2 %v9941_v39  ;;  %2623 = vmatpush.msra.mxu3 %v9942_v8 }
 0x690   :  { %2564 = vmatpush.msra.mxu0 %v9943_v13  ;;  %2584 = vmatpush.msra.mxu1 %v9944_v50 }
 0x691   :  { %2604 = vmatpush.msra.mxu2 %v9945_v62  ;;  %2624 = vmatpush.msra.mxu3 %v9946_v38 }
 0x692   :  { %2565 = vmatpush.msra.mxu0 %v9947_v17  ;;  %2585 = vmatpush.msra.mxu1 %v9948_v51 }
 0x693   :  { %2605 = vmatpush.msra.mxu2 %v9949_v5  ;;  %2625 = vmatpush.msra.mxu3 %v9950_v55 }
 0x694   :  { %2566 = vmatpush.msra.mxu0 %v9951_v27  ;;  %2586 = vmatpush.msra.mxu1 %v9952_v59 }
 0x695   :  { %2606 = vmatpush.msra.mxu2 %v9953_v60  ;;  %2626 = vmatpush.msra.mxu3 %v9954_v63 }
 0x6f1   :  { %v2250_v19 = vpop.f32.mrf.mxu0  ;;  %v2270_v16 = vpop.f32.mrf.mxu1 }
 0x6f2   :  { %v2313_v45 = vadd.f32 %v2250_v19, %v1827_v0  ;;  %v2314_v23 = vadd.f32 %v2270_v16, %v1868_v48  ;;  %v7699_v19 = vld [vmem:[#allocation17 + $0x1e8] sm:$0xff]  ;;  %v7702_v16 = vld [vmem:[#allocation17 + $0x1f0] sm:$0xff] }
 0x6f4   :  { %v5133_v3 = vmul.f32 -1.442695, %v2313_v45  ;;  %v5134_v9 = vmul.f32 -1.442695, %v2314_v23  ;;  %v7705_v45 = vld [vmem:[#allocation17 + $0x1f8] sm:$0xff]  ;;  %v7708_v23 = vld [vmem:[#allocation17 + $0x1c0] sm:$0xff] }
 0x6f6   :  { %5337 = vpow2.f32 %v5133_v3  ;;  %v7711_v3 = vld [vmem:[#allocation17 + $0x1c8] sm:$0xff] }
 0x6f7   :  { %5339 = vpow2.f32 %v5134_v9  ;;  %v7714_v9 = vld [vmem:[#allocation17 + $0x1d0] sm:$0xff] }
 0x6f8   :  { %v2310_v7 = vpop.f32.mrf.mxu3  ;;  %v2290_v4 = vpop.f32.mrf.mxu2 }
 0x6f9   :  { %v2316_v52 = vadd.f32 %v2310_v7, %v1950_v46  ;;  %v2315_v47 = vadd.f32 %v2290_v4, %v1909_v53  ;;  %v7720_v46 = vld [vmem:[#allocation17 + $0x1a0] sm:$0xff]  ;;  %v7723_v7 = vld [vmem:[#allocation17 + $0x1a8] sm:$0xff]  ;;  %v7753_v53 = vld [vmem:[#allocation17 + $0x178] sm:$0xff] }
 0x6fa   :  { %v7744_v4 = vld [vmem:[#allocation17 + $0x160] sm:$0xff] }
 0x6fb   :  { %v5135_v1 = vmul.f32 -1.442695, %v2316_v52  ;;  %v7726_v52 = vld [vmem:[#allocation17 + $0x1b0] sm:$0xff] }
 0x6fc   :  { %v5338_v6 = vpop.eup %5337 }
 0x6fd   :  { %v5340_v44 = vpop.eup %5339  ;;  %v2320_v42 = vadd.f32 1.0, %v5338_v6  ;;  %5341 = vpow2.f32 %v5135_v1  ;;  %v7729_v1 = vld [vmem:[#allocation17 + $0x1b8] sm:$0xff]  ;;  %v7732_v6 = vld [vmem:[#allocation17 + $0x180] sm:$0xff] }
 0x6fe   :  { %v2339_v36 = vadd.f32 1.0, %v5340_v44  ;;  %v7735_v44 = vld [vmem:[#allocation17 + $0x188] sm:$0xff] }
 0x6ff   :  { %5343 = vrcp.f32 %v2320_v42  ;;  %v2332_v26 = vand.u32 2147483648, %v2320_v42  ;;  %v2330_v14 = vand.u32 2147483647, %v2320_v42  ;;  %vm2326_vm15 = vweird.f32 %v2320_v42 }
 0x700   :  { %5345 = vrcp.f32 %v2339_v36  ;;  %v2351_v34 = vand.u32 2147483648, %v2339_v36  ;;  %v2349_v12 = vand.u32 2147483647, %v2339_v36  ;;  %vm2345_vm0 = vweird.f32 %v2339_v36 }
 0x701   :  { %v2333_v20 = vor.u32 1.1754944e-38, %v2332_v26  ;;  %vm2331_vm3 = vcmp.eq.f32.partialorder %v2330_v14, 8.507059e+37  ;;  %v7780_v26 = vld [vmem:[#allocation17 + $0x100] sm:$0xff]  ;;  %v7789_v14 = vld [vmem:[#allocation17 + $0x118] sm:$0xff] }
 0x702   :  { %v2352_v15 = vor.u32 1.1754944e-38, %v2351_v34  ;;  %vm2350_vm4 = vcmp.eq.f32.partialorder %v2349_v12, 8.507059e+37  ;;  %v7783_v34 = vld [vmem:[#allocation17 + $0x108] sm:$0xff] }
 0x703   :  { %v5342_v61 = vpop.eup %5341  ;;  %v7795_v12 = vld [vmem:[#allocation17 + $0xe8] sm:$0xff] }
 0x704   :  { %v2359_v54 = vadd.f32 1.0, %v5342_v61  ;;  %v7747_v61 = vld [vmem:[#allocation17 + $0x168] sm:$0xff] }
 0x705   :  { %v5344_v57 = vpop.eup %5343 }
 0x706   :  { %v5346_v31 = vpop.eup %5345  ;;  %v2322_v10 = vmul.f32 %v5344_v57, %v2320_v42  ;;  %5347 = vrcp.f32 %v2359_v54  ;;  %vm2327_vm13 = vweird.f32 %v5344_v57  ;;  %v2371_v27 = vand.u32 2147483648, %v2359_v54  ;;  %v7738_v42 = vld [vmem:[#allocation17 + $0x190] sm:$0xff] }
 0x707   :  { %v2341_v29 = vmul.f32 %v5346_v31, %v2339_v36  ;;  %5349 = vtanh.f32 %v2315_v47  ;;  %vm2346_vm14 = vweird.f32 %v5346_v31  ;;  %vm2328_vm1 = vmor %vm2326_vm15, %vm2327_vm13  ;;  %vm2365_vm6 = vweird.f32 %v2359_v54  ;;  %v7741_v36 = vld [vmem:[#allocation17 + $0x198] sm:$0xff]  ;;  %v7762_v47 = vld [vmem:[#allocation17 + $0x150] sm:$0xff] }
 0x708   :  { %v2323_v56 = vsub.f32 1.0, %v2322_v10  ;;  %vm2347_vm2 = vmor %vm2345_vm0, %vm2346_vm14  ;;  %v2369_v59 = vand.u32 2147483647, %v2359_v54  ;;  %v2372_v2 = vor.u32 1.1754944e-38, %v2371_v27  ;;  %v7768_v10 = vld [vmem:[#allocation17 + $0x120] sm:$0xff]  ;;  %v7846_v27 = vld [vmem:[#allocation17 + $0x70] sm:$0xff] }
 0x709   :  { %v2342_v43 = vsub.f32 1.0, %v2341_v29  ;;  %v7771_v29 = vld [vmem:[#allocation17 + $0x128] sm:$0xff]  ;;  %9976 = vst [vmem:[#allocation34_spill] sm:$0xff] %v7846_v27 }
 0x70a   :  { %v2324_v22 = vmul.f32 %v5344_v57, %v2323_v56  ;;  %vm2370_vm8 = vcmp.eq.f32.partialorder %v2369_v59, 8.507059e+37  ;;  %v7774_v56 = vld [vmem:[#allocation17 + $0x130] sm:$0xff]  ;;  %v7849_v59 = vld [vmem:[#allocation17 + $0x78] sm:$0xff] }
 0x70b   :  { %v2343_v11 = vmul.f32 %v5346_v31, %v2342_v43  ;;  %v7777_v43 = vld [vmem:[#allocation17 + $0x138] sm:$0xff]  ;;  %9977 = vst [vmem:[#allocation48_spill] sm:$0xff] %v7849_v59 }
 0x70c   :  { %v5348_v33 = vpop.eup %5347  ;;  %v2325_v40 = vadd.f32 %v5344_v57, %v2324_v22  ;;  %v7786_v22 = vld [vmem:[#allocation17 + $0x110] sm:$0xff] }
 0x70d   :  { %v2344_v41 = vadd.f32 %v5346_v31, %v2343_v11  ;;  %v2361_v30 = vmul.f32 %v5348_v33, %v2359_v54  ;;  %v5350_v39 = vpop.eup %5349  ;;  %vm2366_vm5 = vweird.f32 %v5348_v33  ;;  %v7756_v54 = vld [vmem:[#allocation17 + $0x140] sm:$0xff] }
 0x70e   :  { %v2329_v32 = vsel %vm2328_vm1, %v5344_v57, %v2325_v40  ;;  %vm2367_vm7 = vmor %vm2365_vm6, %vm2366_vm5  ;;  %v7759_v57 = vld [vmem:[#allocation17 + $0x148] sm:$0xff]  ;;  %v7792_v11 = vld [vmem:[#allocation17 + $0xe0] sm:$0xff] }
 0x70f   :  { %v2334_v8 = vsel %vm2331_vm3, %v2333_v20, %v2329_v32  ;;  %v2348_v13 = vsel %vm2347_vm2, %v5346_v31, %v2344_v41  ;;  %v2362_v50 = vsub.f32 1.0, %v2361_v30  ;;  %v7765_v31 = vld [vmem:[#allocation17 + $0x158] sm:$0xff]  ;;  %v7804_v20 = vld [vmem:[#allocation17 + $0xc0] sm:$0xff]  ;;  %v7807_v41 = vld [vmem:[#allocation17 + $0xc8] sm:$0xff] }
 0x710   :  { %v2353_v62 = vsel %vm2350_vm4, %v2352_v15, %v2348_v13  ;;  %v2377_v38 = vmul.f32 %v5350_v39, %v2334_v8  ;;  %v7801_v40 = vld [vmem:[#allocation17 + $0xf8] sm:$0xff]  ;;  %v7810_v30 = vld [vmem:[#allocation17 + $0xd0] sm:$0xff]  ;;  %v7816_v32 = vld [vmem:[#allocation17 + $0xa0] sm:$0xff] }
 0x711   :  { %v2376_v17 = vmul.f32 %v2353_v62, %v7605_v24  ;;  %v2363_v51 = vmul.f32 %v5348_v33, %v2362_v50  ;;  %v7696_v24 = vld [vmem:[#allocation17 + $0x1e0] sm:$0xff]  ;;  %9964 = vst [vmem:[#allocation73_spill] sm:$0xff] %v7810_v30  ;;  %v7813_v15 = vld [vmem:[#allocation17 + $0xd8] sm:$0xff]  ;;  %v7819_v39 = vld [vmem:[#allocation17 + $0xa8] sm:$0xff] }
 0x712   :  { %9965 = vst [vmem:[#allocation63_spill] sm:$0xff] %v7813_v15  ;;  %v7822_v8 = vld [vmem:[#allocation17 + $0xb0] sm:$0xff]  ;;  %v7825_v13 = vld [vmem:[#allocation17 + $0xb8] sm:$0xff]  ;;  %v7828_v50 = vld [vmem:[#allocation17 + $0x80] sm:$0xff] }
 0x713   :  { %v7687_v5 = vadd.f32 %v2377_v38, %v2376_v17  ;;  %v2364_v55 = vadd.f32 %v5348_v33, %v2363_v51  ;;  %9966 = vst [vmem:[#allocation43_spill] sm:$0xff] %v7816_v32  ;;  %v7831_v62 = vld [vmem:[#allocation17 + $0x88] sm:$0xff]  ;;  %v7834_v38 = vld [vmem:[#allocation17 + $0x90] sm:$0xff]  ;;  %v7837_v17 = vld [vmem:[#allocation17 + $0x98] sm:$0xff] }
 0x714   :  { %9967 = vst [vmem:[#allocation44_spill] sm:$0xff] %v7819_v39  ;;  %v7840_v51 = vld [vmem:[#allocation17 + $0x60] sm:$0xff] }
 0x715   :  { %5351 = vtanh.f32 %v7687_v5  ;;  %v2368_v63 = vsel %vm2367_vm7, %v5348_v33, %v2364_v55  ;;  %v7798_v33 = vld [vmem:[#allocation17 + $0xf0] sm:$0xff]  ;;  %9968 = vst [vmem:[#allocation47_spill] sm:$0xff] %v7822_v8  ;;  %v7843_v55 = vld [vmem:[#allocation17 + $0x68] sm:$0xff] }
 0x716   :  { %v2373_v37 = vsel %vm2370_vm8, %v2372_v2, %v2368_v63  ;;  %9969 = vst [vmem:[#allocation37_spill] sm:$0xff] %v7825_v13  ;;  %v7852_v63 = vld [vmem:[#allocation17 + $0x40] sm:$0xff]  ;;  %v7855_v2 = vld [vmem:[#allocation17 + $0x48] sm:$0xff] }
 0x717   :  { %9970 = vst [vmem:[#allocation30_spill] sm:$0xff] %v7828_v50 }
 0x718   :  { %9971 = vst [vmem:[#allocation51_spill] sm:$0xff] %v7831_v62 }
 0x719   :  { %9972 = vst [vmem:[#allocation32_spill] sm:$0xff] %v7834_v38 }
 0x71a   :  { %9973 = vst [vmem:[#allocation36_spill] sm:$0xff] %v7837_v17 }
 0x71b   :  { %v5352_v0 = vpop.eup %5351  ;;  %9974 = vst [vmem:[#allocation50_spill] sm:$0xff] %v7840_v51 }
 0x71c   :  { %v7690_v48 = vmul.f32 %v5352_v0, %v2373_v37  ;;  %9975 = vst [vmem:[#allocation42_spill] sm:$0xff] %v7843_v55  ;;  %v7858_v0 = vld [vmem:[#allocation17 + $0x50] sm:$0xff]  ;;  %v7861_v37 = vld [vmem:[#allocation17 + $0x58] sm:$0xff] }
 0x71d   :  { %9978 = vst [vmem:[#allocation41_spill] sm:$0xff] %v7852_v63 }
 0x71e   :  { %9963 = vst [vmem:[#allocation40_spill] sm:$0xff] %v7690_v48  ;;  %2408 = vmatmul.f32.vlgmr.msrb.gmra.mxu0 %v7690_v48  ;;  %2428 = vmatmul.f32.vlgmr.msrb.gmra.mxu1 %v7690_v48 }
 0x71f   :  { %2448 = vmatmul.f32.vlgmr.msrb.gmra.mxu2 %v7690_v48  ;;  %2468 = vmatmul.f32.vlgmr.msrb.gmra.mxu3 %v7690_v48  ;;  %9979 = vst [vmem:[#allocation46_spill] sm:$0xff] %v7855_v2  ;;  %v7864_v48 = vld [vmem:[#allocation17 + $0x20] sm:$0xff] }
 0x720   :  { %2710 = vmatpush.msrb.mxu0 %v7696_v24  ;;  %2730 = vmatpush.msrb.mxu1 %v7699_v19  ;;  %9980 = vst [vmem:[#allocation35_spill] sm:$0xff] %v7858_v0 }
 0x721   :  { %2750 = vmatpush.msrb.mxu2 %v7702_v16  ;;  %2770 = vmatpush.msrb.mxu3 %v7705_v45  ;;  %9981 = vst [vmem:[#allocation45_spill] sm:$0xff] %v7861_v37 }
 0x722   :  { %2711 = vmatpush.msrb.mxu0 %v7708_v23  ;;  %2731 = vmatpush.msrb.mxu1 %v7711_v3  ;;  %9982 = vst [vmem:[#allocation39_spill] sm:$0xff] %v7864_v48 }
 0x723   :  { %2751 = vmatpush.msrb.mxu2 %v7714_v9  ;;  %2771 = vmatpush.msrb.mxu3 %v7717_v21 }
 0x724   :  { %2712 = vmatpush.msrb.mxu0 %v7720_v46  ;;  %2732 = vmatpush.msrb.mxu1 %v7723_v7 }
 0x725   :  { %2752 = vmatpush.msrb.mxu2 %v7726_v52  ;;  %2772 = vmatpush.msrb.mxu3 %v7729_v1 }
 0x726   :  { %2713 = vmatpush.msrb.mxu0 %v7732_v6  ;;  %2733 = vmatpush.msrb.mxu1 %v7735_v44 }
 0x727   :  { %2753 = vmatpush.msrb.mxu2 %v7738_v42  ;;  %2773 = vmatpush.msrb.mxu3 %v7741_v36 }
 0x728   :  { %2714 = vmatpush.msrb.mxu0 %v7744_v4  ;;  %2734 = vmatpush.msrb.mxu1 %v7747_v61 }
 0x729   :  { %2754 = vmatpush.msrb.mxu2 %v7750_v49  ;;  %2774 = vmatpush.msrb.mxu3 %v7753_v53 }
 0x72a   :  { %2715 = vmatpush.msrb.mxu0 %v7756_v54  ;;  %2735 = vmatpush.msrb.mxu1 %v7759_v57 }
 0x72b   :  { %2755 = vmatpush.msrb.mxu2 %v7762_v47  ;;  %2775 = vmatpush.msrb.mxu3 %v7765_v31 }
 0x72c   :  { %2716 = vmatpush.msrb.mxu0 %v7768_v10  ;;  %2736 = vmatpush.msrb.mxu1 %v7771_v29 }
 0x72d   :  { %2756 = vmatpush.msrb.mxu2 %v7774_v56  ;;  %2776 = vmatpush.msrb.mxu3 %v7777_v43 }
 0x72e   :  { %2717 = vmatpush.msrb.mxu0 %v7780_v26  ;;  %2737 = vmatpush.msrb.mxu1 %v7783_v34 }
 0x72f   :  { %2757 = vmatpush.msrb.mxu2 %v7786_v22  ;;  %2777 = vmatpush.msrb.mxu3 %v7789_v14 }
 0x730   :  { %2718 = vmatpush.msrb.mxu0 %v7792_v11  ;;  %2738 = vmatpush.msrb.mxu1 %v7795_v12 }
 0x731   :  { %2758 = vmatpush.msrb.mxu2 %v7798_v33  ;;  %2778 = vmatpush.msrb.mxu3 %v7801_v40 }
 0x732   :  { %2719 = vmatpush.msrb.mxu0 %v7804_v20  ;;  %2739 = vmatpush.msrb.mxu1 %v7807_v41 }
 0x733   :  { %2759 = vmatpush.msrb.mxu2 %v7810_v30  ;;  %2779 = vmatpush.msrb.mxu3 %v7813_v15 }
 0x734   :  { %2720 = vmatpush.msrb.mxu0 %v7816_v32  ;;  %2740 = vmatpush.msrb.mxu1 %v7819_v39 }
 0x735   :  { %2760 = vmatpush.msrb.mxu2 %v7822_v8  ;;  %2780 = vmatpush.msrb.mxu3 %v7825_v13 }
 0x736   :  { %2721 = vmatpush.msrb.mxu0 %v7828_v50  ;;  %2741 = vmatpush.msrb.mxu1 %v7831_v62 }
 0x737   :  { %2761 = vmatpush.msrb.mxu2 %v7834_v38  ;;  %2781 = vmatpush.msrb.mxu3 %v7837_v17 }
 0x738   :  { %2722 = vmatpush.msrb.mxu0 %v7840_v51  ;;  %2742 = vmatpush.msrb.mxu1 %v7843_v55 }
 0x739   :  { %2762 = vmatpush.msrb.mxu2 %v7846_v27  ;;  %2782 = vmatpush.msrb.mxu3 %v7849_v59  ;;  %v9990_v59 = vld [vmem:[#allocation76_spill] sm:$0xff] }
 0x73a   :  { %2723 = vmatpush.msrb.mxu0 %v7852_v63  ;;  %2743 = vmatpush.msrb.mxu1 %v7855_v2  ;;  %v7870_v63 = vld [vmem:[#allocation17 + $0x30] sm:$0xff]  ;;  %v7873_v2 = vld [vmem:[#allocation17 + $0x38] sm:$0xff] }
 0x73b   :  { %2763 = vmatpush.msrb.mxu2 %v7858_v0  ;;  %2783 = vmatpush.msrb.mxu3 %v7861_v37  ;;  %9984 = vst [vmem:[#allocation57_spill] sm:$0xff] %v7870_v63  ;;  %v7876_v0 = vld [vmem:[#allocation17] sm:$0xff]  ;;  %v7879_v37 = vld [vmem:[#allocation17 + $0x8] sm:$0xff] }
 0x73c   :  { %2724 = vmatpush.msrb.mxu0 %v7864_v48  ;;  %2744 = vmatpush.msrb.mxu1 %v7867_v28  ;;  %9985 = vst [vmem:[#allocation52_spill] sm:$0xff] %v7873_v2  ;;  %v7883_v48 = vld [vmem:[#allocation17 + $0x18] sm:$0xff] }
 0x73d   :  { %2764 = vmatpush.msrb.mxu2 %v7870_v63  ;;  %2784 = vmatpush.msrb.mxu3 %v7873_v2  ;;  %9986 = vst [vmem:[#allocation31_spill] sm:$0xff] %v7876_v0  ;;  %v9989_v63 = vld [vmem:[#allocation54_spill] sm:$0xff]  ;;  %v1871_v2 = vadd.f32 %v9990_v59, %v9957_v25 }
 0x73e   :  { %2725 = vmatpush.msrb.mxu0 %v7876_v0  ;;  %9987 = vst [vmem:[#allocation56_spill] sm:$0xff] %v7879_v37  ;;  %2745 = vmatpush.msrb.mxu1 %v7879_v37  ;;  %v1830_v28 = vadd.f32 %v9989_v63, %v9955_v58  ;;  %v9991_v37 = vld [vmem:[#allocation80_spill] sm:$0xff] }
 0x73f   :  { %2765 = vmatpush.msrb.mxu2 %v9953_v60  ;;  %9988 = vst [vmem:[#allocation64_spill] sm:$0xff] %v7883_v48  ;;  %2785 = vmatpush.msrb.mxu3 %v7883_v48  ;;  %v1953_v60 = vadd.f32 %v9991_v37, %v9959_v18 }
 0x79b   :  { %v2409_v27 = vpop.f32.mrf.mxu0  ;;  %v2429_v55 = vpop.f32.mrf.mxu1 }
 0x79c   :  { %v2472_v51 = vadd.f32 %v2409_v27, %v1830_v28  ;;  %v2473_v0 = vadd.f32 %v2429_v55, %v1871_v2 }
 0x79e   :  { %v5136_v17 = vmul.f32 -1.442695, %v2472_v51  ;;  %v5137_v38 = vmul.f32 -1.442695, %v2473_v0  ;;  %v9992_v51 = vld [vmem:[#allocation66_spill] sm:$0xff] }
 0x79f   :  { %v1912_v55 = vadd.f32 %v9992_v51, %v9961_v35 }
 0x7a0   :  { %5353 = vpow2.f32 %v5136_v17 }
 0x7a1   :  { %5355 = vpow2.f32 %v5137_v38 }
 0x7a2   :  { %v2469_v62 = vpop.f32.mrf.mxu3  ;;  %v2449_v59 = vpop.f32.mrf.mxu2 }
 0x7a3   :  { %v2475_v50 = vadd.f32 %v2469_v62, %v1953_v60  ;;  %v2474_v2 = vadd.f32 %v2449_v59, %v1912_v55 }
 0x7a5   :  { %v5138_v48 = vmul.f32 -1.442695, %v2475_v50 }
 0x7a6   :  { %v5354_v13 = vpop.eup %5353 }
 0x7a7   :  { %v5356_v8 = vpop.eup %5355  ;;  %v2479_v63 = vadd.f32 1.0, %v5354_v13  ;;  %5357 = vpow2.f32 %v5138_v48 }
 0x7a8   :  { %v2498_v58 = vadd.f32 1.0, %v5356_v8 }
 0x7a9   :  { %5359 = vrcp.f32 %v2479_v63  ;;  %v2491_v60 = vand.u32 2147483648, %v2479_v63  ;;  %v2489_v13 = vand.u32 2147483647, %v2479_v63  ;;  %vm2485_vm11 = vweird.f32 %v2479_v63 }
 0x7aa   :  { %5361 = vrcp.f32 %v2498_v58  ;;  %v2510_v48 = vand.u32 2147483648, %v2498_v58  ;;  %v2508_v25 = vand.u32 2147483647, %v2498_v58  ;;  %vm2504_vm12 = vweird.f32 %v2498_v58 }
 0x7ab   :  { %v2492_v59 = vor.u32 1.1754944e-38, %v2491_v60  ;;  %vm2490_vm15 = vcmp.eq.f32.partialorder %v2489_v13, 8.507059e+37 }
 0x7ac   :  { %vm2509_vm0 = vcmp.eq.f32.partialorder %v2508_v25, 8.507059e+37 }
 0x7ad   :  { %v5358_v28 = vpop.eup %5357 }
 0x7ae   :  { %v2518_v17 = vadd.f32 1.0, %v5358_v28 }
 0x7af   :  { %v5360_v27 = vpop.eup %5359 }
 0x7b0   :  { %v5362_v0 = vpop.eup %5361  ;;  %v2481_v38 = vmul.f32 %v5360_v27, %v2479_v63  ;;  %5363 = vrcp.f32 %v2518_v17  ;;  %vm2486_vm9 = vweird.f32 %v5360_v27  ;;  %vm2524_vm2 = vweird.f32 %v2518_v17 }
 0x7b1   :  { %v2500_v62 = vmul.f32 %v5362_v0, %v2498_v58  ;;  %5365 = vtanh.f32 %v2474_v2  ;;  %vm2505_vm10 = vweird.f32 %v5362_v0  ;;  %vm2487_vm13 = vmor %vm2485_vm11, %vm2486_vm9 }
 0x7b2   :  { %v2482_v50 = vsub.f32 1.0, %v2481_v38  ;;  %vm2506_vm14 = vmor %vm2504_vm12, %vm2505_vm10  ;;  %v2511_v38 = vor.u32 1.1754944e-38, %v2510_v48 }
 0x7b3   :  { %v2501_v37 = vsub.f32 1.0, %v2500_v62 }
 0x7b4   :  { %v2483_v8 = vmul.f32 %v5360_v27, %v2482_v50 }
 0x7b5   :  { %v2502_v18 = vmul.f32 %v5362_v0, %v2501_v37 }
 0x7b6   :  { %v5364_v39 = vpop.eup %5363  ;;  %v2484_v51 = vadd.f32 %v5360_v27, %v2483_v8 }
 0x7b7   :  { %v2503_v28 = vadd.f32 %v5362_v0, %v2502_v18  ;;  %v2520_v55 = vmul.f32 %v5364_v39, %v2518_v17  ;;  %v5366_v2 = vpop.eup %5365  ;;  %vm2525_vm1 = vweird.f32 %v5364_v39  ;;  %v2530_v18 = vand.u32 2147483648, %v2518_v17 }
 0x7b8   :  { %v2488_v62 = vsel %vm2487_vm13, %v5360_v27, %v2484_v51  ;;  %v2528_v27 = vand.u32 2147483647, %v2518_v17  ;;  %vm2526_vm3 = vmor %vm2524_vm2, %vm2525_vm1  ;;  %v10000_v17 = vld [vmem:[#allocation30_spill] sm:$0xff]  ;;  %v10001_v51 = vld [vmem:[#allocation51_spill] sm:$0xff] }
 0x7b9   :  { %v2493_v35 = vsel %vm2490_vm15, %v2492_v59, %v2488_v62  ;;  %v2507_v50 = vsel %vm2506_vm14, %v5362_v0, %v2503_v28  ;;  %v2521_v32 = vsub.f32 1.0, %v2520_v55  ;;  %v2531_v48 = vor.u32 1.1754944e-38, %v2530_v18  ;;  %v10002_v59 = vld [vmem:[#allocation32_spill] sm:$0xff]  ;;  %v10004_v55 = vld [vmem:[#allocation50_spill] sm:$0xff]  ;;  %v10012_v18 = vld [vmem:[#allocation39_spill] sm:$0xff] }
 0x7ba   :  { %v2512_v37 = vsel %vm2509_vm0, %v2511_v38, %v2507_v50  ;;  %v2536_v15 = vmul.f32 %v5366_v2, %v2493_v35  ;;  %vm2529_vm4 = vcmp.eq.f32.partialorder %v2528_v27, 8.507059e+37  ;;  %v9994_v35 = vld [vmem:[#allocation73_spill] sm:$0xff]  ;;  %v10003_v28 = vld [vmem:[#allocation36_spill] sm:$0xff]  ;;  %v10005_v38 = vld [vmem:[#allocation42_spill] sm:$0xff] }
 0x7bb   :  { %v2535_v30 = vmul.f32 %v2512_v37, %v7687_v5  ;;  %v2522_v8 = vmul.f32 %v5364_v39, %v2521_v32  ;;  %v9995_v5 = vld [vmem:[#allocation63_spill] sm:$0xff]  ;;  %v10006_v62 = vld [vmem:[#allocation34_spill] sm:$0xff]  ;;  %v10007_v2 = vld [vmem:[#allocation48_spill] sm:$0xff] }
 0x7bc   :  { %v9998_v32 = vld [vmem:[#allocation47_spill] sm:$0xff]  ;;  %v10008_v50 = vld [vmem:[#allocation41_spill] sm:$0xff]  ;;  %v10009_v37 = vld [vmem:[#allocation46_spill] sm:$0xff] }
 0x7bd   :  { %v7895_v63 = vadd.f32 %v2536_v15, %v2535_v30  ;;  %v2523_v58 = vadd.f32 %v5364_v39, %v2522_v8  ;;  %v9996_v30 = vld [vmem:[#allocation43_spill] sm:$0xff]  ;;  %v9997_v15 = vld [vmem:[#allocation44_spill] sm:$0xff]  ;;  %v10013_v27 = vld [vmem:[#allocation38_spill] sm:$0xff] }
 0x7be   :  { %v10010_v8 = vld [vmem:[#allocation35_spill] sm:$0xff] }
 0x7bf   :  { %5367 = vtanh.f32 %v7895_v63  ;;  %v2527_v60 = vsel %vm2526_vm3, %v5364_v39, %v2523_v58  ;;  %v9999_v39 = vld [vmem:[#allocation37_spill] sm:$0xff] }
 0x7c0   :  { %v2532_v0 = vsel %vm2529_vm4, %v2531_v48, %v2527_v60  ;;  %v10011_v58 = vld [vmem:[#allocation45_spill] sm:$0xff]  ;;  %v10015_v48 = vld [vmem:[#allocation52_spill] sm:$0xff] }
 0x7c1   :  { %v10014_v60 = vld [vmem:[#allocation57_spill] sm:$0xff] }
 0x7c5   :  { %v5368_v25 = vpop.eup %5367 }
 0x7c6   :  { %v7898_v13 = vmul.f32 %v5368_v25, %v2532_v0  ;;  %v10016_v25 = vld [vmem:[#allocation31_spill] sm:$0xff]  ;;  %v10017_v0 = vld [vmem:[#allocation56_spill] sm:$0xff] }
 0x7c8   :  { %9993 = vst [vmem:[#allocation60_spill] sm:$0xff] %v7898_v13  ;;  %2567 = vmatmul.f32.vlgmr.msra.gmra.mxu0 %v7898_v13  ;;  %2587 = vmatmul.f32.vlgmr.msra.gmra.mxu1 %v7898_v13 }
 0x7c9   :  { %2607 = vmatmul.f32.vlgmr.msra.gmra.mxu2 %v7898_v13  ;;  %2627 = vmatmul.f32.vlgmr.msra.gmra.mxu3 %v7898_v13  ;;  %v7966_v13 = vld [vmem:[#allocation17 + $0x10] sm:$0xff] }
 0x7ca   :  { %2869 = vmatpush.msra.mxu0 %v7696_v24  ;;  %2889 = vmatpush.msra.mxu1 %v7699_v19  ;;  %10018 = vst [vmem:[#allocation67_spill] sm:$0xff] %v7966_v13 }
 0x7cb   :  { %2909 = vmatpush.msra.mxu2 %v7702_v16  ;;  %2929 = vmatpush.msra.mxu3 %v7705_v45 }
 0x7cc   :  { %2870 = vmatpush.msra.mxu0 %v7708_v23  ;;  %2890 = vmatpush.msra.mxu1 %v7711_v3 }
 0x7cd   :  { %2910 = vmatpush.msra.mxu2 %v7714_v9  ;;  %2930 = vmatpush.msra.mxu3 %v7717_v21 }
 0x7ce   :  { %2871 = vmatpush.msra.mxu0 %v7720_v46  ;;  %2891 = vmatpush.msra.mxu1 %v7723_v7 }
 0x7cf   :  { %2911 = vmatpush.msra.mxu2 %v7726_v52  ;;  %2931 = vmatpush.msra.mxu3 %v7729_v1 }
 0x7d0   :  { %2872 = vmatpush.msra.mxu0 %v7732_v6  ;;  %2892 = vmatpush.msra.mxu1 %v7735_v44 }
 0x7d1   :  { %2912 = vmatpush.msra.mxu2 %v7738_v42  ;;  %2932 = vmatpush.msra.mxu3 %v7741_v36 }
 0x7d2   :  { %2873 = vmatpush.msra.mxu0 %v7744_v4  ;;  %2893 = vmatpush.msra.mxu1 %v7747_v61 }
 0x7d3   :  { %2913 = vmatpush.msra.mxu2 %v7750_v49  ;;  %2933 = vmatpush.msra.mxu3 %v7753_v53 }
 0x7d4   :  { %2874 = vmatpush.msra.mxu0 %v7756_v54  ;;  %2894 = vmatpush.msra.mxu1 %v7759_v57 }
 0x7d5   :  { %2914 = vmatpush.msra.mxu2 %v7762_v47  ;;  %2934 = vmatpush.msra.mxu3 %v7765_v31 }
 0x7d6   :  { %2875 = vmatpush.msra.mxu0 %v7768_v10  ;;  %2895 = vmatpush.msra.mxu1 %v7771_v29 }
 0x7d7   :  { %2915 = vmatpush.msra.mxu2 %v7774_v56  ;;  %2935 = vmatpush.msra.mxu3 %v7777_v43 }
 0x7d8   :  { %2876 = vmatpush.msra.mxu0 %v7780_v26  ;;  %2896 = vmatpush.msra.mxu1 %v7783_v34 }
 0x7d9   :  { %2916 = vmatpush.msra.mxu2 %v7786_v22  ;;  %2936 = vmatpush.msra.mxu3 %v7789_v14 }
 0x7da   :  { %2877 = vmatpush.msra.mxu0 %v7792_v11  ;;  %2897 = vmatpush.msra.mxu1 %v7795_v12 }
 0x7db   :  { %2917 = vmatpush.msra.mxu2 %v7798_v33  ;;  %2937 = vmatpush.msra.mxu3 %v7801_v40 }
 0x7dc   :  { %2878 = vmatpush.msra.mxu0 %v7804_v20  ;;  %2898 = vmatpush.msra.mxu1 %v7807_v41 }
 0x7dd   :  { %2918 = vmatpush.msra.mxu2 %v9994_v35  ;;  %2938 = vmatpush.msra.mxu3 %v9995_v5 }
 0x7de   :  { %2879 = vmatpush.msra.mxu0 %v9996_v30  ;;  %2899 = vmatpush.msra.mxu1 %v9997_v15 }
 0x7df   :  { %2919 = vmatpush.msra.mxu2 %v9998_v32  ;;  %2939 = vmatpush.msra.mxu3 %v9999_v39 }
 0x7e0   :  { %2880 = vmatpush.msra.mxu0 %v10000_v17  ;;  %2900 = vmatpush.msra.mxu1 %v10001_v51 }
 0x7e1   :  { %2920 = vmatpush.msra.mxu2 %v10002_v59  ;;  %2940 = vmatpush.msra.mxu3 %v10003_v28  ;;  %v10025_v28 = vld [vmem:[#allocation55_spill] sm:$0xff] }
 0x7e2   :  { %2881 = vmatpush.msra.mxu0 %v10004_v55  ;;  %2901 = vmatpush.msra.mxu1 %v10005_v38 }
 0x7e3   :  { %2921 = vmatpush.msra.mxu2 %v10006_v62  ;;  %2941 = vmatpush.msra.mxu3 %v10007_v2  ;;  %v10023_v2 = vld [vmem:[#allocation81_spill] sm:$0xff] }
 0x7e4   :  { %2882 = vmatpush.msra.mxu0 %v10008_v50  ;;  %2902 = vmatpush.msra.mxu1 %v10009_v37  ;;  %v10019_v37 = vld [vmem:[#allocation64_spill] sm:$0xff] }
 0x7e5   :  { %2922 = vmatpush.msra.mxu2 %v10010_v8  ;;  %2942 = vmatpush.msra.mxu3 %v10011_v58  ;;  %v10020_v8 = vld [vmem:[#allocation70_spill] sm:$0xff]  ;;  %v10021_v58 = vld [vmem:[#allocation77_spill] sm:$0xff] }
 0x7e6   :  { %2883 = vmatpush.msra.mxu0 %v10012_v18  ;;  %2903 = vmatpush.msra.mxu1 %v10013_v27  ;;  %v1833_v50 = vadd.f32 %v10021_v58, %v10020_v8  ;;  %v10022_v18 = vld [vmem:[#allocation53_spill] sm:$0xff] }
 0x7e7   :  { %2923 = vmatpush.msra.mxu2 %v10014_v60  ;;  %2943 = vmatpush.msra.mxu3 %v10015_v48  ;;  %v1874_v27 = vadd.f32 %v10023_v2, %v10022_v18 }
 0x7e8   :  { %2884 = vmatpush.msra.mxu0 %v10016_v25  ;;  %2904 = vmatpush.msra.mxu1 %v10017_v0  ;;  %v10024_v0 = vld [vmem:[#allocation84_spill] sm:$0xff] }
 0x7e9   :  { %2924 = vmatpush.msra.mxu2 %v7966_v13  ;;  %2944 = vmatpush.msra.mxu3 %v10019_v37  ;;  %v1956_v59 = vadd.f32 %v10025_v28, %v10024_v0 }
 0x845   :  { %v2568_v62 = vpop.f32.mrf.mxu0  ;;  %v2588_v60 = vpop.f32.mrf.mxu1 }
 0x846   :  { %v2631_v38 = vadd.f32 %v2568_v62, %v1833_v50  ;;  %v2632_v48 = vadd.f32 %v2588_v60, %v1874_v27  ;;  %v10026_v50 = vld [vmem:[#allocation86_spill] sm:$0xff] }
 0x848   :  { %v5139_v55 = vmul.f32 -1.442695, %v2631_v38  ;;  %v5140_v25 = vmul.f32 -1.442695, %v2632_v48  ;;  %v10027_v38 = vld [vmem:[#allocation69_spill] sm:$0xff] }
 0x849   :  { %v1915_v27 = vadd.f32 %v10027_v38, %v10026_v50 }
 0x84a   :  { %5369 = vpow2.f32 %v5139_v55 }
 0x84b   :  { %5371 = vpow2.f32 %v5140_v25 }
 0x84c   :  { %v2628_v13 = vpop.f32.mrf.mxu3  ;;  %v2608_v2 = vpop.f32.mrf.mxu2 }
 0x84d   :  { %v2634_v51 = vadd.f32 %v2628_v13, %v1956_v59  ;;  %v2633_v48 = vadd.f32 %v2608_v2, %v1915_v27 }
 0x84f   :  { %v5141_v37 = vmul.f32 -1.442695, %v2634_v51 }
 0x850   :  { %v5370_v17 = vpop.eup %5369 }
 0x851   :  { %v5372_v39 = vpop.eup %5371  ;;  %v2638_v58 = vadd.f32 1.0, %v5370_v17  ;;  %5373 = vpow2.f32 %v5141_v37 }
 0x852   :  { %v2657_v8 = vadd.f32 1.0, %v5372_v39 }
 0x853   :  { %5375 = vrcp.f32 %v2638_v58  ;;  %v2650_v0 = vand.u32 2147483648, %v2638_v58  ;;  %v2648_v37 = vand.u32 2147483647, %v2638_v58  ;;  %vm2644_vm7 = vweird.f32 %v2638_v58 }
 0x854   :  { %5377 = vrcp.f32 %v2657_v8  ;;  %v2669_v17 = vand.u32 2147483648, %v2657_v8  ;;  %v2667_v32 = vand.u32 2147483647, %v2657_v8  ;;  %vm2663_vm8 = vweird.f32 %v2657_v8 }
 0x855   :  { %v2651_v2 = vor.u32 1.1754944e-38, %v2650_v0  ;;  %vm2649_vm11 = vcmp.eq.f32.partialorder %v2648_v37, 8.507059e+37 }
 0x856   :  { %vm2668_vm12 = vcmp.eq.f32.partialorder %v2667_v32, 8.507059e+37 }
 0x857   :  { %v5374_v62 = vpop.eup %5373 }
 0x858   :  { %v2677_v55 = vadd.f32 1.0, %v5374_v62 }
 0x859   :  { %v5376_v60 = vpop.eup %5375 }
 0x85a   :  { %v5378_v28 = vpop.eup %5377  ;;  %v2640_v25 = vmul.f32 %v5376_v60, %v2638_v58  ;;  %5379 = vrcp.f32 %v2677_v55  ;;  %vm2645_vm5 = vweird.f32 %v5376_v60  ;;  %vm2683_vm14 = vweird.f32 %v2677_v55 }
 0x85b   :  { %v2659_v13 = vmul.f32 %v5378_v28, %v2657_v8  ;;  %5381 = vtanh.f32 %v2633_v48  ;;  %vm2664_vm6 = vweird.f32 %v5378_v28  ;;  %vm2646_vm9 = vmor %vm2644_vm7, %vm2645_vm5  ;;  %v2687_v0 = vand.u32 2147483647, %v2677_v55 }
 0x85c   :  { %v2641_v51 = vsub.f32 1.0, %v2640_v25  ;;  %vm2665_vm10 = vmor %vm2663_vm8, %vm2664_vm6  ;;  %v2670_v25 = vor.u32 1.1754944e-38, %v2669_v17 }
 0x85d   :  { %v2660_v59 = vsub.f32 1.0, %v2659_v13  ;;  %vm2688_vm0 = vcmp.eq.f32.partialorder %v2687_v0, 8.507059e+37  ;;  %v10048_v0 = vld [vmem:[#allocation38_spill] sm:$0xff] }
 0x85e   :  { %v2642_v39 = vmul.f32 %v5376_v60, %v2641_v51 }
 0x85f   :  { %v2661_v18 = vmul.f32 %v5378_v28, %v2660_v59 }
 0x860   :  { %v5380_v15 = vpop.eup %5379  ;;  %v2643_v38 = vadd.f32 %v5376_v60, %v2642_v39 }
 0x861   :  { %v2662_v62 = vadd.f32 %v5378_v28, %v2661_v18  ;;  %v2679_v27 = vmul.f32 %v5380_v15, %v2677_v55  ;;  %v5382_v48 = vpop.eup %5381  ;;  %vm2684_vm13 = vweird.f32 %v5380_v15  ;;  %v2689_v18 = vand.u32 2147483648, %v2677_v55  ;;  %v10035_v55 = vld [vmem:[#allocation30_spill] sm:$0xff] }
 0x862   :  { %v2647_v13 = vsel %vm2646_vm9, %v5376_v60, %v2643_v38  ;;  %vm2685_vm15 = vmor %vm2683_vm14, %vm2684_vm13  ;;  %v10036_v38 = vld [vmem:[#allocation51_spill] sm:$0xff] }
 0x863   :  { %v2652_v50 = vsel %vm2649_vm11, %v2651_v2, %v2647_v13  ;;  %v2666_v51 = vsel %vm2665_vm10, %v5378_v28, %v2662_v62  ;;  %v2680_v30 = vsub.f32 1.0, %v2679_v27  ;;  %v2690_v17 = vor.u32 1.1754944e-38, %v2689_v18  ;;  %v10037_v2 = vld [vmem:[#allocation32_spill] sm:$0xff]  ;;  %v10039_v27 = vld [vmem:[#allocation50_spill] sm:$0xff]  ;;  %v10047_v18 = vld [vmem:[#allocation39_spill] sm:$0xff] }
 0x864   :  { %v2671_v59 = vsel %vm2668_vm12, %v2670_v25, %v2666_v51  ;;  %v2695_v5 = vmul.f32 %v5382_v48, %v2652_v50  ;;  %v10034_v50 = vld [vmem:[#allocation37_spill] sm:$0xff]  ;;  %v10038_v62 = vld [vmem:[#allocation36_spill] sm:$0xff]  ;;  %v10040_v25 = vld [vmem:[#allocation42_spill] sm:$0xff] }
 0x865   :  { %v2694_v35 = vmul.f32 %v2671_v59, %v7895_v63  ;;  %v2681_v39 = vmul.f32 %v5380_v15, %v2680_v30  ;;  %v10029_v63 = vld [vmem:[#allocation73_spill] sm:$0xff]  ;;  %v10032_v30 = vld [vmem:[#allocation44_spill] sm:$0xff]  ;;  %v10041_v13 = vld [vmem:[#allocation34_spill] sm:$0xff] }
 0x866   :  { %v10042_v48 = vld [vmem:[#allocation48_spill] sm:$0xff]  ;;  %v10043_v51 = vld [vmem:[#allocation41_spill] sm:$0xff]  ;;  %v10044_v59 = vld [vmem:[#allocation46_spill] sm:$0xff] }
 0x867   :  { %v7979_v58 = vadd.f32 %v2695_v5, %v2694_v35  ;;  %v2682_v8 = vadd.f32 %v5380_v15, %v2681_v39  ;;  %v10030_v35 = vld [vmem:[#allocation63_spill] sm:$0xff] }
 0x868   :  { %v10031_v5 = vld [vmem:[#allocation43_spill] sm:$0xff] }
 0x869   :  { %5383 = vtanh.f32 %v7979_v58  ;;  %v2686_v60 = vsel %vm2685_vm15, %v5380_v15, %v2682_v8  ;;  %v10033_v15 = vld [vmem:[#allocation47_spill] sm:$0xff]  ;;  %v10046_v8 = vld [vmem:[#allocation45_spill] sm:$0xff] }
 0x86a   :  { %v2691_v28 = vsel %vm2688_vm0, %v2690_v17, %v2686_v60  ;;  %v10045_v39 = vld [vmem:[#allocation35_spill] sm:$0xff]  ;;  %v10049_v60 = vld [vmem:[#allocation57_spill] sm:$0xff]  ;;  %v10050_v17 = vld [vmem:[#allocation52_spill] sm:$0xff] }
 0x86f   :  { %v5384_v32 = vpop.eup %5383 }
 0x870   :  { %v7982_v37 = vmul.f32 %v5384_v32, %v2691_v28  ;;  %v10051_v32 = vld [vmem:[#allocation31_spill] sm:$0xff]  ;;  %v10052_v28 = vld [vmem:[#allocation56_spill] sm:$0xff] }
 0x872   :  { %10028 = vst [vmem:[#allocation75_spill] sm:$0xff] %v7982_v37  ;;  %2726 = vmatmul.f32.vlgmr.msrb.gmra.mxu0 %v7982_v37  ;;  %2746 = vmatmul.f32.vlgmr.msrb.gmra.mxu1 %v7982_v37 }
 0x873   :  { %2766 = vmatmul.f32.vlgmr.msrb.gmra.mxu2 %v7982_v37  ;;  %2786 = vmatmul.f32.vlgmr.msrb.gmra.mxu3 %v7982_v37  ;;  %v10053_v37 = vld [vmem:[#allocation67_spill] sm:$0xff] }
 0x874   :  { %3028 = vmatpush.msrb.mxu0 %v7696_v24  ;;  %3048 = vmatpush.msrb.mxu1 %v7699_v19 }
 0x875   :  { %3068 = vmatpush.msrb.mxu2 %v7702_v16  ;;  %3088 = vmatpush.msrb.mxu3 %v7705_v45 }
 0x876   :  { %3029 = vmatpush.msrb.mxu0 %v7708_v23  ;;  %3049 = vmatpush.msrb.mxu1 %v7711_v3 }
 0x877   :  { %3069 = vmatpush.msrb.mxu2 %v7714_v9  ;;  %3089 = vmatpush.msrb.mxu3 %v7717_v21 }
 0x878   :  { %3030 = vmatpush.msrb.mxu0 %v7720_v46  ;;  %3050 = vmatpush.msrb.mxu1 %v7723_v7 }
 0x879   :  { %3070 = vmatpush.msrb.mxu2 %v7726_v52  ;;  %3090 = vmatpush.msrb.mxu3 %v7729_v1 }
 0x87a   :  { %3031 = vmatpush.msrb.mxu0 %v7732_v6  ;;  %3051 = vmatpush.msrb.mxu1 %v7735_v44 }
 0x87b   :  { %3071 = vmatpush.msrb.mxu2 %v7738_v42  ;;  %3091 = vmatpush.msrb.mxu3 %v7741_v36 }
 0x87c   :  { %3032 = vmatpush.msrb.mxu0 %v7744_v4  ;;  %3052 = vmatpush.msrb.mxu1 %v7747_v61 }
 0x87d   :  { %3072 = vmatpush.msrb.mxu2 %v7750_v49  ;;  %3092 = vmatpush.msrb.mxu3 %v7753_v53 }
 0x87e   :  { %3033 = vmatpush.msrb.mxu0 %v7756_v54  ;;  %3053 = vmatpush.msrb.mxu1 %v7759_v57 }
 0x87f   :  { %3073 = vmatpush.msrb.mxu2 %v7762_v47  ;;  %3093 = vmatpush.msrb.mxu3 %v7765_v31 }
 0x880   :  { %3034 = vmatpush.msrb.mxu0 %v7768_v10  ;;  %3054 = vmatpush.msrb.mxu1 %v7771_v29 }
 0x881   :  { %3074 = vmatpush.msrb.mxu2 %v7774_v56  ;;  %3094 = vmatpush.msrb.mxu3 %v7777_v43 }
 0x882   :  { %3035 = vmatpush.msrb.mxu0 %v7780_v26  ;;  %3055 = vmatpush.msrb.mxu1 %v7783_v34 }
 0x883   :  { %3075 = vmatpush.msrb.mxu2 %v7786_v22  ;;  %3095 = vmatpush.msrb.mxu3 %v7789_v14 }
 0x884   :  { %3036 = vmatpush.msrb.mxu0 %v7792_v11  ;;  %3056 = vmatpush.msrb.mxu1 %v7795_v12 }
 0x885   :  { %3076 = vmatpush.msrb.mxu2 %v7798_v33  ;;  %3096 = vmatpush.msrb.mxu3 %v7801_v40 }
 0x886   :  { %3037 = vmatpush.msrb.mxu0 %v7804_v20  ;;  %3057 = vmatpush.msrb.mxu1 %v7807_v41 }
 0x887   :  { %3077 = vmatpush.msrb.mxu2 %v10029_v63  ;;  %3097 = vmatpush.msrb.mxu3 %v10030_v35 }
 0x888   :  { %3038 = vmatpush.msrb.mxu0 %v10031_v5  ;;  %3058 = vmatpush.msrb.mxu1 %v10032_v30 }
 0x889   :  { %3078 = vmatpush.msrb.mxu2 %v10033_v15  ;;  %3098 = vmatpush.msrb.mxu3 %v10034_v50 }
 0x88a   :  { %3039 = vmatpush.msrb.mxu0 %v10035_v55  ;;  %3059 = vmatpush.msrb.mxu1 %v10036_v38 }
 0x88b   :  { %3079 = vmatpush.msrb.mxu2 %v10037_v2  ;;  %3099 = vmatpush.msrb.mxu3 %v10038_v62  ;;  %v10060_v2 = vld [vmem:[#allocation82_spill] sm:$0xff] }
 0x88c   :  { %3040 = vmatpush.msrb.mxu0 %v10039_v27  ;;  %3060 = vmatpush.msrb.mxu1 %v10040_v25 }
 0x88d   :  { %3080 = vmatpush.msrb.mxu2 %v10041_v13  ;;  %3100 = vmatpush.msrb.mxu3 %v10042_v48  ;;  %v10058_v13 = vld [vmem:[#allocation78_spill] sm:$0xff] }
 0x88e   :  { %3041 = vmatpush.msrb.mxu0 %v10043_v51  ;;  %3061 = vmatpush.msrb.mxu1 %v10044_v59  ;;  %v10054_v51 = vld [vmem:[#allocation64_spill] sm:$0xff]  ;;  %v10055_v59 = vld [vmem:[#allocation70_spill] sm:$0xff] }
 0x88f   :  { %3081 = vmatpush.msrb.mxu2 %v10045_v39  ;;  %3101 = vmatpush.msrb.mxu3 %v10046_v8  ;;  %v10056_v39 = vld [vmem:[#allocation71_spill] sm:$0xff]  ;;  %v10057_v8 = vld [vmem:[#allocation53_spill] sm:$0xff] }
 0x890   :  { %3042 = vmatpush.msrb.mxu0 %v10047_v18  ;;  %3062 = vmatpush.msrb.mxu1 %v10048_v0  ;;  %v1836_v48 = vadd.f32 %v10056_v39, %v10055_v59  ;;  %v1877_v18 = vadd.f32 %v10058_v13, %v10057_v8 }
 0x891   :  { %3082 = vmatpush.msrb.mxu2 %v10049_v60  ;;  %3102 = vmatpush.msrb.mxu3 %v10050_v17 }
 0x892   :  { %3043 = vmatpush.msrb.mxu0 %v10051_v32  ;;  %3063 = vmatpush.msrb.mxu1 %v10052_v28  ;;  %v10059_v32 = vld [vmem:[#allocation84_spill] sm:$0xff] }
 0x893   :  { %3083 = vmatpush.msrb.mxu2 %v10053_v37  ;;  %3103 = vmatpush.msrb.mxu3 %v10054_v51  ;;  %v1959_v28 = vadd.f32 %v10060_v2, %v10059_v32 }
 0x8ef   :  { %v2727_v25 = vpop.f32.mrf.mxu0  ;;  %v2747_v0 = vpop.f32.mrf.mxu1 }
 0x8f0   :  { %v2790_v27 = vadd.f32 %v2727_v25, %v1836_v48  ;;  %v2791_v60 = vadd.f32 %v2747_v0, %v1877_v18  ;;  %v10061_v48 = vld [vmem:[#allocation86_spill] sm:$0xff] }
 0x8f2   :  { %v5142_v62 = vmul.f32 -1.442695, %v2790_v27  ;;  %v5143_v17 = vmul.f32 -1.442695, %v2791_v60  ;;  %v10062_v27 = vld [vmem:[#allocation59_spill] sm:$0xff] }
 0x8f3   :  { %v1918_v18 = vadd.f32 %v10062_v27, %v10061_v48 }
 0x8f4   :  { %5385 = vpow2.f32 %v5142_v62 }
 0x8f5   :  { %5387 = vpow2.f32 %v5143_v17 }
 0x8f6   :  { %v2787_v37 = vpop.f32.mrf.mxu3  ;;  %v2767_v13 = vpop.f32.mrf.mxu2 }
 0x8f7   :  { %v2793_v38 = vadd.f32 %v2787_v37, %v1959_v28  ;;  %v2792_v60 = vadd.f32 %v2767_v13, %v1918_v18 }
 0x8f9   :  { %v5144_v51 = vmul.f32 -1.442695, %v2793_v38 }
 0x8fa   :  { %v5386_v55 = vpop.eup %5385 }
 0x8fb   :  { %v5388_v50 = vpop.eup %5387  ;;  %v2797_v39 = vadd.f32 1.0, %v5386_v55  ;;  %5389 = vpow2.f32 %v5144_v51 }
 0x8fc   :  { %v2816_v59 = vadd.f32 1.0, %v5388_v50 }
 0x8fd   :  { %5391 = vrcp.f32 %v2797_v39  ;;  %v2809_v32 = vand.u32 2147483648, %v2797_v39  ;;  %v2807_v51 = vand.u32 2147483647, %v2797_v39  ;;  %vm2803_vm3 = vweird.f32 %v2797_v39 }
 0x8fe   :  { %5393 = vrcp.f32 %v2816_v59  ;;  %v2828_v55 = vand.u32 2147483648, %v2816_v59  ;;  %v2826_v15 = vand.u32 2147483647, %v2816_v59  ;;  %vm2822_vm4 = vweird.f32 %v2816_v59 }
 0x8ff   :  { %v2810_v13 = vor.u32 1.1754944e-38, %v2809_v32  ;;  %vm2808_vm7 = vcmp.eq.f32.partialorder %v2807_v51, 8.507059e+37 }
 0x900   :  { %vm2827_vm8 = vcmp.eq.f32.partialorder %v2826_v15, 8.507059e+37 }
 0x901   :  { %v5390_v25 = vpop.eup %5389 }
 0x902   :  { %v2836_v62 = vadd.f32 1.0, %v5390_v25 }
 0x903   :  { %v5392_v0 = vpop.eup %5391 }
 0x904   :  { %v5394_v2 = vpop.eup %5393  ;;  %v2799_v17 = vmul.f32 %v5392_v0, %v2797_v39  ;;  %5395 = vrcp.f32 %v2836_v62  ;;  %vm2804_vm1 = vweird.f32 %v5392_v0  ;;  %vm2842_vm10 = vweird.f32 %v2836_v62 }
 0x905   :  { %v2818_v37 = vmul.f32 %v5394_v2, %v2816_v59  ;;  %5397 = vtanh.f32 %v2792_v60  ;;  %vm2823_vm2 = vweird.f32 %v5394_v2  ;;  %vm2805_vm5 = vmor %vm2803_vm3, %vm2804_vm1  ;;  %v2846_v32 = vand.u32 2147483647, %v2836_v62 }
 0x906   :  { %v2800_v38 = vsub.f32 1.0, %v2799_v17  ;;  %vm2824_vm6 = vmor %vm2822_vm4, %vm2823_vm2  ;;  %v2829_v17 = vor.u32 1.1754944e-38, %v2828_v55 }
 0x907   :  { %v2819_v28 = vsub.f32 1.0, %v2818_v37  ;;  %vm2847_vm12 = vcmp.eq.f32.partialorder %v2846_v32, 8.507059e+37 }
 0x908   :  { %v2801_v50 = vmul.f32 %v5392_v0, %v2800_v38 }
 0x909   :  { %v2820_v8 = vmul.f32 %v5394_v2, %v2819_v28 }
 0x90a   :  { %v5396_v30 = vpop.eup %5395  ;;  %v2802_v27 = vadd.f32 %v5392_v0, %v2801_v50 }
 0x90b   :  { %v2821_v25 = vadd.f32 %v5394_v2, %v2820_v8  ;;  %v2838_v18 = vmul.f32 %v5396_v30, %v2836_v62  ;;  %v5398_v60 = vpop.eup %5397  ;;  %vm2843_vm9 = vweird.f32 %v5396_v30  ;;  %v2848_v8 = vand.u32 2147483648, %v2836_v62 }
 0x90c   :  { %v2806_v37 = vsel %vm2805_vm5, %v5392_v0, %v2802_v27  ;;  %vm2844_vm11 = vmor %vm2842_vm10, %vm2843_vm9 }
 0x90d   :  { %v2811_v48 = vsel %vm2808_vm7, %v2810_v13, %v2806_v37  ;;  %v2825_v38 = vsel %vm2824_vm6, %v5394_v2, %v2821_v25  ;;  %v2839_v5 = vsub.f32 1.0, %v2838_v18  ;;  %v2849_v55 = vor.u32 1.1754944e-38, %v2848_v8  ;;  %v10095_v37 = vld [vmem:[#allocation86_spill] sm:$0xff] }
 0x90e   :  { %v2830_v28 = vsel %vm2827_vm8, %v2829_v17, %v2825_v38  ;;  %v2854_v35 = vmul.f32 %v5398_v60, %v2811_v48  ;;  %v10096_v60 = vld [vmem:[#allocation72_spill] sm:$0xff] }
 0x90f   :  { %v2853_v63 = vmul.f32 %v2830_v28, %v7979_v58  ;;  %v2840_v50 = vmul.f32 %v5396_v30, %v2839_v5  ;;  %v10093_v58 = vld [vmem:[#allocation84_spill] sm:$0xff]  ;;  %v1921_v38 = vadd.f32 %v10096_v60, %v10095_v37  ;;  %v10097_v60 = vld [vmem:[#allocation74_spill] sm:$0xff] }
 0x911   :  { %v8061_v39 = vadd.f32 %v2854_v35, %v2853_v63  ;;  %v2841_v59 = vadd.f32 %v5396_v30, %v2840_v50  ;;  %v10094_v63 = vld [vmem:[#allocation58_spill] sm:$0xff] }
 0x912   :  { %v1962_v35 = vadd.f32 %v10094_v63, %v10093_v58  ;;  %v3399_v63 = vld [vmem:[#allocation18 + $0x1a0] sm:$0xff] }
 0x913   :  { %5399 = vtanh.f32 %v8061_v39  ;;  %v2845_v0 = vsel %vm2844_vm11, %v5396_v30, %v2841_v59 }
 0x914   :  { %v2850_v2 = vsel %vm2847_vm12, %v2849_v55, %v2845_v0 }
 0x919   :  { %v5400_v15 = vpop.eup %5399 }
 0x91a   :  { %v8064_v51 = vmul.f32 %v5400_v15, %v2850_v2 }
 0x91c   :  { %2885 = vmatmul.f32.vlgmr.msra.gmra.mxu0 %v8064_v51  ;;  %2905 = vmatmul.f32.vlgmr.msra.gmra.mxu1 %v8064_v51 }
 0x91d   :  { %2925 = vmatmul.f32.vlgmr.msra.gmra.mxu2 %v8064_v51  ;;  %2945 = vmatmul.f32.vlgmr.msra.gmra.mxu3 %v8064_v51 }
 0x91e   :  { %3187 = vmatpush.msra.mxu0 %v7696_v24  ;;  %3207 = vmatpush.msra.mxu1 %v7699_v19  ;;  %v10063_v24 = vld [vmem:[#allocation73_spill] sm:$0xff]  ;;  %v10064_v19 = vld [vmem:[#allocation63_spill] sm:$0xff] }
 0x91f   :  { %3227 = vmatpush.msra.mxu2 %v7702_v16  ;;  %3247 = vmatpush.msra.mxu3 %v7705_v45  ;;  %v10065_v16 = vld [vmem:[#allocation43_spill] sm:$0xff]  ;;  %v10066_v45 = vld [vmem:[#allocation44_spill] sm:$0xff] }
 0x920   :  { %3188 = vmatpush.msra.mxu0 %v7708_v23  ;;  %3208 = vmatpush.msra.mxu1 %v7711_v3  ;;  %v10067_v23 = vld [vmem:[#allocation47_spill] sm:$0xff]  ;;  %v10068_v3 = vld [vmem:[#allocation37_spill] sm:$0xff] }
 0x921   :  { %3228 = vmatpush.msra.mxu2 %v7714_v9  ;;  %3248 = vmatpush.msra.mxu3 %v7717_v21  ;;  %v10069_v9 = vld [vmem:[#allocation30_spill] sm:$0xff]  ;;  %v10070_v21 = vld [vmem:[#allocation51_spill] sm:$0xff] }
 0x922   :  { %3189 = vmatpush.msra.mxu0 %v7720_v46  ;;  %3209 = vmatpush.msra.mxu1 %v7723_v7  ;;  %v10071_v46 = vld [vmem:[#allocation32_spill] sm:$0xff] }
 0x923   :  { %3229 = vmatpush.msra.mxu2 %v7726_v52  ;;  %3249 = vmatpush.msra.mxu3 %v7729_v1  ;;  %v10072_v7 = vld [vmem:[#allocation36_spill] sm:$0xff]  ;;  %v10073_v52 = vld [vmem:[#allocation50_spill] sm:$0xff] }
 0x924   :  { %3190 = vmatpush.msra.mxu0 %v7732_v6  ;;  %3210 = vmatpush.msra.mxu1 %v7735_v44  ;;  %v10074_v1 = vld [vmem:[#allocation42_spill] sm:$0xff]  ;;  %v10076_v44 = vld [vmem:[#allocation48_spill] sm:$0xff] }
 0x925   :  { %3230 = vmatpush.msra.mxu2 %v7738_v42  ;;  %3250 = vmatpush.msra.mxu3 %v7741_v36  ;;  %v10075_v6 = vld [vmem:[#allocation34_spill] sm:$0xff]  ;;  %v10077_v42 = vld [vmem:[#allocation41_spill] sm:$0xff] }
 0x926   :  { %3191 = vmatpush.msra.mxu0 %v7744_v4  ;;  %3211 = vmatpush.msra.mxu1 %v7747_v61  ;;  %v10078_v36 = vld [vmem:[#allocation46_spill] sm:$0xff]  ;;  %v10079_v4 = vld [vmem:[#allocation35_spill] sm:$0xff]  ;;  %v10080_v61 = vld [vmem:[#allocation45_spill] sm:$0xff] }
 0x927   :  { %3231 = vmatpush.msra.mxu2 %v7750_v49  ;;  %3251 = vmatpush.msra.mxu3 %v7753_v53  ;;  %v10081_v49 = vld [vmem:[#allocation39_spill] sm:$0xff]  ;;  %v10082_v53 = vld [vmem:[#allocation38_spill] sm:$0xff] }
 0x928   :  { %3192 = vmatpush.msra.mxu0 %v7756_v54  ;;  %3212 = vmatpush.msra.mxu1 %v7759_v57  ;;  %v10083_v54 = vld [vmem:[#allocation57_spill] sm:$0xff]  ;;  %v10084_v57 = vld [vmem:[#allocation52_spill] sm:$0xff] }
 0x929   :  { %3232 = vmatpush.msra.mxu2 %v7762_v47  ;;  %3252 = vmatpush.msra.mxu3 %v7765_v31  ;;  %v10085_v47 = vld [vmem:[#allocation31_spill] sm:$0xff]  ;;  %v10086_v31 = vld [vmem:[#allocation56_spill] sm:$0xff] }
 0x92a   :  { %3193 = vmatpush.msra.mxu0 %v7768_v10  ;;  %3213 = vmatpush.msra.mxu1 %v7771_v29  ;;  %v10087_v10 = vld [vmem:[#allocation67_spill] sm:$0xff]  ;;  %v10088_v29 = vld [vmem:[#allocation64_spill] sm:$0xff] }
 0x92b   :  { %3233 = vmatpush.msra.mxu2 %v7774_v56  ;;  %3253 = vmatpush.msra.mxu3 %v7777_v43  ;;  %v10089_v56 = vld [vmem:[#allocation70_spill] sm:$0xff]  ;;  %v10090_v43 = vld [vmem:[#allocation33_spill] sm:$0xff] }
 0x92c   :  { %3194 = vmatpush.msra.mxu0 %v7780_v26  ;;  %3214 = vmatpush.msra.mxu1 %v7783_v34  ;;  %v1839_v26 = vadd.f32 %v10090_v43, %v10089_v56  ;;  %v10091_v34 = vld [vmem:[#allocation53_spill] sm:$0xff] }
 0x92d   :  { %3234 = vmatpush.msra.mxu2 %v7786_v22  ;;  %3254 = vmatpush.msra.mxu3 %v7789_v14  ;;  %v10092_v22 = vld [vmem:[#allocation49_spill] sm:$0xff] }
 0x92e   :  { %3195 = vmatpush.msra.mxu0 %v7792_v11  ;;  %3215 = vmatpush.msra.mxu1 %v7795_v12  ;;  %v1880_v14 = vadd.f32 %v10092_v22, %v10091_v34 }
 0x92f   :  { %3235 = vmatpush.msra.mxu2 %v7798_v33  ;;  %3255 = vmatpush.msra.mxu3 %v7801_v40 }
 0x930   :  { %3196 = vmatpush.msra.mxu0 %v7804_v20  ;;  %3216 = vmatpush.msra.mxu1 %v7807_v41 }
 0x931   :  { %3236 = vmatpush.msra.mxu2 %v10063_v24  ;;  %3256 = vmatpush.msra.mxu3 %v10064_v19 }
 0x932   :  { %3197 = vmatpush.msra.mxu0 %v10065_v16  ;;  %3217 = vmatpush.msra.mxu1 %v10066_v45 }
 0x933   :  { %3237 = vmatpush.msra.mxu2 %v10067_v23  ;;  %3257 = vmatpush.msra.mxu3 %v10068_v3 }
 0x934   :  { %3198 = vmatpush.msra.mxu0 %v10069_v9  ;;  %3218 = vmatpush.msra.mxu1 %v10070_v21 }
 0x935   :  { %3238 = vmatpush.msra.mxu2 %v10071_v46  ;;  %3258 = vmatpush.msra.mxu3 %v10072_v7 }
 0x936   :  { %3199 = vmatpush.msra.mxu0 %v10073_v52  ;;  %3219 = vmatpush.msra.mxu1 %v10074_v1 }
 0x937   :  { %3239 = vmatpush.msra.mxu2 %v10075_v6  ;;  %3259 = vmatpush.msra.mxu3 %v10076_v44 }
 0x938   :  { %3200 = vmatpush.msra.mxu0 %v10077_v42  ;;  %3220 = vmatpush.msra.mxu1 %v10078_v36 }
 0x939   :  { %3240 = vmatpush.msra.mxu2 %v10079_v4  ;;  %3260 = vmatpush.msra.mxu3 %v10080_v61 }
 0x93a   :  { %3201 = vmatpush.msra.mxu0 %v10081_v49  ;;  %3221 = vmatpush.msra.mxu1 %v10082_v53 }
 0x93b   :  { %3241 = vmatpush.msra.mxu2 %v10083_v54  ;;  %3261 = vmatpush.msra.mxu3 %v10084_v57 }
 0x93c   :  { %3202 = vmatpush.msra.mxu0 %v10085_v47  ;;  %3222 = vmatpush.msra.mxu1 %v10086_v31 }
 0x93d   :  { %3242 = vmatpush.msra.mxu2 %v10087_v10  ;;  %3262 = vmatpush.msra.mxu3 %v10088_v29 }
 0x999   :  { %v2886_v11 = vpop.f32.mrf.mxu0  ;;  %v2906_v12 = vpop.f32.mrf.mxu1 }
 0x99a   :  { %v2949_v33 = vadd.f32 %v2886_v11, %v1839_v26  ;;  %v2950_v40 = vadd.f32 %v2906_v12, %v1880_v14  ;;  %v3408_v14 = vld [vmem:[#allocation18 + $0x1e8] sm:$0xff]  ;;  %v3409_v11 = vld [vmem:[#allocation18 + $0x1f0] sm:$0xff]  ;;  %v3410_v12 = vld [vmem:[#allocation18 + $0x1f8] sm:$0xff] }
 0x99c   :  { %v5145_v20 = vmul.f32 -1.442695, %v2949_v33  ;;  %v5146_v41 = vmul.f32 -1.442695, %v2950_v40  ;;  %v3403_v33 = vld [vmem:[#allocation18 + $0x1c0] sm:$0xff]  ;;  %v3404_v40 = vld [vmem:[#allocation18 + $0x1c8] sm:$0xff] }
 0x99e   :  { %5401 = vpow2.f32 %v5145_v20  ;;  %v3405_v20 = vld [vmem:[#allocation18 + $0x1d0] sm:$0xff] }
 0x99f   :  { %5403 = vpow2.f32 %v5146_v41  ;;  %v3406_v41 = vld [vmem:[#allocation18 + $0x1d8] sm:$0xff] }
 0x9a0   :  { %v2946_v5 = vpop.f32.mrf.mxu3  ;;  %v2926_v18 = vpop.f32.mrf.mxu2 }
 0x9a1   :  { %v2952_v30 = vadd.f32 %v2946_v5, %v1962_v35  ;;  %v2951_v59 = vadd.f32 %v2926_v18, %v1921_v38  ;;  %v3400_v35 = vld [vmem:[#allocation18 + $0x1a8] sm:$0xff]  ;;  %v3401_v5 = vld [vmem:[#allocation18 + $0x1b0] sm:$0xff]  ;;  %v1842_v38 = vadd.f32 %v10097_v60, %v10089_v56 }
 0x9a2   :  { %v3392_v18 = vld [vmem:[#allocation18 + $0x168] sm:$0xff] }
 0x9a3   :  { %v5147_v48 = vmul.f32 -1.442695, %v2952_v30  ;;  %v3402_v30 = vld [vmem:[#allocation18 + $0x1b8] sm:$0xff] }
 0x9a4   :  { %v5402_v62 = vpop.eup %5401 }
 0x9a5   :  { %v5404_v27 = vpop.eup %5403  ;;  %v2956_v13 = vadd.f32 1.0, %v5402_v62  ;;  %5405 = vpow2.f32 %v5147_v48  ;;  %v3395_v48 = vld [vmem:[#allocation18 + $0x180] sm:$0xff]  ;;  %v3396_v62 = vld [vmem:[#allocation18 + $0x188] sm:$0xff] }
 0x9a6   :  { %v2975_v25 = vadd.f32 1.0, %v5404_v27  ;;  %v3397_v27 = vld [vmem:[#allocation18 + $0x190] sm:$0xff] }
 0x9a7   :  { %5407 = vrcp.f32 %v2956_v13  ;;  %v2968_v2 = vand.u32 2147483648, %v2956_v13  ;;  %v2966_v16 = vand.u32 2147483647, %v2956_v13  ;;  %vm2962_vm15 = vweird.f32 %v2956_v13 }
 0x9a8   :  { %5409 = vrcp.f32 %v2975_v25  ;;  %v2987_v24 = vand.u32 2147483648, %v2975_v25  ;;  %v2985_v23 = vand.u32 2147483647, %v2975_v25  ;;  %vm2981_vm0 = vweird.f32 %v2975_v25 }
 0x9a9   :  { %v2969_v21 = vor.u32 1.1754944e-38, %v2968_v2  ;;  %vm2967_vm3 = vcmp.eq.f32.partialorder %v2966_v16, 8.507059e+37  ;;  %v3383_v16 = vld [vmem:[#allocation18 + $0x120] sm:$0xff] }
 0x9aa   :  { %v2988_v52 = vor.u32 1.1754944e-38, %v2987_v24  ;;  %vm2986_vm4 = vcmp.eq.f32.partialorder %v2985_v23, 8.507059e+37  ;;  %v3385_v23 = vld [vmem:[#allocation18 + $0x130] sm:$0xff] }
 0x9ab   :  { %v5406_v17 = vpop.eup %5405 }
 0x9ac   :  { %v2995_v28 = vadd.f32 1.0, %v5406_v17  ;;  %v3393_v17 = vld [vmem:[#allocation18 + $0x170] sm:$0xff] }
 0x9ad   :  { %v5408_v50 = vpop.eup %5407 }
 0x9ae   :  { %v5410_v8 = vpop.eup %5409  ;;  %v2958_v32 = vmul.f32 %v5408_v50, %v2956_v13  ;;  %5411 = vrcp.f32 %v2995_v28  ;;  %vm2963_vm13 = vweird.f32 %v5408_v50  ;;  %v3007_v47 = vand.u32 2147483648, %v2995_v28  ;;  %v3398_v13 = vld [vmem:[#allocation18 + $0x198] sm:$0xff] }
 0x9af   :  { %v2977_v0 = vmul.f32 %v5410_v8, %v2975_v25  ;;  %5413 = vtanh.f32 %v2951_v59  ;;  %vm2982_vm14 = vweird.f32 %v5410_v8  ;;  %vm2964_vm1 = vmor %vm2962_vm15, %vm2963_vm13  ;;  %vm3001_vm6 = vweird.f32 %v2995_v28  ;;  %v3391_v25 = vld [vmem:[#allocation18 + $0x160] sm:$0xff]  ;;  %v3394_v59 = vld [vmem:[#allocation18 + $0x178] sm:$0xff] }
 0x9b0   :  { %v2959_v55 = vsub.f32 1.0, %v2958_v32  ;;  %vm2983_vm2 = vmor %vm2981_vm0, %vm2982_vm14  ;;  %v3005_v31 = vand.u32 2147483647, %v2995_v28  ;;  %v3008_v29 = vor.u32 1.1754944e-38, %v3007_v47  ;;  %v3372_v47 = vld [vmem:[#allocation18 + $0xc8] sm:$0xff] }
 0x9b1   :  { %v2978_v15 = vsub.f32 1.0, %v2977_v0  ;;  %v3387_v0 = vld [vmem:[#allocation18 + $0x140] sm:$0xff] }
 0x9b2   :  { %v2960_v19 = vmul.f32 %v5408_v50, %v2959_v55  ;;  %vm3006_vm8 = vcmp.eq.f32.partialorder %v3005_v31, 8.507059e+37  ;;  %v3388_v55 = vld [vmem:[#allocation18 + $0x148] sm:$0xff]  ;;  %v3373_v31 = vld [vmem:[#allocation18 + $0xd0] sm:$0xff] }
 0x9b3   :  { %v2979_v45 = vmul.f32 %v5410_v8, %v2978_v15  ;;  %v3389_v15 = vld [vmem:[#allocation18 + $0x150] sm:$0xff] }
 0x9b4   :  { %v5412_v3 = vpop.eup %5411  ;;  %v2961_v9 = vadd.f32 %v5408_v50, %v2960_v19  ;;  %v3390_v19 = vld [vmem:[#allocation18 + $0x158] sm:$0xff] }
 0x9b5   :  { %v2980_v46 = vadd.f32 %v5410_v8, %v2979_v45  ;;  %v2997_v7 = vmul.f32 %v5412_v3, %v2995_v28  ;;  %v5414_v6 = vpop.eup %5413  ;;  %vm3002_vm5 = vweird.f32 %v5412_v3  ;;  %v10098_v28 = vld [vmem:[#allocation79_spill] sm:$0xff]  ;;  %v3384_v45 = vld [vmem:[#allocation18 + $0x128] sm:$0xff] }
 0x9b6   :  { %v2965_v1 = vsel %vm2964_vm1, %v5408_v50, %v2961_v9  ;;  %vm3003_vm7 = vmor %vm3001_vm6, %vm3002_vm5  ;;  %v1883_v50 = vadd.f32 %v10098_v28, %v10091_v34  ;;  %v3353_v28 = vld [vmem:[#allocation18 + $0x30] sm:$0xff] }
 0x9b7   :  { %v2970_v44 = vsel %vm2967_vm3, %v2969_v21, %v2965_v1  ;;  %v2984_v42 = vsel %vm2983_vm2, %v5410_v8, %v2980_v46  ;;  %v2998_v36 = vsub.f32 1.0, %v2997_v7  ;;  %v3386_v21 = vld [vmem:[#allocation18 + $0x138] sm:$0xff]  ;;  %v3379_v46 = vld [vmem:[#allocation18 + $0x100] sm:$0xff]  ;;  %v3380_v7 = vld [vmem:[#allocation18 + $0x108] sm:$0xff] }
 0x9b8   :  { %v2989_v4 = vsel %vm2986_vm4, %v2988_v52, %v2984_v42  ;;  %v3013_v61 = vmul.f32 %v5414_v6, %v2970_v44  ;;  %v3381_v52 = vld [vmem:[#allocation18 + $0x110] sm:$0xff]  ;;  %v3382_v1 = vld [vmem:[#allocation18 + $0x118] sm:$0xff]  ;;  %v10099_v6 = vld [vmem:[#allocation62_spill] sm:$0xff] }
 0x9b9   :  { %v3012_v49 = vmul.f32 %v2989_v4, %v8061_v39  ;;  %v2999_v53 = vmul.f32 %v5412_v3, %v2998_v36  ;;  %v3407_v39 = vld [vmem:[#allocation18 + $0x1e0] sm:$0xff]  ;;  %v1965_v44 = vadd.f32 %v10099_v6, %v10093_v58  ;;  %v3376_v36 = vld [vmem:[#allocation18 + $0xe8] sm:$0xff]  ;;  %v3377_v4 = vld [vmem:[#allocation18 + $0xf0] sm:$0xff] }
 0x9ba   :  { %v3375_v42 = vld [vmem:[#allocation18 + $0xe0] sm:$0xff] }
 0x9bb   :  { %v8143_v54 = vadd.f32 %v3013_v61, %v3012_v49  ;;  %v3000_v57 = vadd.f32 %v5412_v3, %v2999_v53  ;;  %v3378_v49 = vld [vmem:[#allocation18 + $0xf8] sm:$0xff] }
 0x9bd   :  { %5415 = vtanh.f32 %v8143_v54  ;;  %v3004_v10 = vsel %vm3003_vm7, %v5412_v3, %v3000_v57  ;;  %v3371_v57 = vld [vmem:[#allocation18 + $0xc0] sm:$0xff] }
 0x9be   :  { %v3009_v26 = vsel %vm3006_vm8, %v3008_v29, %v3004_v10  ;;  %v3374_v10 = vld [vmem:[#allocation18 + $0xd8] sm:$0xff] }
 0x9c3   :  { %v5416_v43 = vpop.eup %5415 }
 0x9c4   :  { %v8146_v22 = vmul.f32 %v5416_v43, %v3009_v26  ;;  %v3367_v43 = vld [vmem:[#allocation18 + $0xa0] sm:$0xff]  ;;  %v3368_v26 = vld [vmem:[#allocation18 + $0xa8] sm:$0xff] }
 0x9c6   :  { %3044 = vmatmul.f32.vlgmr.msrb.gmra.mxu0 %v8146_v22  ;;  %3064 = vmatmul.f32.vlgmr.msrb.gmra.mxu1 %v8146_v22 }
 0x9c7   :  { %3084 = vmatmul.f32.vlgmr.msrb.gmra.mxu2 %v8146_v22  ;;  %3104 = vmatmul.f32.vlgmr.msrb.gmra.mxu3 %v8146_v22 }
 0x9c8   :  { %3421 = vmatpush.msrb.mxu0 %v3407_v39  ;;  %3462 = vmatpush.msrb.mxu1 %v3408_v14  ;;  %v3369_v39 = vld [vmem:[#allocation18 + $0xb0] sm:$0xff] }
 0x9c9   :  { %3503 = vmatpush.msrb.mxu2 %v3409_v11  ;;  %3544 = vmatpush.msrb.mxu3 %v3410_v12  ;;  %v3370_v11 = vld [vmem:[#allocation18 + $0xb8] sm:$0xff]  ;;  %v3363_v12 = vld [vmem:[#allocation18 + $0x80] sm:$0xff] }
 0x9ca   :  { %3422 = vmatpush.msrb.mxu0 %v3403_v33  ;;  %3463 = vmatpush.msrb.mxu1 %v3404_v40  ;;  %v3364_v33 = vld [vmem:[#allocation18 + $0x88] sm:$0xff] }
 0x9cb   :  { %3504 = vmatpush.msrb.mxu2 %v3405_v20  ;;  %3545 = vmatpush.msrb.mxu3 %v3406_v41  ;;  %v3365_v41 = vld [vmem:[#allocation18 + $0x90] sm:$0xff] }
 0x9cc   :  { %3423 = vmatpush.msrb.mxu0 %v3399_v63  ;;  %3464 = vmatpush.msrb.mxu1 %v3400_v35  ;;  %v3366_v63 = vld [vmem:[#allocation18 + $0x98] sm:$0xff] }
 0x9cd   :  { %3505 = vmatpush.msrb.mxu2 %v3401_v5  ;;  %3546 = vmatpush.msrb.mxu3 %v3402_v30  ;;  %v3359_v5 = vld [vmem:[#allocation18 + $0x60] sm:$0xff]  ;;  %v3360_v30 = vld [vmem:[#allocation18 + $0x68] sm:$0xff] }
 0x9ce   :  { %3424 = vmatpush.msrb.mxu0 %v3395_v48  ;;  %3465 = vmatpush.msrb.mxu1 %v3396_v62  ;;  %v3361_v48 = vld [vmem:[#allocation18 + $0x70] sm:$0xff]  ;;  %v3362_v62 = vld [vmem:[#allocation18 + $0x78] sm:$0xff] }
 0x9cf   :  { %3506 = vmatpush.msrb.mxu2 %v3397_v27  ;;  %3547 = vmatpush.msrb.mxu3 %v3398_v13  ;;  %v3355_v27 = vld [vmem:[#allocation18 + $0x40] sm:$0xff]  ;;  %v3356_v13 = vld [vmem:[#allocation18 + $0x48] sm:$0xff] }
 0x9d0   :  { %3425 = vmatpush.msrb.mxu0 %v3391_v25  ;;  %3466 = vmatpush.msrb.mxu1 %v3392_v18  ;;  %v3357_v25 = vld [vmem:[#allocation18 + $0x50] sm:$0xff]  ;;  %v3358_v18 = vld [vmem:[#allocation18 + $0x58] sm:$0xff] }
 0x9d1   :  { %3507 = vmatpush.msrb.mxu2 %v3393_v17  ;;  %3548 = vmatpush.msrb.mxu3 %v3394_v59  ;;  %v3351_v17 = vld [vmem:[#allocation18 + $0x20] sm:$0xff] }
 0x9d2   :  { %3426 = vmatpush.msrb.mxu0 %v3387_v0  ;;  %3467 = vmatpush.msrb.mxu1 %v3388_v55  ;;  %v3347_v0 = vld [vmem:[#allocation18] sm:$0xff]  ;;  %v3348_v55 = vld [vmem:[#allocation18 + $0x8] sm:$0xff] }
 0x9d3   :  { %3508 = vmatpush.msrb.mxu2 %v3389_v15  ;;  %3549 = vmatpush.msrb.mxu3 %v3390_v19 }
 0x9d4   :  { %3427 = vmatpush.msrb.mxu0 %v3383_v16  ;;  %3468 = vmatpush.msrb.mxu1 %v3384_v45 }
 0x9d5   :  { %3509 = vmatpush.msrb.mxu2 %v3385_v23  ;;  %3550 = vmatpush.msrb.mxu3 %v3386_v21 }
 0x9d6   :  { %3428 = vmatpush.msrb.mxu0 %v3379_v46  ;;  %3469 = vmatpush.msrb.mxu1 %v3380_v7 }
 0x9d7   :  { %3510 = vmatpush.msrb.mxu2 %v3381_v52  ;;  %3551 = vmatpush.msrb.mxu3 %v3382_v1 }
 0x9d8   :  { %3429 = vmatpush.msrb.mxu0 %v3375_v42  ;;  %3470 = vmatpush.msrb.mxu1 %v3376_v36 }
 0x9d9   :  { %3511 = vmatpush.msrb.mxu2 %v3377_v4  ;;  %3552 = vmatpush.msrb.mxu3 %v3378_v49 }
 0x9da   :  { %3430 = vmatpush.msrb.mxu0 %v3371_v57  ;;  %3471 = vmatpush.msrb.mxu1 %v3372_v47 }
 0x9db   :  { %3512 = vmatpush.msrb.mxu2 %v3373_v31  ;;  %3553 = vmatpush.msrb.mxu3 %v3374_v10 }
 0x9dc   :  { %3431 = vmatpush.msrb.mxu0 %v3367_v43  ;;  %3472 = vmatpush.msrb.mxu1 %v3368_v26 }
 0x9dd   :  { %3513 = vmatpush.msrb.mxu2 %v3369_v39  ;;  %3554 = vmatpush.msrb.mxu3 %v3370_v11 }
 0x9de   :  { %3432 = vmatpush.msrb.mxu0 %v3363_v12  ;;  %3473 = vmatpush.msrb.mxu1 %v3364_v33 }
 0x9df   :  { %3514 = vmatpush.msrb.mxu2 %v3365_v41  ;;  %3555 = vmatpush.msrb.mxu3 %v3366_v63 }
 0x9e0   :  { %3433 = vmatpush.msrb.mxu0 %v3359_v5  ;;  %3474 = vmatpush.msrb.mxu1 %v3360_v30  ;;  %v10102_v30 = vld [vmem:[#allocation40_spill] sm:$0xff] }
 0x9e1   :  { %3515 = vmatpush.msrb.mxu2 %v3361_v48  ;;  %3556 = vmatpush.msrb.mxu3 %v3362_v62  ;;  %v10103_v48 = vld [vmem:[#allocation60_spill] sm:$0xff]  ;;  %v8190_v62 = vld [vmem:[#allocation20 + $0x1e0] sm:$0xff] }
 0x9e2   :  { %3434 = vmatpush.msrb.mxu0 %v3355_v27  ;;  %3475 = vmatpush.msrb.mxu1 %v3356_v13  ;;  %10104 = vst [vmem:[#allocation68_spill] sm:$0xff] %v8190_v62  ;;  %v8192_v27 = vld [vmem:[#allocation20 + $0x1e8] sm:$0xff]  ;;  %v8194_v13 = vld [vmem:[#allocation20 + $0x1c0] sm:$0xff] }
 0x9e3   :  { %3516 = vmatpush.msrb.mxu2 %v3357_v25  ;;  %3557 = vmatpush.msrb.mxu3 %v3358_v18  ;;  %v8198_v25 = vld [vmem:[#allocation20 + $0x1c8] sm:$0xff]  ;;  %v8200_v18 = vld [vmem:[#allocation20 + $0x1f8] sm:$0xff] }
 0x9e4   :  { %3435 = vmatpush.msrb.mxu0 %v3351_v17  ;;  %10105 = vst [vmem:[#allocation54_spill] sm:$0xff] %v8198_v25  ;;  %v8203_v17 = vld [vmem:[#allocation20 + $0x1a0] sm:$0xff] }
 0x9e5   :  { %3517 = vmatpush.msrb.mxu2 %v3353_v28  ;;  %v10108_v28 = vld [vmem:[#allocation75_spill] sm:$0xff] }
 0x9e6   :  { %3436 = vmatpush.msrb.mxu0 %v3347_v0  ;;  %v8238_v0 = vld [vmem:[#allocation20 + $0x188] sm:$0xff] }
 0xa43   :  { %v3045_v8 = vpop.f32.mrf.mxu0  ;;  %v3065_v32 = vpop.f32.mrf.mxu1 }
 0xa44   :  { %v3108_v2 = vadd.f32 %v3045_v8, %v1842_v38  ;;  %v3109_v24 = vadd.f32 %v3065_v32, %v1883_v50  ;;  %v3352_v38 = vld [vmem:[#allocation18 + $0x28] sm:$0xff]  ;;  %v3354_v50 = vld [vmem:[#allocation18 + $0x38] sm:$0xff]  ;;  %v10100_v8 = vld [vmem:[#allocation65_spill] sm:$0xff] }
 0xa45   :  { %v1924_v32 = vadd.f32 %v10100_v8, %v10095_v37  ;;  %3476 = vmatpush.msrb.mxu1 %v3352_v38  ;;  %3558 = vmatpush.msrb.mxu3 %v3354_v50  ;;  %v8207_v38 = vld [vmem:[#allocation20 + $0x1d8] sm:$0xff]  ;;  %v8226_v50 = vld [vmem:[#allocation20 + $0x1f0] sm:$0xff] }
 0xa46   :  { %v5148_v3 = vmul.f32 -1.442695, %v3108_v2  ;;  %v5149_v9 = vmul.f32 -1.442695, %v3109_v24  ;;  %v3349_v2 = vld [vmem:[#allocation18 + $0x10] sm:$0xff]  ;;  %v3350_v24 = vld [vmem:[#allocation18 + $0x18] sm:$0xff] }
 0xa47   :  { %3477 = vmatpush.msrb.mxu1 %v3348_v55  ;;  %3518 = vmatpush.msrb.mxu2 %v3349_v2  ;;  %10107 = vst [vmem:[#allocation80_spill] sm:$0xff] %v8207_v38  ;;  %v8234_v8 = vld [vmem:[#allocation20 + $0x1b0] sm:$0xff]  ;;  %v8246_v55 = vld [vmem:[#allocation20 + $0x168] sm:$0xff] }
 0xa48   :  { %5417 = vpow2.f32 %v5148_v3  ;;  %3559 = vmatpush.msrb.mxu3 %v3350_v24  ;;  %v8250_v2 = vld [vmem:[#allocation20 + $0x190] sm:$0xff]  ;;  %v8256_v24 = vld [vmem:[#allocation20 + $0x178] sm:$0xff] }
 0xa49   :  { %5419 = vpow2.f32 %v5149_v9 }
 0xa4a   :  { %v3105_v61 = vpop.f32.mrf.mxu3  ;;  %v3085_v60 = vpop.f32.mrf.mxu2 }
 0xa4b   :  { %v3111_v53 = vadd.f32 %v3105_v61, %v1965_v44  ;;  %v3110_v16 = vadd.f32 %v3085_v60, %v1924_v32  ;;  %v8205_v60 = vld [vmem:[#allocation20 + $0x1a8] sm:$0xff]  ;;  %v8236_v32 = vld [vmem:[#allocation20 + $0x180] sm:$0xff] }
 0xa4c   :  { %10106 = vst [vmem:[#allocation76_spill] sm:$0xff] %v8205_v60 }
 0xa4d   :  { %v5150_v29 = vmul.f32 -1.442695, %v3111_v53  ;;  %10110 = vst [vmem:[#allocation77_spill] sm:$0xff] %v8236_v32 }
 0xa4e   :  { %v5418_v14 = vpop.eup %5417 }
 0xa4f   :  { %v5420_v40 = vpop.eup %5419  ;;  %v8158_v20 = vadd.f32 1.0, %v5418_v14  ;;  %5421 = vpow2.f32 %v5150_v29 }
 0xa50   :  { %v8160_v35 = vadd.f32 1.0, %v5420_v40 }
 0xa51   :  { %5423 = vrcp.f32 %v8158_v20  ;;  %v3127_v46 = vand.u32 2147483648, %v8158_v20  ;;  %v3125_v1 = vand.u32 2147483647, %v8158_v20  ;;  %vm3121_vm11 = vweird.f32 %v8158_v20 }
 0xa52   :  { %5425 = vrcp.f32 %v8160_v35  ;;  %v3146_v7 = vand.u32 2147483648, %v8160_v35  ;;  %v3144_v44 = vand.u32 2147483647, %v8160_v35  ;;  %vm3140_vm12 = vweird.f32 %v8160_v35 }
 0xa53   :  { %v3128_v4 = vor.u32 1.1754944e-38, %v3127_v46  ;;  %vm3126_vm15 = vcmp.eq.f32.partialorder %v3125_v1, 8.507059e+37  ;;  %v8270_v46 = vld [vmem:[#allocation20 + $0x158] sm:$0xff]  ;;  %v8274_v1 = vld [vmem:[#allocation20 + $0x150] sm:$0xff] }
 0xa54   :  { %v3147_v53 = vor.u32 1.1754944e-38, %v3146_v7  ;;  %vm3145_vm0 = vcmp.eq.f32.partialorder %v3144_v44, 8.507059e+37 }
 0xa55   :  { %v5422_v59 = vpop.eup %5421 }
 0xa56   :  { %v3154_v15 = vadd.f32 1.0, %v5422_v59  ;;  %v8229_v59 = vld [vmem:[#allocation20 + $0x1d0] sm:$0xff] }
 0xa57   :  { %v5424_v19 = vpop.eup %5423 }
 0xa58   :  { %v5426_v45 = vpop.eup %5425  ;;  %v3117_v23 = vmul.f32 %v5424_v19, %v8158_v20  ;;  %5427 = vrcp.f32 %v3154_v15  ;;  %vm3122_vm9 = vweird.f32 %v5424_v19  ;;  %v3166_v33 = vand.u32 2147483648, %v3154_v15 }
 0xa59   :  { %v3136_v3 = vmul.f32 %v5426_v45, %v8160_v35  ;;  %5429 = vtanh.f32 %v3110_v16  ;;  %vm3141_vm10 = vweird.f32 %v5426_v45  ;;  %vm3123_vm13 = vmor %vm3121_vm11, %vm3122_vm9  ;;  %vm3160_vm2 = vweird.f32 %v3154_v15  ;;  %v10111_v16 = vld [vmem:[#allocation29_spill] sm:$0xff] }
 0xa5a   :  { %v3118_v9 = vsub.f32 1.0, %v3117_v23  ;;  %vm3142_vm14 = vmor %vm3140_vm12, %vm3141_vm10  ;;  %v3164_v40 = vand.u32 2147483647, %v3154_v15  ;;  %v3167_v41 = vor.u32 1.1754944e-38, %v3166_v33  ;;  %v10112_v23 = vld [vmem:[#allocation61_spill] sm:$0xff] }
 0xa5b   :  { %v3137_v21 = vsub.f32 1.0, %v3136_v3  ;;  %v1886_v3 = vadd.f32 %v10112_v23, %v10091_v34  ;;  %v8281_v34 = vld [vmem:[#allocation20 + $0x138] sm:$0xff]  ;;  %v8316_v33 = vld [vmem:[#allocation20 + $0xa0] sm:$0xff] }
 0xa5c   :  { %v3119_v52 = vmul.f32 %v5424_v19, %v3118_v9  ;;  %vm3165_vm4 = vcmp.eq.f32.partialorder %v3164_v40, 8.507059e+37  ;;  %v8266_v9 = vld [vmem:[#allocation20 + $0x140] sm:$0xff]  ;;  %10115 = vst [vmem:[#allocation55_spill] sm:$0xff] %v8316_v33  ;;  %v8318_v40 = vld [vmem:[#allocation20 + $0xa8] sm:$0xff] }
 0xa5d   :  { %v3138_v6 = vmul.f32 %v5426_v45, %v3137_v21  ;;  %v8268_v21 = vld [vmem:[#allocation20 + $0x148] sm:$0xff]  ;;  %10116 = vst [vmem:[#allocation69_spill] sm:$0xff] %v8318_v40 }
 0xa5e   :  { %v5428_v42 = vpop.eup %5427  ;;  %v3120_v36 = vadd.f32 %v5424_v19, %v3119_v52 }
 0xa5f   :  { %v3139_v61 = vadd.f32 %v5426_v45, %v3138_v6  ;;  %v3156_v49 = vmul.f32 %v5428_v42, %v3154_v15  ;;  %v5430_v47 = vpop.eup %5429  ;;  %vm3161_vm1 = vweird.f32 %v5428_v42  ;;  %v8248_v15 = vld [vmem:[#allocation20 + $0x198] sm:$0xff] }
 0xa60   :  { %v3124_v57 = vsel %vm3123_vm13, %v5424_v19, %v3120_v36  ;;  %vm3162_vm3 = vmor %vm3160_vm2, %vm3161_vm1  ;;  %v8258_v19 = vld [vmem:[#allocation20 + $0x170] sm:$0xff] }
 0xa61   :  { %v3129_v31 = vsel %vm3126_vm15, %v3128_v4, %v3124_v57  ;;  %v3143_v10 = vsel %vm3142_vm14, %v5426_v45, %v3139_v61  ;;  %v3157_v29 = vsub.f32 1.0, %v3156_v49  ;;  %v1845_v45 = vadd.f32 %v10111_v16, %v10089_v56  ;;  %v8276_v56 = vld [vmem:[#allocation20 + $0x120] sm:$0xff]  ;;  %v8286_v36 = vld [vmem:[#allocation20 + $0x130] sm:$0xff] }
 0xa62   :  { %v3148_v43 = vsel %vm3145_vm0, %v3147_v53, %v3143_v10  ;;  %v3172_v26 = vmul.f32 %v5430_v47, %v3129_v31  ;;  %v8288_v49 = vld [vmem:[#allocation20 + $0x100] sm:$0xff]  ;;  %v8290_v53 = vld [vmem:[#allocation20 + $0x108] sm:$0xff]  ;;  %v8300_v31 = vld [vmem:[#allocation20 + $0x118] sm:$0xff] }
 0xa63   :  { %v3171_v39 = vmul.f32 %v3148_v43, %v8143_v54  ;;  %v3158_v14 = vmul.f32 %v5428_v42, %v3157_v29  ;;  %v10101_v54 = vld [vmem:[#allocation87_spill] sm:$0xff]  ;;  %v8296_v57 = vld [vmem:[#allocation20 + $0xe0] sm:$0xff]  ;;  %v8298_v47 = vld [vmem:[#allocation20 + $0xe8] sm:$0xff] }
 0xa64   :  { %v8303_v10 = vld [vmem:[#allocation20 + $0xc0] sm:$0xff]  ;;  %v8305_v29 = vld [vmem:[#allocation20 + $0xc8] sm:$0xff]  ;;  %v8307_v43 = vld [vmem:[#allocation20 + $0xf8] sm:$0xff] }
 0xa65   :  { %v8175_v11 = vadd.f32 %v3172_v26, %v3171_v39  ;;  %v3159_v12 = vadd.f32 %v5428_v42, %v3158_v14  ;;  %v10113_v26 = vld [vmem:[#allocation83_spill] sm:$0xff]  ;;  %v8313_v14 = vld [vmem:[#allocation20 + $0xd8] sm:$0xff]  ;;  %v8342_v16 = vld [vmem:[#allocation20 + $0x60] sm:$0xff] }
 0xa66   :  { %v1968_v39 = vadd.f32 %v10113_v26, %v10093_v58  ;;  %10114 = vst [vmem:[#allocation81_spill] sm:$0xff] %v8313_v14  ;;  %v8324_v58 = vld [vmem:[#allocation20 + $0xb8] sm:$0xff]  ;;  %v8370_v26 = vld [vmem:[#allocation20 + $0x20] sm:$0xff] }
 0xa67   :  { %5431 = vtanh.f32 %v8175_v11  ;;  %v3163_v20 = vsel %vm3162_vm3, %v5428_v42, %v3159_v12  ;;  %v8278_v42 = vld [vmem:[#allocation20 + $0x128] sm:$0xff]  ;;  %10117 = vst [vmem:[#allocation71_spill] sm:$0xff] %v8324_v58 }
 0xa68   :  { %v3168_v35 = vsel %vm3165_vm4, %v3167_v41, %v3163_v20  ;;  %v8320_v20 = vld [vmem:[#allocation20 + $0x110] sm:$0xff]  ;;  %10122 = vst [vmem:[#allocation63_spill] sm:$0xff] %v8342_v16 }
 0xa69   :  { %10129 = vst [vmem:[#allocation32_spill] sm:$0xff] %v8370_v26 }
 0xa6d   :  { %v5432_v63 = vpop.eup %5431 }
 0xa6e   :  { %v3175_v5 = vmul.f32 %v5432_v63, %v3168_v35  ;;  %v8326_v63 = vld [vmem:[#allocation20 + $0xf0] sm:$0xff]  ;;  %v8330_v35 = vld [vmem:[#allocation20 + $0x80] sm:$0xff] }
 0xa6f   :  { %10118 = vst [vmem:[#allocation78_spill] sm:$0xff] %v8330_v35 }
 0xa70   :  { %3203 = vmatmul.f32.vlgmr.msra.gmra.mxu0 %v3175_v5  ;;  %3223 = vmatmul.f32.vlgmr.msra.gmra.mxu1 %v3175_v5 }
 0xa71   :  { %3243 = vmatmul.f32.vlgmr.msra.gmra.mxu2 %v3175_v5  ;;  %3263 = vmatmul.f32.vlgmr.msra.gmra.mxu3 %v3175_v5 }
 0xa72   :  { %3690 = vmatpush.msra.mxu0 %v8190_v62  ;;  %3710 = vmatpush.msra.mxu1 %v8192_v27 }
 0xa73   :  { %3750 = vmatpush.msra.mxu3 %v8200_v18  ;;  %3730 = vmatpush.msra.mxu2 %v8226_v50 }
 0xa74   :  { %3691 = vmatpush.msra.mxu0 %v8194_v13  ;;  %3711 = vmatpush.msra.mxu1 %v8198_v25 }
 0xa75   :  { %3751 = vmatpush.msra.mxu3 %v8207_v38  ;;  %3731 = vmatpush.msra.mxu2 %v8229_v59 }
 0xa76   :  { %3692 = vmatpush.msra.mxu0 %v8203_v17  ;;  %3712 = vmatpush.msra.mxu1 %v8205_v60 }
 0xa77   :  { %3732 = vmatpush.msra.mxu2 %v8234_v8 }
 0xa78   :  { %3437 = vmatmul.f32.vlgmr.msrb.gmra.mxu0 %v10101_v54  ;;  %3478 = vmatmul.f32.vlgmr.msrb.gmra.mxu1 %v10101_v54 }
 0xa79   :  { %3519 = vmatmul.f32.vlgmr.msrb.gmra.mxu2 %v10101_v54  ;;  %3560 = vmatmul.f32.vlgmr.msrb.gmra.mxu3 %v10101_v54 }
 0xa7a   :  { %3693 = vmatpush.msra.mxu0 %v8236_v32  ;;  %3713 = vmatpush.msra.mxu1 %v8238_v0 }
 0xa7b   :  { %3733 = vmatpush.msra.mxu2 %v8250_v2 }
 0xa7c   :  { %3714 = vmatpush.msra.mxu1 %v8246_v55 }
 0xa7d   :  { %3734 = vmatpush.msra.mxu2 %v8258_v19 }
 0xa7e   :  { %3715 = vmatpush.msra.mxu1 %v8268_v21 }
 0xa7f   :  { %3735 = vmatpush.msra.mxu2 %v8274_v1 }
 0xa80   :  { %3440 = vmatmul.f32.gmra.mxu0 %v10102_v30  ;;  %3481 = vmatmul.f32.gmra.mxu1 %v10102_v30 }
 0xa81   :  { %3522 = vmatmul.f32.gmra.mxu2 %v10102_v30  ;;  %3563 = vmatmul.f32.gmra.mxu3 %v10102_v30  ;;  %v8336_v30 = vld [vmem:[#allocation20 + $0x98] sm:$0xff] }
 0xa82   :  { %3716 = vmatpush.msra.mxu1 %v8278_v42  ;;  %3736 = vmatpush.msra.mxu2 %v8286_v36  ;;  %10120 = vst [vmem:[#allocation59_spill] sm:$0xff] %v8336_v30 }
 0xa84   :  { %3717 = vmatpush.msra.mxu1 %v8290_v53  ;;  %3737 = vmatpush.msra.mxu2 %v8320_v20 }
 0xa86   :  { %3718 = vmatpush.msra.mxu1 %v8298_v47  ;;  %3738 = vmatpush.msra.mxu2 %v8326_v63 }
 0xa88   :  { %3443 = vmatmul.f32.gmra.mxu0 %v10103_v48  ;;  %3484 = vmatmul.f32.gmra.mxu1 %v10103_v48 }
 0xa89   :  { %3525 = vmatmul.f32.gmra.mxu2 %v10103_v48  ;;  %3566 = vmatmul.f32.gmra.mxu3 %v10103_v48  ;;  %v8338_v48 = vld [vmem:[#allocation20 + $0xd0] sm:$0xff] }
 0xa8a   :  { %3719 = vmatpush.msra.mxu1 %v8305_v29  ;;  %10121 = vst [vmem:[#allocation73_spill] sm:$0xff] %v8338_v48  ;;  %3739 = vmatpush.msra.mxu2 %v8338_v48 }
 0xa8c   :  { %3720 = vmatpush.msra.mxu1 %v8318_v40 }
 0xa90   :  { %3446 = vmatmul.f32.gmra.mxu0 %v10108_v28  ;;  %3487 = vmatmul.f32.gmra.mxu1 %v10108_v28 }
 0xa91   :  { %3528 = vmatmul.f32.gmra.mxu2 %v10108_v28  ;;  %3569 = vmatmul.f32.gmra.mxu3 %v10108_v28 }
 0xa98   :  { %3449 = vmatmul.f32.gmra.mxu0 %v8064_v51  ;;  %3490 = vmatmul.f32.gmra.mxu1 %v8064_v51 }
 0xa99   :  { %3531 = vmatmul.f32.gmra.mxu2 %v8064_v51  ;;  %3572 = vmatmul.f32.gmra.mxu3 %v8064_v51  ;;  %v8232_v51 = vld [vmem:[#allocation20 + $0x1b8] sm:$0xff] }
 0xa9a   :  { %10109 = vst [vmem:[#allocation66_spill] sm:$0xff] %v8232_v51  ;;  %3752 = vmatpush.msra.mxu3 %v8232_v51 }
 0xa9c   :  { %3753 = vmatpush.msra.mxu3 %v8248_v15 }
 0xa9e   :  { %3754 = vmatpush.msra.mxu3 %v8256_v24 }
 0xaa0   :  { %3452 = vmatmul.f32.gmra.mxu0 %v8146_v22  ;;  %3493 = vmatmul.f32.gmra.mxu1 %v8146_v22 }
 0xaa1   :  { %3534 = vmatmul.f32.gmra.mxu2 %v8146_v22  ;;  %3575 = vmatmul.f32.gmra.mxu3 %v8146_v22  ;;  %v8241_v22 = vld [vmem:[#allocation20 + $0x160] sm:$0xff] }
 0xaa2   :  { %3694 = vmatpush.msra.mxu0 %v8241_v22  ;;  %3755 = vmatpush.msra.mxu3 %v8270_v46 }
 0xaa4   :  { %3695 = vmatpush.msra.mxu0 %v8266_v9  ;;  %3756 = vmatpush.msra.mxu3 %v8281_v34 }
 0xaa6   :  { %3696 = vmatpush.msra.mxu0 %v8276_v56  ;;  %3757 = vmatpush.msra.mxu3 %v8300_v31 }
 0xaa8   :  { %3455 = vmatmul.f32.gmra.mxu0 %v3175_v5  ;;  %3496 = vmatmul.f32.gmra.mxu1 %v3175_v5 }
 0xaa9   :  { %3537 = vmatmul.f32.gmra.mxu2 %v3175_v5  ;;  %3578 = vmatmul.f32.gmra.mxu3 %v3175_v5  ;;  %v8332_v5 = vld [vmem:[#allocation20 + $0x88] sm:$0xff] }
 0xaaa   :  { %3697 = vmatpush.msra.mxu0 %v8288_v49  ;;  %3758 = vmatpush.msra.mxu3 %v8307_v43  ;;  %10119 = vst [vmem:[#allocation82_spill] sm:$0xff] %v8332_v5 }
 0xaab   :  { %3721 = vmatpush.msra.mxu1 %v8332_v5 }
 0xaac   :  { %3698 = vmatpush.msra.mxu0 %v8296_v57  ;;  %3759 = vmatpush.msra.mxu3 %v8313_v14 }
 0xaae   :  { %3699 = vmatpush.msra.mxu0 %v8303_v10  ;;  %3760 = vmatpush.msra.mxu3 %v8324_v58 }
 0xab0   :  { %3700 = vmatpush.msra.mxu0 %v8316_v33  ;;  %3761 = vmatpush.msra.mxu3 %v8336_v30  ;;  %v8394_v30 = vld [vmem:[#allocation20 + $0x18] sm:$0xff] }
 0xab1   :  { %10138 = vst [vmem:[#allocation35_spill] sm:$0xff] %v8394_v30 }
 0xab2   :  { %3701 = vmatpush.msra.mxu0 %v8330_v35 }
 0xab4   :  { %3702 = vmatpush.msra.mxu0 %v8342_v16 }
 0xaed   :  { %v3204_v7 = vpop.f32.mrf.mxu0  ;;  %v3224_v52 = vpop.f32.mrf.mxu1 }
 0xaee   :  { %v3267_v6 = vadd.f32 %v3204_v7, %v1845_v45  ;;  %v3268_v44 = vadd.f32 %v3224_v52, %v1886_v3  ;;  %v8344_v45 = vld [vmem:[#allocation20 + $0x68] sm:$0xff]  ;;  %v8350_v7 = vld [vmem:[#allocation20 + $0xb0] sm:$0xff]  ;;  %v8352_v52 = vld [vmem:[#allocation20 + $0x78] sm:$0xff] }
 0xaef   :  { %10123 = vst [vmem:[#allocation43_spill] sm:$0xff] %v8344_v45  ;;  %3722 = vmatpush.msra.mxu1 %v8344_v45  ;;  %3740 = vmatpush.msra.mxu2 %v8350_v7  ;;  %v10135_v45 = vld [vmem:[#allocation85_spill] sm:$0xff] }
 0xaf0   :  { %v5151_v4 = vmul.f32 -1.442695, %v3267_v6  ;;  %v5152_v61 = vmul.f32 -1.442695, %v3268_v44  ;;  %10124 = vst [vmem:[#allocation44_spill] sm:$0xff] %v8350_v7  ;;  %v8358_v44 = vld [vmem:[#allocation20 + $0x40] sm:$0xff]  ;;  %3762 = vmatpush.msra.mxu3 %v8352_v52  ;;  %v1927_v16 = vadd.f32 %v10135_v45, %v10095_v37 }
 0xaf1   :  { %10125 = vst [vmem:[#allocation47_spill] sm:$0xff] %v8352_v52  ;;  %3703 = vmatpush.msra.mxu0 %v8358_v44  ;;  %v8402_v37 = vld [vmem:[#allocation20 + $0x30] sm:$0xff] }
 0xaf2   :  { %5433 = vpow2.f32 %v5151_v4  ;;  %10126 = vst [vmem:[#allocation37_spill] sm:$0xff] %v8358_v44  ;;  %v8360_v4 = vld [vmem:[#allocation20 + $0x48] sm:$0xff]  ;;  %v8392_v44 = vld [vmem:[#allocation20 + $0x38] sm:$0xff] }
 0xaf3   :  { %5435 = vpow2.f32 %v5152_v61  ;;  %10127 = vst [vmem:[#allocation30_spill] sm:$0xff] %v8360_v4  ;;  %v8365_v61 = vld [vmem:[#allocation20 + $0x90] sm:$0xff]  ;;  %3723 = vmatpush.msra.mxu1 %v8360_v4  ;;  %3704 = vmatpush.msra.mxu0 %v8370_v26 }
 0xaf4   :  { %v3264_v12 = vpop.f32.mrf.mxu3  ;;  %10128 = vst [vmem:[#allocation51_spill] sm:$0xff] %v8365_v61  ;;  %3741 = vmatpush.msra.mxu2 %v8365_v61  ;;  %v8390_v4 = vld [vmem:[#allocation20 + $0x50] sm:$0xff] }
 0xaf5   :  { %v3270_v41 = vadd.f32 %v3264_v12, %v1968_v39  ;;  %v8372_v39 = vld [vmem:[#allocation20 + $0x28] sm:$0xff]  ;;  %v8374_v12 = vld [vmem:[#allocation20 + $0x58] sm:$0xff]  ;;  %10136 = vst [vmem:[#allocation41_spill] sm:$0xff] %v8390_v4 }
 0xaf6   :  { %10130 = vst [vmem:[#allocation36_spill] sm:$0xff] %v8372_v39  ;;  %3763 = vmatpush.msra.mxu3 %v8374_v12  ;;  %3724 = vmatpush.msra.mxu1 %v8372_v39 }
 0xaf7   :  { %v5153_v54 = vmul.f32 -1.442695, %v3270_v41  ;;  %10131 = vst [vmem:[#allocation50_spill] sm:$0xff] %v8374_v12  ;;  %v8378_v41 = vld [vmem:[#allocation20 + $0x70] sm:$0xff] }
 0xaf8   :  { %v5434_v28 = vpop.eup %5433  ;;  %10132 = vst [vmem:[#allocation42_spill] sm:$0xff] %v8378_v41  ;;  %3742 = vmatpush.msra.mxu2 %v8378_v41  ;;  %3764 = vmatpush.msra.mxu3 %v8392_v44 }
 0xaf9   :  { %v5436_v23 = vpop.eup %5435  ;;  %v8346_v3 = vadd.f32 1.0, %v5434_v28  ;;  %5437 = vpow2.f32 %v5153_v54  ;;  %v3244_v54 = vpop.f32.mrf.mxu2  ;;  %v8382_v28 = vld [vmem:[#allocation20] sm:$0xff]  ;;  %10137 = vst [vmem:[#allocation46_spill] sm:$0xff] %v8392_v44  ;;  %v8409_v44 = vld [vmem:[#allocation20 + $0x10] sm:$0xff] }
 0xafa   :  { %v8354_v6 = vadd.f32 1.0, %v5436_v23  ;;  %10133 = vst [vmem:[#allocation34_spill] sm:$0xff] %v8382_v28  ;;  %v8384_v23 = vld [vmem:[#allocation20 + $0x8] sm:$0xff]  ;;  %v3269_v5 = vadd.f32 %v3244_v54, %v1927_v16  ;;  %3705 = vmatpush.msra.mxu0 %v8382_v28  ;;  %3743 = vmatpush.msra.mxu2 %v8390_v4 }
 0xafb   :  { %5439 = vrcp.f32 %v8346_v3  ;;  %10134 = vst [vmem:[#allocation48_spill] sm:$0xff] %v8384_v23  ;;  %3725 = vmatpush.msra.mxu1 %v8384_v23  ;;  %3765 = vmatpush.msra.mxu3 %v8394_v30  ;;  %v3286_v23 = vand.u32 2147483648, %v8346_v3  ;;  %vm3280_vm7 = vweird.f32 %v8346_v3 }
 0xafc   :  { %5441 = vrcp.f32 %v8354_v6  ;;  %10139 = vst [vmem:[#allocation45_spill] sm:$0xff] %v8402_v37  ;;  %3848 = vmatpush.msrb.mxu0 %v8190_v62  ;;  %3744 = vmatpush.msra.mxu2 %v8402_v37  ;;  %v3305_v30 = vand.u32 2147483648, %v8354_v6  ;;  %v3284_v62 = vand.u32 2147483647, %v8346_v3  ;;  %vm3299_vm8 = vweird.f32 %v8354_v6 }
 0xafd   :  { %10140 = vst [vmem:[#allocation39_spill] sm:$0xff] %v8409_v44  ;;  %3868 = vmatpush.msrb.mxu1 %v8192_v27  ;;  %3908 = vmatpush.msrb.mxu3 %v8200_v18 }
 0xafe   :  { %3849 = vmatpush.msrb.mxu0 %v8194_v13  ;;  %3745 = vmatpush.msra.mxu2 %v8409_v44  ;;  %vm3285_vm11 = vcmp.eq.f32.partialorder %v3284_v62, 8.507059e+37 }
 0xaff   :  { %v5438_v52 = vpop.eup %5437  ;;  %3869 = vmatpush.msrb.mxu1 %v8198_v25  ;;  %3909 = vmatpush.msrb.mxu3 %v8207_v38 }
 0xb00   :  { %v8396_v61 = vadd.f32 1.0, %v5438_v52  ;;  %3888 = vmatpush.msrb.mxu2 %v8226_v50  ;;  %3850 = vmatpush.msrb.mxu0 %v8203_v17 }
 0xb01   :  { %v5440_v12 = vpop.eup %5439  ;;  %3870 = vmatpush.msrb.mxu1 %v8205_v60  ;;  %3910 = vmatpush.msrb.mxu3 %v8232_v51 }
 0xb02   :  { %v5442_v45 = vpop.eup %5441  ;;  %v3276_v39 = vmul.f32 %v5440_v12, %v8346_v3  ;;  %5443 = vrcp.f32 %v8396_v61  ;;  %vm3281_vm5 = vweird.f32 %v5440_v12  ;;  %3889 = vmatpush.msrb.mxu2 %v8229_v59  ;;  %3851 = vmatpush.msrb.mxu0 %v8236_v32  ;;  %v3306_v3 = vor.u32 1.1754944e-38, %v3305_v30 }
 0xb03   :  { %v3295_v52 = vmul.f32 %v5442_v45, %v8354_v6  ;;  %5445 = vtanh.f32 %v3269_v5  ;;  %vm3300_vm6 = vweird.f32 %v5442_v45  ;;  %vm3282_vm9 = vmor %vm3280_vm7, %vm3281_vm5  ;;  %3871 = vmatpush.msrb.mxu1 %v8238_v0  ;;  %3911 = vmatpush.msrb.mxu3 %v8248_v15  ;;  %vm3319_vm14 = vweird.f32 %v8396_v61 }
 0xb04   :  { %v3277_v16 = vsub.f32 1.0, %v3276_v39  ;;  %vm3301_vm10 = vmor %vm3299_vm8, %vm3300_vm6  ;;  %3890 = vmatpush.msrb.mxu2 %v8234_v8  ;;  %3852 = vmatpush.msrb.mxu0 %v8241_v22 }
 0xb05   :  { %v3296_v54 = vsub.f32 1.0, %v3295_v52  ;;  %v3303_v52 = vand.u32 2147483647, %v8354_v6  ;;  %3872 = vmatpush.msrb.mxu1 %v8246_v55  ;;  %3912 = vmatpush.msrb.mxu3 %v8256_v24 }
 0xb06   :  { %v3278_v28 = vmul.f32 %v5440_v12, %v3277_v16  ;;  %v3287_v16 = vor.u32 1.1754944e-38, %v3286_v23  ;;  %3891 = vmatpush.msrb.mxu2 %v8250_v2  ;;  %3853 = vmatpush.msrb.mxu0 %v8266_v9 }
 0xb07   :  { %v3297_v39 = vmul.f32 %v5442_v45, %v3296_v54  ;;  %vm3304_vm12 = vcmp.eq.f32.partialorder %v3303_v52, 8.507059e+37  ;;  %3873 = vmatpush.msrb.mxu1 %v8268_v21  ;;  %3913 = vmatpush.msrb.mxu3 %v8270_v46  ;;  %v10141_v52 = vld [vmem:[#allocation82_spill] sm:$0xff] }
 0xb08   :  { %v8425_v5 = vpop.eup %5443  ;;  %v3279_v25 = vadd.f32 %v5440_v12, %v3278_v28  ;;  %3892 = vmatpush.msrb.mxu2 %v8258_v19  ;;  %3854 = vmatpush.msrb.mxu0 %v8276_v56 }
 0xb09   :  { %v3298_v54 = vadd.f32 %v5442_v45, %v3297_v39  ;;  %v3315_v38 = vmul.f32 %v8425_v5, %v8396_v61  ;;  %v5446_v6 = vpop.eup %5445  ;;  %vm3320_vm13 = vweird.f32 %v8425_v5  ;;  %3874 = vmatpush.msrb.mxu1 %v8278_v42  ;;  %3914 = vmatpush.msrb.mxu3 %v8281_v34 }
 0xb0a   :  { %v3283_v28 = vsel %vm3282_vm9, %v5440_v12, %v3279_v25  ;;  %3893 = vmatpush.msrb.mxu2 %v8274_v1  ;;  %3855 = vmatpush.msrb.mxu0 %v8288_v49  ;;  %vm3321_vm15 = vmor %vm3319_vm14, %vm3320_vm13 }
 0xb0b   :  { %v3288_v51 = vsel %vm3285_vm11, %v3287_v16, %v3283_v28  ;;  %v3302_v23 = vsel %vm3301_vm10, %v5442_v45, %v3298_v54  ;;  %v3316_v39 = vsub.f32 1.0, %v3315_v38  ;;  %3875 = vmatpush.msrb.mxu1 %v8290_v53  ;;  %3915 = vmatpush.msrb.mxu3 %v8300_v31  ;;  %v10143_v16 = vld [vmem:[#allocation51_spill] sm:$0xff] }
 0xb0c   :  { %v3307_v60 = vsel %vm3304_vm12, %v3306_v3, %v3302_v23  ;;  %v3331_v32 = vmul.f32 %v5446_v6, %v3288_v51  ;;  %3894 = vmatpush.msrb.mxu2 %v8286_v36  ;;  %3856 = vmatpush.msrb.mxu0 %v8296_v57  ;;  %v10144_v54 = vld [vmem:[#allocation63_spill] sm:$0xff]  ;;  %v10147_v6 = vld [vmem:[#allocation37_spill] sm:$0xff]  ;;  %v10148_v23 = vld [vmem:[#allocation30_spill] sm:$0xff] }
 0xb0d   :  { %v3330_v62 = vmul.f32 %v3307_v60, %v8175_v11  ;;  %v3317_v25 = vmul.f32 %v8425_v5, %v3316_v39  ;;  %v3325_v11 = vand.u32 2147483648, %v8396_v61  ;;  %v3323_v60 = vand.u32 2147483647, %v8396_v61  ;;  %3876 = vmatpush.msrb.mxu1 %v8298_v47  ;;  %3916 = vmatpush.msrb.mxu3 %v8307_v43  ;;  %v10145_v3 = vld [vmem:[#allocation43_spill] sm:$0xff]  ;;  %v10149_v39 = vld [vmem:[#allocation50_spill] sm:$0xff] }
 0xb0e   :  { %3895 = vmatpush.msrb.mxu2 %v8320_v20  ;;  %3857 = vmatpush.msrb.mxu0 %v8303_v10  ;;  %v10146_v28 = vld [vmem:[#allocation47_spill] sm:$0xff] }
 0xb0f   :  { %v3332_v38 = vadd.f32 %v3331_v32, %v3330_v62  ;;  %v3318_v51 = vadd.f32 %v8425_v5, %v3317_v25  ;;  %v3326_v30 = vor.u32 1.1754944e-38, %v3325_v11  ;;  %vm3324_vm0 = vcmp.eq.f32.partialorder %v3323_v60, 8.507059e+37  ;;  %3877 = vmatpush.msrb.mxu1 %v8305_v29  ;;  %3917 = vmatpush.msrb.mxu3 %v8313_v14  ;;  %v10151_v25 = vld [vmem:[#allocation36_spill] sm:$0xff]  ;;  %v10155_v60 = vld [vmem:[#allocation35_spill] sm:$0xff] }
 0xb10   :  { %3896 = vmatpush.msrb.mxu2 %v8326_v63  ;;  %3858 = vmatpush.msrb.mxu0 %v8316_v33  ;;  %v10150_v62 = vmov 0.0   ;;  %v10154_v11 = vld [vmem:[#allocation48_spill] sm:$0xff] }
 0xb11   :  { %5447 = vtanh.f32 %v3332_v38  ;;  %v3322_v32 = vsel %vm3321_vm15, %v8425_v5, %v3318_v51  ;;  %3878 = vmatpush.msrb.mxu1 %v8318_v40  ;;  %3918 = vmatpush.msrb.mxu3 %v8324_v58  ;;  %v10142_v5 = vld [vmem:[#allocation59_spill] sm:$0xff]  ;;  %v10152_v38 = vld [vmem:[#allocation46_spill] sm:$0xff] }
 0xb12   :  { %v3327_v12 = vsel %vm3324_vm0, %v3326_v30, %v3322_v32  ;;  %3897 = vmatpush.msrb.mxu2 %v8338_v48  ;;  %3859 = vmatpush.msrb.mxu0 %v8330_v35  ;;  %v10153_v51 = vld [vmem:[#allocation34_spill] sm:$0xff]  ;;  %v10156_v32 = vld [vmem:[#allocation68_spill] sm:$0xff] }
 0xb13   :  { %3879 = vmatpush.msrb.mxu1 %v10141_v52  ;;  %3919 = vmatpush.msrb.mxu3 %v10142_v5  ;;  %v10157_v30 = vld [vmem:[#allocation54_spill] sm:$0xff] }
 0xb14   :  { %3898 = vmatpush.msrb.mxu2 %v8350_v7  ;;  %3860 = vmatpush.msrb.mxu0 %v10144_v54 }
 0xb15   :  { %3880 = vmatpush.msrb.mxu1 %v10145_v3  ;;  %3920 = vmatpush.msrb.mxu3 %v10146_v28 }
 0xb16   :  { %3899 = vmatpush.msrb.mxu2 %v10143_v16  ;;  %3861 = vmatpush.msrb.mxu0 %v10147_v6 }
 0xb17   :  { %v5448_v61 = vpop.eup %5447  ;;  %3881 = vmatpush.msrb.mxu1 %v10148_v23  ;;  %3921 = vmatpush.msrb.mxu3 %v10149_v39 }
 0xb18   :  { %v3334_v45 = vmul.f32 %v5448_v61, %v3327_v12  ;;  %3900 = vmatpush.msrb.mxu2 %v8378_v41  ;;  %3862 = vmatpush.msrb.mxu0 %v8370_v26  ;;  %v10158_v61 = vld [vmem:[#allocation80_spill] sm:$0xff] }
 0xb19   :  { %3882 = vmatpush.msrb.mxu1 %v10151_v25  ;;  %3922 = vmatpush.msrb.mxu3 %v10152_v38  ;;  %v10159_v12 = vld [vmem:[#allocation76_spill] sm:$0xff] }
 0xb1a   :  { %3458 = vmatmul.f32.gmra.mxu0 %v3334_v45  ;;  %3499 = vmatmul.f32.gmra.mxu1 %v3334_v45 }
 0xb1b   :  { %3540 = vmatmul.f32.gmra.mxu2 %v3334_v45  ;;  %3581 = vmatmul.f32.gmra.mxu3 %v3334_v45  ;;  %v10160_v45 = vld [vmem:[#allocation66_spill] sm:$0xff] }
 0xb1c   :  { %3901 = vmatpush.msrb.mxu2 %v8390_v4  ;;  %3863 = vmatpush.msrb.mxu0 %v10153_v51 }
 0xb1d   :  { %3883 = vmatpush.msrb.mxu1 %v10154_v11  ;;  %3923 = vmatpush.msrb.mxu3 %v10155_v60 }
 0xb1e   :  { %3902 = vmatpush.msrb.mxu2 %v8402_v37 }
 0xb20   :  { %3903 = vmatpush.msrb.mxu2 %v8409_v44 }
 0xb22   :  { %3706 = vmatmul.f32.vlgmr.msra.gmra.mxu0 %v10150_v62  ;;  %3726 = vmatmul.f32.vlgmr.msra.gmra.mxu1 %v10150_v62 }
 0xb23   :  { %3746 = vmatmul.f32.vlgmr.msra.gmra.mxu2 %v10150_v62  ;;  %3766 = vmatmul.f32.vlgmr.msra.gmra.mxu3 %v10150_v62  ;;  %v10161_v62 = vld [vmem:[#allocation77_spill] sm:$0xff] }
 0xb24   :  { %4007 = vmatpush.msra.mxu0 %v10156_v32  ;;  %4027 = vmatpush.msra.mxu1 %v8192_v27 }
 0xb25   :  { %4047 = vmatpush.msra.mxu2 %v8226_v50  ;;  %4067 = vmatpush.msra.mxu3 %v8200_v18 }
 0xb26   :  { %4008 = vmatpush.msra.mxu0 %v8194_v13  ;;  %4028 = vmatpush.msra.mxu1 %v10157_v30 }
 0xb27   :  { %4048 = vmatpush.msra.mxu2 %v8229_v59  ;;  %4068 = vmatpush.msra.mxu3 %v10158_v61 }
 0xb28   :  { %4009 = vmatpush.msra.mxu0 %v8203_v17  ;;  %4029 = vmatpush.msra.mxu1 %v10159_v12 }
 0xb29   :  { %4049 = vmatpush.msra.mxu2 %v8234_v8  ;;  %4069 = vmatpush.msra.mxu3 %v10160_v45 }
 0xb2a   :  { %4010 = vmatpush.msra.mxu0 %v10161_v62  ;;  %4030 = vmatpush.msra.mxu1 %v8238_v0 }
 0xb2b   :  { %4050 = vmatpush.msra.mxu2 %v8250_v2  ;;  %4070 = vmatpush.msra.mxu3 %v8248_v15 }
 0xb2c   :  { %4011 = vmatpush.msra.mxu0 %v8241_v22  ;;  %4031 = vmatpush.msra.mxu1 %v8246_v55 }
 0xb2d   :  { %4051 = vmatpush.msra.mxu2 %v8258_v19  ;;  %4071 = vmatpush.msra.mxu3 %v8256_v24 }
 0xb2e   :  { %4012 = vmatpush.msra.mxu0 %v8266_v9  ;;  %4032 = vmatpush.msra.mxu1 %v8268_v21 }
 0xb2f   :  { %4052 = vmatpush.msra.mxu2 %v8274_v1  ;;  %4072 = vmatpush.msra.mxu3 %v8270_v46 }
 0xb30   :  { %4013 = vmatpush.msra.mxu0 %v8276_v56  ;;  %4033 = vmatpush.msra.mxu1 %v8278_v42 }
 0xb31   :  { %4053 = vmatpush.msra.mxu2 %v8286_v36  ;;  %4073 = vmatpush.msra.mxu3 %v8281_v34 }
 0xb32   :  { %4014 = vmatpush.msra.mxu0 %v8288_v49  ;;  %4034 = vmatpush.msra.mxu1 %v8290_v53 }
 0xb33   :  { %4054 = vmatpush.msra.mxu2 %v8320_v20  ;;  %4074 = vmatpush.msra.mxu3 %v8300_v31 }
 0xb34   :  { %4015 = vmatpush.msra.mxu0 %v8296_v57  ;;  %4035 = vmatpush.msra.mxu1 %v8298_v47 }
 0xb35   :  { %4055 = vmatpush.msra.mxu2 %v8326_v63  ;;  %4075 = vmatpush.msra.mxu3 %v8307_v43 }
 0xb36   :  { %4016 = vmatpush.msra.mxu0 %v8303_v10  ;;  %4036 = vmatpush.msra.mxu1 %v8305_v29 }
 0xb37   :  { %4056 = vmatpush.msra.mxu2 %v8338_v48  ;;  %4076 = vmatpush.msra.mxu3 %v8313_v14 }
 0xb38   :  { %4017 = vmatpush.msra.mxu0 %v8316_v33  ;;  %4037 = vmatpush.msra.mxu1 %v8318_v40 }
 0xb39   :  { %4057 = vmatpush.msra.mxu2 %v8350_v7  ;;  %4077 = vmatpush.msra.mxu3 %v8324_v58 }
 0xb3a   :  { %4018 = vmatpush.msra.mxu0 %v8330_v35  ;;  %4038 = vmatpush.msra.mxu1 %v10141_v52 }
 0xb3b   :  { %4058 = vmatpush.msra.mxu2 %v10143_v16  ;;  %4078 = vmatpush.msra.mxu3 %v10142_v5 }
 0xb3c   :  { %4019 = vmatpush.msra.mxu0 %v10144_v54  ;;  %4039 = vmatpush.msra.mxu1 %v10145_v3 }
 0xb3d   :  { %4059 = vmatpush.msra.mxu2 %v8378_v41  ;;  %4079 = vmatpush.msra.mxu3 %v10146_v28 }
 0xb3e   :  { %4020 = vmatpush.msra.mxu0 %v10147_v6  ;;  %4040 = vmatpush.msra.mxu1 %v10148_v23  ;;  %v3438_v23 = vpop.f32.mrf.mxu0  ;;  %v3561_v6 = vpop.f32.mrf.mxu3 }
 0xb3f   :  { %4060 = vmatpush.msra.mxu2 %v8390_v4  ;;  %4080 = vmatpush.msra.mxu3 %v10149_v39  ;;  %v3479_v4 = vpop.f32.mrf.mxu1 }
 0xb40   :  { %4021 = vmatpush.msra.mxu0 %v8370_v26  ;;  %4041 = vmatpush.msra.mxu1 %v10151_v25  ;;  %v3520_v25 = vpop.f32.mrf.mxu2 }
 0xb41   :  { %4061 = vmatpush.msra.mxu2 %v8402_v37  ;;  %4081 = vmatpush.msra.mxu3 %v10152_v38 }
 0xb42   :  { %4022 = vmatpush.msra.mxu0 %v10153_v51  ;;  %4042 = vmatpush.msra.mxu1 %v10154_v11 }
 0xb43   :  { %4062 = vmatpush.msra.mxu2 %v8409_v44  ;;  %4082 = vmatpush.msra.mxu3 %v10155_v60 }
 0xb46   :  { %v8565_v39 = vpop.f32.mrf.mxu0  ;;  %v8569_v28 = vpop.f32.mrf.mxu3 }
 0xb47   :  { %10162 = vst [vmem:[#allocation38_spill] sm:$0xff] %v8565_v39  ;;  %v8567_v26 = vpop.f32.mrf.mxu1 }
 0xb48   :  { %10163 = vst [vmem:[#allocation57_spill] sm:$0xff] %v8567_v26  ;;  %v8575_v51 = vpop.f32.mrf.mxu2 }
 0xb49   :  { %10164 = vst [vmem:[#allocation52_spill] sm:$0xff] %v8569_v28 }
 0xb4a   :  { %10167 = vst [vmem:[#allocation67_spill] sm:$0xff] %v8575_v51 }
 0xb4e   :  { %v8571_v37 = vpop.f32.mrf.mxu0  ;;  %v8577_v11 = vpop.f32.mrf.mxu3 }
 0xb4f   :  { %10165 = vst [vmem:[#allocation31_spill] sm:$0xff] %v8571_v37  ;;  %v8573_v38 = vpop.f32.mrf.mxu1 }
 0xb50   :  { %10166 = vst [vmem:[#allocation56_spill] sm:$0xff] %v8573_v38  ;;  %v8583_v41 = vpop.f32.mrf.mxu2 }
 0xb51   :  { %10168 = vst [vmem:[#allocation64_spill] sm:$0xff] %v8577_v11 }
 0xb52   :  { %10171 = vst [vmem:[#allocation53_spill] sm:$0xff] %v8583_v41 }
 0xb56   :  { %v8579_v44 = vpop.f32.mrf.mxu0  ;;  %v8585_v39 = vpop.f32.mrf.mxu3 }
 0xb57   :  { %10169 = vst [vmem:[#allocation70_spill] sm:$0xff] %v8579_v44  ;;  %v8581_v60 = vpop.f32.mrf.mxu1 }
 0xb58   :  { %10170 = vst [vmem:[#allocation33_spill] sm:$0xff] %v8581_v60  ;;  %v8591_v28 = vpop.f32.mrf.mxu2 }
 0xb59   :  { %10172 = vst [vmem:[#allocation49_spill] sm:$0xff] %v8585_v39 }
 0xb5a   :  { %10175 = vst [vmem:[#allocation86_spill] sm:$0xff] %v8591_v28 }
 0xb5e   :  { %v8587_v26 = vpop.f32.mrf.mxu0  ;;  %v8593_v37 = vpop.f32.mrf.mxu3 }
 0xb5f   :  { %10173 = vst [vmem:[#allocation84_spill] sm:$0xff] %v8587_v26  ;;  %v8589_v3 = vpop.f32.mrf.mxu1 }
 0xb60   :  { %10174 = vst [vmem:[#allocation58_spill] sm:$0xff] %v8589_v3  ;;  %v8599_v11 = vpop.f32.mrf.mxu2 }
 0xb61   :  { %10176 = vst [vmem:[#allocation72_spill] sm:$0xff] %v8593_v37  ;;  %v3411_v37 = vld [vmem:[%s9238_s9] sm:$0xf] }
 0xb62   :  { %10179 = vst [vmem:[#allocation62_spill] sm:$0xff] %v8599_v11  ;;  %v8620_v11 = vperm.slane %v3411_v37, 1  ;;  %v8628_v16 = vperm.slane %v3411_v37, 3 }
 0xb64   :  { %10188 = vst [vmem:[#allocation85_spill] sm:$0xff] %v8620_v11  ;;  %v3562_v52 = vadd.f32 %v3561_v6, %v8628_v16 }
 0xb65   :  { %10191 = vst [vmem:[#allocation80_spill] sm:$0xff] %v8628_v16 }
 0xb66   :  { %v8595_v38 = vpop.f32.mrf.mxu0  ;;  %v8601_v44 = vpop.f32.mrf.mxu3 }
 0xb67   :  { %10177 = vst [vmem:[#allocation74_spill] sm:$0xff] %v8595_v38  ;;  %v8597_v51 = vpop.f32.mrf.mxu1 }
 0xb68   :  { %10178 = vst [vmem:[#allocation79_spill] sm:$0xff] %v8597_v51  ;;  %v8607_v39 = vpop.f32.mrf.mxu2  ;;  %v8618_v51 = vperm.slane %v3411_v37, 0 }
 0xb69   :  { %10180 = vst [vmem:[#allocation65_spill] sm:$0xff] %v8601_v44 }
 0xb6a   :  { %10183 = vst [vmem:[#allocation60_spill] sm:$0xff] %v8607_v39 }
 0xb6b   :  { %10187 = vst [vmem:[#allocation83_spill] sm:$0xff] %v8618_v51 }
 0xb6e   :  { %v8603_v60 = vpop.f32.mrf.mxu0  ;;  %v8609_v26 = vpop.f32.mrf.mxu3 }
 0xb6f   :  { %10181 = vst [vmem:[#allocation87_spill] sm:$0xff] %v8603_v60  ;;  %v8605_v41 = vpop.f32.mrf.mxu1  ;;  %v3439_v60 = vadd.f32 %v3438_v23, %v8618_v51 }
 0xb70   :  { %10182 = vst [vmem:[#allocation40_spill] sm:$0xff] %v8605_v41  ;;  %v3480_v41 = vadd.f32 %v3479_v4, %v8620_v11  ;;  %v8624_v44 = vpop.f32.mrf.mxu2 }
 0xb71   :  { %10184 = vst [vmem:[#allocation75_spill] sm:$0xff] %v8609_v26 }
 0xb72   :  { %10189 = vst [vmem:[#allocation68_spill] sm:$0xff] %v8624_v44 }
 0xb97   :  { %v8614_v3 = vpop.f32.mrf.mxu0  ;;  %v8616_v38 = vpop.f32.mrf.mxu1 }
 0xb98   :  { %10185 = vst [vmem:[#allocation29_spill] sm:$0xff] %v8614_v3 }
 0xb99   :  { %10186 = vst [vmem:[#allocation61_spill] sm:$0xff] %v8616_v38 }
 0xb9e   :  { %v8626_v39 = vpop.f32.mrf.mxu3  ;;  %v8631_v35 = vpop.f32.mrf.mxu2 }
 0xb9f   :  { %10190 = vst [vmem:[#allocation54_spill] sm:$0xff] %v8626_v39  ;;  %v3707_v26 = vpop.f32.mrf.mxu0  ;;  %v3727_v28 = vpop.f32.mrf.mxu1 }
 0xba0   :  { %v3770_v54 = vadd.f32 %v3707_v26, %v3439_v60  ;;  %v3771_v5 = vadd.f32 %v3727_v28, %v3480_v41  ;;  %10192 = vst [vmem:[#allocation76_spill] sm:$0xff] %v8631_v35  ;;  %v8633_v26 = vperm.slane %v3411_v37, 2 }
 0xba2   :  { %v5154_v3 = vmul.f32 -1.442695, %v3770_v54  ;;  %v5155_v38 = vmul.f32 -1.442695, %v3771_v5  ;;  %10193 = vst [vmem:[#allocation66_spill] sm:$0xff] %v8633_v26  ;;  %v3521_v54 = vadd.f32 %v3520_v25, %v8633_v26 }
 0xba4   :  { %5449 = vpow2.f32 %v5154_v3 }
 0xba5   :  { %5451 = vpow2.f32 %v5155_v38 }
 0xba6   :  { %v3767_v23 = vpop.f32.mrf.mxu3  ;;  %v3747_v41 = vpop.f32.mrf.mxu2 }
 0xba7   :  { %v3773_v4 = vadd.f32 %v3767_v23, %v3562_v52  ;;  %v3772_v6 = vadd.f32 %v3747_v41, %v3521_v54 }
 0xba9   :  { %v5156_v11 = vmul.f32 -1.442695, %v3773_v4 }
 0xbaa   :  { %v5450_v44 = vpop.eup %5449 }
 0xbab   :  { %v5452_v51 = vpop.eup %5451  ;;  %v3777_v39 = vadd.f32 1.0, %v5450_v44  ;;  %5453 = vpow2.f32 %v5156_v11 }
 0xbac   :  { %v3796_v58 = vadd.f32 1.0, %v5452_v51 }
 0xbad   :  { %5455 = vrcp.f32 %v3777_v39  ;;  %v3789_v44 = vand.u32 2147483648, %v3777_v39  ;;  %v3787_v11 = vand.u32 2147483647, %v3777_v39  ;;  %vm3783_vm3 = vweird.f32 %v3777_v39 }
 0xbae   :  { %5457 = vrcp.f32 %v3796_v58  ;;  %v3808_v51 = vand.u32 2147483648, %v3796_v58  ;;  %v3806_v16 = vand.u32 2147483647, %v3796_v58  ;;  %vm3802_vm4 = vweird.f32 %v3796_v58 }
 0xbaf   :  { %v3790_v41 = vor.u32 1.1754944e-38, %v3789_v44  ;;  %vm3788_vm6 = vcmp.eq.f32.partialorder %v3787_v11, 8.507059e+37 }
 0xbb0   :  { %v3809_v26 = vor.u32 1.1754944e-38, %v3808_v51  ;;  %vm3807_vm8 = vcmp.eq.f32.partialorder %v3806_v16, 8.507059e+37 }
 0xbb1   :  { %v5454_v5 = vpop.eup %5453 }
 0xbb2   :  { %v3816_v3 = vadd.f32 1.0, %v5454_v5 }
 0xbb3   :  { %v5456_v28 = vpop.eup %5455 }
 0xbb4   :  { %v5458_v38 = vpop.eup %5457  ;;  %v3779_v60 = vmul.f32 %v5456_v28, %v3777_v39  ;;  %5459 = vrcp.f32 %v3816_v3  ;;  %vm3784_vm1 = vweird.f32 %v5456_v28  ;;  %vm3822_vm10 = vweird.f32 %v3816_v3 }
 0xbb5   :  { %v3798_v52 = vmul.f32 %v5458_v38, %v3796_v58  ;;  %5461 = vtanh.f32 %v3772_v6  ;;  %vm3803_vm2 = vweird.f32 %v5458_v38  ;;  %vm3785_vm5 = vmor %vm3783_vm3, %vm3784_vm1  ;;  %v3826_v39 = vand.u32 2147483647, %v3816_v3 }
 0xbb6   :  { %v3780_v23 = vsub.f32 1.0, %v3779_v60  ;;  %vm3804_vm7 = vmor %vm3802_vm4, %vm3803_vm2 }
 0xbb7   :  { %v3799_v4 = vsub.f32 1.0, %v3798_v52  ;;  %vm3827_vm12 = vcmp.eq.f32.partialorder %v3826_v39, 8.507059e+37 }
 0xbb8   :  { %v3781_v37 = vmul.f32 %v5456_v28, %v3780_v23 }
 0xbb9   :  { %v3800_v35 = vmul.f32 %v5458_v38, %v3799_v4 }
 0xbba   :  { %v5460_v7 = vpop.eup %5459  ;;  %v3782_v25 = vadd.f32 %v5456_v28, %v3781_v37 }
 0xbbb   :  { %v3801_v5 = vadd.f32 %v5458_v38, %v3800_v35  ;;  %v3818_v54 = vmul.f32 %v5460_v7, %v3816_v3  ;;  %v5462_v6 = vpop.eup %5461  ;;  %vm3823_vm9 = vweird.f32 %v5460_v7  ;;  %v3828_v35 = vand.u32 2147483648, %v3816_v3 }
 0xbbc   :  { %v3786_v60 = vsel %vm3785_vm5, %v5456_v28, %v3782_v25  ;;  %vm3824_vm11 = vmor %vm3822_vm10, %vm3823_vm9 }
 0xbbd   :  { %v3791_v52 = vsel %vm3788_vm6, %v3790_v41, %v3786_v60  ;;  %v3805_v23 = vsel %vm3804_vm7, %v5458_v38, %v3801_v5  ;;  %v3819_v40 = vsub.f32 1.0, %v3818_v54  ;;  %v3829_v44 = vor.u32 1.1754944e-38, %v3828_v35  ;;  %v10227_v60 = vld [vmem:[#allocation66_spill] sm:$0xff] }
 0xbbe   :  { %v3810_v4 = vsel %vm3807_vm8, %v3809_v26, %v3805_v23  ;;  %v3834_v33 = vmul.f32 %v5462_v6, %v3791_v52  ;;  %v10228_v6 = vld [vmem:[#allocation67_spill] sm:$0xff] }
 0xbbf   :  { %v3833_v14 = vmul.f32 0.0, %v3810_v4  ;;  %v3820_v48 = vmul.f32 %v5460_v7, %v3819_v40  ;;  %v3524_v52 = vadd.f32 %v10228_v6, %v10227_v60  ;;  %v8781_v6 = vld [vmem:[#allocation20 + $0x170] sm:$0xff] }
 0xbc1   :  { %v8636_v37 = vadd.f32 %v3834_v33, %v3833_v14  ;;  %v3821_v58 = vadd.f32 %v5460_v7, %v3820_v48  ;;  %v10224_v14 = vld [vmem:[#allocation57_spill] sm:$0xff] }
 0xbc3   :  { %5463 = vtanh.f32 %v8636_v37  ;;  %v3825_v28 = vsel %vm3824_vm11, %v5460_v7, %v3821_v58 }
 0xbc4   :  { %v3830_v16 = vsel %vm3827_vm12, %v3829_v44, %v3825_v28 }
 0xbc9   :  { %v5464_v38 = vpop.eup %5463 }
 0xbca   :  { %v8639_v51 = vmul.f32 %v5464_v38, %v3830_v16 }
 0xbcc   :  { %10194 = vst [vmem:[#allocation77_spill] sm:$0xff] %v8639_v51  ;;  %3864 = vmatmul.f32.vlgmr.msrb.gmra.mxu0 %v8639_v51  ;;  %3884 = vmatmul.f32.vlgmr.msrb.gmra.mxu1 %v8639_v51 }
 0xbcd   :  { %3904 = vmatmul.f32.vlgmr.msrb.gmra.mxu2 %v8639_v51  ;;  %3924 = vmatmul.f32.vlgmr.msrb.gmra.mxu3 %v8639_v51  ;;  %v8898_v51 = vld [vmem:[#allocation20 + $0x28] sm:$0xff] }
 0xbce   :  { %4166 = vmatpush.msrb.mxu0 %v10156_v32  ;;  %4186 = vmatpush.msrb.mxu1 %v8192_v27  ;;  %v10195_v27 = vld [vmem:[#allocation73_spill] sm:$0xff] }
 0xbcf   :  { %4206 = vmatpush.msrb.mxu2 %v8226_v50  ;;  %4226 = vmatpush.msrb.mxu3 %v8200_v18  ;;  %v10197_v18 = vld [vmem:[#allocation55_spill] sm:$0xff]  ;;  %v10199_v50 = vld [vmem:[#allocation44_spill] sm:$0xff] }
 0xbd0   :  { %4167 = vmatpush.msrb.mxu0 %v8194_v13  ;;  %4187 = vmatpush.msrb.mxu1 %v10157_v30  ;;  %v10196_v13 = vld [vmem:[#allocation81_spill] sm:$0xff]  ;;  %v10225_v30 = vld [vmem:[#allocation80_spill] sm:$0xff] }
 0xbd1   :  { %4207 = vmatpush.msrb.mxu2 %v8229_v59  ;;  %4227 = vmatpush.msrb.mxu3 %v10158_v61  ;;  %v10200_v59 = vld [vmem:[#allocation71_spill] sm:$0xff]  ;;  %v10226_v61 = vld [vmem:[#allocation52_spill] sm:$0xff] }
 0xbd2   :  { %4168 = vmatpush.msrb.mxu0 %v8203_v17  ;;  %4188 = vmatpush.msrb.mxu1 %v10159_v12  ;;  %v10198_v17 = vld [vmem:[#allocation69_spill] sm:$0xff]  ;;  %v3565_v12 = vadd.f32 %v10226_v61, %v10225_v30  ;;  %v8748_v61 = vld [vmem:[#allocation20 + $0x1d8] sm:$0xff] }
 0xbd3   :  { %4208 = vmatpush.msrb.mxu2 %v8234_v8  ;;  %4228 = vmatpush.msrb.mxu3 %v10160_v45  ;;  %v10201_v8 = vld [vmem:[#allocation78_spill] sm:$0xff] }
 0xbd4   :  { %4169 = vmatpush.msrb.mxu0 %v10161_v62  ;;  %4189 = vmatpush.msrb.mxu1 %v8238_v0  ;;  %v10202_v0 = vld [vmem:[#allocation82_spill] sm:$0xff] }
 0xbd5   :  { %4209 = vmatpush.msrb.mxu2 %v8250_v2  ;;  %4229 = vmatpush.msrb.mxu3 %v8248_v15  ;;  %v10205_v15 = vld [vmem:[#allocation63_spill] sm:$0xff] }
 0xbd6   :  { %4170 = vmatpush.msrb.mxu0 %v8241_v22  ;;  %4190 = vmatpush.msrb.mxu1 %v8246_v55  ;;  %v10203_v22 = vld [vmem:[#allocation51_spill] sm:$0xff] }
 0xbd7   :  { %4210 = vmatpush.msrb.mxu2 %v8258_v19  ;;  %4230 = vmatpush.msrb.mxu3 %v8256_v24  ;;  %v10204_v55 = vld [vmem:[#allocation59_spill] sm:$0xff]  ;;  %v10207_v24 = vld [vmem:[#allocation42_spill] sm:$0xff] }
 0xbd8   :  { %4171 = vmatpush.msrb.mxu0 %v8266_v9  ;;  %4191 = vmatpush.msrb.mxu1 %v8268_v21  ;;  %v10206_v2 = vld [vmem:[#allocation43_spill] sm:$0xff]  ;;  %v10209_v9 = vld [vmem:[#allocation37_spill] sm:$0xff]  ;;  %v10210_v21 = vld [vmem:[#allocation30_spill] sm:$0xff] }
 0xbd9   :  { %4211 = vmatpush.msrb.mxu2 %v8274_v1  ;;  %4231 = vmatpush.msrb.mxu3 %v8270_v46  ;;  %v10208_v19 = vld [vmem:[#allocation47_spill] sm:$0xff]  ;;  %v10211_v46 = vld [vmem:[#allocation41_spill] sm:$0xff]  ;;  %v10212_v1 = vld [vmem:[#allocation50_spill] sm:$0xff] }
 0xbda   :  { %4172 = vmatpush.msrb.mxu0 %v8276_v56  ;;  %4192 = vmatpush.msrb.mxu1 %v8278_v42  ;;  %v10213_v56 = vld [vmem:[#allocation32_spill] sm:$0xff] }
 0xbdb   :  { %4212 = vmatpush.msrb.mxu2 %v8286_v36  ;;  %4232 = vmatpush.msrb.mxu3 %v8281_v34  ;;  %v10214_v42 = vld [vmem:[#allocation36_spill] sm:$0xff]  ;;  %v10215_v34 = vld [vmem:[#allocation45_spill] sm:$0xff]  ;;  %v10216_v36 = vld [vmem:[#allocation46_spill] sm:$0xff] }
 0xbdc   :  { %4173 = vmatpush.msrb.mxu0 %v8288_v49  ;;  %4193 = vmatpush.msrb.mxu1 %v8290_v53  ;;  %v10217_v49 = vld [vmem:[#allocation34_spill] sm:$0xff]  ;;  %v10218_v53 = vld [vmem:[#allocation48_spill] sm:$0xff]  ;;  %10249 = vst [vmem:[#allocation45_spill] sm:$0xff] %v8898_v51 }
 0xbdd   :  { %4213 = vmatpush.msrb.mxu2 %v8320_v20  ;;  %4233 = vmatpush.msrb.mxu3 %v8300_v31  ;;  %v10221_v31 = vld [vmem:[#allocation83_spill] sm:$0xff] }
 0xbde   :  { %4174 = vmatpush.msrb.mxu0 %v8296_v57  ;;  %4194 = vmatpush.msrb.mxu1 %v8298_v47  ;;  %v10219_v57 = vld [vmem:[#allocation39_spill] sm:$0xff] }
 0xbdf   :  { %4214 = vmatpush.msrb.mxu2 %v8326_v63  ;;  %4234 = vmatpush.msrb.mxu3 %v8307_v43  ;;  %v10220_v47 = vld [vmem:[#allocation35_spill] sm:$0xff]  ;;  %v10223_v43 = vld [vmem:[#allocation85_spill] sm:$0xff] }
 0xbe0   :  { %4175 = vmatpush.msrb.mxu0 %v8303_v10  ;;  %4195 = vmatpush.msrb.mxu1 %v8305_v29  ;;  %v10222_v10 = vld [vmem:[#allocation38_spill] sm:$0xff]  ;;  %v3483_v33 = vadd.f32 %v10224_v14, %v10223_v43 }
 0xbe1   :  { %4215 = vmatpush.msrb.mxu2 %v10195_v27  ;;  %4235 = vmatpush.msrb.mxu3 %v10196_v13  ;;  %v3442_v29 = vadd.f32 %v10222_v10, %v10221_v31 }
 0xbe2   :  { %4176 = vmatpush.msrb.mxu0 %v10197_v18  ;;  %4196 = vmatpush.msrb.mxu1 %v10198_v17 }
 0xbe3   :  { %4216 = vmatpush.msrb.mxu2 %v10199_v50  ;;  %4236 = vmatpush.msrb.mxu3 %v10200_v59 }
 0xbe4   :  { %4177 = vmatpush.msrb.mxu0 %v10201_v8  ;;  %4197 = vmatpush.msrb.mxu1 %v10202_v0 }
 0xbe5   :  { %4217 = vmatpush.msrb.mxu2 %v10203_v22  ;;  %4237 = vmatpush.msrb.mxu3 %v10204_v55 }
 0xbe6   :  { %4178 = vmatpush.msrb.mxu0 %v10205_v15  ;;  %4198 = vmatpush.msrb.mxu1 %v10206_v2 }
 0xbe7   :  { %4218 = vmatpush.msrb.mxu2 %v10207_v24  ;;  %4238 = vmatpush.msrb.mxu3 %v10208_v19 }
 0xbe8   :  { %4179 = vmatpush.msrb.mxu0 %v10209_v9  ;;  %4199 = vmatpush.msrb.mxu1 %v10210_v21 }
 0xbe9   :  { %4219 = vmatpush.msrb.mxu2 %v10211_v46  ;;  %4239 = vmatpush.msrb.mxu3 %v10212_v1 }
 0xbea   :  { %4180 = vmatpush.msrb.mxu0 %v10213_v56  ;;  %4200 = vmatpush.msrb.mxu1 %v10214_v42 }
 0xbeb   :  { %4220 = vmatpush.msrb.mxu2 %v10215_v34  ;;  %4240 = vmatpush.msrb.mxu3 %v10216_v36 }
 0xbec   :  { %4181 = vmatpush.msrb.mxu0 %v10217_v49  ;;  %4201 = vmatpush.msrb.mxu1 %v10218_v53 }
 0xbed   :  { %4221 = vmatpush.msrb.mxu2 %v10219_v57  ;;  %4241 = vmatpush.msrb.mxu3 %v10220_v47 }
 0xc49   :  { %v3865_v40 = vpop.f32.mrf.mxu0  ;;  %v3885_v20 = vpop.f32.mrf.mxu1 }
 0xc4a   :  { %v3928_v63 = vadd.f32 %v3865_v40, %v3442_v29  ;;  %v3929_v48 = vadd.f32 %v3885_v20, %v3483_v33  ;;  %v8730_v40 = vld [vmem:[#allocation20 + $0x1e8] sm:$0xff]  ;;  %v8733_v20 = vld [vmem:[#allocation20 + $0x1f0] sm:$0xff] }
 0xc4c   :  { %v5157_v7 = vmul.f32 -1.442695, %v3928_v63  ;;  %v5158_v32 = vmul.f32 -1.442695, %v3929_v48  ;;  %v8736_v63 = vld [vmem:[#allocation20 + $0x1f8] sm:$0xff]  ;;  %v8739_v48 = vld [vmem:[#allocation20 + $0x1c0] sm:$0xff] }
 0xc4e   :  { %5465 = vpow2.f32 %v5157_v7  ;;  %v8742_v7 = vld [vmem:[#allocation20 + $0x1c8] sm:$0xff] }
 0xc4f   :  { %5467 = vpow2.f32 %v5158_v32  ;;  %v8745_v32 = vld [vmem:[#allocation20 + $0x1d0] sm:$0xff] }
 0xc50   :  { %v3925_v45 = vpop.f32.mrf.mxu3  ;;  %v3905_v5 = vpop.f32.mrf.mxu2 }
 0xc51   :  { %v3931_v62 = vadd.f32 %v3925_v45, %v3565_v12  ;;  %v3930_v58 = vadd.f32 %v3905_v5, %v3524_v52  ;;  %v8751_v12 = vld [vmem:[#allocation20 + $0x1a0] sm:$0xff]  ;;  %v8754_v45 = vld [vmem:[#allocation20 + $0x1a8] sm:$0xff]  ;;  %v8784_v52 = vld [vmem:[#allocation20 + $0x178] sm:$0xff] }
 0xc52   :  { %v8775_v5 = vld [vmem:[#allocation20 + $0x160] sm:$0xff] }
 0xc53   :  { %v5159_v26 = vmul.f32 -1.442695, %v3931_v62  ;;  %v8757_v62 = vld [vmem:[#allocation20 + $0x1b0] sm:$0xff] }
 0xc54   :  { %v5466_v3 = vpop.eup %5465 }
 0xc55   :  { %v5468_v11 = vpop.eup %5467  ;;  %v3935_v25 = vadd.f32 1.0, %v5466_v3  ;;  %5469 = vpow2.f32 %v5159_v26  ;;  %v8760_v26 = vld [vmem:[#allocation20 + $0x1b8] sm:$0xff]  ;;  %v8763_v3 = vld [vmem:[#allocation20 + $0x180] sm:$0xff] }
 0xc56   :  { %v3954_v41 = vadd.f32 1.0, %v5468_v11  ;;  %v8766_v11 = vld [vmem:[#allocation20 + $0x188] sm:$0xff] }
 0xc57   :  { %5471 = vrcp.f32 %v3935_v25  ;;  %v3947_v16 = vand.u32 2147483648, %v3935_v25  ;;  %v3945_v18 = vand.u32 2147483647, %v3935_v25  ;;  %vm3941_vm15 = vweird.f32 %v3935_v25 }
 0xc58   :  { %5473 = vrcp.f32 %v3954_v41  ;;  %v3966_v27 = vand.u32 2147483648, %v3954_v41  ;;  %v3964_v50 = vand.u32 2147483647, %v3954_v41  ;;  %vm3960_vm0 = vweird.f32 %v3954_v41 }
 0xc59   :  { %v3948_v0 = vor.u32 1.1754944e-38, %v3947_v16  ;;  %vm3946_vm3 = vcmp.eq.f32.partialorder %v3945_v18, 8.507059e+37  ;;  %v8811_v16 = vld [vmem:[#allocation20 + $0x100] sm:$0xff]  ;;  %v8820_v18 = vld [vmem:[#allocation20 + $0x118] sm:$0xff] }
 0xc5a   :  { %v3967_v15 = vor.u32 1.1754944e-38, %v3966_v27  ;;  %vm3965_vm4 = vcmp.eq.f32.partialorder %v3964_v50, 8.507059e+37  ;;  %v8814_v27 = vld [vmem:[#allocation20 + $0x108] sm:$0xff] }
 0xc5b   :  { %v5470_v54 = vpop.eup %5469  ;;  %v8826_v50 = vld [vmem:[#allocation20 + $0xe8] sm:$0xff] }
 0xc5c   :  { %v3974_v23 = vadd.f32 1.0, %v5470_v54  ;;  %v8778_v54 = vld [vmem:[#allocation20 + $0x168] sm:$0xff] }
 0xc5d   :  { %v5472_v4 = vpop.eup %5471 }
 0xc5e   :  { %v5474_v35 = vpop.eup %5473  ;;  %v3937_v39 = vmul.f32 %v5472_v4, %v3935_v25  ;;  %5475 = vrcp.f32 %v3974_v23  ;;  %vm3942_vm13 = vweird.f32 %v5472_v4  ;;  %v3986_v49 = vand.u32 2147483648, %v3974_v23  ;;  %v8769_v25 = vld [vmem:[#allocation20 + $0x190] sm:$0xff] }
 0xc5f   :  { %v3956_v28 = vmul.f32 %v5474_v35, %v3954_v41  ;;  %5477 = vtanh.f32 %v3930_v58  ;;  %vm3961_vm14 = vweird.f32 %v5474_v35  ;;  %vm3943_vm1 = vmor %vm3941_vm15, %vm3942_vm13  ;;  %vm3980_vm6 = vweird.f32 %v3974_v23  ;;  %v8772_v41 = vld [vmem:[#allocation20 + $0x198] sm:$0xff]  ;;  %v8793_v58 = vld [vmem:[#allocation20 + $0x150] sm:$0xff] }
 0xc60   :  { %v3938_v44 = vsub.f32 1.0, %v3937_v39  ;;  %vm3962_vm2 = vmor %vm3960_vm0, %vm3961_vm14  ;;  %v3984_v53 = vand.u32 2147483647, %v3974_v23  ;;  %v3987_v10 = vor.u32 1.1754944e-38, %v3986_v49  ;;  %v8799_v39 = vld [vmem:[#allocation20 + $0x120] sm:$0xff]  ;;  %v8877_v49 = vld [vmem:[#allocation20 + $0x70] sm:$0xff] }
 0xc61   :  { %v3957_v38 = vsub.f32 1.0, %v3956_v28  ;;  %v8802_v28 = vld [vmem:[#allocation20 + $0x128] sm:$0xff]  ;;  %10242 = vst [vmem:[#allocation47_spill] sm:$0xff] %v8877_v49 }
 0xc62   :  { %v3939_v13 = vmul.f32 %v5472_v4, %v3938_v44  ;;  %vm3985_vm8 = vcmp.eq.f32.partialorder %v3984_v53, 8.507059e+37  ;;  %v8805_v44 = vld [vmem:[#allocation20 + $0x130] sm:$0xff]  ;;  %v8880_v53 = vld [vmem:[#allocation20 + $0x78] sm:$0xff] }
 0xc63   :  { %v3958_v17 = vmul.f32 %v5474_v35, %v3957_v38  ;;  %v8808_v38 = vld [vmem:[#allocation20 + $0x138] sm:$0xff]  ;;  %10243 = vst [vmem:[#allocation37_spill] sm:$0xff] %v8880_v53 }
 0xc64   :  { %v5476_v59 = vpop.eup %5475  ;;  %v3940_v8 = vadd.f32 %v5472_v4, %v3939_v13  ;;  %v8817_v13 = vld [vmem:[#allocation20 + $0x110] sm:$0xff] }
 0xc65   :  { %v3959_v22 = vadd.f32 %v5474_v35, %v3958_v17  ;;  %v3976_v55 = vmul.f32 %v5476_v59, %v3974_v23  ;;  %v5478_v24 = vpop.eup %5477  ;;  %vm3981_vm5 = vweird.f32 %v5476_v59  ;;  %v8787_v23 = vld [vmem:[#allocation20 + $0x140] sm:$0xff] }
 0xc66   :  { %v3944_v2 = vsel %vm3943_vm1, %v5472_v4, %v3940_v8  ;;  %vm3982_vm7 = vmor %vm3980_vm6, %vm3981_vm5  ;;  %v8790_v4 = vld [vmem:[#allocation20 + $0x148] sm:$0xff]  ;;  %v8823_v17 = vld [vmem:[#allocation20 + $0xe0] sm:$0xff] }
 0xc67   :  { %v3949_v19 = vsel %vm3946_vm3, %v3948_v0, %v3944_v2  ;;  %v3963_v9 = vsel %vm3962_vm2, %v5474_v35, %v3959_v22  ;;  %v3977_v21 = vsub.f32 1.0, %v3976_v55  ;;  %v8796_v35 = vld [vmem:[#allocation20 + $0x158] sm:$0xff]  ;;  %v8835_v0 = vld [vmem:[#allocation20 + $0xc0] sm:$0xff]  ;;  %v8838_v22 = vld [vmem:[#allocation20 + $0xc8] sm:$0xff] }
 0xc68   :  { %v3968_v46 = vsel %vm3965_vm4, %v3967_v15, %v3963_v9  ;;  %v3992_v1 = vmul.f32 %v5478_v24, %v3949_v19  ;;  %v8832_v8 = vld [vmem:[#allocation20 + $0xf8] sm:$0xff]  ;;  %v8841_v55 = vld [vmem:[#allocation20 + $0xd0] sm:$0xff]  ;;  %v8847_v2 = vld [vmem:[#allocation20 + $0xa0] sm:$0xff] }
 0xc69   :  { %v3991_v56 = vmul.f32 %v3968_v46, %v8636_v37  ;;  %v3978_v42 = vmul.f32 %v5476_v59, %v3977_v21  ;;  %v8727_v37 = vld [vmem:[#allocation20 + $0x1e0] sm:$0xff]  ;;  %10230 = vst [vmem:[#allocation81_spill] sm:$0xff] %v8841_v55  ;;  %v8844_v15 = vld [vmem:[#allocation20 + $0xd8] sm:$0xff]  ;;  %v8850_v24 = vld [vmem:[#allocation20 + $0xa8] sm:$0xff] }
 0xc6a   :  { %10231 = vst [vmem:[#allocation55_spill] sm:$0xff] %v8844_v15  ;;  %v8853_v19 = vld [vmem:[#allocation20 + $0xb0] sm:$0xff]  ;;  %v8856_v9 = vld [vmem:[#allocation20 + $0xb8] sm:$0xff]  ;;  %v8859_v21 = vld [vmem:[#allocation20 + $0x80] sm:$0xff] }
 0xc6b   :  { %v8718_v34 = vadd.f32 %v3992_v1, %v3991_v56  ;;  %v3979_v36 = vadd.f32 %v5476_v59, %v3978_v42  ;;  %10232 = vst [vmem:[#allocation69_spill] sm:$0xff] %v8847_v2  ;;  %v8862_v46 = vld [vmem:[#allocation20 + $0x88] sm:$0xff]  ;;  %v8865_v1 = vld [vmem:[#allocation20 + $0x90] sm:$0xff]  ;;  %v8868_v56 = vld [vmem:[#allocation20 + $0x98] sm:$0xff] }
 0xc6c   :  { %10233 = vst [vmem:[#allocation44_spill] sm:$0xff] %v8850_v24  ;;  %v8871_v42 = vld [vmem:[#allocation20 + $0x60] sm:$0xff] }
 0xc6d   :  { %5479 = vtanh.f32 %v8718_v34  ;;  %v3983_v47 = vsel %vm3982_vm7, %v5476_v59, %v3979_v36  ;;  %v8829_v59 = vld [vmem:[#allocation20 + $0xf0] sm:$0xff]  ;;  %10234 = vst [vmem:[#allocation71_spill] sm:$0xff] %v8853_v19  ;;  %v8874_v36 = vld [vmem:[#allocation20 + $0x68] sm:$0xff] }
 0xc6e   :  { %v3988_v14 = vsel %vm3985_vm8, %v3987_v10, %v3983_v47  ;;  %10235 = vst [vmem:[#allocation78_spill] sm:$0xff] %v8856_v9  ;;  %v8883_v47 = vld [vmem:[#allocation20 + $0x40] sm:$0xff]  ;;  %v8886_v10 = vld [vmem:[#allocation20 + $0x48] sm:$0xff] }
 0xc6f   :  { %10236 = vst [vmem:[#allocation82_spill] sm:$0xff] %v8859_v21 }
 0xc70   :  { %10237 = vst [vmem:[#allocation51_spill] sm:$0xff] %v8862_v46 }
 0xc71   :  { %10238 = vst [vmem:[#allocation59_spill] sm:$0xff] %v8865_v1 }
 0xc72   :  { %10239 = vst [vmem:[#allocation63_spill] sm:$0xff] %v8868_v56 }
 0xc73   :  { %v5480_v29 = vpop.eup %5479  ;;  %10240 = vst [vmem:[#allocation43_spill] sm:$0xff] %v8871_v42 }
 0xc74   :  { %v8721_v33 = vmul.f32 %v5480_v29, %v3988_v14  ;;  %10241 = vst [vmem:[#allocation42_spill] sm:$0xff] %v8874_v36  ;;  %v8889_v29 = vld [vmem:[#allocation20 + $0x50] sm:$0xff]  ;;  %v8892_v14 = vld [vmem:[#allocation20 + $0x58] sm:$0xff] }
 0xc75   :  { %10244 = vst [vmem:[#allocation30_spill] sm:$0xff] %v8883_v47 }
 0xc76   :  { %10229 = vst [vmem:[#allocation73_spill] sm:$0xff] %v8721_v33  ;;  %4023 = vmatmul.f32.vlgmr.msra.gmra.mxu0 %v8721_v33  ;;  %4043 = vmatmul.f32.vlgmr.msra.gmra.mxu1 %v8721_v33 }
 0xc77   :  { %4063 = vmatmul.f32.vlgmr.msra.gmra.mxu2 %v8721_v33  ;;  %4083 = vmatmul.f32.vlgmr.msra.gmra.mxu3 %v8721_v33  ;;  %10245 = vst [vmem:[#allocation41_spill] sm:$0xff] %v8886_v10  ;;  %v8895_v33 = vld [vmem:[#allocation20 + $0x20] sm:$0xff] }
 0xc78   :  { %4325 = vmatpush.msra.mxu0 %v8727_v37  ;;  %4345 = vmatpush.msra.mxu1 %v8730_v40  ;;  %10246 = vst [vmem:[#allocation50_spill] sm:$0xff] %v8889_v29 }
 0xc79   :  { %4365 = vmatpush.msra.mxu2 %v8733_v20  ;;  %4385 = vmatpush.msra.mxu3 %v8736_v63  ;;  %10247 = vst [vmem:[#allocation32_spill] sm:$0xff] %v8892_v14 }
 0xc7a   :  { %4326 = vmatpush.msra.mxu0 %v8739_v48  ;;  %4346 = vmatpush.msra.mxu1 %v8742_v7  ;;  %10248 = vst [vmem:[#allocation36_spill] sm:$0xff] %v8895_v33 }
 0xc7b   :  { %4366 = vmatpush.msra.mxu2 %v8745_v32  ;;  %4386 = vmatpush.msra.mxu3 %v8748_v61 }
 0xc7c   :  { %4327 = vmatpush.msra.mxu0 %v8751_v12  ;;  %4347 = vmatpush.msra.mxu1 %v8754_v45 }
 0xc7d   :  { %4367 = vmatpush.msra.mxu2 %v8757_v62  ;;  %4387 = vmatpush.msra.mxu3 %v8760_v26 }
 0xc7e   :  { %4328 = vmatpush.msra.mxu0 %v8763_v3  ;;  %4348 = vmatpush.msra.mxu1 %v8766_v11 }
 0xc7f   :  { %4368 = vmatpush.msra.mxu2 %v8769_v25  ;;  %4388 = vmatpush.msra.mxu3 %v8772_v41 }
 0xc80   :  { %4329 = vmatpush.msra.mxu0 %v8775_v5  ;;  %4349 = vmatpush.msra.mxu1 %v8778_v54 }
 0xc81   :  { %4369 = vmatpush.msra.mxu2 %v8781_v6  ;;  %4389 = vmatpush.msra.mxu3 %v8784_v52 }
 0xc82   :  { %4330 = vmatpush.msra.mxu0 %v8787_v23  ;;  %4350 = vmatpush.msra.mxu1 %v8790_v4 }
 0xc83   :  { %4370 = vmatpush.msra.mxu2 %v8793_v58  ;;  %4390 = vmatpush.msra.mxu3 %v8796_v35 }
 0xc84   :  { %4331 = vmatpush.msra.mxu0 %v8799_v39  ;;  %4351 = vmatpush.msra.mxu1 %v8802_v28 }
 0xc85   :  { %4371 = vmatpush.msra.mxu2 %v8805_v44  ;;  %4391 = vmatpush.msra.mxu3 %v8808_v38 }
 0xc86   :  { %4332 = vmatpush.msra.mxu0 %v8811_v16  ;;  %4352 = vmatpush.msra.mxu1 %v8814_v27 }
 0xc87   :  { %4372 = vmatpush.msra.mxu2 %v8817_v13  ;;  %4392 = vmatpush.msra.mxu3 %v8820_v18 }
 0xc88   :  { %4333 = vmatpush.msra.mxu0 %v8823_v17  ;;  %4353 = vmatpush.msra.mxu1 %v8826_v50 }
 0xc89   :  { %4373 = vmatpush.msra.mxu2 %v8829_v59  ;;  %4393 = vmatpush.msra.mxu3 %v8832_v8 }
 0xc8a   :  { %4334 = vmatpush.msra.mxu0 %v8835_v0  ;;  %4354 = vmatpush.msra.mxu1 %v8838_v22 }
 0xc8b   :  { %4374 = vmatpush.msra.mxu2 %v8841_v55  ;;  %4394 = vmatpush.msra.mxu3 %v8844_v15 }
 0xc8c   :  { %4335 = vmatpush.msra.mxu0 %v8847_v2  ;;  %4355 = vmatpush.msra.mxu1 %v8850_v24 }
 0xc8d   :  { %4375 = vmatpush.msra.mxu2 %v8853_v19  ;;  %4395 = vmatpush.msra.mxu3 %v8856_v9 }
 0xc8e   :  { %4336 = vmatpush.msra.mxu0 %v8859_v21  ;;  %4356 = vmatpush.msra.mxu1 %v8862_v46 }
 0xc8f   :  { %4376 = vmatpush.msra.mxu2 %v8865_v1  ;;  %4396 = vmatpush.msra.mxu3 %v8868_v56 }
 0xc90   :  { %4337 = vmatpush.msra.mxu0 %v8871_v42  ;;  %4357 = vmatpush.msra.mxu1 %v8874_v36 }
 0xc91   :  { %4377 = vmatpush.msra.mxu2 %v8877_v49  ;;  %4397 = vmatpush.msra.mxu3 %v8880_v53  ;;  %v10256_v53 = vld [vmem:[#allocation56_spill] sm:$0xff] }
 0xc92   :  { %4338 = vmatpush.msra.mxu0 %v8883_v47  ;;  %4358 = vmatpush.msra.mxu1 %v8886_v10  ;;  %v8901_v47 = vld [vmem:[#allocation20 + $0x30] sm:$0xff]  ;;  %v8904_v10 = vld [vmem:[#allocation20 + $0x38] sm:$0xff] }
 0xc93   :  { %4378 = vmatpush.msra.mxu2 %v8889_v29  ;;  %4398 = vmatpush.msra.mxu3 %v8892_v14  ;;  %10250 = vst [vmem:[#allocation46_spill] sm:$0xff] %v8901_v47  ;;  %v8907_v29 = vld [vmem:[#allocation20] sm:$0xff]  ;;  %v8910_v14 = vld [vmem:[#allocation20 + $0x8] sm:$0xff] }
 0xc94   :  { %4339 = vmatpush.msra.mxu0 %v8895_v33  ;;  %4359 = vmatpush.msra.mxu1 %v8898_v51  ;;  %10251 = vst [vmem:[#allocation34_spill] sm:$0xff] %v8904_v10  ;;  %v8914_v33 = vld [vmem:[#allocation20 + $0x18] sm:$0xff] }
 0xc95   :  { %4379 = vmatpush.msra.mxu2 %v8901_v47  ;;  %4399 = vmatpush.msra.mxu3 %v8904_v10  ;;  %10252 = vst [vmem:[#allocation48_spill] sm:$0xff] %v8907_v29  ;;  %v10255_v47 = vld [vmem:[#allocation31_spill] sm:$0xff]  ;;  %v3486_v10 = vadd.f32 %v10256_v53, %v10223_v43 }
 0xc96   :  { %4340 = vmatpush.msra.mxu0 %v8907_v29  ;;  %10253 = vst [vmem:[#allocation39_spill] sm:$0xff] %v8910_v14  ;;  %4360 = vmatpush.msra.mxu1 %v8910_v14  ;;  %v3445_v51 = vadd.f32 %v10255_v47, %v10221_v31  ;;  %v10257_v14 = vld [vmem:[#allocation64_spill] sm:$0xff] }
 0xc97   :  { %4380 = vmatpush.msra.mxu2 %v10219_v57  ;;  %10254 = vst [vmem:[#allocation35_spill] sm:$0xff] %v8914_v33  ;;  %4400 = vmatpush.msra.mxu3 %v8914_v33  ;;  %v3568_v57 = vadd.f32 %v10257_v14, %v10225_v30 }
 0xcf3   :  { %v4024_v49 = vpop.f32.mrf.mxu0  ;;  %v4044_v36 = vpop.f32.mrf.mxu1 }
 0xcf4   :  { %v4087_v42 = vadd.f32 %v4024_v49, %v3445_v51  ;;  %v4088_v29 = vadd.f32 %v4044_v36, %v3486_v10 }
 0xcf6   :  { %v5160_v56 = vmul.f32 -1.442695, %v4087_v42  ;;  %v5161_v1 = vmul.f32 -1.442695, %v4088_v29  ;;  %v10258_v42 = vld [vmem:[#allocation53_spill] sm:$0xff] }
 0xcf7   :  { %v3527_v36 = vadd.f32 %v10258_v42, %v10227_v60 }
 0xcf8   :  { %5481 = vpow2.f32 %v5160_v56 }
 0xcf9   :  { %5483 = vpow2.f32 %v5161_v1 }
 0xcfa   :  { %v4084_v46 = vpop.f32.mrf.mxu3  ;;  %v4064_v53 = vpop.f32.mrf.mxu2 }
 0xcfb   :  { %v4090_v21 = vadd.f32 %v4084_v46, %v3568_v57  ;;  %v4089_v10 = vadd.f32 %v4064_v53, %v3527_v36 }
 0xcfd   :  { %v5162_v33 = vmul.f32 -1.442695, %v4090_v21 }
 0xcfe   :  { %v5482_v9 = vpop.eup %5481 }
 0xcff   :  { %v5484_v19 = vpop.eup %5483  ;;  %v4094_v47 = vadd.f32 1.0, %v5482_v9  ;;  %5485 = vpow2.f32 %v5162_v33 }
 0xd00   :  { %v4113_v31 = vadd.f32 1.0, %v5484_v19 }
 0xd01   :  { %5487 = vrcp.f32 %v4094_v47  ;;  %v4106_v57 = vand.u32 2147483648, %v4094_v47  ;;  %v4104_v9 = vand.u32 2147483647, %v4094_v47  ;;  %vm4100_vm11 = vweird.f32 %v4094_v47 }
 0xd02   :  { %5489 = vrcp.f32 %v4113_v31  ;;  %v4125_v33 = vand.u32 2147483648, %v4113_v31  ;;  %v4123_v43 = vand.u32 2147483647, %v4113_v31  ;;  %vm4119_vm12 = vweird.f32 %v4113_v31 }
 0xd03   :  { %v4107_v53 = vor.u32 1.1754944e-38, %v4106_v57  ;;  %vm4105_vm15 = vcmp.eq.f32.partialorder %v4104_v9, 8.507059e+37 }
 0xd04   :  { %vm4124_vm0 = vcmp.eq.f32.partialorder %v4123_v43, 8.507059e+37 }
 0xd05   :  { %v5486_v51 = vpop.eup %5485 }
 0xd06   :  { %v4133_v56 = vadd.f32 1.0, %v5486_v51 }
 0xd07   :  { %v5488_v49 = vpop.eup %5487 }
 0xd08   :  { %v5490_v29 = vpop.eup %5489  ;;  %v4096_v1 = vmul.f32 %v5488_v49, %v4094_v47  ;;  %5491 = vrcp.f32 %v4133_v56  ;;  %vm4101_vm9 = vweird.f32 %v5488_v49  ;;  %vm4139_vm2 = vweird.f32 %v4133_v56 }
 0xd09   :  { %v4115_v46 = vmul.f32 %v5490_v29, %v4113_v31  ;;  %5493 = vtanh.f32 %v4089_v10  ;;  %vm4120_vm10 = vweird.f32 %v5490_v29  ;;  %vm4102_vm13 = vmor %vm4100_vm11, %vm4101_vm9 }
 0xd0a   :  { %v4097_v21 = vsub.f32 1.0, %v4096_v1  ;;  %vm4121_vm14 = vmor %vm4119_vm12, %vm4120_vm10  ;;  %v4126_v1 = vor.u32 1.1754944e-38, %v4125_v33 }
 0xd0b   :  { %v4116_v14 = vsub.f32 1.0, %v4115_v46 }
 0xd0c   :  { %v4098_v19 = vmul.f32 %v5488_v49, %v4097_v21 }
 0xd0d   :  { %v4117_v30 = vmul.f32 %v5490_v29, %v4116_v14 }
 0xd0e   :  { %v5492_v24 = vpop.eup %5491  ;;  %v4099_v42 = vadd.f32 %v5488_v49, %v4098_v19 }
 0xd0f   :  { %v4118_v51 = vadd.f32 %v5490_v29, %v4117_v30  ;;  %v4135_v36 = vmul.f32 %v5492_v24, %v4133_v56  ;;  %v5494_v10 = vpop.eup %5493  ;;  %vm4140_vm1 = vweird.f32 %v5492_v24  ;;  %v4145_v30 = vand.u32 2147483648, %v4133_v56 }
 0xd10   :  { %v4103_v46 = vsel %vm4102_vm13, %v5488_v49, %v4099_v42  ;;  %v4143_v49 = vand.u32 2147483647, %v4133_v56  ;;  %vm4141_vm3 = vmor %vm4139_vm2, %vm4140_vm1  ;;  %v10266_v56 = vld [vmem:[#allocation82_spill] sm:$0xff]  ;;  %v10267_v42 = vld [vmem:[#allocation51_spill] sm:$0xff] }
 0xd11   :  { %v4108_v60 = vsel %vm4105_vm15, %v4107_v53, %v4103_v46  ;;  %v4122_v21 = vsel %vm4121_vm14, %v5490_v29, %v4118_v51  ;;  %v4136_v2 = vsub.f32 1.0, %v4135_v36  ;;  %v4146_v33 = vor.u32 1.1754944e-38, %v4145_v30  ;;  %v10268_v53 = vld [vmem:[#allocation59_spill] sm:$0xff]  ;;  %v10278_v30 = vld [vmem:[#allocation36_spill] sm:$0xff] }
 0xd12   :  { %v4127_v14 = vsel %vm4124_vm0, %v4126_v1, %v4122_v21  ;;  %v4151_v15 = vmul.f32 %v5494_v10, %v4108_v60  ;;  %vm4144_vm4 = vcmp.eq.f32.partialorder %v4143_v49, 8.507059e+37  ;;  %v10260_v60 = vld [vmem:[#allocation81_spill] sm:$0xff]  ;;  %v10269_v51 = vld [vmem:[#allocation63_spill] sm:$0xff]  ;;  %v10271_v1 = vld [vmem:[#allocation42_spill] sm:$0xff] }
 0xd13   :  { %v4150_v55 = vmul.f32 %v4127_v14, %v8718_v34  ;;  %v4137_v19 = vmul.f32 %v5492_v24, %v4136_v2  ;;  %v10261_v34 = vld [vmem:[#allocation55_spill] sm:$0xff]  ;;  %v10273_v10 = vld [vmem:[#allocation37_spill] sm:$0xff]  ;;  %v10274_v21 = vld [vmem:[#allocation30_spill] sm:$0xff] }
 0xd14   :  { %v10264_v2 = vld [vmem:[#allocation71_spill] sm:$0xff]  ;;  %v10275_v14 = vld [vmem:[#allocation41_spill] sm:$0xff] }
 0xd15   :  { %v8926_v47 = vadd.f32 %v4151_v15, %v4150_v55  ;;  %v4138_v31 = vadd.f32 %v5492_v24, %v4137_v19  ;;  %v10262_v55 = vld [vmem:[#allocation69_spill] sm:$0xff]  ;;  %v10263_v15 = vld [vmem:[#allocation44_spill] sm:$0xff]  ;;  %v10270_v36 = vld [vmem:[#allocation43_spill] sm:$0xff] }
 0xd16   :  { %v10272_v46 = vld [vmem:[#allocation47_spill] sm:$0xff]  ;;  %v10276_v19 = vld [vmem:[#allocation50_spill] sm:$0xff]  ;;  %v10279_v49 = vld [vmem:[#allocation45_spill] sm:$0xff] }
 0xd17   :  { %5495 = vtanh.f32 %v8926_v47  ;;  %v4142_v57 = vsel %vm4141_vm3, %v5492_v24, %v4138_v31  ;;  %v10265_v24 = vld [vmem:[#allocation78_spill] sm:$0xff]  ;;  %v10277_v31 = vld [vmem:[#allocation32_spill] sm:$0xff] }
 0xd18   :  { %v4147_v29 = vsel %vm4144_vm4, %v4146_v33, %v4142_v57  ;;  %v10280_v57 = vld [vmem:[#allocation46_spill] sm:$0xff] }
 0xd19   :  { %v10281_v33 = vld [vmem:[#allocation34_spill] sm:$0xff] }
 0xd1d   :  { %v5496_v43 = vpop.eup %5495 }
 0xd1e   :  { %v8929_v9 = vmul.f32 %v5496_v43, %v4147_v29  ;;  %v10282_v43 = vld [vmem:[#allocation48_spill] sm:$0xff]  ;;  %v10283_v29 = vld [vmem:[#allocation39_spill] sm:$0xff] }
 0xd20   :  { %10259 = vst [vmem:[#allocation38_spill] sm:$0xff] %v8929_v9  ;;  %4182 = vmatmul.f32.vlgmr.msrb.gmra.mxu0 %v8929_v9  ;;  %4202 = vmatmul.f32.vlgmr.msrb.gmra.mxu1 %v8929_v9 }
 0xd21   :  { %4222 = vmatmul.f32.vlgmr.msrb.gmra.mxu2 %v8929_v9  ;;  %4242 = vmatmul.f32.vlgmr.msrb.gmra.mxu3 %v8929_v9  ;;  %v8997_v9 = vld [vmem:[#allocation20 + $0x10] sm:$0xff] }
 0xd22   :  { %4484 = vmatpush.msrb.mxu0 %v8727_v37  ;;  %4504 = vmatpush.msrb.mxu1 %v8730_v40  ;;  %10284 = vst [vmem:[#allocation57_spill] sm:$0xff] %v8997_v9 }
 0xd23   :  { %4524 = vmatpush.msrb.mxu2 %v8733_v20  ;;  %4544 = vmatpush.msrb.mxu3 %v8736_v63 }
 0xd24   :  { %4485 = vmatpush.msrb.mxu0 %v8739_v48  ;;  %4505 = vmatpush.msrb.mxu1 %v8742_v7 }
 0xd25   :  { %4525 = vmatpush.msrb.mxu2 %v8745_v32  ;;  %4545 = vmatpush.msrb.mxu3 %v8748_v61 }
 0xd26   :  { %4486 = vmatpush.msrb.mxu0 %v8751_v12  ;;  %4506 = vmatpush.msrb.mxu1 %v8754_v45 }
 0xd27   :  { %4526 = vmatpush.msrb.mxu2 %v8757_v62  ;;  %4546 = vmatpush.msrb.mxu3 %v8760_v26 }
 0xd28   :  { %4487 = vmatpush.msrb.mxu0 %v8763_v3  ;;  %4507 = vmatpush.msrb.mxu1 %v8766_v11 }
 0xd29   :  { %4527 = vmatpush.msrb.mxu2 %v8769_v25  ;;  %4547 = vmatpush.msrb.mxu3 %v8772_v41 }
 0xd2a   :  { %4488 = vmatpush.msrb.mxu0 %v8775_v5  ;;  %4508 = vmatpush.msrb.mxu1 %v8778_v54 }
 0xd2b   :  { %4528 = vmatpush.msrb.mxu2 %v8781_v6  ;;  %4548 = vmatpush.msrb.mxu3 %v8784_v52 }
 0xd2c   :  { %4489 = vmatpush.msrb.mxu0 %v8787_v23  ;;  %4509 = vmatpush.msrb.mxu1 %v8790_v4 }
 0xd2d   :  { %4529 = vmatpush.msrb.mxu2 %v8793_v58  ;;  %4549 = vmatpush.msrb.mxu3 %v8796_v35 }
 0xd2e   :  { %4490 = vmatpush.msrb.mxu0 %v8799_v39  ;;  %4510 = vmatpush.msrb.mxu1 %v8802_v28 }
 0xd2f   :  { %4530 = vmatpush.msrb.mxu2 %v8805_v44  ;;  %4550 = vmatpush.msrb.mxu3 %v8808_v38 }
 0xd30   :  { %4491 = vmatpush.msrb.mxu0 %v8811_v16  ;;  %4511 = vmatpush.msrb.mxu1 %v8814_v27 }
 0xd31   :  { %4531 = vmatpush.msrb.mxu2 %v8817_v13  ;;  %4551 = vmatpush.msrb.mxu3 %v8820_v18 }
 0xd32   :  { %4492 = vmatpush.msrb.mxu0 %v8823_v17  ;;  %4512 = vmatpush.msrb.mxu1 %v8826_v50 }
 0xd33   :  { %4532 = vmatpush.msrb.mxu2 %v8829_v59  ;;  %4552 = vmatpush.msrb.mxu3 %v8832_v8 }
 0xd34   :  { %4493 = vmatpush.msrb.mxu0 %v8835_v0  ;;  %4513 = vmatpush.msrb.mxu1 %v8838_v22 }
 0xd35   :  { %4533 = vmatpush.msrb.mxu2 %v10260_v60  ;;  %4553 = vmatpush.msrb.mxu3 %v10261_v34 }
 0xd36   :  { %4494 = vmatpush.msrb.mxu0 %v10262_v55  ;;  %4514 = vmatpush.msrb.mxu1 %v10263_v15 }
 0xd37   :  { %4534 = vmatpush.msrb.mxu2 %v10264_v2  ;;  %4554 = vmatpush.msrb.mxu3 %v10265_v24 }
 0xd38   :  { %4495 = vmatpush.msrb.mxu0 %v10266_v56  ;;  %4515 = vmatpush.msrb.mxu1 %v10267_v42 }
 0xd39   :  { %4535 = vmatpush.msrb.mxu2 %v10268_v53  ;;  %4555 = vmatpush.msrb.mxu3 %v10269_v51  ;;  %v10291_v51 = vld [vmem:[#allocation49_spill] sm:$0xff] }
 0xd3a   :  { %4496 = vmatpush.msrb.mxu0 %v10270_v36  ;;  %4516 = vmatpush.msrb.mxu1 %v10271_v1 }
 0xd3b   :  { %4536 = vmatpush.msrb.mxu2 %v10272_v46  ;;  %4556 = vmatpush.msrb.mxu3 %v10273_v10  ;;  %v10289_v10 = vld [vmem:[#allocation33_spill] sm:$0xff] }
 0xd3c   :  { %4497 = vmatpush.msrb.mxu0 %v10274_v21  ;;  %4517 = vmatpush.msrb.mxu1 %v10275_v14  ;;  %v10285_v14 = vld [vmem:[#allocation35_spill] sm:$0xff] }
 0xd3d   :  { %4537 = vmatpush.msrb.mxu2 %v10276_v19  ;;  %4557 = vmatpush.msrb.mxu3 %v10277_v31  ;;  %v10286_v19 = vld [vmem:[#allocation83_spill] sm:$0xff]  ;;  %v10287_v31 = vld [vmem:[#allocation70_spill] sm:$0xff] }
 0xd3e   :  { %4498 = vmatpush.msrb.mxu0 %v10278_v30  ;;  %4518 = vmatpush.msrb.mxu1 %v10279_v49  ;;  %v3448_v21 = vadd.f32 %v10287_v31, %v10286_v19  ;;  %v10288_v30 = vld [vmem:[#allocation85_spill] sm:$0xff] }
 0xd3f   :  { %4538 = vmatpush.msrb.mxu2 %v10280_v57  ;;  %4558 = vmatpush.msrb.mxu3 %v10281_v33  ;;  %v3489_v49 = vadd.f32 %v10289_v10, %v10288_v30 }
 0xd40   :  { %4499 = vmatpush.msrb.mxu0 %v10282_v43  ;;  %4519 = vmatpush.msrb.mxu1 %v10283_v29  ;;  %v10290_v29 = vld [vmem:[#allocation80_spill] sm:$0xff] }
 0xd41   :  { %4539 = vmatpush.msrb.mxu2 %v8997_v9  ;;  %4559 = vmatpush.msrb.mxu3 %v10285_v14  ;;  %v3571_v53 = vadd.f32 %v10291_v51, %v10290_v29 }
 0xd9d   :  { %v4183_v46 = vpop.f32.mrf.mxu0  ;;  %v4203_v57 = vpop.f32.mrf.mxu1 }
 0xd9e   :  { %v4246_v1 = vadd.f32 %v4183_v46, %v3448_v21  ;;  %v4247_v33 = vadd.f32 %v4203_v57, %v3489_v49  ;;  %v10292_v21 = vld [vmem:[#allocation66_spill] sm:$0xff] }
 0xda0   :  { %v5163_v36 = vmul.f32 -1.442695, %v4246_v1  ;;  %v5164_v43 = vmul.f32 -1.442695, %v4247_v33  ;;  %v10293_v1 = vld [vmem:[#allocation86_spill] sm:$0xff] }
 0xda1   :  { %v3530_v49 = vadd.f32 %v10293_v1, %v10292_v21 }
 0xda2   :  { %5497 = vpow2.f32 %v5163_v36 }
 0xda3   :  { %5499 = vpow2.f32 %v5164_v43 }
 0xda4   :  { %v4243_v9 = vpop.f32.mrf.mxu3  ;;  %v4223_v10 = vpop.f32.mrf.mxu2 }
 0xda5   :  { %v4249_v42 = vadd.f32 %v4243_v9, %v3571_v53  ;;  %v4248_v33 = vadd.f32 %v4223_v10, %v3530_v49 }
 0xda7   :  { %v5165_v14 = vmul.f32 -1.442695, %v4249_v42 }
 0xda8   :  { %v5498_v56 = vpop.eup %5497 }
 0xda9   :  { %v5500_v24 = vpop.eup %5499  ;;  %v4253_v31 = vadd.f32 1.0, %v5498_v56  ;;  %5501 = vpow2.f32 %v5165_v14 }
 0xdaa   :  { %v4272_v19 = vadd.f32 1.0, %v5500_v24 }
 0xdab   :  { %5503 = vrcp.f32 %v4253_v31  ;;  %v4265_v29 = vand.u32 2147483648, %v4253_v31  ;;  %v4263_v14 = vand.u32 2147483647, %v4253_v31  ;;  %vm4259_vm7 = vweird.f32 %v4253_v31 }
 0xdac   :  { %5505 = vrcp.f32 %v4272_v19  ;;  %v4284_v56 = vand.u32 2147483648, %v4272_v19  ;;  %v4282_v2 = vand.u32 2147483647, %v4272_v19  ;;  %vm4278_vm8 = vweird.f32 %v4272_v19 }
 0xdad   :  { %v4266_v10 = vor.u32 1.1754944e-38, %v4265_v29  ;;  %vm4264_vm11 = vcmp.eq.f32.partialorder %v4263_v14, 8.507059e+37 }
 0xdae   :  { %vm4283_vm12 = vcmp.eq.f32.partialorder %v4282_v2, 8.507059e+37 }
 0xdaf   :  { %v5502_v46 = vpop.eup %5501 }
 0xdb0   :  { %v4292_v36 = vadd.f32 1.0, %v5502_v46 }
 0xdb1   :  { %v5504_v57 = vpop.eup %5503 }
 0xdb2   :  { %v5506_v51 = vpop.eup %5505  ;;  %v4255_v43 = vmul.f32 %v5504_v57, %v4253_v31  ;;  %5507 = vrcp.f32 %v4292_v36  ;;  %vm4260_vm5 = vweird.f32 %v5504_v57  ;;  %vm4298_vm14 = vweird.f32 %v4292_v36 }
 0xdb3   :  { %v4274_v9 = vmul.f32 %v5506_v51, %v4272_v19  ;;  %5509 = vtanh.f32 %v4248_v33  ;;  %vm4279_vm6 = vweird.f32 %v5506_v51  ;;  %vm4261_vm9 = vmor %vm4259_vm7, %vm4260_vm5  ;;  %v4302_v29 = vand.u32 2147483647, %v4292_v36 }
 0xdb4   :  { %v4256_v42 = vsub.f32 1.0, %v4255_v43  ;;  %vm4280_vm10 = vmor %vm4278_vm8, %vm4279_vm6  ;;  %v4285_v43 = vor.u32 1.1754944e-38, %v4284_v56 }
 0xdb5   :  { %v4275_v53 = vsub.f32 1.0, %v4274_v9  ;;  %vm4303_vm0 = vcmp.eq.f32.partialorder %v4302_v29, 8.507059e+37  ;;  %v10314_v29 = vld [vmem:[#allocation45_spill] sm:$0xff] }
 0xdb6   :  { %v4257_v24 = vmul.f32 %v5504_v57, %v4256_v42 }
 0xdb7   :  { %v4276_v30 = vmul.f32 %v5506_v51, %v4275_v53 }
 0xdb8   :  { %v5508_v15 = vpop.eup %5507  ;;  %v4258_v1 = vadd.f32 %v5504_v57, %v4257_v24 }
 0xdb9   :  { %v4277_v46 = vadd.f32 %v5506_v51, %v4276_v30  ;;  %v4294_v49 = vmul.f32 %v5508_v15, %v4292_v36  ;;  %v5510_v33 = vpop.eup %5509  ;;  %vm4299_vm13 = vweird.f32 %v5508_v15  ;;  %v4304_v30 = vand.u32 2147483648, %v4292_v36  ;;  %v10301_v36 = vld [vmem:[#allocation82_spill] sm:$0xff] }
 0xdba   :  { %v4262_v9 = vsel %vm4261_vm9, %v5504_v57, %v4258_v1  ;;  %vm4300_vm15 = vmor %vm4298_vm14, %vm4299_vm13  ;;  %v10302_v1 = vld [vmem:[#allocation51_spill] sm:$0xff] }
 0xdbb   :  { %v4267_v21 = vsel %vm4264_vm11, %v4266_v10, %v4262_v9  ;;  %v4281_v42 = vsel %vm4280_vm10, %v5506_v51, %v4277_v46  ;;  %v4295_v55 = vsub.f32 1.0, %v4294_v49  ;;  %v4305_v56 = vor.u32 1.1754944e-38, %v4304_v30  ;;  %v10303_v10 = vld [vmem:[#allocation59_spill] sm:$0xff]  ;;  %v10313_v30 = vld [vmem:[#allocation36_spill] sm:$0xff] }
 0xdbc   :  { %v4286_v53 = vsel %vm4283_vm12, %v4285_v43, %v4281_v42  ;;  %v4310_v34 = vmul.f32 %v5510_v33, %v4267_v21  ;;  %v10300_v21 = vld [vmem:[#allocation78_spill] sm:$0xff]  ;;  %v10304_v46 = vld [vmem:[#allocation63_spill] sm:$0xff]  ;;  %v10308_v33 = vld [vmem:[#allocation37_spill] sm:$0xff] }
 0xdbd   :  { %v4309_v60 = vmul.f32 %v4286_v53, %v8926_v47  ;;  %v4296_v24 = vmul.f32 %v5508_v15, %v4295_v55  ;;  %v10295_v47 = vld [vmem:[#allocation81_spill] sm:$0xff]  ;;  %v10298_v55 = vld [vmem:[#allocation44_spill] sm:$0xff]  ;;  %v10305_v49 = vld [vmem:[#allocation43_spill] sm:$0xff] }
 0xdbe   :  { %v10306_v43 = vld [vmem:[#allocation42_spill] sm:$0xff]  ;;  %v10307_v9 = vld [vmem:[#allocation47_spill] sm:$0xff]  ;;  %v10310_v53 = vld [vmem:[#allocation41_spill] sm:$0xff] }
 0xdbf   :  { %v9010_v31 = vadd.f32 %v4310_v34, %v4309_v60  ;;  %v4297_v19 = vadd.f32 %v5508_v15, %v4296_v24  ;;  %v10296_v60 = vld [vmem:[#allocation55_spill] sm:$0xff]  ;;  %v10297_v34 = vld [vmem:[#allocation69_spill] sm:$0xff]  ;;  %v10309_v42 = vld [vmem:[#allocation30_spill] sm:$0xff] }
 0xdc0   :  { %v10311_v24 = vld [vmem:[#allocation50_spill] sm:$0xff] }
 0xdc1   :  { %5511 = vtanh.f32 %v9010_v31  ;;  %v4301_v57 = vsel %vm4300_vm15, %v5508_v15, %v4297_v19  ;;  %v10299_v15 = vld [vmem:[#allocation71_spill] sm:$0xff]  ;;  %v10312_v19 = vld [vmem:[#allocation32_spill] sm:$0xff] }
 0xdc2   :  { %v4306_v51 = vsel %vm4303_vm0, %v4305_v56, %v4301_v57  ;;  %v10315_v57 = vld [vmem:[#allocation46_spill] sm:$0xff] }
 0xdc3   :  { %v10316_v56 = vld [vmem:[#allocation34_spill] sm:$0xff] }
 0xdc7   :  { %v5512_v2 = vpop.eup %5511 }
 0xdc8   :  { %v9013_v14 = vmul.f32 %v5512_v2, %v4306_v51  ;;  %v10317_v2 = vld [vmem:[#allocation48_spill] sm:$0xff]  ;;  %v10318_v51 = vld [vmem:[#allocation39_spill] sm:$0xff] }
 0xdca   :  { %10294 = vst [vmem:[#allocation52_spill] sm:$0xff] %v9013_v14  ;;  %4341 = vmatmul.f32.vlgmr.msra.gmra.mxu0 %v9013_v14  ;;  %4361 = vmatmul.f32.vlgmr.msra.gmra.mxu1 %v9013_v14 }
 0xdcb   :  { %4381 = vmatmul.f32.vlgmr.msra.gmra.mxu2 %v9013_v14  ;;  %4401 = vmatmul.f32.vlgmr.msra.gmra.mxu3 %v9013_v14  ;;  %v10319_v14 = vld [vmem:[#allocation57_spill] sm:$0xff] }
 0xdcc   :  { %4643 = vmatpush.msra.mxu0 %v8727_v37  ;;  %4663 = vmatpush.msra.mxu1 %v8730_v40 }
 0xdcd   :  { %4683 = vmatpush.msra.mxu2 %v8733_v20  ;;  %4703 = vmatpush.msra.mxu3 %v8736_v63 }
 0xdce   :  { %4644 = vmatpush.msra.mxu0 %v8739_v48  ;;  %4664 = vmatpush.msra.mxu1 %v8742_v7 }
 0xdcf   :  { %4684 = vmatpush.msra.mxu2 %v8745_v32  ;;  %4704 = vmatpush.msra.mxu3 %v8748_v61 }
 0xdd0   :  { %4645 = vmatpush.msra.mxu0 %v8751_v12  ;;  %4665 = vmatpush.msra.mxu1 %v8754_v45 }
 0xdd1   :  { %4685 = vmatpush.msra.mxu2 %v8757_v62  ;;  %4705 = vmatpush.msra.mxu3 %v8760_v26 }
 0xdd2   :  { %4646 = vmatpush.msra.mxu0 %v8763_v3  ;;  %4666 = vmatpush.msra.mxu1 %v8766_v11 }
 0xdd3   :  { %4686 = vmatpush.msra.mxu2 %v8769_v25  ;;  %4706 = vmatpush.msra.mxu3 %v8772_v41 }
 0xdd4   :  { %4647 = vmatpush.msra.mxu0 %v8775_v5  ;;  %4667 = vmatpush.msra.mxu1 %v8778_v54 }
 0xdd5   :  { %4687 = vmatpush.msra.mxu2 %v8781_v6  ;;  %4707 = vmatpush.msra.mxu3 %v8784_v52 }
 0xdd6   :  { %4648 = vmatpush.msra.mxu0 %v8787_v23  ;;  %4668 = vmatpush.msra.mxu1 %v8790_v4 }
 0xdd7   :  { %4688 = vmatpush.msra.mxu2 %v8793_v58  ;;  %4708 = vmatpush.msra.mxu3 %v8796_v35 }
 0xdd8   :  { %4649 = vmatpush.msra.mxu0 %v8799_v39  ;;  %4669 = vmatpush.msra.mxu1 %v8802_v28 }
 0xdd9   :  { %4689 = vmatpush.msra.mxu2 %v8805_v44  ;;  %4709 = vmatpush.msra.mxu3 %v8808_v38 }
 0xdda   :  { %4650 = vmatpush.msra.mxu0 %v8811_v16  ;;  %4670 = vmatpush.msra.mxu1 %v8814_v27 }
 0xddb   :  { %4690 = vmatpush.msra.mxu2 %v8817_v13  ;;  %4710 = vmatpush.msra.mxu3 %v8820_v18 }
 0xddc   :  { %4651 = vmatpush.msra.mxu0 %v8823_v17  ;;  %4671 = vmatpush.msra.mxu1 %v8826_v50 }
 0xddd   :  { %4691 = vmatpush.msra.mxu2 %v8829_v59  ;;  %4711 = vmatpush.msra.mxu3 %v8832_v8 }
 0xdde   :  { %4652 = vmatpush.msra.mxu0 %v8835_v0  ;;  %4672 = vmatpush.msra.mxu1 %v8838_v22 }
 0xddf   :  { %4692 = vmatpush.msra.mxu2 %v10295_v47  ;;  %4712 = vmatpush.msra.mxu3 %v10296_v60 }
 0xde0   :  { %4653 = vmatpush.msra.mxu0 %v10297_v34  ;;  %4673 = vmatpush.msra.mxu1 %v10298_v55 }
 0xde1   :  { %4693 = vmatpush.msra.mxu2 %v10299_v15  ;;  %4713 = vmatpush.msra.mxu3 %v10300_v21 }
 0xde2   :  { %4654 = vmatpush.msra.mxu0 %v10301_v36  ;;  %4674 = vmatpush.msra.mxu1 %v10302_v1 }
 0xde3   :  { %4694 = vmatpush.msra.mxu2 %v10303_v10  ;;  %4714 = vmatpush.msra.mxu3 %v10304_v46  ;;  %v10326_v10 = vld [vmem:[#allocation72_spill] sm:$0xff] }
 0xde4   :  { %4655 = vmatpush.msra.mxu0 %v10305_v49  ;;  %4675 = vmatpush.msra.mxu1 %v10306_v43 }
 0xde5   :  { %4695 = vmatpush.msra.mxu2 %v10307_v9  ;;  %4715 = vmatpush.msra.mxu3 %v10308_v33  ;;  %v10324_v9 = vld [vmem:[#allocation58_spill] sm:$0xff] }
 0xde6   :  { %4656 = vmatpush.msra.mxu0 %v10309_v42  ;;  %4676 = vmatpush.msra.mxu1 %v10310_v53  ;;  %v10320_v42 = vld [vmem:[#allocation35_spill] sm:$0xff] }
 0xde7   :  { %4696 = vmatpush.msra.mxu2 %v10311_v24  ;;  %4716 = vmatpush.msra.mxu3 %v10312_v19  ;;  %v10321_v53 = vld [vmem:[#allocation83_spill] sm:$0xff]  ;;  %v10322_v24 = vld [vmem:[#allocation84_spill] sm:$0xff]  ;;  %v10323_v19 = vld [vmem:[#allocation85_spill] sm:$0xff] }
 0xde8   :  { %4657 = vmatpush.msra.mxu0 %v10313_v30  ;;  %4677 = vmatpush.msra.mxu1 %v10314_v29  ;;  %v3451_v33 = vadd.f32 %v10322_v24, %v10321_v53  ;;  %v3492_v30 = vadd.f32 %v10324_v9, %v10323_v19 }
 0xde9   :  { %4697 = vmatpush.msra.mxu2 %v10315_v57  ;;  %4717 = vmatpush.msra.mxu3 %v10316_v56 }
 0xdea   :  { %4658 = vmatpush.msra.mxu0 %v10317_v2  ;;  %4678 = vmatpush.msra.mxu1 %v10318_v51  ;;  %v10325_v2 = vld [vmem:[#allocation80_spill] sm:$0xff] }
 0xdeb   :  { %4698 = vmatpush.msra.mxu2 %v10319_v14  ;;  %4718 = vmatpush.msra.mxu3 %v10320_v42  ;;  %v3574_v51 = vadd.f32 %v10326_v10, %v10325_v2 }
 0xe47   :  { %v4342_v43 = vpop.f32.mrf.mxu0  ;;  %v4362_v29 = vpop.f32.mrf.mxu1 }
 0xe48   :  { %v4405_v49 = vadd.f32 %v4342_v43, %v3451_v33  ;;  %v4406_v57 = vadd.f32 %v4362_v29, %v3492_v30  ;;  %v10327_v33 = vld [vmem:[#allocation66_spill] sm:$0xff] }
 0xe4a   :  { %v5166_v46 = vmul.f32 -1.442695, %v4405_v49  ;;  %v5167_v56 = vmul.f32 -1.442695, %v4406_v57  ;;  %v10328_v49 = vld [vmem:[#allocation62_spill] sm:$0xff] }
 0xe4b   :  { %v3533_v30 = vadd.f32 %v10328_v49, %v10327_v33 }
 0xe4c   :  { %5513 = vpow2.f32 %v5166_v46 }
 0xe4d   :  { %5515 = vpow2.f32 %v5167_v56 }
 0xe4e   :  { %v4402_v14 = vpop.f32.mrf.mxu3  ;;  %v4382_v9 = vpop.f32.mrf.mxu2 }
 0xe4f   :  { %v4408_v1 = vadd.f32 %v4402_v14, %v3574_v51  ;;  %v4407_v57 = vadd.f32 %v4382_v9, %v3533_v30 }
 0xe51   :  { %v5168_v42 = vmul.f32 -1.442695, %v4408_v1 }
 0xe52   :  { %v5514_v36 = vpop.eup %5513 }
 0xe53   :  { %v5516_v21 = vpop.eup %5515  ;;  %v4412_v24 = vadd.f32 1.0, %v5514_v36  ;;  %5517 = vpow2.f32 %v5168_v42 }
 0xe54   :  { %v4431_v53 = vadd.f32 1.0, %v5516_v21 }
 0xe55   :  { %5519 = vrcp.f32 %v4412_v24  ;;  %v4424_v2 = vand.u32 2147483648, %v4412_v24  ;;  %v4422_v42 = vand.u32 2147483647, %v4412_v24  ;;  %vm4418_vm3 = vweird.f32 %v4412_v24 }
 0xe56   :  { %5521 = vrcp.f32 %v4431_v53  ;;  %v4443_v36 = vand.u32 2147483648, %v4431_v53  ;;  %v4441_v15 = vand.u32 2147483647, %v4431_v53  ;;  %vm4437_vm4 = vweird.f32 %v4431_v53 }
 0xe57   :  { %v4425_v9 = vor.u32 1.1754944e-38, %v4424_v2  ;;  %vm4423_vm7 = vcmp.eq.f32.partialorder %v4422_v42, 8.507059e+37 }
 0xe58   :  { %vm4442_vm8 = vcmp.eq.f32.partialorder %v4441_v15, 8.507059e+37 }
 0xe59   :  { %v5518_v43 = vpop.eup %5517 }
 0xe5a   :  { %v4451_v46 = vadd.f32 1.0, %v5518_v43 }
 0xe5b   :  { %v5520_v29 = vpop.eup %5519 }
 0xe5c   :  { %v5522_v10 = vpop.eup %5521  ;;  %v4414_v56 = vmul.f32 %v5520_v29, %v4412_v24  ;;  %5523 = vrcp.f32 %v4451_v46  ;;  %vm4419_vm1 = vweird.f32 %v5520_v29  ;;  %vm4457_vm10 = vweird.f32 %v4451_v46 }
 0xe5d   :  { %v4433_v14 = vmul.f32 %v5522_v10, %v4431_v53  ;;  %5525 = vtanh.f32 %v4407_v57  ;;  %vm4438_vm2 = vweird.f32 %v5522_v10  ;;  %vm4420_vm5 = vmor %vm4418_vm3, %vm4419_vm1  ;;  %v4461_v2 = vand.u32 2147483647, %v4451_v46 }
 0xe5e   :  { %v4415_v1 = vsub.f32 1.0, %v4414_v56  ;;  %vm4439_vm6 = vmor %vm4437_vm4, %vm4438_vm2  ;;  %v4444_v56 = vor.u32 1.1754944e-38, %v4443_v36 }
 0xe5f   :  { %v4434_v51 = vsub.f32 1.0, %v4433_v14  ;;  %vm4462_vm12 = vcmp.eq.f32.partialorder %v4461_v2, 8.507059e+37 }
 0xe60   :  { %v4416_v21 = vmul.f32 %v5520_v29, %v4415_v1 }
 0xe61   :  { %v4435_v19 = vmul.f32 %v5522_v10, %v4434_v51 }
 0xe62   :  { %v5524_v55 = vpop.eup %5523  ;;  %v4417_v49 = vadd.f32 %v5520_v29, %v4416_v21 }
 0xe63   :  { %v4436_v43 = vadd.f32 %v5522_v10, %v4435_v19  ;;  %v4453_v30 = vmul.f32 %v5524_v55, %v4451_v46  ;;  %v5526_v57 = vpop.eup %5525  ;;  %vm4458_vm9 = vweird.f32 %v5524_v55  ;;  %v4463_v19 = vand.u32 2147483648, %v4451_v46 }
 0xe64   :  { %v4421_v14 = vsel %vm4420_vm5, %v5520_v29, %v4417_v49  ;;  %vm4459_vm11 = vmor %vm4457_vm10, %vm4458_vm9 }
 0xe65   :  { %v4426_v33 = vsel %vm4423_vm7, %v4425_v9, %v4421_v14  ;;  %v4440_v1 = vsel %vm4439_vm6, %v5522_v10, %v4436_v43  ;;  %v4454_v34 = vsub.f32 1.0, %v4453_v30  ;;  %v4464_v36 = vor.u32 1.1754944e-38, %v4463_v19  ;;  %v10361_v14 = vld [vmem:[#allocation66_spill] sm:$0xff] }
 0xe66   :  { %v4445_v51 = vsel %vm4442_vm8, %v4444_v56, %v4440_v1  ;;  %v4469_v60 = vmul.f32 %v5526_v57, %v4426_v33  ;;  %v10362_v57 = vld [vmem:[#allocation60_spill] sm:$0xff] }
 0xe67   :  { %v4468_v47 = vmul.f32 %v4445_v51, %v9010_v31  ;;  %v4455_v21 = vmul.f32 %v5524_v55, %v4454_v34  ;;  %v10359_v31 = vld [vmem:[#allocation80_spill] sm:$0xff]  ;;  %v3536_v1 = vadd.f32 %v10362_v57, %v10361_v14  ;;  %v10365_v57 = vld [vmem:[#allocation75_spill] sm:$0xff] }
 0xe69   :  { %v9092_v24 = vadd.f32 %v4469_v60, %v4468_v47  ;;  %v4456_v53 = vadd.f32 %v5524_v55, %v4455_v21  ;;  %v10360_v47 = vld [vmem:[#allocation65_spill] sm:$0xff] }
 0xe6a   :  { %v3577_v60 = vadd.f32 %v10360_v47, %v10359_v31 }
 0xe6b   :  { %5527 = vtanh.f32 %v9092_v24  ;;  %v4460_v29 = vsel %vm4459_vm11, %v5524_v55, %v4456_v53 }
 0xe6c   :  { %v4465_v10 = vsel %vm4462_vm12, %v4464_v36, %v4460_v29 }
 0xe71   :  { %v5528_v15 = vpop.eup %5527 }
 0xe72   :  { %v9095_v42 = vmul.f32 %v5528_v15, %v4465_v10 }
 0xe74   :  { %4500 = vmatmul.f32.vlgmr.msrb.gmra.mxu0 %v9095_v42  ;;  %4520 = vmatmul.f32.vlgmr.msrb.gmra.mxu1 %v9095_v42 }
 0xe75   :  { %4540 = vmatmul.f32.vlgmr.msrb.gmra.mxu2 %v9095_v42  ;;  %4560 = vmatmul.f32.vlgmr.msrb.gmra.mxu3 %v9095_v42 }
 0xe76   :  { %4802 = vmatpush.msrb.mxu0 %v8727_v37  ;;  %4822 = vmatpush.msrb.mxu1 %v8730_v40  ;;  %v10329_v37 = vld [vmem:[#allocation81_spill] sm:$0xff]  ;;  %v10330_v40 = vld [vmem:[#allocation55_spill] sm:$0xff] }
 0xe77   :  { %4842 = vmatpush.msrb.mxu2 %v8733_v20  ;;  %4862 = vmatpush.msrb.mxu3 %v8736_v63  ;;  %v10331_v20 = vld [vmem:[#allocation69_spill] sm:$0xff]  ;;  %v10332_v63 = vld [vmem:[#allocation44_spill] sm:$0xff] }
 0xe78   :  { %4803 = vmatpush.msrb.mxu0 %v8739_v48  ;;  %4823 = vmatpush.msrb.mxu1 %v8742_v7  ;;  %v10333_v48 = vld [vmem:[#allocation71_spill] sm:$0xff]  ;;  %v10334_v7 = vld [vmem:[#allocation78_spill] sm:$0xff] }
 0xe79   :  { %4843 = vmatpush.msrb.mxu2 %v8745_v32  ;;  %4863 = vmatpush.msrb.mxu3 %v8748_v61  ;;  %v10335_v32 = vld [vmem:[#allocation82_spill] sm:$0xff]  ;;  %v10336_v61 = vld [vmem:[#allocation51_spill] sm:$0xff] }
 0xe7a   :  { %4804 = vmatpush.msrb.mxu0 %v8751_v12  ;;  %4824 = vmatpush.msrb.mxu1 %v8754_v45  ;;  %v10337_v12 = vld [vmem:[#allocation59_spill] sm:$0xff] }
 0xe7b   :  { %4844 = vmatpush.msrb.mxu2 %v8757_v62  ;;  %4864 = vmatpush.msrb.mxu3 %v8760_v26  ;;  %v10338_v45 = vld [vmem:[#allocation63_spill] sm:$0xff]  ;;  %v10340_v26 = vld [vmem:[#allocation42_spill] sm:$0xff] }
 0xe7c   :  { %4805 = vmatpush.msrb.mxu0 %v8763_v3  ;;  %4825 = vmatpush.msrb.mxu1 %v8766_v11  ;;  %v10339_v62 = vld [vmem:[#allocation43_spill] sm:$0xff]  ;;  %v10342_v11 = vld [vmem:[#allocation37_spill] sm:$0xff] }
 0xe7d   :  { %4845 = vmatpush.msrb.mxu2 %v8769_v25  ;;  %4865 = vmatpush.msrb.mxu3 %v8772_v41  ;;  %v10341_v3 = vld [vmem:[#allocation47_spill] sm:$0xff]  ;;  %v10343_v25 = vld [vmem:[#allocation30_spill] sm:$0xff]  ;;  %v10344_v41 = vld [vmem:[#allocation41_spill] sm:$0xff] }
 0xe7e   :  { %4806 = vmatpush.msrb.mxu0 %v8775_v5  ;;  %4826 = vmatpush.msrb.mxu1 %v8778_v54  ;;  %v10345_v5 = vld [vmem:[#allocation50_spill] sm:$0xff]  ;;  %v10346_v54 = vld [vmem:[#allocation32_spill] sm:$0xff] }
 0xe7f   :  { %4846 = vmatpush.msrb.mxu2 %v8781_v6  ;;  %4866 = vmatpush.msrb.mxu3 %v8784_v52  ;;  %v10347_v6 = vld [vmem:[#allocation36_spill] sm:$0xff]  ;;  %v10348_v52 = vld [vmem:[#allocation45_spill] sm:$0xff] }
 0xe80   :  { %4807 = vmatpush.msrb.mxu0 %v8787_v23  ;;  %4827 = vmatpush.msrb.mxu1 %v8790_v4  ;;  %v10349_v23 = vld [vmem:[#allocation46_spill] sm:$0xff] }
 0xe81   :  { %4847 = vmatpush.msrb.mxu2 %v8793_v58  ;;  %4867 = vmatpush.msrb.mxu3 %v8796_v35  ;;  %v10350_v4 = vld [vmem:[#allocation34_spill] sm:$0xff]  ;;  %v10351_v58 = vld [vmem:[#allocation48_spill] sm:$0xff]  ;;  %v10352_v35 = vld [vmem:[#allocation39_spill] sm:$0xff] }
 0xe82   :  { %4808 = vmatpush.msrb.mxu0 %v8799_v39  ;;  %4828 = vmatpush.msrb.mxu1 %v8802_v28  ;;  %v10353_v39 = vld [vmem:[#allocation57_spill] sm:$0xff]  ;;  %v10354_v28 = vld [vmem:[#allocation35_spill] sm:$0xff] }
 0xe83   :  { %4848 = vmatpush.msrb.mxu2 %v8805_v44  ;;  %4868 = vmatpush.msrb.mxu3 %v8808_v38  ;;  %v10355_v44 = vld [vmem:[#allocation83_spill] sm:$0xff]  ;;  %v10356_v38 = vld [vmem:[#allocation74_spill] sm:$0xff] }
 0xe84   :  { %4809 = vmatpush.msrb.mxu0 %v8811_v16  ;;  %4829 = vmatpush.msrb.mxu1 %v8814_v27  ;;  %v3454_v16 = vadd.f32 %v10356_v38, %v10355_v44  ;;  %v10357_v27 = vld [vmem:[#allocation85_spill] sm:$0xff] }
 0xe85   :  { %4849 = vmatpush.msrb.mxu2 %v8817_v13  ;;  %4869 = vmatpush.msrb.mxu3 %v8820_v18  ;;  %v10358_v13 = vld [vmem:[#allocation79_spill] sm:$0xff] }
 0xe86   :  { %4810 = vmatpush.msrb.mxu0 %v8823_v17  ;;  %4830 = vmatpush.msrb.mxu1 %v8826_v50  ;;  %v3495_v18 = vadd.f32 %v10358_v13, %v10357_v27 }
 0xe87   :  { %4850 = vmatpush.msrb.mxu2 %v8829_v59  ;;  %4870 = vmatpush.msrb.mxu3 %v8832_v8 }
 0xe88   :  { %4811 = vmatpush.msrb.mxu0 %v8835_v0  ;;  %4831 = vmatpush.msrb.mxu1 %v8838_v22 }
 0xe89   :  { %4851 = vmatpush.msrb.mxu2 %v10329_v37  ;;  %4871 = vmatpush.msrb.mxu3 %v10330_v40 }
 0xe8a   :  { %4812 = vmatpush.msrb.mxu0 %v10331_v20  ;;  %4832 = vmatpush.msrb.mxu1 %v10332_v63 }
 0xe8b   :  { %4852 = vmatpush.msrb.mxu2 %v10333_v48  ;;  %4872 = vmatpush.msrb.mxu3 %v10334_v7 }
 0xe8c   :  { %4813 = vmatpush.msrb.mxu0 %v10335_v32  ;;  %4833 = vmatpush.msrb.mxu1 %v10336_v61 }
 0xe8d   :  { %4853 = vmatpush.msrb.mxu2 %v10337_v12  ;;  %4873 = vmatpush.msrb.mxu3 %v10338_v45 }
 0xe8e   :  { %4814 = vmatpush.msrb.mxu0 %v10339_v62  ;;  %4834 = vmatpush.msrb.mxu1 %v10340_v26 }
 0xe8f   :  { %4854 = vmatpush.msrb.mxu2 %v10341_v3  ;;  %4874 = vmatpush.msrb.mxu3 %v10342_v11 }
 0xe90   :  { %4815 = vmatpush.msrb.mxu0 %v10343_v25  ;;  %4835 = vmatpush.msrb.mxu1 %v10344_v41 }
 0xe91   :  { %4855 = vmatpush.msrb.mxu2 %v10345_v5  ;;  %4875 = vmatpush.msrb.mxu3 %v10346_v54 }
 0xe92   :  { %4816 = vmatpush.msrb.mxu0 %v10347_v6  ;;  %4836 = vmatpush.msrb.mxu1 %v10348_v52 }
 0xe93   :  { %4856 = vmatpush.msrb.mxu2 %v10349_v23  ;;  %4876 = vmatpush.msrb.mxu3 %v10350_v4 }
 0xe94   :  { %4817 = vmatpush.msrb.mxu0 %v10351_v58  ;;  %4837 = vmatpush.msrb.mxu1 %v10352_v35 }
 0xe95   :  { %4857 = vmatpush.msrb.mxu2 %v10353_v39  ;;  %4877 = vmatpush.msrb.mxu3 %v10354_v28 }
 0xef1   :  { %v4501_v17 = vpop.f32.mrf.mxu0  ;;  %v4521_v50 = vpop.f32.mrf.mxu1 }
 0xef2   :  { %v4564_v59 = vadd.f32 %v4501_v17, %v3454_v16  ;;  %v4565_v8 = vadd.f32 %v4521_v50, %v3495_v18  ;;  %v4976_v18 = vld [vmem:[#allocation21 + $0x70] sm:$0xff]  ;;  %v4975_v17 = vld [vmem:[#allocation21 + $0x68] sm:$0xff]  ;;  %v4974_v50 = vld [vmem:[#allocation21 + $0x60] sm:$0xff] }
 0xef4   :  { %v5169_v0 = vmul.f32 -1.442695, %v4564_v59  ;;  %v5170_v22 = vmul.f32 -1.442695, %v4565_v8  ;;  %v4973_v59 = vld [vmem:[#allocation21 + $0x58] sm:$0xff]  ;;  %v10363_v8 = vld [vmem:[#allocation87_spill] sm:$0xff] }
 0xef6   :  { %5529 = vpow2.f32 %v5169_v0  ;;  %v3457_v0 = vadd.f32 %v10363_v8, %v10355_v44 }
 0xef7   :  { %5531 = vpow2.f32 %v5170_v22  ;;  %v10364_v22 = vld [vmem:[#allocation40_spill] sm:$0xff] }
 0xef8   :  { %v4561_v34 = vpop.f32.mrf.mxu3  ;;  %v4541_v30 = vpop.f32.mrf.mxu2  ;;  %v3498_v47 = vadd.f32 %v10364_v22, %v10357_v27 }
 0xef9   :  { %v4567_v55 = vadd.f32 %v4561_v34, %v3577_v60  ;;  %v4566_v53 = vadd.f32 %v4541_v30, %v3536_v1  ;;  %v4970_v30 = vld [vmem:[#allocation21 + $0x40] sm:$0xff]  ;;  %v3580_v1 = vadd.f32 %v10365_v57, %v10359_v31 }
 0xefb   :  { %v5171_v33 = vmul.f32 -1.442695, %v4567_v55  ;;  %v4972_v55 = vld [vmem:[#allocation21 + $0x50] sm:$0xff] }
 0xefc   :  { %v5530_v46 = vpop.eup %5529 }
 0xefd   :  { %v5532_v49 = vpop.eup %5531  ;;  %v4571_v9 = vadd.f32 1.0, %v5530_v46  ;;  %5533 = vpow2.f32 %v5171_v33 }
 0xefe   :  { %v4590_v43 = vadd.f32 1.0, %v5532_v49  ;;  %v4971_v49 = vld [vmem:[#allocation21 + $0x48] sm:$0xff] }
 0xeff   :  { %5535 = vrcp.f32 %v4571_v9  ;;  %v4583_v10 = vand.u32 2147483648, %v4571_v9  ;;  %v4581_v20 = vand.u32 2147483647, %v4571_v9  ;;  %vm4577_vm15 = vweird.f32 %v4571_v9 }
 0xf00   :  { %5537 = vrcp.f32 %v4590_v43  ;;  %v4602_v37 = vand.u32 2147483648, %v4590_v43  ;;  %v4600_v48 = vand.u32 2147483647, %v4590_v43  ;;  %vm4596_vm0 = vweird.f32 %v4590_v43 }
 0xf01   :  { %v4584_v61 = vor.u32 1.1754944e-38, %v4583_v10  ;;  %vm4582_vm3 = vcmp.eq.f32.partialorder %v4581_v20, 8.507059e+37  ;;  %v4964_v20 = vld [vmem:[#allocation21 + $0x10] sm:$0xff] }
 0xf02   :  { %v4603_v62 = vor.u32 1.1754944e-38, %v4602_v37  ;;  %vm4601_vm4 = vcmp.eq.f32.partialorder %v4600_v48, 8.507059e+37 }
 0xf03   :  { %v5534_v56 = vpop.eup %5533 }
 0xf04   :  { %v4610_v51 = vadd.f32 1.0, %v5534_v56  ;;  %v4969_v56 = vld [vmem:[#allocation21 + $0x38] sm:$0xff] }
 0xf05   :  { %v5536_v21 = vpop.eup %5535 }
 0xf06   :  { %v5538_v19 = vpop.eup %5537  ;;  %v4573_v2 = vmul.f32 %v5536_v21, %v4571_v9  ;;  %5539 = vrcp.f32 %v4610_v51  ;;  %vm4578_vm13 = vweird.f32 %v5536_v21  ;;  %v4622_v58 = vand.u32 2147483648, %v4610_v51 }
 0xf07   :  { %v4592_v29 = vmul.f32 %v5538_v19, %v4590_v43  ;;  %5541 = vtanh.f32 %v4566_v53  ;;  %vm4597_vm14 = vweird.f32 %v5538_v19  ;;  %vm4579_vm1 = vmor %vm4577_vm15, %vm4578_vm13  ;;  %vm4616_vm6 = vweird.f32 %v4610_v51 }
 0xf08   :  { %v4574_v36 = vsub.f32 1.0, %v4573_v2  ;;  %vm4598_vm2 = vmor %vm4596_vm0, %vm4597_vm14  ;;  %v4620_v35 = vand.u32 2147483647, %v4610_v51  ;;  %v4623_v28 = vor.u32 1.1754944e-38, %v4622_v58 }
 0xf09   :  { %v4593_v15 = vsub.f32 1.0, %v4592_v29  ;;  %v4966_v29 = vld [vmem:[#allocation21 + $0x20] sm:$0xff] }
 0xf0a   :  { %v4575_v40 = vmul.f32 %v5536_v21, %v4574_v36  ;;  %vm4621_vm8 = vcmp.eq.f32.partialorder %v4620_v35, 8.507059e+37 }
 0xf0b   :  { %v4594_v63 = vmul.f32 %v5538_v19, %v4593_v15 }
 0xf0c   :  { %v5540_v7 = vpop.eup %5539  ;;  %v4576_v32 = vadd.f32 %v5536_v21, %v4575_v40  ;;  %v4965_v40 = vld [vmem:[#allocation21 + $0x18] sm:$0xff] }
 0xf0d   :  { %v4595_v12 = vadd.f32 %v5538_v19, %v4594_v63  ;;  %v4612_v45 = vmul.f32 %v5540_v7, %v4610_v51  ;;  %v5542_v3 = vpop.eup %5541  ;;  %vm4617_vm5 = vweird.f32 %v5540_v7  ;;  %v4968_v51 = vld [vmem:[#allocation21 + $0x30] sm:$0xff]  ;;  %v4963_v63 = vld [vmem:[#allocation21 + $0x8] sm:$0xff] }
 0xf0e   :  { %v4580_v26 = vsel %vm4579_vm1, %v5536_v21, %v4576_v32  ;;  %vm4618_vm7 = vmor %vm4616_vm6, %vm4617_vm5  ;;  %v10366_v32 = vld [vmem:[#allocation68_spill] sm:$0xff] }
 0xf0f   :  { %v4585_v11 = vsel %vm4582_vm3, %v4584_v61, %v4580_v26  ;;  %v4599_v25 = vsel %vm4598_vm2, %v5538_v19, %v4595_v12  ;;  %v4613_v41 = vsub.f32 1.0, %v4612_v45  ;;  %v4967_v19 = vld [vmem:[#allocation21 + $0x28] sm:$0xff]  ;;  %v3539_v61 = vadd.f32 %v10366_v32, %v10361_v14  ;;  %v4962_v12 = vld [vmem:[#allocation21] sm:$0xff] }
 0xf10   :  { %v4604_v5 = vsel %vm4601_vm4, %v4603_v62, %v4599_v25  ;;  %v4628_v54 = vmul.f32 %v5542_v3, %v4585_v11 }
 0xf11   :  { %v4627_v6 = vmul.f32 %v4604_v5, %v9092_v24  ;;  %v4614_v52 = vmul.f32 %v5540_v7, %v4613_v41  ;;  %v4977_v24 = vld [vmem:[#allocation21 + $0x78] sm:$0xff] }
 0xf13   :  { %v9174_v23 = vadd.f32 %v4628_v54, %v4627_v6  ;;  %v4615_v4 = vadd.f32 %v5540_v7, %v4614_v52 }
 0xf15   :  { %5543 = vtanh.f32 %v9174_v23  ;;  %v4619_v39 = vsel %vm4618_vm7, %v5540_v7, %v4615_v4 }
 0xf16   :  { %v4624_v16 = vsel %vm4621_vm8, %v4623_v28, %v4619_v39 }
 0xf1b   :  { %v5544_v38 = vpop.eup %5543 }
 0xf1c   :  { %v9177_v13 = vmul.f32 %v5544_v38, %v4624_v16 }
 0xf1e   :  { %4659 = vmatmul.f32.vlgmr.msra.gmra.mxu0 %v9177_v13  ;;  %4679 = vmatmul.f32.vlgmr.msra.gmra.mxu1 %v9177_v13 }
 0xf1f   :  { %4699 = vmatmul.f32.vlgmr.msra.gmra.mxu2 %v9177_v13  ;;  %4719 = vmatmul.f32.vlgmr.msra.gmra.mxu3 %v9177_v13 }
 0xf20   :  { %4982 = vmatpush.msra.mxu0 %v4977_v24 }
 0xf22   :  { %4983 = vmatpush.msra.mxu0 %v4976_v18 }
 0xf24   :  { %4984 = vmatpush.msra.mxu0 %v4975_v17 }
 0xf26   :  { %4985 = vmatpush.msra.mxu0 %v4974_v50 }
 0xf28   :  { %4986 = vmatpush.msra.mxu0 %v4973_v59 }
 0xf2a   :  { %4987 = vmatpush.msra.mxu0 %v4972_v55 }
 0xf2c   :  { %4988 = vmatpush.msra.mxu0 %v4971_v49 }
 0xf2e   :  { %4989 = vmatpush.msra.mxu0 %v4970_v30 }
 0xf30   :  { %4990 = vmatpush.msra.mxu0 %v4969_v56 }
 0xf32   :  { %4991 = vmatpush.msra.mxu0 %v4968_v51  ;;  %v10369_v51 = vld [vmem:[#allocation38_spill] sm:$0xff] }
 0xf34   :  { %4992 = vmatpush.msra.mxu0 %v4967_v19 }
 0xf36   :  { %4993 = vmatpush.msra.mxu0 %v4966_v29 }
 0xf38   :  { %4994 = vmatpush.msra.mxu0 %v4965_v40 }
 0xf3a   :  { %4995 = vmatpush.msra.mxu0 %v4964_v20 }
 0xf3c   :  { %4996 = vmatpush.msra.mxu0 %v4963_v63 }
 0xf3e   :  { %4997 = vmatpush.msra.mxu0 %v4962_v12 }
 0xf9b   :  { %v4660_v60 = vpop.f32.mrf.mxu0  ;;  %v4680_v34 = vpop.f32.mrf.mxu1 }
 0xf9c   :  { %v4723_v33 = vadd.f32 %v4660_v60, %v3457_v0  ;;  %v4724_v46 = vadd.f32 %v4680_v34, %v3498_v47 }
 0xf9e   :  { %v5172_v9 = vmul.f32 -1.442695, %v4723_v33  ;;  %v5173_v43 = vmul.f32 -1.442695, %v4724_v46 }
 0xfa0   :  { %5545 = vpow2.f32 %v5172_v9 }
 0xfa1   :  { %5547 = vpow2.f32 %v5173_v43 }
 0xfa2   :  { %v4720_v21 = vpop.f32.mrf.mxu3  ;;  %v4700_v48 = vpop.f32.mrf.mxu2 }
 0xfa3   :  { %v4726_v53 = vadd.f32 %v4720_v21, %v3580_v1  ;;  %v4725_v26 = vadd.f32 %v4700_v48, %v3539_v61  ;;  %v10368_v1 = vld [vmem:[#allocation73_spill] sm:$0xff]  ;;  %v10370_v21 = vld [vmem:[#allocation52_spill] sm:$0xff] }
 0xfa5   :  { %v5174_v2 = vmul.f32 -1.442695, %v4726_v53  ;;  %v10371_v53 = vld [vmem:[#allocation29_spill] sm:$0xff] }
 0xfa6   :  { %v5546_v36 = vpop.eup %5545  ;;  %v3460_v19 = vadd.f32 %v10371_v53, %v10355_v44 }
 0xfa7   :  { %v5548_v15 = vpop.eup %5547  ;;  %v4730_v10 = vadd.f32 1.0, %v5546_v36  ;;  %5549 = vpow2.f32 %v5174_v2  ;;  %v10372_v2 = vld [vmem:[#allocation61_spill] sm:$0xff] }
 0xfa8   :  { %v4749_v37 = vadd.f32 1.0, %v5548_v15  ;;  %v3501_v29 = vadd.f32 %v10372_v2, %v10357_v27 }
 0xfa9   :  { %5551 = vrcp.f32 %v4730_v10  ;;  %v4742_v54 = vand.u32 2147483648, %v4730_v10  ;;  %v4740_v4 = vand.u32 2147483647, %v4730_v10  ;;  %vm4736_vm11 = vweird.f32 %v4730_v10 }
 0xfaa   :  { %5553 = vrcp.f32 %v4749_v37  ;;  %v4761_v6 = vand.u32 2147483648, %v4749_v37  ;;  %v4759_v35 = vand.u32 2147483647, %v4749_v37  ;;  %vm4755_vm12 = vweird.f32 %v4749_v37 }
 0xfab   :  { %v4743_v38 = vor.u32 1.1754944e-38, %v4742_v54  ;;  %vm4741_vm15 = vcmp.eq.f32.partialorder %v4740_v4, 8.507059e+37 }
 0xfac   :  { %v4762_v18 = vor.u32 1.1754944e-38, %v4761_v6  ;;  %vm4760_vm0 = vcmp.eq.f32.partialorder %v4759_v35, 8.507059e+37 }
 0xfad   :  { %v5550_v7 = vpop.eup %5549 }
 0xfae   :  { %v4769_v45 = vadd.f32 1.0, %v5550_v7 }
 0xfaf   :  { %v5552_v62 = vpop.eup %5551 }
 0xfb0   :  { %v5554_v3 = vpop.eup %5553  ;;  %v4732_v11 = vmul.f32 %v5552_v62, %v4730_v10  ;;  %5555 = vrcp.f32 %v4769_v45  ;;  %vm4737_vm9 = vweird.f32 %v5552_v62  ;;  %v4781_v46 = vand.u32 2147483648, %v4769_v45 }
 0xfb1   :  { %v4751_v25 = vmul.f32 %v5554_v3, %v4749_v37  ;;  %5557 = vtanh.f32 %v4725_v26  ;;  %vm4756_vm10 = vweird.f32 %v5554_v3  ;;  %vm4738_vm13 = vmor %vm4736_vm11, %vm4737_vm9  ;;  %vm4775_vm2 = vweird.f32 %v4769_v45 }
 0xfb2   :  { %v4733_v41 = vsub.f32 1.0, %v4732_v11  ;;  %vm4757_vm14 = vmor %vm4755_vm12, %vm4756_vm10  ;;  %v4779_v49 = vand.u32 2147483647, %v4769_v45  ;;  %v4782_v43 = vor.u32 1.1754944e-38, %v4781_v46 }
 0xfb3   :  { %v4752_v5 = vsub.f32 1.0, %v4751_v25  ;;  %v10374_v25 = vld [vmem:[#allocation76_spill] sm:$0xff] }
 0xfb4   :  { %v4734_v52 = vmul.f32 %v5552_v62, %v4733_v41  ;;  %vm4780_vm4 = vcmp.eq.f32.partialorder %v4779_v49, 8.507059e+37  ;;  %v3542_v41 = vadd.f32 %v10374_v25, %v10361_v14 }
 0xfb5   :  { %v4753_v58 = vmul.f32 %v5554_v3, %v4752_v5 }
 0xfb6   :  { %v5556_v39 = vpop.eup %5555  ;;  %v4735_v28 = vadd.f32 %v5552_v62, %v4734_v52 }
 0xfb7   :  { %v4754_v16 = vadd.f32 %v5554_v3, %v4753_v58  ;;  %v4771_v24 = vmul.f32 %v5556_v39, %v4769_v45  ;;  %v5558_v50 = vpop.eup %5557  ;;  %vm4776_vm1 = vweird.f32 %v5556_v39 }
 0xfb8   :  { %v4739_v17 = vsel %vm4738_vm13, %v5552_v62, %v4735_v28  ;;  %vm4777_vm3 = vmor %vm4775_vm2, %vm4776_vm1 }
 0xfb9   :  { %v4744_v59 = vsel %vm4741_vm15, %v4743_v38, %v4739_v17  ;;  %v4758_v8 = vsel %vm4757_vm14, %v5554_v3, %v4754_v16  ;;  %v4772_v0 = vsub.f32 1.0, %v4771_v24 }
 0xfba   :  { %v4763_v22 = vsel %vm4760_vm0, %v4762_v18, %v4758_v8  ;;  %v4787_v47 = vmul.f32 %v5558_v50, %v4744_v59 }
 0xfbb   :  { %v4786_v60 = vmul.f32 %v4763_v22, %v9174_v23  ;;  %v4773_v34 = vmul.f32 %v5556_v39, %v4772_v0  ;;  %v10367_v23 = vld [vmem:[#allocation77_spill] sm:$0xff] }
 0xfbd   :  { %v9192_v55 = vadd.f32 %v4787_v47, %v4786_v60  ;;  %v4774_v33 = vadd.f32 %v5556_v39, %v4773_v34 }
 0xfbf   :  { %5559 = vtanh.f32 %v9192_v55  ;;  %v4778_v9 = vsel %vm4777_vm3, %v5556_v39, %v4774_v33 }
 0xfc0   :  { %v4783_v56 = vsel %vm4780_vm4, %v4782_v43, %v4778_v9 }
 0xfc5   :  { %v5560_v30 = vpop.eup %5559 }
 0xfc6   :  { %v4790_v57 = vmul.f32 %v5560_v30, %v4783_v56 }
 0xfc8   :  { %4818 = vmatmul.f32.vlgmr.msrb.gmra.mxu0 %v4790_v57  ;;  %4838 = vmatmul.f32.vlgmr.msrb.gmra.mxu1 %v4790_v57 }
 0xfc9   :  { %4858 = vmatmul.f32.vlgmr.msrb.gmra.mxu2 %v4790_v57  ;;  %4878 = vmatmul.f32.vlgmr.msrb.gmra.mxu3 %v4790_v57 }
 0xfd0   :  { %4998 = vmatmul.f32.vlgmr.msra.gmra.mxu0 %v10367_v23 }
 0xfd8   :  { %5001 = vmatmul.f32.gmra.mxu0 %v10368_v1 }
 0xfe0   :  { %5004 = vmatmul.f32.gmra.mxu0 %v10369_v51 }
 0xfe8   :  { %5007 = vmatmul.f32.gmra.mxu0 %v10370_v21 }
 0xff0   :  { %5010 = vmatmul.f32.gmra.mxu0 %v9095_v42  ;;  %v9208_v42 = vld [vmem:[%s9240_s11] ss:$0 sm:$0xff]  ;;  %s5958_s11 = smov [#allocation23]  }
 0xff1   :  { %s5035_s7 = sshll.u32 %s5958_s11, 4  ;;  %s5036_s7 = int_to_ptr.vmem [resolvable:$true] %s5035_s7 }
 0xff8   :  { %5013 = vmatmul.f32.gmra.mxu0 %v9177_v13  ;;  %v10373_v13 = vld [vmem:[#allocation54_spill] sm:$0xff] }
 0xff9   :  { %v3583_v63 = vadd.f32 %v10373_v13, %v10359_v31 }
0x1000   :  { %5016 = vmatmul.f32.gmra.mxu0 %v4790_v57 }
0x1045   :  { %v4819_v36 = vpop.f32.mrf.mxu0  ;;  %v4839_v15 = vpop.f32.mrf.mxu1 }
0x1046   :  { %v4882_v10 = vadd.f32 %v4819_v36, %v3460_v19  ;;  %v4883_v37 = vadd.f32 %v4839_v15, %v3501_v29 }
0x1048   :  { %v5175_v40 = vmul.f32 -1.442695, %v4882_v10  ;;  %v5176_v20 = vmul.f32 -1.442695, %v4883_v37 }
0x104a   :  { %5561 = vpow2.f32 %v5175_v40 }
0x104b   :  { %5563 = vpow2.f32 %v5176_v20 }
0x104c   :  { %v4879_v44 = vpop.f32.mrf.mxu3  ;;  %v4859_v3 = vpop.f32.mrf.mxu2 }
0x104d   :  { %v4885_v48 = vadd.f32 %v4879_v44, %v3583_v63  ;;  %v4999_v7 = vpop.f32.mrf.mxu0  ;;  %v4884_v6 = vadd.f32 %v4859_v3, %v3542_v41 }
0x104e   :  { %v5000_v27 = vadd.f32 %v9208_v42, %v4999_v7 }
0x104f   :  { %v5177_v32 = vmul.f32 -1.442695, %v4885_v48 }
0x1050   :  { %v5562_v61 = vpop.eup %5561  ;;  %5023 = vst [vmem:[#allocation23] sm:$0xff] %v5000_v27 }
0x1051   :  { %v5564_v12 = vpop.eup %5563  ;;  %v4889_v45 = vadd.f32 1.0, %v5562_v61  ;;  %5565 = vpow2.f32 %v5177_v32 }
0x1052   :  { %v4908_v62 = vadd.f32 1.0, %v5564_v12 }
0x1053   :  { %5567 = vrcp.f32 %v4889_v45  ;;  %v4899_v28 = vand.u32 2147483647, %v4889_v45  ;;  %v4901_v38 = vand.u32 2147483648, %v4889_v45  ;;  %vm4895_vm7 = vweird.f32 %v4889_v45 }
0x1054   :  { %5569 = vrcp.f32 %v4908_v62  ;;  %v4920_v24 = vand.u32 2147483648, %v4908_v62  ;;  %v4918_v50 = vand.u32 2147483647, %v4908_v62  ;;  %vm4914_vm8 = vweird.f32 %v4908_v62 }
0x1055   :  { %v5002_v26 = vpop.f32.mrf.mxu0  ;;  %v4902_v0 = vor.u32 1.1754944e-38, %v4901_v38  ;;  %vm4900_vm11 = vcmp.eq.f32.partialorder %v4899_v28, 8.507059e+37 }
0x1056   :  { %v5003_v11 = vadd.f32 %v9208_v42, %v5002_v26  ;;  %v4921_v60 = vor.u32 1.1754944e-38, %v4920_v24  ;;  %vm4919_vm12 = vcmp.eq.f32.partialorder %v4918_v50, 8.507059e+37 }
0x1057   :  { %v5566_v31 = vpop.eup %5565 }
0x1058   :  { %v4928_v5 = vadd.f32 1.0, %v5566_v31  ;;  %5024 = vst [vmem:[#allocation23 + $0x8] sm:$0xff] %v5003_v11 }
0x1059   :  { %v5568_v54 = vpop.eup %5567 }
0x105a   :  { %v5570_v52 = vpop.eup %5569  ;;  %v4891_v4 = vmul.f32 %v5568_v54, %v4889_v45  ;;  %5571 = vrcp.f32 %v4928_v5  ;;  %vm4896_vm5 = vweird.f32 %v5568_v54  ;;  %v4940_v53 = vand.u32 2147483648, %v4928_v5 }
0x105b   :  { %v4910_v58 = vmul.f32 %v5570_v52, %v4908_v62  ;;  %5573 = vtanh.f32 %v4884_v6  ;;  %vm4915_vm6 = vweird.f32 %v5570_v52  ;;  %vm4897_vm9 = vmor %vm4895_vm7, %vm4896_vm5  ;;  %vm4934_vm14 = vweird.f32 %v4928_v5 }
0x105c   :  { %v4892_v35 = vsub.f32 1.0, %v4891_v4  ;;  %vm4916_vm10 = vmor %vm4914_vm8, %vm4915_vm6  ;;  %v4938_v19 = vand.u32 2147483647, %v4928_v5  ;;  %v4941_v36 = vor.u32 1.1754944e-38, %v4940_v53 }
0x105d   :  { %v4911_v39 = vsub.f32 1.0, %v4910_v58  ;;  %v5005_v16 = vpop.f32.mrf.mxu0 }
0x105e   :  { %v4893_v18 = vmul.f32 %v5568_v54, %v4892_v35  ;;  %v5006_v17 = vadd.f32 %v9208_v42, %v5005_v16  ;;  %vm4939_vm0 = vcmp.eq.f32.partialorder %v4938_v19, 8.507059e+37 }
0x105f   :  { %v4912_v14 = vmul.f32 %v5570_v52, %v4911_v39 }
0x1060   :  { %v5572_v59 = vpop.eup %5571  ;;  %v4894_v8 = vadd.f32 %v5568_v54, %v4893_v18  ;;  %5025 = vst [vmem:[#allocation23 + $0x10] sm:$0xff] %v5006_v17 }
0x1061   :  { %v4913_v22 = vadd.f32 %v5570_v52, %v4912_v14  ;;  %v4930_v47 = vmul.f32 %v5572_v59, %v4928_v5  ;;  %v5574_v33 = vpop.eup %5573  ;;  %vm4935_vm13 = vweird.f32 %v5572_v59 }
0x1062   :  { %v4898_v34 = vsel %vm4897_vm9, %v5568_v54, %v4894_v8  ;;  %vm4936_vm15 = vmor %vm4934_vm14, %vm4935_vm13 }
0x1063   :  { %v4903_v46 = vsel %vm4900_vm11, %v4902_v0, %v4898_v34  ;;  %v4917_v49 = vsel %vm4916_vm10, %v5570_v52, %v4913_v22  ;;  %v4931_v9 = vsub.f32 1.0, %v4930_v47 }
0x1064   :  { %v4922_v43 = vsel %vm4919_vm12, %v4921_v60, %v4917_v49  ;;  %v4946_v30 = vmul.f32 %v5574_v33, %v4903_v46 }
0x1065   :  { %v4945_v56 = vmul.f32 %v4922_v43, %v9192_v55  ;;  %v5008_v57 = vpop.f32.mrf.mxu0  ;;  %v4932_v23 = vmul.f32 %v5572_v59, %v4931_v9 }
0x1066   :  { %v5009_v1 = vadd.f32 %v9208_v42, %v5008_v57 }
0x1067   :  { %v4947_v51 = vadd.f32 %v4946_v30, %v4945_v56  ;;  %v4933_v21 = vadd.f32 %v5572_v59, %v4932_v23 }
0x1068   :  { %5026 = vst [vmem:[#allocation23 + $0x18] sm:$0xff] %v5009_v1 }
0x1069   :  { %5575 = vtanh.f32 %v4947_v51  ;;  %v4937_v2 = vsel %vm4936_vm15, %v5572_v59, %v4933_v21 }
0x106a   :  { %v4942_v10 = vsel %vm4939_vm0, %v4941_v36, %v4937_v2 }
0x106d   :  { %v5011_v29 = vpop.f32.mrf.mxu0 }
0x106e   :  { %v5012_v15 = vadd.f32 %v9208_v42, %v5011_v29 }
0x106f   :  { %v5576_v55 = vpop.eup %5575 }
0x1070   :  { %5027 = vst [vmem:[#allocation23 + $0x20] sm:$0xff] %v5012_v15  ;;  %v4949_v37 = vmul.f32 %v5576_v55, %v4942_v10 }
0x1072   :  { %5019 = vmatmul.f32.gmra.mxu0 %v4949_v37 }
0x1075   :  { %v5014_v40 = vpop.f32.mrf.mxu0 }
0x1076   :  { %v5015_v20 = vadd.f32 %v9208_v42, %v5014_v40 }
0x1078   :  { %5028 = vst [vmem:[#allocation23 + $0x28] sm:$0xff] %v5015_v20 }
0x107d   :  { %v5017_v13 = vpop.f32.mrf.mxu0 }
0x107e   :  { %v5018_v63 = vadd.f32 %v9208_v42, %v5017_v13 }
0x1080   :  { %5029 = vst [vmem:[#allocation23 + $0x30] sm:$0xff] %v5018_v63 }
0x10ef   :  { %v5020_v44 = vpop.f32.mrf.mxu0 }
0x10f0   :  { %v5021_v48 = vadd.f32 %v9208_v42, %v5020_v44 }
0x10f2   :  { %5030 = vst [vmem:[#allocation23 + $0x38] sm:$0xff] %v5021_v48 }
0x10f3   :  { %5043 = dma.vmem_to_hbm [thread:$0]  %s5036_s7, 1024, %s5038_s19, [#allocation14], %s5955_s14, %s5955_s14, %s5956_s15  }
0x10f4   :  { %5945 = dma.done.wait [#allocation14], 1024  }
0x10f5   :  { %5946 = vsyncadd [#allocation14], 4294966272 }
0x10f6   :  { %5048 = vsyncpa [#allocation13], 1 }
0x10f7   :  { %5049 = vsyncpa [#allocation16], 1 }
0x10f8   :  { %5050 = vsyncpa [#allocation19], 1 }
0x10f9   :  { %5051 = vsyncpa [#allocation22], 1 }
0x10fa   :  { %5052 = vsyncpa [#allocation14], 1 }

</bundles_post_ra>
